<compile_context>
chip_gen: v7x
topology: tpu7x:2x2x1
jax: 0.10.0
libtpu: 0.0.40
codegen_flags: <defaults>
</compile_context>

<pallas_src>
import functools

import jax
import jax.numpy as jnp
from jax.experimental import pallas as pl
from jax.experimental.pallas import tpu as pltpu


_VMEM_LIMIT = 32 * 1024 * 1024        # safe on v5e/v6e (128 MiB) and v7x (64 MiB)
_WEIGHT_TILE_BYTES = 8 * 1024 * 1024  # max weight bytes per N tile (x2 buffers)


def _round_up(x, m):
    return (x + m - 1) // m * m


@functools.lru_cache(maxsize=1)
def _multi_tensorcore():
    """True on parts with 2 TensorCores per chip (v4 / v5p / v7x)."""
    try:
        kind = jax.devices()[0].device_kind.lower()
    except Exception:
        return False
    return any(tag in kind for tag in ("v7", "7x", "v4", "v5p"))


def _pick_tm(mp, candidates=(4096, 2048, 1024, 512, 256)):
    for t in candidates:
        if mp % t == 0 and mp >= t:
            return t
    return mp


def _pick_tn(k, n, itemsize, *, force_full=False, split_for_multicore=False):
    """Largest N tile that (a) keeps the weight tile <= 8 MiB and (b) on
    two-TC chips gives at least 2 tiles so both cores get work."""
    if force_full:
        return n
    if k * n * itemsize <= _WEIGHT_TILE_BYTES and not split_for_multicore:
        return n
    for t in (16384, 8192, 4096, 2048, 1536, 1024, 512, 256, 128):
        if n % t != 0:
            continue
        if split_for_multicore and n // t < 2:
            continue
        if k * t * itemsize > _WEIGHT_TILE_BYTES:
            continue
        return t
    return n


# --------------------------------------------------------------------------
# Pallas kernel 1: fused  out = post_LN_opt( act( LN_opt(A) @ W * scale + bias ) )
#   - W may be f32 / bf16 / int8 (int8 dequant scale folded into `scale`).
# --------------------------------------------------------------------------
def _make_mm_kernel(*, ln, post_ln, has_scale, has_bias, act, eps):
    def kernel(*refs):
        it = iter(refs)
        a_ref = next(it)
        if ln:
            g_ref = next(it)
            gb_ref = next(it)
        w_ref = next(it)
        if has_scale:
            s_ref = next(it)
        if has_bias:
            c_ref = next(it)
        if post_ln:
            pg_ref = next(it)
            pb_ref = next(it)
        o_ref = next(it)

        a = a_ref[...].astype(jnp.float32)
        if ln:  # LayerNorm over the (fully resident) K axis
            mu = jnp.mean(a, axis=-1, keepdims=True)
            a = a - mu
            var = jnp.mean(jnp.square(a), axis=-1, keepdims=True)
            a = a * jax.lax.rsqrt(var + eps)
            a = a * g_ref[...] + gb_ref[...]

        w = w_ref[...]
        if w.dtype == jnp.int8:
            w = w.astype(jnp.float32)       # dequant scale lives in `scale`
        if w.dtype == jnp.bfloat16:
            a = a.astype(jnp.bfloat16)
        y = jnp.dot(a, w, preferred_element_type=jnp.float32)

        if has_scale:
            y = y * s_ref[...]
        if has_bias:
            y = y + c_ref[...]
        if act == "relu":
            y = jnp.maximum(y, 0.0)
        if post_ln:                          # requires tn == N (full row resident)
            mu2 = jnp.mean(y, axis=-1, keepdims=True)
            yc = y - mu2
            var2 = jnp.mean(jnp.square(yc), axis=-1, keepdims=True)
            y = yc * jax.lax.rsqrt(var2 + eps) * pg_ref[...] + pb_ref[...]
        o_ref[...] = y.astype(o_ref.dtype)

    return kernel


def fused_matmul(x, w, *, ln_g=None, ln_b=None, scale=None, bias=None,
                 post_ln_g=None, post_ln_b=None, act="none", eps=1e-5):
    """x: (M, K) f32; w: (K, N) f32/bf16/int8; optional pre-LN / scale / bias /
    post-LN (post-LN forces a single N tile)."""
    M, K = x.shape
    K2, N = w.shape
    assert K == K2
    ln = ln_g is not None
    has_scale = scale is not None
    has_bias = bias is not None
    post_ln = post_ln_g is not None

    Mp = _round_up(M, 8)
    xp = x if Mp == M else jnp.pad(x, ((0, Mp - M), (0, 0)))
    tm = _pick_tm(Mp)
    tn = _pick_tn(K, N, w.dtype.itemsize, force_full=post_ln,
                  split_for_multicore=_multi_tensorcore())

    args = [xp]
    in_specs = [pl.BlockSpec((tm, K), lambda i, j: (i, 0))]
    if ln:
        args.append(ln_g.reshape(1, K).astype(jnp.float32))
        in_specs.append(pl.BlockSpec((1, K), lambda i, j: (0, 0)))
        args.append(ln_b.reshape(1, K).astype(jnp.float32))
        in_specs.append(pl.BlockSpec((1, K), lambda i, j: (0, 0)))
    args.append(w)
    in_specs.append(pl.BlockSpec((K, tn), lambda i, j: (0, j)))
    if has_scale:
        args.append(scale.reshape(1, N).astype(jnp.float32))
        in_specs.append(pl.BlockSpec((1, tn), lambda i, j: (0, j)))
    if has_bias:
        args.append(bias.reshape(1, N).astype(jnp.float32))
        in_specs.append(pl.BlockSpec((1, tn), lambda i, j: (0, j)))
    if post_ln:
        args.append(post_ln_g.reshape(1, N).astype(jnp.float32))
        in_specs.append(pl.BlockSpec((1, N), lambda i, j: (0, 0)))
        args.append(post_ln_b.reshape(1, N).astype(jnp.float32))
        in_specs.append(pl.BlockSpec((1, N), lambda i, j: (0, 0)))

    kernel = _make_mm_kernel(ln=ln, post_ln=post_ln, has_scale=has_scale,
                             has_bias=has_bias, act=act, eps=eps)
    out = pl.pallas_call(
        kernel,
        out_shape=jax.ShapeDtypeStruct((Mp, N), jnp.float32),
        grid_spec=pltpu.PrefetchScalarGridSpec(
            num_scalar_prefetch=0,
            grid=(Mp // tm, N // tn),
            in_specs=in_specs,
            out_specs=pl.BlockSpec((tm, tn), lambda i, j: (i, j)),
        ),
        compiler_params=pltpu.CompilerParams(
            dimension_semantics=("parallel", "parallel"),
            vmem_limit_bytes=_VMEM_LIMIT,
        ),
    )(*args)
    return out[:M]


# --------------------------------------------------------------------------
# Pallas kernel 2: lane-dense fused conv3x3(+BN+ReLU) + conv1x1
#   computes (Cmid, tm) / (Cout, tm) blocks -> pixels on lanes, dense stores.
# --------------------------------------------------------------------------
def _conv_fused_kernel(xt_ref, w1_ref, s_ref, c_ref, w2_ref, b2_ref, o_ref):
    # xt: (K, tm); w1: (Cmid, K); s,c: (Cmid,1); w2: (Cout, Cmid); b2: (Cout,1)
    y = jnp.dot(w1_ref[...], xt_ref[...], preferred_element_type=jnp.float32)
    y = jnp.maximum(y * s_ref[...] + c_ref[...], 0.0)          # BN (eval) + ReLU
    z = jnp.dot(w2_ref[...], y, preferred_element_type=jnp.float32) + b2_ref[...]
    o_ref[...] = z.astype(o_ref.dtype)


def conv3x3_bn_relu_then_1x1_nchw(x_nchw, wconv, bconv, gamma, beta, rmean, rvar,
                                  w1x1, b1x1, eps=1e-5):
    """x_nchw: (B,Cin,H,W); wconv: (Cmid,Cin,3,3) PyTorch layout; w1x1: (Cout,Cmid,1,1).
    Returns (B, Cout, H, W)."""
    B, Cin, H, W = x_nchw.shape
    Cmid = wconv.shape[0]
    Cout = w1x1.shape[0]

    xp = jnp.pad(x_nchw, ((0, 0), (0, 0), (1, 1), (1, 1)))
    xt = jnp.transpose(xp, (1, 0, 2, 3))                       # (Cin, B, H+2, W+2)
    # TODO(synk): do the 9-tap im2col inside the kernel (the padded input is
    # only ~1.8 MiB and fits VMEM-resident) to avoid this 9x-inflated HBM slab.
    cols = [xt[:, :, dh:dh + H, dw:dw + W].reshape(Cin, B * H * W)
            for dh in range(3) for dw in range(3)]
    Xt = jnp.concatenate(cols, axis=0)                         # (9*Cin, M), K=(dh,dw,cin)
    K = 9 * Cin
    M = B * H * W

    W1 = jnp.transpose(wconv, (0, 2, 3, 1)).reshape(Cmid, K).astype(jnp.float32)
    bn_s = gamma / jnp.sqrt(rvar + eps)
    s = bn_s.reshape(Cmid, 1).astype(jnp.float32)
    c = (beta + (bconv - rmean) * bn_s).reshape(Cmid, 1).astype(jnp.float32)
    W2 = w1x1.reshape(Cout, Cmid).astype(jnp.float32)
    b2 = b1x1.reshape(Cout, 1).astype(jnp.float32)

    Mp = _round_up(M, 128)
    Xtp = Xt if Mp == M else jnp.pad(Xt, ((0, 0), (0, Mp - M)))
    tm = _pick_tm(Mp, candidates=(8192, 4096, 2048, 1024, 512, 256, 128))

    out = pl.pallas_call(
        _conv_fused_kernel,
        out_shape=jax.ShapeDtypeStruct((Cout, Mp), jnp.float32),
        grid_spec=pltpu.PrefetchScalarGridSpec(
            num_scalar_prefetch=0,
            grid=(Mp // tm,),
            in_specs=[
                pl.BlockSpec((K, tm), lambda i: (0, i)),
                pl.BlockSpec((Cmid, K), lambda i: (0, 0)),
                pl.BlockSpec((Cmid, 1), lambda i: (0, 0)),
                pl.BlockSpec((Cmid, 1), lambda i: (0, 0)),
                pl.BlockSpec((Cout, Cmid), lambda i: (0, 0)),
                pl.BlockSpec((Cout, 1), lambda i: (0, 0)),
            ],
            out_specs=pl.BlockSpec((Cout, tm), lambda i: (0, i)),
        ),
        compiler_params=pltpu.CompilerParams(
            dimension_semantics=("parallel",),
            vmem_limit_bytes=_VMEM_LIMIT,
        ),
    )(Xtp, W1, s, c, W2, b2)
    out = out[:, :M].reshape(Cout, B, H, W)
    return jnp.transpose(out, (1, 0, 2, 3))                    # (B, Cout, H, W) NCHW


# --------------------------------------------------------------------------
# ViT (lucidrains-style, eval mode -> dropout is identity)
# --------------------------------------------------------------------------
def vit_forward(image_nchw, vp):
    B, C, H, W = image_nchw.shape
    p = vp["patch"]
    nh, nw = H // p, W // p
    n = nh * nw
    D = vp["dim"]
    heads = vp["heads"]
    dh = D // heads

    # 'b c (h p1) (w p2) -> b (h w) (p1 p2 c)'
    x = image_nchw.reshape(B, C, nh, p, nw, p)
    x = jnp.transpose(x, (0, 2, 4, 3, 5, 1)).reshape(B * n, p * p * C)

    # patch embedding: LN -> Linear -> LN, all in one fused matmul
    x = fused_matmul(x, vp["pe_w"], ln_g=vp["pe_ln1_g"], ln_b=vp["pe_ln1_b"],
                     bias=vp["pe_b"], post_ln_g=vp["pe_ln2_g"], post_ln_b=vp["pe_ln2_b"])
    x = x.reshape(B, n, D)

    cls = jnp.broadcast_to(vp["cls"], (B, 1, D))
    x = jnp.concatenate([cls, x], axis=1) + vp["pos"][:, : n + 1]
    seq = n + 1

    # TODO(synk): the attention core (split/softmax/context) and cross-call
    # weight-prefetch streaming are left to XLA; at seq=17 they are glue ops.
    for layer in vp["layers"]:
        # --- pre-norm multi-head attention + residual (LN fused into QKV) ---
        qkv = fused_matmul(x.reshape(B * seq, D), layer["wqkv"],
                           ln_g=layer["ln1_g"], ln_b=layer["ln1_b"])
        qkv = qkv.reshape(B, seq, 3, heads, dh)
        q = jnp.transpose(qkv[:, :, 0], (0, 2, 1, 3))
        k = jnp.transpose(qkv[:, :, 1], (0, 2, 1, 3))
        v = jnp.transpose(qkv[:, :, 2], (0, 2, 1, 3))
        scores = jnp.einsum("bhqd,bhkd->bhqk", q, k) * (dh ** -0.5)
        attn = jax.nn.softmax(scores, axis=-1)
        o = jnp.einsum("bhqk,bhkd->bhqd", attn, v)
        o = jnp.transpose(o, (0, 2, 1, 3)).reshape(B * seq, D)
        o = fused_matmul(o, layer["wo"], bias=layer["bo"])
        x = x + o.reshape(B, seq, D)

        # --- pre-norm feed-forward + residual (LN fused into first Linear) ---
        h1 = fused_matmul(x.reshape(B * seq, D), layer["w1"],
                          ln_g=layer["ln2_g"], ln_b=layer["ln2_b"],
                          bias=layer["b1"])
        h1 = jax.nn.gelu(h1, approximate=False)          # exact GELU (nn.GELU default)
        h2 = fused_matmul(h1, layer["w2"], bias=layer["b2"])
        x = x + h2.reshape(B, seq, D)

    # 'cls' pooling, then final LN fused into the int8 head matmul (LN is
    # per-token, so pool-then-LN == LN-then-pool).  head_scale carries the
    # per-column int8 dequant factor.
    cls_tok = x[:, 0]                                    # (B, D)
    out = fused_matmul(cls_tok, vp["head_w"], ln_g=vp["fin_ln_g"],
                       ln_b=vp["fin_ln_b"], scale=vp["head_scale"],
                       bias=vp["head_b"])
    return out                                           # (B, 128*128*conv_channels)


# --------------------------------------------------------------------------
# Encoder forward (encoder_mode == 'vit')
# --------------------------------------------------------------------------
def encoder_forward(image_nchw, message, params):
    B = image_nchw.shape[0]
    H, W = params["H"], params["W"]
    Cc = params["conv_channels"]

    sem = vit_forward(image_nchw, params["vit"])
    sem = sem.reshape(B, Cc, 128, 128)                   # NCHW, as in torch

    L = message.shape[1]
    msg = jnp.broadcast_to(message[:, :, None, None], (B, L, H, W))

    # NOTE: the PyTorch reference also computes `self.conv_layers(image)` but
    # discards the result; that dead compute is intentionally skipped here
    # (output-identical, saves two full image-space conv sweeps).

    concat = jnp.concatenate([msg, sem, image_nchw], axis=1)   # (B, L+Cc+3, H, W)
    imw = conv3x3_bn_relu_then_1x1_nchw(concat, *params["after_concat"],
                                        params["final_w"], params["final_b"])
    return imw                                           # NCHW (B, 3, H, W)


# --------------------------------------------------------------------------
# Deterministic synthetic parameters
# --------------------------------------------------------------------------
def init_params(key, *, H=128, W=128, conv_channels=2, encoder_blocks=2,
                message_length=8, decoder_blocks=4):
    dim, heads, mlp_dim, patch = 1024, 16, 2048, 32      # hard-coded in module
    depth = decoder_blocks // 2
    num_classes = 128 * 128 * conv_channels
    patch_dim = 3 * patch * patch
    keys = iter(jax.random.split(key, 128))

    def nrm(shape, s=0.02, dtype=jnp.float32):
        return (jax.random.normal(next(keys), shape, jnp.float32) * s).astype(dtype)

    def conv_bn(cin, cout):
        return (
            nrm((cout, cin, 3, 3)),            # conv weight (PyTorch layout)
            nrm((cout,)),                      # conv bias
            jnp.ones((cout,), jnp.float32),    # BN gamma
            jnp.zeros((cout,), jnp.float32),   # BN beta
            nrm((cout,), 0.01),                # BN running_mean
            jnp.ones((cout,), jnp.float32),    # BN running_var
        )

    bf16 = jnp.bfloat16  # large ViT weights in bf16 (weight-HBM-bound branch)
    vit = dict(dim=dim, heads=heads, patch=patch)
    vit["pe_ln1_g"] = jnp.ones((patch_dim,), jnp.float32)
    vit["pe_ln1_b"] = jnp.zeros((patch_dim,), jnp.float32)
    vit["pe_w"] = nrm((patch_dim, dim), dtype=bf16)
    vit["pe_b"] = jnp.zeros((dim,), jnp.float32)
    vit["pe_ln2_g"] = jnp.ones((dim,), jnp.float32)
    vit["pe_ln2_b"] = jnp.zeros((dim,), jnp.float32)
    vit["cls"] = nrm((1, 1, dim))
    n_patches = (H // patch) * (W // patch)
    vit["pos"] = nrm((1, n_patches + 1, dim))
    vit["layers"] = []
    for _ in range(depth):
        vit["layers"].append(dict(
            ln1_g=jnp.ones((dim,), jnp.float32), ln1_b=jnp.zeros((dim,), jnp.float32),
            wqkv=nrm((dim, 3 * dim), dtype=bf16),
            wo=nrm((dim, dim), dtype=bf16), bo=jnp.zeros((dim,), jnp.float32),
            ln2_g=jnp.ones((dim,), jnp.float32), ln2_b=jnp.zeros((dim,), jnp.float32),
            w1=nrm((dim, mlp_dim), dtype=bf16), b1=jnp.zeros((mlp_dim,), jnp.float32),
            w2=nrm((mlp_dim, dim), dtype=bf16), b2=jnp.zeros((dim,), jnp.float32),
        ))
    vit["fin_ln_g"] = jnp.ones((dim,), jnp.float32)
    vit["fin_ln_b"] = jnp.zeros((dim,), jnp.float32)

    # Head weight: per-column symmetric int8 quantization (dominant HBM stream).
    head_f32 = jax.random.normal(next(keys), (dim, num_classes), jnp.float32) * 0.02
    col_scale = jnp.maximum(jnp.max(jnp.abs(head_f32), axis=0), 1e-8) / 127.0
    vit["head_w"] = jnp.clip(jnp.round(head_f32 / col_scale), -127, 127).astype(jnp.int8)
    vit["head_scale"] = col_scale.astype(jnp.float32)
    vit["head_b"] = jnp.zeros((num_classes,), jnp.float32)

    params = dict(H=H, W=W, conv_channels=conv_channels, vit=vit)
    # Mirror the module's (unused-in-output) conv_layers parameters.
    conv_layers = [conv_bn(3, conv_channels)]
    for _ in range(encoder_blocks - 1):
        conv_layers.append(conv_bn(conv_channels, conv_channels))
    params["conv_layers"] = conv_layers
    params["after_concat"] = conv_bn(conv_channels + 3 + message_length, conv_channels)
    params["final_w"] = nrm((3, conv_channels, 1, 1))
    params["final_b"] = jnp.zeros((3,), jnp.float32)
    return params


if __name__ == "__main__":
    key = jax.random.PRNGKey(0)
    kimg, kmsg, kpar = jax.random.split(key, 3)

    # H = W = 128 is forced by the module (semantic map is reshaped to 128x128
    # and concatenated channel-wise with the image). Everything else kept small.
    B, H, W, L = 2, 128, 128, 8
    image = jax.random.uniform(kimg, (B, 3, H, W), jnp.float32)
    message = jax.random.bernoulli(kmsg, 0.5, (B, L)).astype(jnp.float32)

    params = init_params(kpar, H=H, W=W, conv_channels=2,
                         encoder_blocks=2, message_length=L, decoder_blocks=4)

    out = encoder_forward(image, message, params)
    out = jax.block_until_ready(out)
    assert out.shape == (B, 3, H, W) and out.dtype == jnp.float32
    print("KERNEL_OK")
</pallas_src>

<mosaic_0001>
module attributes {stable_mosaic.version = 11 : i64} {
  func.func @kernel(%arg0: i32, %arg1: i32, %arg2: memref<32x3072xf32, #tpu.memory_space<vmem>>, %arg3: memref<1x3072xf32, #tpu.memory_space<vmem>>, %arg4: memref<1x3072xf32, #tpu.memory_space<vmem>>, %arg5: memref<3072x1024xbf16, #tpu.memory_space<vmem>>, %arg6: memref<1x1024xf32, #tpu.memory_space<vmem>>, %arg7: memref<1x1024xf32, #tpu.memory_space<vmem>>, %arg8: memref<1x1024xf32, #tpu.memory_space<vmem>>, %arg9: memref<32x1024xf32, #tpu.memory_space<vmem>>) attributes {dimension_semantics = [#tpu.dimension_semantics<parallel>, #tpu.dimension_semantics<parallel>], iteration_bounds = array<i64: 1, 1>, scalar_prefetch = 0 : i64, scratch_operands = 0 : i64, tpu.core_type = #tpu.core_type<tc>, window_params = [{transform_indices = @transform_0, window_bounds = array<i64: 32, 3072>}, {pipeline_mode = #tpu.pipeline_mode<synchronous>, transform_indices = @transform_1, window_bounds = array<i64: 1, 3072>}, {pipeline_mode = #tpu.pipeline_mode<synchronous>, transform_indices = @transform_2, window_bounds = array<i64: 1, 3072>}, {transform_indices = @transform_3, window_bounds = array<i64: 3072, 1024>}, {transform_indices = @transform_4, window_bounds = array<i64: 1, 1024>}, {pipeline_mode = #tpu.pipeline_mode<synchronous>, transform_indices = @transform_5, window_bounds = array<i64: 1, 1024>}, {pipeline_mode = #tpu.pipeline_mode<synchronous>, transform_indices = @transform_6, window_bounds = array<i64: 1, 1024>}, {transform_indices = @transform_7, window_bounds = array<i64: 32, 1024>}]} {
    %c0 = arith.constant 0 : index
    %c0_0 = arith.constant 0 : index
    %0 = vector.load %arg2[%c0, %c0_0] : memref<32x3072xf32, #tpu.memory_space<vmem>>, vector<32x3072xf32>
    %cst = arith.constant dense<0.000000e+00> : vector<32xf32>
    %1 = vector.multi_reduction <add>, %0, %cst [1] : vector<32x3072xf32> to vector<32xf32>
    %2 = vector.shape_cast %1 : vector<32xf32> to vector<32x1xf32>
    %cst_1 = arith.constant 3.072000e+03 : f32
    %3 = vector.broadcast %cst_1 : f32 to vector<32x1xf32>
    %4 = arith.divf %2, %3 : vector<32x1xf32>
    %5 = vector.broadcast %4 : vector<32x1xf32> to vector<32x3072xf32>
    %6 = arith.subf %0, %5 : vector<32x3072xf32>
    %7 = arith.mulf %6, %6 : vector<32x3072xf32>
    %cst_2 = arith.constant dense<0.000000e+00> : vector<32xf32>
    %8 = vector.multi_reduction <add>, %7, %cst_2 [1] : vector<32x3072xf32> to vector<32xf32>
    %9 = vector.shape_cast %8 : vector<32xf32> to vector<32x1xf32>
    %cst_3 = arith.constant 3.072000e+03 : f32
    %10 = vector.broadcast %cst_3 : f32 to vector<32x1xf32>
    %11 = arith.divf %9, %10 : vector<32x1xf32>
    %cst_4 = arith.constant 9.99999974E-6 : f32
    %12 = vector.broadcast %cst_4 : f32 to vector<32x1xf32>
    %13 = arith.addf %11, %12 : vector<32x1xf32>
    %14 = math.rsqrt %13 : vector<32x1xf32>
    %15 = vector.broadcast %14 : vector<32x1xf32> to vector<32x3072xf32>
    %16 = arith.mulf %6, %15 : vector<32x3072xf32>
    %c0_5 = arith.constant 0 : index
    %c0_6 = arith.constant 0 : index
    %17 = vector.load %arg3[%c0_5, %c0_6] : memref<1x3072xf32, #tpu.memory_space<vmem>>, vector<1x3072xf32>
    %18 = vector.broadcast %17 : vector<1x3072xf32> to vector<32x3072xf32>
    %19 = arith.mulf %16, %18 : vector<32x3072xf32>
    %c0_7 = arith.constant 0 : index
    %c0_8 = arith.constant 0 : index
    %20 = vector.load %arg4[%c0_7, %c0_8] : memref<1x3072xf32, #tpu.memory_space<vmem>>, vector<1x3072xf32>
    %21 = vector.broadcast %20 : vector<1x3072xf32> to vector<32x3072xf32>
    %22 = arith.addf %19, %21 : vector<32x3072xf32>
    %c0_9 = arith.constant 0 : index
    %c0_10 = arith.constant 0 : index
    %23 = vector.load %arg5[%c0_9, %c0_10] : memref<3072x1024xbf16, #tpu.memory_space<vmem>>, vector<3072x1024xbf16>
    %24 = arith.truncf %22 : vector<32x3072xf32> to vector<32x3072xbf16>
    %cst_11 = arith.constant dense<0.000000e+00> : vector<32x1024xf32>
    %25 = tpu.matmul %24, %23, %cst_11 {dimension_numbers = #tpu.dot_dimension_numbers<[1], [0], [0], [1], [0, 0, 1, 1], [], []>} : vector<32x3072xbf16>, vector<3072x1024xbf16>, vector<32x1024xf32> -> vector<32x1024xf32>
    %c0_12 = arith.constant 0 : index
    %c0_13 = arith.constant 0 : index
    %26 = vector.load %arg6[%c0_12, %c0_13] : memref<1x1024xf32, #tpu.memory_space<vmem>>, vector<1x1024xf32>
    %27 = vector.broadcast %26 : vector<1x1024xf32> to vector<32x1024xf32>
    %28 = arith.addf %25, %27 : vector<32x1024xf32>
    %cst_14 = arith.constant dense<0.000000e+00> : vector<32xf32>
    %29 = vector.multi_reduction <add>, %28, %cst_14 [1] : vector<32x1024xf32> to vector<32xf32>
    %30 = vector.shape_cast %29 : vector<32xf32> to vector<32x1xf32>
    %cst_15 = arith.constant 1.024000e+03 : f32
    %31 = vector.broadcast %cst_15 : f32 to vector<32x1xf32>
    %32 = arith.divf %30, %31 : vector<32x1xf32>
    %33 = vector.broadcast %32 : vector<32x1xf32> to vector<32x1024xf32>
    %34 = arith.subf %28, %33 : vector<32x1024xf32>
    %35 = arith.mulf %34, %34 : vector<32x1024xf32>
    %cst_16 = arith.constant dense<0.000000e+00> : vector<32xf32>
    %36 = vector.multi_reduction <add>, %35, %cst_16 [1] : vector<32x1024xf32> to vector<32xf32>
    %37 = vector.shape_cast %36 : vector<32xf32> to vector<32x1xf32>
    %cst_17 = arith.constant 1.024000e+03 : f32
    %38 = vector.broadcast %cst_17 : f32 to vector<32x1xf32>
    %39 = arith.divf %37, %38 : vector<32x1xf32>
    %cst_18 = arith.constant 9.99999974E-6 : f32
    %40 = vector.broadcast %cst_18 : f32 to vector<32x1xf32>
    %41 = arith.addf %39, %40 : vector<32x1xf32>
    %42 = math.rsqrt %41 : vector<32x1xf32>
    %43 = vector.broadcast %42 : vector<32x1xf32> to vector<32x1024xf32>
    %44 = arith.mulf %34, %43 : vector<32x1024xf32>
    %c0_19 = arith.constant 0 : index
    %c0_20 = arith.constant 0 : index
    %45 = vector.load %arg7[%c0_19, %c0_20] : memref<1x1024xf32, #tpu.memory_space<vmem>>, vector<1x1024xf32>
    %46 = vector.broadcast %45 : vector<1x1024xf32> to vector<32x1024xf32>
    %47 = arith.mulf %44, %46 : vector<32x1024xf32>
    %c0_21 = arith.constant 0 : index
    %c0_22 = arith.constant 0 : index
    %48 = vector.load %arg8[%c0_21, %c0_22] : memref<1x1024xf32, #tpu.memory_space<vmem>>, vector<1x1024xf32>
    %49 = vector.broadcast %48 : vector<1x1024xf32> to vector<32x1024xf32>
    %50 = arith.addf %47, %49 : vector<32x1024xf32>
    %c0_23 = arith.constant 0 : index
    %c0_24 = arith.constant 0 : index
    %51 = vector.load %arg9[%c0_23, %c0_24] : memref<32x1024xf32, #tpu.memory_space<vmem>>, vector<32x1024xf32>
    tpu.vector_store %arg9[%c0_23, %c0_24], %50 {strides = array<i32>} : memref<32x1024xf32, #tpu.memory_space<vmem>>, vector<32x1024xf32>,
    return
  }
  func.func @transform_0(%arg0: i32, %arg1: i32) -> (i32, i32) {
    %c0_i32 = arith.constant 0 : i32
    %c0_i32_0 = arith.constant 0 : i32
    return %arg0, %c0_i32 : i32, i32
  }
  func.func @transform_1(%arg0: i32, %arg1: i32) -> (i32, i32) {
    %c0_i32 = arith.constant 0 : i32
    %c0_i32_0 = arith.constant 0 : i32
    %c0_i32_1 = arith.constant 0 : i32
    return %c0_i32, %c0_i32_0 : i32, i32
  }
  func.func @transform_2(%arg0: i32, %arg1: i32) -> (i32, i32) {
    %c0_i32 = arith.constant 0 : i32
    %c0_i32_0 = arith.constant 0 : i32
    %c0_i32_1 = arith.constant 0 : i32
    return %c0_i32, %c0_i32_0 : i32, i32
  }
  func.func @transform_3(%arg0: i32, %arg1: i32) -> (i32, i32) {
    %c0_i32 = arith.constant 0 : i32
    %c0_i32_0 = arith.constant 0 : i32
    return %c0_i32, %arg1 : i32, i32
  }
  func.func @transform_4(%arg0: i32, %arg1: i32) -> (i32, i32) {
    %c0_i32 = arith.constant 0 : i32
    %c0_i32_0 = arith.constant 0 : i32
    return %c0_i32, %arg1 : i32, i32
  }
  func.func @transform_5(%arg0: i32, %arg1: i32) -> (i32, i32) {
    %c0_i32 = arith.constant 0 : i32
    %c0_i32_0 = arith.constant 0 : i32
    %c0_i32_1 = arith.constant 0 : i32
    return %c0_i32, %c0_i32_0 : i32, i32
  }
  func.func @transform_6(%arg0: i32, %arg1: i32) -> (i32, i32) {
    %c0_i32 = arith.constant 0 : i32
    %c0_i32_0 = arith.constant 0 : i32
    %c0_i32_1 = arith.constant 0 : i32
    return %c0_i32, %c0_i32_0 : i32, i32
  }
  func.func @transform_7(%arg0: i32, %arg1: i32) -> (i32, i32) {
    %c0_i32 = arith.constant 0 : i32
    return %arg0, %arg1 : i32, i32
  }
}

</mosaic_0001>

<bundles_post_ra>
// kernel: tpu_custom_call.1
= control target key start
LH: loop header
LB: loop body
LE: loop exit
PB: predicated region body
PF: predicated region fallthrough
CT: control target
= control target key end

     0   :  { %12 = vsyncpa [#allocation3], 0  ;;  %s18245_s0 = inlined_call_operand.hbm [shape: f32[32,3072], index: 0, kind: input, shape index: {}]   ;;  %s18246_s1 = inlined_call_operand.hbm [shape: f32[1,3072], index: 1, kind: input, shape index: {}]   ;;  %s18247_s2 = inlined_call_operand.hbm [shape: f32[1,3072], index: 2, kind: input, shape index: {}]   ;;  %s18248_s3 = inlined_call_operand.hbm [shape: bf16[3072,1024], index: 3, kind: input, shape index: {}]   ;;  %s18249_s4 = inlined_call_operand.hbm [shape: f32[1,1024], index: 4, kind: input, shape index: {}]   ;;  %s18250_s5 = inlined_call_operand.hbm [shape: f32[1,1024], index: 5, kind: input, shape index: {}]   ;;  %s18251_s6 = inlined_call_operand.hbm [shape: f32[1,1024], index: 6, kind: input, shape index: {}]   ;;  %s18252_s7 = inlined_call_operand.hbm [shape: f32[32,1024], index: 7, kind: output, shape index: {}]  }
   0x1   :  { %13 = vsyncpa [#allocation6], 0 }
   0x2   :  { %14 = vsyncpa [#allocation9], 0 }
   0x3   :  { %15 = vsyncpa [#allocation12], 0 }
   0x4   :  { %16 = vsyncpa [#allocation4], 0  ;;  %s15532_s24 = smov [#allocation5]   ;;  %s15533_s26 = smov [#allocation8]  }
   0x5   :  { %s35_s25 = sshll.u32 %s15532_s24, 4  ;;  %s54_s27 = sshll.u32 %s15533_s26, 4  ;;  %s36_s25 = int_to_ptr.vmem [resolvable:$true] %s35_s25  ;;  %s15586_s27 = int_to_ptr.vmem [resolvable:$true] %s54_s27 }
   0x6   :  { %s15346_s30 = scalar_lea.hbm %s18246_s1, 384 }
   0x7   :  { %p15347_p0 = scmp.ne.s32.totalorder %s18246_s1, %s15346_s30  ;;  %p15350_p1 = scmp.lt.u32.totalorder %s15346_s30, %s18246_s1 }
   0x9   :  { %p15352_p2 = pnand %p15350_p1, %p15347_p0 }
   0xb   :  { %15355 = shalt.err (!%p15352_p2)
}
   0xc   :  { %s15356_s12 = scalar_lea.vmem %s36_s25, 384  ;;  %p15361_p4 = scmp.lt.s32.totalorder %s36_s25, %s36_s25 }
   0xd   :  { %p15357_p3 = scmp.ne.s32.totalorder %s36_s25, %s15356_s12  ;;  %p15362_p5 = scmp.lt.s32.totalorder %s15356_s12, %s15356_s12 }
   0xf   :  { %p15363_p6 = por %p15362_p5, %p15361_p4 }
  0x11   :  { %p15364_p7 = pnand %p15363_p6, %p15357_p3 }
  0x13   :  { %15367 = shalt.err (!%p15364_p7)
}
  0x14   :  { %38 = dma.hbm_to_vmem [thread:$0]  %s18246_s1, 384, %s36_s25, [#allocation6]  }
  0x15   :  { %s15368_s17 = scalar_lea.hbm %s18248_s3, 196608 }
  0x16   :  { %p15369_p8 = scmp.ne.s32.totalorder %s18248_s3, %s15368_s17  ;;  %p15372_p9 = scmp.lt.u32.totalorder %s15368_s17, %s18248_s3 }
  0x18   :  { %p15374_p10 = pnand %p15372_p9, %p15369_p8 }
  0x1a   :  { %15377 = shalt.err (!%p15374_p10)
}
  0x1b   :  { %s15378_s22 = scalar_lea.vmem %s15586_s27, 196608  ;;  %p15383_p12 = scmp.lt.s32.totalorder %s15586_s27, %s15586_s27 }
  0x1c   :  { %p15379_p11 = scmp.ne.s32.totalorder %s15586_s27, %s15378_s22  ;;  %p15384_p13 = scmp.lt.s32.totalorder %s15378_s22, %s15378_s22 }
  0x1e   :  { %p15385_p0 = por %p15384_p13, %p15383_p12 }
  0x20   :  { %p15386_p1 = pnand %p15385_p0, %p15379_p11 }
  0x22   :  { %15389 = shalt.err (!%p15386_p1)
}
  0x23   :  { %s15534_s1 = smov 512   ;;  %s15535_s23 = smov 32  }
  0x24   :  { %60 = dma.hbm_to_vmem [thread:$0]  %s18248_s3, 196608, %s15586_s27, [#allocation9], %s15534_s1, %s15534_s1, %s15535_s23  }
  0x25   :  { %s15536_s26 = smov [#allocation11]   ;;  %s15537_s29 = smov [#allocation2]  }
  0x26   :  { %s77_s28 = sshll.u32 %s15536_s26, 4  ;;  %s22_s30 = sshll.u32 %s15537_s29, 4  ;;  %s78_s28 = int_to_ptr.vmem [resolvable:$true] %s77_s28  ;;  %s15617_s30 = int_to_ptr.vmem [resolvable:$true] %s22_s30 }
  0x27   :  { %s15390_s10 = scalar_lea.hbm %s18250_s5, 128 }
  0x28   :  { %p15391_p2 = scmp.ne.s32.totalorder %s18250_s5, %s15390_s10  ;;  %p15394_p3 = scmp.lt.u32.totalorder %s15390_s10, %s18250_s5 }
  0x2a   :  { %p15396_p4 = pnand %p15394_p3, %p15391_p2 }
  0x2c   :  { %15399 = shalt.err (!%p15396_p4)
}
  0x2d   :  { %s15400_s3 = scalar_lea.vmem %s78_s28, 128  ;;  %p15405_p6 = scmp.lt.s32.totalorder %s78_s28, %s78_s28 }
  0x2e   :  { %p15401_p5 = scmp.ne.s32.totalorder %s78_s28, %s15400_s3  ;;  %p15406_p7 = scmp.lt.s32.totalorder %s15400_s3, %s15400_s3 }
  0x30   :  { %p15407_p8 = por %p15406_p7, %p15405_p6 }
  0x32   :  { %p15408_p9 = pnand %p15407_p8, %p15401_p5 }
  0x34   :  { %15411 = shalt.err (!%p15408_p9)
}
  0x35   :  { %80 = dma.hbm_to_vmem [thread:$0]  %s18250_s5, 128, %s78_s28, [#allocation12]  }
  0x36   :  { %s15412_s18 = scalar_lea.hbm %s18245_s0, 12288 }
  0x37   :  { %p15413_p10 = scmp.ne.s32.totalorder %s18245_s0, %s15412_s18  ;;  %p15416_p11 = scmp.lt.u32.totalorder %s15412_s18, %s18245_s0 }
  0x39   :  { %p15418_p12 = pnand %p15416_p11, %p15413_p10 }
  0x3b   :  { %15421 = shalt.err (!%p15418_p12)
}
  0x3c   :  { %s15422_s1 = scalar_lea.vmem %s15617_s30, 12288  ;;  %p15427_p0 = scmp.lt.s32.totalorder %s15617_s30, %s15617_s30 }
  0x3d   :  { %p15423_p13 = scmp.ne.s32.totalorder %s15617_s30, %s15422_s1  ;;  %p15428_p1 = scmp.lt.s32.totalorder %s15422_s1, %s15422_s1 }
  0x3f   :  { %p15429_p2 = por %p15428_p1, %p15427_p0 }
  0x41   :  { %p15430_p3 = pnand %p15429_p2, %p15423_p13 }
  0x43   :  { %15433 = shalt.err (!%p15430_p3)
}
  0x44   :  { %s15538_s5 = smov 3072   ;;  %s15539_s23 = smov 192  }
  0x45   :  { %28 = dma.hbm_to_vmem [thread:$0]  %s18245_s0, 12288, %s15617_s30, [#allocation3], %s15538_s5, %s15538_s5, %s15539_s23  }
  0x46   :  { %s15540_s26 = smov [#allocation7]   ;;  %s15541_s29 = smov [#allocation10]  }
  0x47   :  { %s45_s28 = sshll.u32 %s15540_s26, 4  ;;  %s67_s8 = sshll.u32 %s15541_s29, 4  ;;  %s46_s28 = int_to_ptr.vmem [resolvable:$true] %s45_s28  ;;  %s68_s8 = int_to_ptr.vmem [resolvable:$true] %s67_s8 }
  0x48   :  { %s15434_s11 = scalar_lea.hbm %s18247_s2, 384 }
  0x49   :  { %p15435_p4 = scmp.ne.s32.totalorder %s18247_s2, %s15434_s11  ;;  %p15438_p5 = scmp.lt.u32.totalorder %s15434_s11, %s18247_s2 }
  0x4b   :  { %p15440_p6 = pnand %p15438_p5, %p15435_p4 }
  0x4d   :  { %15443 = shalt.err (!%p15440_p6)
}
  0x4e   :  { %s15444_s0 = scalar_lea.vmem %s46_s28, 384  ;;  %p15449_p8 = scmp.lt.s32.totalorder %s46_s28, %s46_s28 }
  0x4f   :  { %p15445_p7 = scmp.ne.s32.totalorder %s46_s28, %s15444_s0  ;;  %p15450_p9 = scmp.lt.s32.totalorder %s15444_s0, %s15444_s0 }
  0x51   :  { %p15451_p10 = por %p15450_p9, %p15449_p8 }
  0x53   :  { %p15452_p11 = pnand %p15451_p10, %p15445_p7 }
  0x55   :  { %15455 = shalt.err (!%p15452_p11)
}
  0x56   :  { %48 = dma.hbm_to_vmem [thread:$0]  %s18247_s2, 384, %s46_s28, [#allocation6]  }
  0x57   :  { %s15456_s17 = scalar_lea.hbm %s18249_s4, 128 }
  0x58   :  { %p15457_p12 = scmp.ne.s32.totalorder %s18249_s4, %s15456_s17  ;;  %p15460_p13 = scmp.lt.u32.totalorder %s15456_s17, %s18249_s4 }
  0x5a   :  { %p15462_p0 = pnand %p15460_p13, %p15457_p12 }
  0x5c   :  { %15465 = shalt.err (!%p15462_p0)
}
  0x5d   :  { %s15466_s22 = scalar_lea.vmem %s68_s8, 128  ;;  %p15471_p2 = scmp.lt.s32.totalorder %s68_s8, %s68_s8 }
  0x5e   :  { %p15467_p1 = scmp.ne.s32.totalorder %s68_s8, %s15466_s22  ;;  %p15472_p3 = scmp.lt.s32.totalorder %s15466_s22, %s15466_s22 }
  0x60   :  { %p15473_p4 = por %p15472_p3, %p15471_p2 }
  0x62   :  { %p15474_p5 = pnand %p15473_p4, %p15467_p1 }
  0x64   :  { %15477 = shalt.err (!%p15474_p5)
}
  0x65   :  { %70 = dma.hbm_to_vmem [thread:$0]  %s18249_s4, 128, %s68_s8, [#allocation9]  }
  0x66   :  { %s15542_s5 = smov [#allocation13]   ;;  %s15478_s26 = scalar_lea.hbm %s18251_s6, 128 }
  0x67   :  { %s87_s23 = sshll.u32 %s15542_s5, 4  ;;  %p15479_p6 = scmp.ne.s32.totalorder %s18251_s6, %s15478_s26  ;;  %s88_s23 = int_to_ptr.vmem [resolvable:$true] %s87_s23 }
  0x68   :  { %p15482_p7 = scmp.lt.u32.totalorder %s15478_s26, %s18251_s6 }
  0x6a   :  { %p15484_p8 = pnand %p15482_p7, %p15479_p6 }
  0x6c   :  { %15487 = shalt.err (!%p15484_p8)
}
  0x6d   :  { %s15488_s11 = scalar_lea.vmem %s88_s23, 128  ;;  %p15493_p10 = scmp.lt.s32.totalorder %s88_s23, %s88_s23 }
  0x6e   :  { %p15489_p9 = scmp.ne.s32.totalorder %s88_s23, %s15488_s11  ;;  %p15494_p11 = scmp.lt.s32.totalorder %s15488_s11, %s15488_s11 }
  0x70   :  { %p15495_p12 = por %p15494_p11, %p15493_p10 }
  0x72   :  { %p15496_p13 = pnand %p15495_p12, %p15489_p9 }
  0x74   :  { %15499 = shalt.err (!%p15496_p13)
}
  0x75   :  { %90 = dma.hbm_to_vmem [thread:$0]  %s18251_s6, 128, %s88_s23, [#allocation12]  }
  0x76   :  { %15522 = dma.done.wait [#allocation3], 12288  }
  0x77   :  { %15523 = vsyncadd [#allocation3], 4294955008 }
  0x78   :  { %15524 = dma.done.wait [#allocation6], 768  }
  0x79   :  { %15525 = vsyncadd [#allocation6], 4294966528 }
  0x7a   :  { %15526 = dma.done.wait [#allocation9], 196736  }
  0x7b   :  { %15527 = vsyncadd [#allocation9], 4294770560 }
  0x7c   :  { %15528 = dma.done.wait [#allocation12], 256  }
  0x7d   :  { %15529 = vsyncadd [#allocation12], 4294967040  ;;  %v15684_v0 = vld [vmem:[#allocation2] sm:$0xff]  ;;  %v15686_v1 = vld [vmem:[#allocation2 + $0x8] sm:$0xff]  ;;  %s15543_s6 = smov [#allocation14]  }
  0x7e   :  { %v15688_v2 = vld [vmem:[#allocation2 + $0x10] sm:$0xff]  ;;  %v208_v3 = vadd.f32 %v15686_v1, %v15684_v0  ;;  %v15692_v4 = vld [vmem:[#allocation2 + $0x18] sm:$0xff]  ;;  %v15695_v6 = vld [vmem:[#allocation2 + $0x20] sm:$0xff]  ;;  %s13377_s12 = sshll.u32 %s15543_s6, 4  ;;  %s13378_s12 = int_to_ptr.vmem [resolvable:$true] %s13377_s12 }
  0x7f   :  { %v15698_v8 = vld [vmem:[#allocation2 + $0x28] sm:$0xff]  ;;  %v15700_v9 = vld [vmem:[#allocation2 + $0x30] sm:$0xff]  ;;  %v15703_v11 = vld [vmem:[#allocation2 + $0x180] sm:$0xff]  ;;  %s15500_s13 = scalar_lea.vmem %s13378_s12, 4096  ;;  %p15505_p1 = scmp.lt.s32.totalorder %s13378_s12, %s13378_s12 }
  0x80   :  { %v209_v5 = vadd.f32 %v208_v3, %v15688_v2  ;;  %v15705_v12 = vld [vmem:[#allocation2 + $0x188] sm:$0xff]  ;;  %v15707_v13 = vld [vmem:[#allocation2 + $0x190] sm:$0xff]  ;;  %v15712_v16 = vld [vmem:[#allocation2 + $0x38] sm:$0xff]  ;;  %p15501_p0 = scmp.ne.s32.totalorder %s13378_s12, %s15500_s13  ;;  %p15506_p2 = scmp.lt.s32.totalorder %s15500_s13, %s15500_s13 }
  0x81   :  { %v258_v15 = vadd.f32 %v15705_v12, %v15703_v11  ;;  %v15714_v17 = vld [vmem:[#allocation2 + $0x198] sm:$0xff]  ;;  %v15718_v20 = vld [vmem:[#allocation2 + $0x40] sm:$0xff]  ;;  %v15724_v24 = vld [vmem:[#allocation2 + $0x48] sm:$0xff] }
  0x82   :  { %v210_v7 = vadd.f32 %v209_v5, %v15692_v4  ;;  %v15720_v21 = vld [vmem:[#allocation2 + $0x1a0] sm:$0xff]  ;;  %v15726_v25 = vld [vmem:[#allocation2 + $0x1a8] sm:$0xff]  ;;  %v15728_v26 = vld [vmem:[#allocation2 + $0x50] sm:$0xff]  ;;  %p15507_p3 = por %p15506_p2, %p15505_p1 }
  0x83   :  { %v259_v19 = vadd.f32 %v258_v15, %v15707_v13  ;;  %v15731_v28 = vld [vmem:[#allocation2 + $0x1b0] sm:$0xff]  ;;  %v15734_v30 = vld [vmem:[#allocation2 + $0xc0] sm:$0xff]  ;;  %v15736_v31 = vld [vmem:[#allocation2 + $0xc8] sm:$0xff] }
  0x84   :  { %v211_v10 = vadd.f32 %v210_v7, %v15695_v6  ;;  %v15738_v32 = vld [vmem:[#allocation2 + $0xd0] sm:$0xff]  ;;  %v233_v35 = vadd.f32 %v15736_v31, %v15734_v30  ;;  %v15744_v36 = vld [vmem:[#allocation2 + $0x58] sm:$0xff]  ;;  %v15753_v42 = vld [vmem:[#allocation2 + $0x60] sm:$0xff]  ;;  %p15508_p4 = pnand %p15507_p3, %p15501_p0 }
  0x85   :  { %v260_v23 = vadd.f32 %v259_v19, %v15714_v17  ;;  %v15746_v37 = vld [vmem:[#allocation2 + $0x1b8] sm:$0xff]  ;;  %v15755_v43 = vld [vmem:[#allocation2 + $0x1c0] sm:$0xff]  ;;  %v15762_v48 = vld [vmem:[#allocation2 + $0x68] sm:$0xff] }
  0x86   :  { %v212_v14 = vadd.f32 %v211_v10, %v15698_v8  ;;  %v15748_v38 = vld [vmem:[#allocation2 + $0xd8] sm:$0xff]  ;;  %v234_v41 = vadd.f32 %v233_v35, %v15738_v32  ;;  %v15757_v44 = vld [vmem:[#allocation2 + $0xe0] sm:$0xff]  ;;  %v15764_v49 = vld [vmem:[#allocation2 + $0x1c8] sm:$0xff] }
  0x87   :  { %v261_v29 = vadd.f32 %v260_v23, %v15720_v21  ;;  %18445 = vst [vmem:[#allocation20_spill] sm:$0xff] %v15748_v38  ;;  %18446 = vst [vmem:[#allocation21_spill] sm:$0xff] %v15757_v44  ;;  %v15766_v50 = vld [vmem:[#allocation2 + $0xe8] sm:$0xff]  ;;  %v15768_v51 = vld [vmem:[#allocation2 + $0x70] sm:$0xff] }
  0x88   :  { %v213_v18 = vadd.f32 %v212_v14, %v15700_v9  ;;  %v235_v47 = vadd.f32 %v234_v41, %v15748_v38  ;;  %18447 = vst [vmem:[#allocation22_spill] sm:$0xff] %v15766_v50  ;;  %v15771_v53 = vld [vmem:[#allocation2 + $0x1d0] sm:$0xff]  ;;  %v15777_v57 = vld [vmem:[#allocation2 + $0x240] sm:$0xff]  ;;  %v15779_v58 = vld [vmem:[#allocation2 + $0x248] sm:$0xff] }
  0x89   :  { %v262_v34 = vadd.f32 %v261_v29, %v15726_v25  ;;  %v15774_v55 = vld [vmem:[#allocation2 + $0xf0] sm:$0xff]  ;;  %18449 = vst [vmem:[#allocation24_spill] sm:$0xff] %v15777_v57  ;;  %18450 = vst [vmem:[#allocation25_spill] sm:$0xff] %v15779_v58  ;;  %v15783_v60 = vld [vmem:[#allocation2 + $0x78] sm:$0xff]  ;;  %v283_v3 = vadd.f32 %v15779_v58, %v15777_v57 }
  0x8a   :  { %v214_v22 = vadd.f32 %v213_v18, %v15712_v16  ;;  %18448 = vst [vmem:[#allocation23_spill] sm:$0xff] %v15774_v55  ;;  %v236_v56 = vadd.f32 %v235_v47, %v15757_v44  ;;  %v15781_v59 = vld [vmem:[#allocation2 + $0x250] sm:$0xff]  ;;  %v15790_v5 = vld [vmem:[#allocation2 + $0x1d8] sm:$0xff]  ;;  %v15796_v14 = vld [vmem:[#allocation2 + $0x80] sm:$0xff] }
  0x8b   :  { %v263_v40 = vadd.f32 %v262_v34, %v15731_v28  ;;  %18451 = vst [vmem:[#allocation26_spill] sm:$0xff] %v15781_v59  ;;  %v15792_v7 = vld [vmem:[#allocation2 + $0xf8] sm:$0xff]  ;;  %v15802_v23 = vld [vmem:[#allocation2 + $0x1e0] sm:$0xff]  ;;  %v15814_v41 = vld [vmem:[#allocation2 + $0x1e8] sm:$0xff] }
  0x8c   :  { %v215_v27 = vadd.f32 %v214_v22, %v15718_v20  ;;  %v237_v63 = vadd.f32 %v236_v56, %v15766_v50  ;;  %18452 = vst [vmem:[#allocation27_spill] sm:$0xff] %v15792_v7  ;;  %v15794_v10 = vld [vmem:[#allocation2 + $0x258] sm:$0xff]  ;;  %v284_v22 = vadd.f32 %v283_v3, %v15781_v59  ;;  %v15806_v29 = vld [vmem:[#allocation2 + $0x260] sm:$0xff]  ;;  %18456 = vst [vmem:[#allocation31_spill] sm:$0xff] %v15814_v41 }
  0x8d   :  { %v264_v46 = vadd.f32 %v263_v40, %v15746_v37  ;;  %18453 = vst [vmem:[#allocation28_spill] sm:$0xff] %v15794_v10  ;;  %18455 = vst [vmem:[#allocation30_spill] sm:$0xff] %v15806_v29  ;;  %v15820_v47 = vld [vmem:[#allocation2 + $0x90] sm:$0xff]  ;;  %v15850_v58 = vld [vmem:[#allocation2 + $0x200] sm:$0xff] }
  0x8e   :  { %v216_v33 = vadd.f32 %v215_v27, %v15724_v24  ;;  %v238_v19 = vadd.f32 %v237_v63, %v15774_v55  ;;  %v15804_v27 = vld [vmem:[#allocation2 + $0x100] sm:$0xff]  ;;  %v285_v40 = vadd.f32 %v284_v22, %v15794_v10  ;;  %v15828_v63 = vld [vmem:[#allocation2 + $0x110] sm:$0xff]  ;;  %18465 = vst [vmem:[#allocation40_spill] sm:$0xff] %v15850_v58 }
  0x8f   :  { %v265_v54 = vadd.f32 %v264_v46, %v15755_v43  ;;  %18454 = vst [vmem:[#allocation29_spill] sm:$0xff] %v15804_v27  ;;  %v15818_v46 = vld [vmem:[#allocation2 + $0x268] sm:$0xff]  ;;  %18460 = vst [vmem:[#allocation35_spill] sm:$0xff] %v15828_v63  ;;  %v15830_v3 = vld [vmem:[#allocation2 + $0x270] sm:$0xff] }
  0x90   :  { %v217_v39 = vadd.f32 %v216_v33, %v15728_v26  ;;  %v15808_v33 = vld [vmem:[#allocation2 + $0x88] sm:$0xff]  ;;  %18458 = vst [vmem:[#allocation33_spill] sm:$0xff] %v15818_v46  ;;  %18461 = vst [vmem:[#allocation36_spill] sm:$0xff] %v15830_v3  ;;  %v15874_v55 = vld [vmem:[#allocation2 + $0x210] sm:$0xff] }
  0x91   :  { %v266_v62 = vadd.f32 %v265_v54, %v15764_v49  ;;  %18471 = vst [vmem:[#allocation46_spill] sm:$0xff] %v15874_v55 }
  0x92   :  { %v218_v45 = vadd.f32 %v217_v39, %v15744_v36  ;;  %v239_v39 = vadd.f32 %v238_v19, %v15792_v7 }
  0x93   :  { %v267_v18 = vadd.f32 %v266_v62, %v15771_v53  ;;  %v15826_v62 = vld [vmem:[#allocation2 + $0x1f0] sm:$0xff] }
  0x94   :  { %v219_v52 = vadd.f32 %v218_v45, %v15753_v42  ;;  %v15816_v45 = vld [vmem:[#allocation2 + $0x108] sm:$0xff]  ;;  %v240_v56 = vadd.f32 %v239_v39, %v15804_v27  ;;  %18459 = vst [vmem:[#allocation34_spill] sm:$0xff] %v15826_v62  ;;  %v15840_v39 = vld [vmem:[#allocation2 + $0x118] sm:$0xff] }
  0x95   :  { %v268_v35 = vadd.f32 %v267_v18, %v15790_v5  ;;  %18457 = vst [vmem:[#allocation32_spill] sm:$0xff] %v15816_v45  ;;  %18463 = vst [vmem:[#allocation38_spill] sm:$0xff] %v15840_v39  ;;  %v15862_v27 = vld [vmem:[#allocation2 + $0x208] sm:$0xff] }
  0x96   :  { %v220_v61 = vadd.f32 %v219_v52, %v15762_v48  ;;  %v241_v22 = vadd.f32 %v240_v56, %v15816_v45  ;;  %v15852_v56 = vld [vmem:[#allocation2 + $0x120] sm:$0xff]  ;;  %18468 = vst [vmem:[#allocation43_spill] sm:$0xff] %v15862_v27 }
  0x97   :  { %v269_v54 = vadd.f32 %v268_v35, %v15802_v23  ;;  %v15838_v35 = vld [vmem:[#allocation2 + $0x1f8] sm:$0xff]  ;;  %18466 = vst [vmem:[#allocation41_spill] sm:$0xff] %v15852_v56 }
  0x98   :  { %v221_v15 = vadd.f32 %v220_v61, %v15768_v51  ;;  %v286_v61 = vadd.f32 %v285_v40, %v15806_v29  ;;  %18462 = vst [vmem:[#allocation37_spill] sm:$0xff] %v15838_v35  ;;  %v15842_v40 = vld [vmem:[#allocation2 + $0x278] sm:$0xff]  ;;  %v15844_v29 = vld [vmem:[#allocation2 + $0xa0] sm:$0xff] }
  0x99   :  { %v270_v19 = vadd.f32 %v269_v54, %v15814_v41  ;;  %18464 = vst [vmem:[#allocation39_spill] sm:$0xff] %v15842_v40 }
  0x9a   :  { %v222_v34 = vadd.f32 %v221_v15, %v15783_v60  ;;  %v15832_v15 = vld [vmem:[#allocation2 + $0x98] sm:$0xff] }
  0x9b   :  { %v271_v59 = vadd.f32 %v270_v19, %v15826_v62  ;;  %v1186_v62 = vld [vmem:[#allocation8 + $0xe8] sm:$0xff] }
  0x9c   :  { %v223_v52 = vadd.f32 %v222_v34, %v15796_v14  ;;  %v287_v34 = vadd.f32 %v286_v61, %v15818_v46  ;;  %v15854_v61 = vld [vmem:[#allocation2 + $0x280] sm:$0xff]  ;;  %v15856_v46 = vld [vmem:[#allocation2 + $0xa8] sm:$0xff] }
  0x9d   :  { %18467 = vst [vmem:[#allocation42_spill] sm:$0xff] %v15854_v61  ;;  %v272_v45 = vadd.f32 %v271_v59, %v15838_v35  ;;  %v15896_v35 = vld [vmem:[#allocation2 + $0x220] sm:$0xff] }
  0x9e   :  { %v224_v18 = vadd.f32 %v223_v52, %v15808_v33  ;;  %v242_v52 = vadd.f32 %v241_v22, %v15828_v63  ;;  %v288_v54 = vadd.f32 %v287_v34, %v15830_v3  ;;  %v15864_v22 = vld [vmem:[#allocation2 + $0x128] sm:$0xff]  ;;  %v15868_v3 = vld [vmem:[#allocation2 + $0xb0] sm:$0xff]  ;;  %18477 = vst [vmem:[#allocation52_spill] sm:$0xff] %v15896_v35 }
  0x9f   :  { %18469 = vst [vmem:[#allocation44_spill] sm:$0xff] %v15864_v22  ;;  %v15866_v34 = vld [vmem:[#allocation2 + $0x288] sm:$0xff]  ;;  %v273_v7 = vadd.f32 %v272_v45, %v15850_v58  ;;  %v15886_v58 = vld [vmem:[#allocation2 + $0x218] sm:$0xff] }
  0xa0   :  { %v225_v10 = vadd.f32 %v224_v18, %v15820_v47  ;;  %v243_v18 = vadd.f32 %v242_v52, %v15840_v39  ;;  %v289_v19 = vadd.f32 %v288_v54, %v15842_v40  ;;  %18470 = vst [vmem:[#allocation45_spill] sm:$0xff] %v15866_v34  ;;  %v15876_v52 = vld [vmem:[#allocation2 + $0x130] sm:$0xff]  ;;  %v15880_v40 = vld [vmem:[#allocation2 + $0xb8] sm:$0xff]  ;;  %18474 = vst [vmem:[#allocation49_spill] sm:$0xff] %v15886_v58 }
  0xa1   :  { %18472 = vst [vmem:[#allocation47_spill] sm:$0xff] %v15876_v52  ;;  %v15878_v54 = vld [vmem:[#allocation2 + $0x290] sm:$0xff]  ;;  %v274_v50 = vadd.f32 %v273_v7, %v15862_v27  ;;  %v15898_v7 = vld [vmem:[#allocation2 + $0x140] sm:$0xff]  ;;  %v15906_v27 = vld [vmem:[#allocation2 + $0x228] sm:$0xff] }
  0xa2   :  { %v226_v57 = vadd.f32 %v225_v10, %v15832_v15  ;;  %v244_v10 = vadd.f32 %v243_v18, %v15852_v56  ;;  %v290_v59 = vadd.f32 %v289_v19, %v15854_v61  ;;  %18473 = vst [vmem:[#allocation48_spill] sm:$0xff] %v15878_v54  ;;  %v15888_v18 = vld [vmem:[#allocation2 + $0x138] sm:$0xff]  ;;  %18478 = vst [vmem:[#allocation53_spill] sm:$0xff] %v15898_v7 }
  0xa3   :  { %18475 = vst [vmem:[#allocation50_spill] sm:$0xff] %v15888_v18  ;;  %v15890_v19 = vld [vmem:[#allocation2 + $0x298] sm:$0xff]  ;;  %v275_v56 = vadd.f32 %v274_v50, %v15874_v55  ;;  %18480 = vst [vmem:[#allocation55_spill] sm:$0xff] %v15906_v27  ;;  %v15908_v50 = vld [vmem:[#allocation2 + $0x148] sm:$0xff] }
  0xa4   :  { %v227_v63 = vadd.f32 %v226_v57, %v15844_v29  ;;  %v245_v57 = vadd.f32 %v244_v10, %v15864_v22  ;;  %v291_v45 = vadd.f32 %v290_v59, %v15866_v34  ;;  %18476 = vst [vmem:[#allocation51_spill] sm:$0xff] %v15890_v19  ;;  %v15900_v10 = vld [vmem:[#allocation2 + $0x2a0] sm:$0xff]  ;;  %18481 = vst [vmem:[#allocation56_spill] sm:$0xff] %v15908_v50  ;;  %v1181_v55 = vld [vmem:[#allocation8 + $0xc0] sm:$0xff] }
  0xa5   :  { %18479 = vst [vmem:[#allocation54_spill] sm:$0xff] %v15900_v10  ;;  %v276_v34 = vadd.f32 %v275_v56, %v15886_v58  ;;  %v15917_v56 = vld [vmem:[#allocation2 + $0x150] sm:$0xff]  ;;  %v15924_v58 = vld [vmem:[#allocation2 + $0x238] sm:$0xff] }
  0xa6   :  { %v228_v39 = vadd.f32 %v227_v63, %v15856_v46  ;;  %v246_v44 = vadd.f32 %v245_v57, %v15876_v52  ;;  %v292_v63 = vadd.f32 %v291_v45, %v15878_v54  ;;  %v15910_v57 = vld [vmem:[#allocation2 + $0x2a8] sm:$0xff]  ;;  %18484 = vst [vmem:[#allocation59_spill] sm:$0xff] %v15917_v56  ;;  %18486 = vst [vmem:[#allocation61_spill] sm:$0xff] %v15924_v58 }
  0xa7   :  { %18482 = vst [vmem:[#allocation57_spill] sm:$0xff] %v15910_v57  ;;  %v277_v45 = vadd.f32 %v276_v34, %v15896_v35  ;;  %v15928_v34 = vld [vmem:[#allocation2 + $0x2b8] sm:$0xff]  ;;  %v15935_v35 = vld [vmem:[#allocation2 + $0x2c0] sm:$0xff] }
  0xa8   :  { %v229_v61 = vadd.f32 %v228_v39, %v15868_v3  ;;  %v247_v22 = vadd.f32 %v246_v44, %v15888_v18  ;;  %v293_v39 = vadd.f32 %v292_v63, %v15890_v19  ;;  %v15919_v44 = vld [vmem:[#allocation2 + $0x2b0] sm:$0xff]  ;;  %18488 = vst [vmem:[#allocation63_spill] sm:$0xff] %v15928_v34  ;;  %18490 = vst [vmem:[#allocation65_spill] sm:$0xff] %v15935_v35 }
  0xa9   :  { %18485 = vst [vmem:[#allocation60_spill] sm:$0xff] %v15919_v44  ;;  %v278_v63 = vadd.f32 %v277_v45, %v15906_v27 }
  0xaa   :  { %v230_v59 = vadd.f32 %v229_v61, %v15880_v40  ;;  %v248_v54 = vadd.f32 %v247_v22, %v15898_v7  ;;  %v294_v52 = vadd.f32 %v293_v39, %v15900_v10  ;;  %v15915_v61 = vld [vmem:[#allocation2 + $0x230] sm:$0xff]  ;;  %v15933_v7 = vld [vmem:[#allocation2 + $0x160] sm:$0xff] }
  0xab   :  { %18483 = vst [vmem:[#allocation58_spill] sm:$0xff] %v15915_v61  ;;  %v279_v22 = vadd.f32 %v278_v63, %v15915_v61  ;;  %18489 = vst [vmem:[#allocation64_spill] sm:$0xff] %v15933_v7  ;;  %v1166_v61 = vld [vmem:[#allocation8 + $0x48] sm:$0xff] }
  0xac   :  { %231 = vadd.xlane.f32.xlu0 %v230_v59  ;;  %v249_v19 = vadd.f32 %v248_v54, %v15908_v50  ;;  %v295_v18 = vadd.f32 %v294_v52, %v15910_v57  ;;  %v15926_v59 = vld [vmem:[#allocation2 + $0x158] sm:$0xff]  ;;  %v15940_v57 = vld [vmem:[#allocation2 + $0x168] sm:$0xff] }
  0xad   :  { %18487 = vst [vmem:[#allocation62_spill] sm:$0xff] %v15926_v59  ;;  %v280_v54 = vadd.f32 %v279_v22, %v15924_v58  ;;  %18491 = vst [vmem:[#allocation66_spill] sm:$0xff] %v15940_v57  ;;  %v15942_v50 = vld [vmem:[#allocation2 + $0x2c8] sm:$0xff] }
  0xae   :  { %v250_v39 = vadd.f32 %v249_v19, %v15917_v56  ;;  %v296_v10 = vadd.f32 %v295_v18, %v15919_v44  ;;  %18492 = vst [vmem:[#allocation67_spill] sm:$0xff] %v15942_v50  ;;  %v15946_v18 = vld [vmem:[#allocation2 + $0x170] sm:$0xff] }
  0xaf   :  { %281 = vadd.xlane.f32.xlu1 %v280_v54  ;;  %18493 = vst [vmem:[#allocation68_spill] sm:$0xff] %v15946_v18  ;;  %v15948_v44 = vld [vmem:[#allocation2 + $0x2d0] sm:$0xff] }
  0xb0   :  { %v251_v52 = vadd.f32 %v250_v39, %v15926_v59  ;;  %v297_v45 = vadd.f32 %v296_v10, %v15928_v34  ;;  %18494 = vst [vmem:[#allocation69_spill] sm:$0xff] %v15948_v44  ;;  %v15952_v39 = vld [vmem:[#allocation2 + $0x178] sm:$0xff]  ;;  %v15958_v59 = vld [vmem:[#allocation2 + $0x2e0] sm:$0xff] }
  0xb1   :  { %18495 = vst [vmem:[#allocation70_spill] sm:$0xff] %v15952_v39  ;;  %v15954_v10 = vld [vmem:[#allocation2 + $0x2d8] sm:$0xff]  ;;  %18497 = vst [vmem:[#allocation72_spill] sm:$0xff] %v15958_v59 }
  0xb2   :  { %v252_v63 = vadd.f32 %v251_v52, %v15933_v7  ;;  %v298_v19 = vadd.f32 %v297_v45, %v15935_v35  ;;  %18496 = vst [vmem:[#allocation71_spill] sm:$0xff] %v15954_v10  ;;  %v15962_v35 = vld [vmem:[#allocation2 + $0x2e8] sm:$0xff]  ;;  %v1169_v7 = vld [vmem:[#allocation8 + $0x60] sm:$0xff] }
  0xb3   :  { %18498 = vst [vmem:[#allocation73_spill] sm:$0xff] %v15962_v35 }
  0xb4   :  { %v253_v56 = vadd.f32 %v252_v63, %v15940_v57  ;;  %v299_v22 = vadd.f32 %v298_v19, %v15942_v50  ;;  %v15965_v19 = vld [vmem:[#allocation2 + $0x2f0] sm:$0xff]  ;;  %v15968_v57 = vld [vmem:[#allocation2 + $0x2f8] sm:$0xff] }
  0xb5   :  { %18499 = vst [vmem:[#allocation74_spill] sm:$0xff] %v15965_v19  ;;  %18500 = vst [vmem:[#allocation75_spill] sm:$0xff] %v15968_v57 }
  0xb6   :  { %v254_v34 = vadd.f32 %v253_v56, %v15946_v18  ;;  %v300_v54 = vadd.f32 %v299_v22, %v15948_v44  ;;  %v1157_v44 = vld [vmem:[#allocation8] sm:$0xff] }
  0xb8   :  { %v255_v52 = vadd.f32 %v254_v34, %v15952_v39  ;;  %v301_v45 = vadd.f32 %v300_v54, %v15954_v10  ;;  %v1161_v34 = vld [vmem:[#allocation8 + $0x20] sm:$0xff]  ;;  %v1158_v39 = vld [vmem:[#allocation8 + $0x8] sm:$0xff] }
  0xb9   :  { %v13393_v54 = vcombine.high %v1157_v44, %v1161_v34  ;;  %v1162_v10 = vld [vmem:[#allocation8 + $0x28] sm:$0xff]  ;;  %v13392_v18 = vcombine.low %v1157_v44, %v1161_v34 }
  0xba   :  { %256 = vadd.xlane.f32.xlu0 %v255_v52  ;;  %v302_v63 = vadd.f32 %v301_v45, %v15958_v59  ;;  %v1165_v52 = vld [vmem:[#allocation8 + $0x40] sm:$0xff]  ;;  %v13395_v45 = vcombine.high %v1158_v39, %v1162_v10  ;;  %v13394_v59 = vcombine.low %v1158_v39, %v1162_v10  ;;  %v1182_v10 = vld [vmem:[#allocation8 + $0xc8] sm:$0xff] }
  0xbb   :  { %v13401_v58 = vcombine.high %v1165_v52, %v1169_v7  ;;  %10463 = vmatprep.subr.bf16.mxu0 %v13393_v54  ;;  %v1185_v39 = vld [vmem:[#allocation8 + $0xe0] sm:$0xff] }
  0xbc   :  { %v303_v50 = vadd.f32 %v302_v63, %v15962_v35  ;;  %v1170_v63 = vld [vmem:[#allocation8 + $0x68] sm:$0xff]  ;;  %v1173_v35 = vld [vmem:[#allocation8 + $0x80] sm:$0xff]  ;;  %11099 = vmatprep.subr.bf16.mxu1 %v13395_v45  ;;  %10464 = vmatpush1.bf16.msra.mxu0 %v13392_v18  ;;  %v13417_v41 = vcombine.high %v1181_v55, %v1185_v39  ;;  %v13419_v45 = vcombine.high %v1182_v10, %v1186_v62 }
  0xbd   :  { %v13403_v27 = vcombine.high %v1166_v61, %v1170_v63  ;;  %11100 = vmatpush1.bf16.msra.mxu1 %v13394_v59  ;;  %10465 = vmatprep.subr.bf16.mxu0 %v13401_v58  ;;  %v1189_v18 = vld [vmem:[#allocation8 + $0x100] sm:$0xff]  ;;  %v1190_v59 = vld [vmem:[#allocation8 + $0x108] sm:$0xff] }
  0xbe   :  { %v304_v56 = vadd.f32 %v303_v50, %v15965_v19  ;;  %v1177_v50 = vld [vmem:[#allocation8 + $0xa0] sm:$0xff]  ;;  %v1174_v19 = vld [vmem:[#allocation8 + $0x88] sm:$0xff] }
  0xbf   :  { %v13409_v44 = vcombine.high %v1173_v35, %v1177_v50  ;;  %11101 = vmatprep.subr.bf16.mxu1 %v13403_v27  ;;  %v13408_v38 = vcombine.low %v1173_v35, %v1177_v50  ;;  %v1194_v58 = vld [vmem:[#allocation8 + $0x128] sm:$0xff]  ;;  %v13418_v27 = vcombine.low %v1182_v10, %v1186_v62  ;;  %v1201_v35 = vld [vmem:[#allocation8 + $0x160] sm:$0xff] }
  0xc0   :  { %v305_v22 = vadd.f32 %v304_v56, %v15968_v57  ;;  %v1178_v56 = vld [vmem:[#allocation8 + $0xa8] sm:$0xff]  ;;  %v13402_v57 = vcombine.low %v1166_v61, %v1170_v63  ;;  %v13416_v61 = vcombine.low %v1181_v55, %v1185_v39  ;;  %v13427_v63 = vcombine.high %v1190_v59, %v1194_v58  ;;  %v1205_v55 = vld [vmem:[#allocation8 + $0x180] sm:$0xff] }
  0xc1   :  { %v13411_v34 = vcombine.high %v1174_v19, %v1178_v56  ;;  %v13410_v54 = vcombine.low %v1174_v19, %v1178_v56  ;;  %v1198_v19 = vld [vmem:[#allocation8 + $0x148] sm:$0xff]  ;;  %v13426_v56 = vcombine.low %v1190_v59, %v1194_v58  ;;  %v1209_v39 = vld [vmem:[#allocation8 + $0x1a0] sm:$0xff] }
  0xc2   :  { %306 = vadd.xlane.f32.xlu1 %v305_v22  ;;  %v13400_v22 = vcombine.low %v1165_v52, %v1169_v7  ;;  %11102 = vmatpush1.bf16.msra.mxu1 %v13402_v57  ;;  %v1193_v7 = vld [vmem:[#allocation8 + $0x120] sm:$0xff]  ;;  %v1202_v50 = vld [vmem:[#allocation8 + $0x168] sm:$0xff]  ;;  %v13440_v58 = vcombine.low %v1205_v55, %v1209_v39 }
  0xc3   :  { %11103 = vmatprep.subr.bf16.mxu1 %v13411_v34  ;;  %v13425_v52 = vcombine.high %v1189_v18, %v1193_v7  ;;  %v13424_v57 = vcombine.low %v1189_v18, %v1193_v7  ;;  %v1206_v62 = vld [vmem:[#allocation8 + $0x188] sm:$0xff]  ;;  %v13441_v18 = vcombine.high %v1205_v55, %v1209_v39  ;;  %v1217_v59 = vld [vmem:[#allocation8 + $0x1e0] sm:$0xff] }
  0xc4   :  { %10466 = vmatpush1.bf16.msra.mxu0 %v13400_v22  ;;  %v1197_v22 = vld [vmem:[#allocation8 + $0x140] sm:$0xff]  ;;  %v1210_v10 = vld [vmem:[#allocation8 + $0x1a8] sm:$0xff] }
  0xc5   :  { %10467 = vmatprep.subr.bf16.mxu0 %v13409_v44  ;;  %v13433_v34 = vcombine.high %v1197_v22, %v1201_v35  ;;  %v13443_v7 = vcombine.high %v1206_v62, %v1210_v10 }
  0xc6   :  { %11104 = vmatpush1.bf16.msra.mxu1 %v13410_v54 }
  0xc7   :  { %11105 = vmatprep.subr.bf16.mxu1 %v13419_v45  ;;  %v13434_v45 = vcombine.low %v1198_v19, %v1202_v50 }
  0xc8   :  { %10468 = vmatpush1.bf16.msra.mxu0 %v13408_v38  ;;  %v13435_v38 = vcombine.high %v1198_v19, %v1202_v50  ;;  %v1221_v50 = vld [vmem:[#allocation8 + $0x200] sm:$0xff] }
  0xc9   :  { %10469 = vmatprep.subr.bf16.mxu0 %v13417_v41  ;;  %v13432_v41 = vcombine.low %v1197_v22, %v1201_v35  ;;  %v13442_v35 = vcombine.low %v1206_v62, %v1210_v10  ;;  %v15990_v62 = vld [vmem:[#allocation8 + $0x240] sm:$0xff] }
  0xca   :  { %11106 = vmatpush1.bf16.msra.mxu1 %v13418_v27  ;;  %v1214_v27 = vld [vmem:[#allocation8 + $0x1c8] sm:$0xff] }
  0xcb   :  { %11107 = vmatprep.subr.bf16.mxu1 %v13427_v63 }
  0xcc   :  { %10470 = vmatpush1.bf16.msra.mxu0 %v13416_v61  ;;  %v1213_v61 = vld [vmem:[#allocation8 + $0x1c0] sm:$0xff] }
  0xcd   :  { %10471 = vmatprep.subr.bf16.mxu0 %v13425_v52  ;;  %v1218_v52 = vld [vmem:[#allocation8 + $0x1e8] sm:$0xff] }
  0xce   :  { %11108 = vmatpush1.bf16.msra.mxu1 %v13426_v56  ;;  %v13451_v19 = vcombine.high %v1214_v27, %v1218_v52  ;;  %v1225_v56 = vld [vmem:[#allocation8 + $0x220] sm:$0xff]  ;;  %v13450_v39 = vcombine.low %v1214_v27, %v1218_v52 }
  0xcf   :  { %11109 = vmatprep.subr.bf16.mxu1 %v13435_v38  ;;  %v1226_v38 = vld [vmem:[#allocation8 + $0x228] sm:$0xff] }
  0xd0   :  { %10472 = vmatpush1.bf16.msra.mxu0 %v13424_v57  ;;  %v13449_v57 = vcombine.high %v1213_v61, %v1217_v59 }
  0xd1   :  { %10473 = vmatprep.subr.bf16.mxu0 %v13433_v34  ;;  %v1222_v34 = vld [vmem:[#allocation8 + $0x208] sm:$0xff] }
  0xd2   :  { %11110 = vmatpush1.bf16.msra.mxu1 %v13434_v45  ;;  %v13459_v45 = vcombine.high %v1222_v34, %v1226_v38  ;;  %v13458_v52 = vcombine.low %v1222_v34, %v1226_v38 }
  0xd3   :  { %11111 = vmatprep.subr.bf16.mxu1 %v13443_v7  ;;  %v16000_v7 = vld [vmem:[#allocation8 + $0x268] sm:$0xff] }
  0xd4   :  { %10474 = vmatpush1.bf16.msra.mxu0 %v13432_v41  ;;  %v13457_v41 = vcombine.high %v1221_v50, %v1225_v56 }
  0xd5   :  { %10475 = vmatprep.subr.bf16.mxu0 %v13441_v18  ;;  %v15998_v18 = vld [vmem:[#allocation8 + $0x248] sm:$0xff] }
  0xd6   :  { %11112 = vmatpush1.bf16.msra.mxu1 %v13442_v35 }
  0xd7   :  { %11113 = vmatprep.subr.bf16.mxu1 %v13451_v19 }
  0xd8   :  { %10476 = vmatpush1.bf16.msra.mxu0 %v13440_v58 }
  0xd9   :  { %10477 = vmatprep.subr.bf16.mxu0 %v13449_v57  ;;  %v13467_v57 = vcombine.high %v15998_v18, %v16000_v7 }
  0xda   :  { %11114 = vmatpush1.bf16.msra.mxu1 %v13450_v39 }
  0xdb   :  { %11115 = vmatprep.subr.bf16.mxu1 %v13459_v45 }
  0xde   :  { %11116 = vmatpush1.bf16.msra.mxu1 %v13458_v52 }
  0xdf   :  { %11117 = vmatprep.subr.bf16.mxu1 %v13467_v57 }
 0x139   :  { %v232_v44 = vpop.xlane.xlu0 %231 }
 0x13a   :  { %v15972_v54 = vmul.f32 0.00032552084, %v232_v44  ;;  %v13448_v44 = vcombine.low %v1213_v61, %v1217_v59  ;;  %v13456_v59 = vcombine.low %v1221_v50, %v1225_v56 }
 0x13c   :  { %v15976_v63 = vsub.f32 %v15684_v0, %v15972_v54  ;;  %v15980_v22 = vsub.f32 %v15686_v1, %v15972_v54  ;;  %v15984_v0 = vsub.f32 %v15688_v2, %v15972_v54  ;;  %v15994_v10 = vsub.f32 %v15692_v4, %v15972_v54  ;;  %v15996_v2 = vld [vmem:[#allocation8 + $0x260] sm:$0xff]  ;;  %v282_v61 = vpop.xlane.xlu1 %281  ;;  %10478 = vmatpush1.bf16.msra.mxu0 %v13448_v44 }
 0x13d   :  { %v16004_v58 = vsub.f32 %v15695_v6, %v15972_v54  ;;  %10479 = vmatprep.subr.bf16.mxu0 %v13457_v41  ;;  %v13465_v35 = vcombine.high %v15990_v62, %v15996_v2  ;;  %v16012_v19 = vmul.f32 0.00032552084, %v282_v61  ;;  %v16016_v50 = vsub.f32 %v15698_v8, %v15972_v54 }
 0x13e   :  { %v409_v1 = vmul.f32 %v15976_v63, %v15976_v63  ;;  %v410_v55 = vmul.f32 %v15980_v22, %v15980_v22  ;;  %18501 = vst [vmem:[#allocation76_spill] sm:$0xff] %v15994_v10  ;;  %v411_v27 = vmul.f32 %v15984_v0, %v15984_v0  ;;  %v412_v6 = vmul.f32 %v15994_v10, %v15994_v10  ;;  %v18549_v10 = vld [vmem:[#allocation25_spill] sm:$0xff] }
 0x13f   :  { %v16022_v44 = vsub.f32 %v15700_v9, %v15972_v54  ;;  %v413_v34 = vmul.f32 %v16004_v58, %v16004_v58  ;;  %v414_v8 = vmul.f32 %v16016_v50, %v16016_v50  ;;  %v16034_v39 = vsub.f32 %v15703_v11, %v16012_v19 }
 0x140   :  { %v505_v4 = vadd.f32 %v410_v55, %v409_v1  ;;  %10480 = vmatpush1.bf16.msra.mxu0 %v13456_v59  ;;  %v16028_v1 = vsub.f32 %v15712_v16, %v15972_v54  ;;  %v16038_v9 = vsub.f32 %v15705_v12, %v16012_v19  ;;  %v16042_v41 = vsub.f32 %v15718_v20, %v15972_v54 }
 0x141   :  { %10481 = vmatprep.subr.bf16.mxu0 %v13465_v35  ;;  %v415_v16 = vmul.f32 %v16022_v44, %v16022_v44  ;;  %v16048_v61 = vsub.f32 %v15707_v13, %v16012_v19  ;;  %v16052_v11 = vsub.f32 %v15724_v24, %v15972_v54  ;;  %v16058_v20 = vsub.f32 %v15714_v17, %v16012_v19 }
 0x142   :  { %v506_v56 = vadd.f32 %v505_v4, %v411_v27  ;;  %18502 = vst [vmem:[#allocation77_spill] sm:$0xff] %v16042_v41  ;;  %v416_v12 = vmul.f32 %v16028_v1, %v16028_v1  ;;  %v457_v27 = vmul.f32 %v16034_v39, %v16034_v39  ;;  %v458_v4 = vmul.f32 %v16038_v9, %v16038_v9 }
 0x143   :  { %18503 = vst [vmem:[#allocation78_spill] sm:$0xff] %v16052_v11  ;;  %18504 = vst [vmem:[#allocation79_spill] sm:$0xff] %v16058_v20  ;;  %v16066_v13 = vsub.f32 %v15728_v26, %v15972_v54  ;;  %v417_v24 = vmul.f32 %v16042_v41, %v16042_v41  ;;  %v16072_v35 = vsub.f32 %v15720_v21, %v16012_v19 }
 0x144   :  { %v507_v38 = vadd.f32 %v506_v56, %v412_v6  ;;  %v459_v17 = vmul.f32 %v16048_v61, %v16048_v61  ;;  %v16078_v57 = vsub.f32 %v15744_v36, %v15972_v54  ;;  %v16082_v6 = vsub.f32 %v15753_v42, %v15972_v54 }
 0x145   :  { %v16086_v26 = vsub.f32 %v15762_v48, %v15972_v54  ;;  %v418_v56 = vmul.f32 %v16052_v11, %v16052_v11  ;;  %v460_v36 = vmul.f32 %v16058_v20, %v16058_v20  ;;  %v16098_v42 = vsub.f32 %v15768_v51, %v15972_v54  ;;  %v18523_v11 = vld [vmem:[#allocation37_spill] sm:$0xff] }
 0x146   :  { %v508_v55 = vadd.f32 %v507_v38, %v413_v34  ;;  %v16092_v34 = vsub.f32 %v15726_v25, %v16012_v19  ;;  %v555_v38 = vadd.f32 %v458_v4, %v457_v27  ;;  %v16102_v48 = vsub.f32 %v15783_v60, %v15972_v54 }
 0x147   :  { %18505 = vst [vmem:[#allocation80_spill] sm:$0xff] %v16098_v42  ;;  %v419_v25 = vmul.f32 %v16066_v13, %v16066_v13  ;;  %v461_v51 = vmul.f32 %v16072_v35, %v16072_v35  ;;  %v16118_v60 = vsub.f32 %v15808_v33, %v15972_v54  ;;  %v16132_v4 = vsub.f32 %v15746_v37, %v16012_v19 }
 0x148   :  { %v509_v45 = vadd.f32 %v508_v55, %v414_v8  ;;  %18506 = vst [vmem:[#allocation81_spill] sm:$0xff] %v16102_v48  ;;  %v16106_v8 = vsub.f32 %v15796_v14, %v15972_v54  ;;  %v257_v55 = vpop.xlane.xlu0 %256  ;;  %v16122_v14 = vsub.f32 %v15820_v47, %v15972_v54  ;;  %v462_v33 = vmul.f32 %v16092_v34, %v16092_v34 }
 0x149   :  { %18508 = vst [vmem:[#allocation83_spill] sm:$0xff] %v16118_v60  ;;  %v16140_v47 = vsub.f32 %v15844_v29, %v15972_v54  ;;  %v16150_v37 = vsub.f32 %v15755_v43, %v16012_v19  ;;  %v16156_v29 = vsub.f32 %v15868_v3, %v15972_v54 }
 0x14a   :  { %v510_v59 = vadd.f32 %v509_v45, %v415_v16  ;;  %18507 = vst [vmem:[#allocation82_spill] sm:$0xff] %v16106_v8  ;;  %v16112_v45 = vsub.f32 %v15731_v28, %v16012_v19  ;;  %18509 = vst [vmem:[#allocation84_spill] sm:$0xff] %v16122_v14  ;;  %v420_v28 = vmul.f32 %v16078_v57, %v16078_v57 }
 0x14b   :  { %18511 = vst [vmem:[#allocation86_spill] sm:$0xff] %v16140_v47  ;;  %18513 = vst [vmem:[#allocation88_spill] sm:$0xff] %v16150_v37 }
 0x14c   :  { %v511_v52 = vadd.f32 %v510_v59, %v416_v12  ;;  %v556_v12 = vadd.f32 %v555_v38, %v459_v17  ;;  %v16126_v59 = vsub.f32 %v15832_v15, %v15972_v54  ;;  %v16144_v15 = vsub.f32 %v15856_v46, %v15972_v54  ;;  %18514 = vst [vmem:[#allocation89_spill] sm:$0xff] %v16156_v29 }
 0x14d   :  { %v421_v17 = vmul.f32 %v16082_v6, %v16082_v6  ;;  %v16160_v46 = vsub.f32 %v15880_v40, %v15972_v54  ;;  %v422_v38 = vmul.f32 %v16086_v26, %v16086_v26  ;;  %v425_v40 = vmul.f32 %v16106_v8, %v16106_v8 }
 0x14e   :  { %v512_v21 = vadd.f32 %v511_v52, %v417_v24  ;;  %18510 = vst [vmem:[#allocation85_spill] sm:$0xff] %v16126_v59  ;;  %v557_v24 = vadd.f32 %v556_v12, %v460_v36  ;;  %v16136_v52 = vmul.f32 0.00032552084, %v257_v55  ;;  %18512 = vst [vmem:[#allocation87_spill] sm:$0xff] %v16144_v15  ;;  %v16168_v55 = vsub.f32 %v15764_v49, %v16012_v19 }
 0x14f   :  { %18515 = vst [vmem:[#allocation90_spill] sm:$0xff] %v16160_v46  ;;  %v431_v8 = vmul.f32 %v16156_v29, %v16156_v29  ;;  %v16240_v29 = vsub.f32 %v18523_v11, %v16012_v19  ;;  %v18528_v11 = vld [vmem:[#allocation43_spill] sm:$0xff] }
 0x150   :  { %v513_v16 = vadd.f32 %v512_v21, %v418_v56  ;;  %v463_v21 = vmul.f32 %v16112_v45, %v16112_v45  ;;  %v558_v36 = vadd.f32 %v557_v24, %v461_v51  ;;  %18516 = vst [vmem:[#allocation91_spill] sm:$0xff] %v16168_v55  ;;  %v424_v51 = vmul.f32 %v16102_v48, %v16102_v48 }
 0x151   :  { %v16178_v54 = vsub.f32 %v15734_v30, %v16136_v52  ;;  %v16182_v12 = vsub.f32 %v15736_v31, %v16136_v52  ;;  %v426_v24 = vmul.f32 %v16118_v60, %v16118_v60  ;;  %v427_v30 = vmul.f32 %v16122_v14, %v16122_v14  ;;  %v18518_v60 = vld [vmem:[#allocation31_spill] sm:$0xff] }
 0x152   :  { %v514_v27 = vadd.f32 %v513_v16, %v419_v25  ;;  %v423_v25 = vmul.f32 %v16098_v42, %v16098_v42  ;;  %v464_v16 = vmul.f32 %v16132_v4, %v16132_v4  ;;  %v559_v3 = vadd.f32 %v558_v36, %v462_v33 }
 0x153   :  { %v429_v31 = vmul.f32 %v16140_v47, %v16140_v47 }
 0x154   :  { %v515_v56 = vadd.f32 %v514_v27, %v420_v28  ;;  %v16186_v28 = vsub.f32 %v15771_v53, %v16012_v19  ;;  %v465_v27 = vmul.f32 %v16150_v37, %v16150_v37  ;;  %v560_v33 = vadd.f32 %v559_v3, %v463_v21 }
 0x155   :  { %v16200_v53 = vsub.f32 %v15790_v5, %v16012_v19  ;;  %v466_v21 = vmul.f32 %v16168_v55, %v16168_v55  ;;  %v433_v3 = vmul.f32 %v16178_v54, %v16178_v54  ;;  %v16216_v5 = vsub.f32 %v15802_v23, %v16012_v19  ;;  %v18521_v55 = vld [vmem:[#allocation34_spill] sm:$0xff] }
 0x156   :  { %v516_v43 = vadd.f32 %v515_v56, %v421_v17  ;;  %v428_v17 = vmul.f32 %v16126_v59, %v16126_v59  ;;  %v561_v36 = vadd.f32 %v560_v33, %v464_v16  ;;  %v467_v16 = vmul.f32 %v16186_v28, %v16186_v28  ;;  %18524 = vst [vmem:[#allocation34_spill] sm:$0xff] %v16240_v29 }
 0x157   :  { %18517 = vst [vmem:[#allocation92_spill] sm:$0xff] %v16216_v5  ;;  %v16226_v37 = vsub.f32 %v18518_v60, %v16012_v19  ;;  %v16234_v41 = vsub.f32 %v18521_v55, %v16012_v19  ;;  %v18525_v60 = vld [vmem:[#allocation21_spill] sm:$0xff]  ;;  %v18526_v55 = vld [vmem:[#allocation40_spill] sm:$0xff] }
 0x158   :  { %v517_v49 = vadd.f32 %v516_v43, %v422_v38  ;;  %v430_v38 = vmul.f32 %v16144_v15, %v16144_v15  ;;  %v16208_v43 = vsub.f32 %v15738_v32, %v16136_v52  ;;  %v562_v33 = vadd.f32 %v561_v36, %v465_v27 }
 0x159   :  { %v432_v32 = vmul.f32 %v16160_v46, %v16160_v46  ;;  %18519 = vst [vmem:[#allocation31_spill] sm:$0xff] %v16226_v37  ;;  %v468_v27 = vmul.f32 %v16200_v53, %v16200_v53  ;;  %v16244_v46 = vsub.f32 %v18525_v60, %v16136_v52  ;;  %v16250_v47 = vsub.f32 %v18526_v55, %v16012_v19  ;;  %v18530_v60 = vld [vmem:[#allocation22_spill] sm:$0xff] }
 0x15a   :  { %v518_v56 = vadd.f32 %v517_v49, %v423_v25  ;;  %v434_v25 = vmul.f32 %v16182_v12, %v16182_v12  ;;  %v563_v36 = vadd.f32 %v562_v33, %v466_v21  ;;  %v469_v21 = vmul.f32 %v16216_v5, %v16216_v5  ;;  %v18531_v55 = vld [vmem:[#allocation46_spill] sm:$0xff] }
 0x15b   :  { %18527 = vst [vmem:[#allocation37_spill] sm:$0xff] %v16250_v47  ;;  %v16256_v15 = vsub.f32 %v18528_v11, %v16012_v19  ;;  %v16260_v14 = vsub.f32 %v18530_v60, %v16136_v52  ;;  %v16266_v59 = vsub.f32 %v18531_v55, %v16012_v19  ;;  %v18533_v11 = vld [vmem:[#allocation49_spill] sm:$0xff]  ;;  %v18535_v60 = vld [vmem:[#allocation23_spill] sm:$0xff] }
 0x15c   :  { %v519_v49 = vadd.f32 %v518_v56, %v424_v51  ;;  %v18520_v51 = vld [vmem:[#allocation20_spill] sm:$0xff]  ;;  %v564_v33 = vadd.f32 %v563_v36, %v467_v16  ;;  %v470_v16 = vmul.f32 %v16226_v37, %v16226_v37  ;;  %v16272_v20 = vsub.f32 %v18533_v11, %v16012_v19  ;;  %v18538_v11 = vld [vmem:[#allocation27_spill] sm:$0xff] }
 0x15d   :  { %v16230_v56 = vsub.f32 %v18520_v51, %v16136_v52  ;;  %18522 = vst [vmem:[#allocation20_spill] sm:$0xff] %v16234_v41  ;;  %v435_v51 = vmul.f32 %v16208_v43, %v16208_v43  ;;  %18529 = vst [vmem:[#allocation21_spill] sm:$0xff] %v16256_v15  ;;  %v16276_v42 = vsub.f32 %v18535_v60, %v16136_v52 }
 0x15e   :  { %v520_v23 = vadd.f32 %v519_v49, %v425_v40  ;;  %v530_v40 = vadd.f32 %v434_v25, %v433_v3  ;;  %v307_v25 = vpop.xlane.xlu1 %306  ;;  %18532 = vst [vmem:[#allocation40_spill] sm:$0xff] %v16266_v59  ;;  %v565_v36 = vadd.f32 %v564_v33, %v468_v27  ;;  %18534 = vst [vmem:[#allocation43_spill] sm:$0xff] %v16272_v20 }
 0x15f   :  { %v436_v3 = vmul.f32 %v16230_v56, %v16230_v56  ;;  %v471_v27 = vmul.f32 %v16234_v41, %v16234_v41  ;;  %v16286_v48 = vmul.f32 0.00032552084, %v307_v25  ;;  %v16290_v5 = vsub.f32 %v18538_v11, %v16136_v52  ;;  %v18545_v41 = vld [vmem:[#allocation32_spill] sm:$0xff] }
 0x160   :  { %v521_v49 = vadd.f32 %v520_v23, %v426_v24  ;;  %v531_v24 = vadd.f32 %v530_v40, %v435_v51  ;;  %v437_v51 = vmul.f32 %v16244_v46, %v16244_v46  ;;  %v566_v33 = vadd.f32 %v565_v36, %v469_v21  ;;  %v18541_v21 = vld [vmem:[#allocation58_spill] sm:$0xff]  ;;  %v18543_v36 = vld [vmem:[#allocation29_spill] sm:$0xff] }
 0x161   :  { %v438_v60 = vmul.f32 %v16260_v14, %v16260_v14  ;;  %v16302_v25 = vsub.f32 %v18541_v21, %v16012_v19  ;;  %v16306_v11 = vsub.f32 %v18543_v36, %v16136_v52  ;;  %v18547_v36 = vld [vmem:[#allocation24_spill] sm:$0xff] }
 0x162   :  { %v522_v23 = vadd.f32 %v521_v49, %v427_v30  ;;  %v532_v30 = vadd.f32 %v531_v24, %v436_v3  ;;  %v18536_v49 = vld [vmem:[#allocation52_spill] sm:$0xff] }
 0x163   :  { %v16282_v55 = vsub.f32 %v18536_v49, %v16012_v19  ;;  %v567_v49 = vadd.f32 %v566_v33, %v470_v16  ;;  %18542 = vst [vmem:[#allocation49_spill] sm:$0xff] %v16302_v25  ;;  %18544 = vst [vmem:[#allocation23_spill] sm:$0xff] %v16306_v11  ;;  %v16314_v16 = vsub.f32 %v18545_v41, %v16136_v52 }
 0x164   :  { %v523_v40 = vadd.f32 %v522_v23, %v428_v17  ;;  %v533_v37 = vadd.f32 %v532_v30, %v437_v51  ;;  %v18539_v17 = vld [vmem:[#allocation55_spill] sm:$0xff]  ;;  %v472_v23 = vmul.f32 %v16240_v29, %v16240_v29  ;;  %v439_v51 = vmul.f32 %v16276_v42, %v16276_v42 }
 0x165   :  { %18537 = vst [vmem:[#allocation22_spill] sm:$0xff] %v16282_v55  ;;  %v16296_v24 = vsub.f32 %v18539_v17, %v16012_v19  ;;  %v568_v17 = vadd.f32 %v567_v49, %v471_v27  ;;  %18546 = vst [vmem:[#allocation52_spill] sm:$0xff] %v16314_v16  ;;  %v440_v33 = vmul.f32 %v16290_v5, %v16290_v5 }
 0x166   :  { %v524_v3 = vadd.f32 %v523_v40, %v429_v31  ;;  %v534_v31 = vadd.f32 %v533_v37, %v438_v60  ;;  %v473_v40 = vmul.f32 %v16250_v47, %v16250_v47  ;;  %v16320_v29 = vsub.f32 %v18547_v36, %v16286_v48  ;;  %v18553_v36 = vld [vmem:[#allocation26_spill] sm:$0xff] }
 0x167   :  { %18540 = vst [vmem:[#allocation46_spill] sm:$0xff] %v16296_v24  ;;  %v16324_v37 = vsub.f32 %v18549_v10, %v16286_v48  ;;  %v474_v27 = vmul.f32 %v16256_v15, %v16256_v15  ;;  %v475_v41 = vmul.f32 %v16266_v59, %v16266_v59  ;;  %v569_v60 = vadd.f32 %v568_v17, %v472_v23  ;;  %v18555_v47 = vld [vmem:[#allocation38_spill] sm:$0xff] }
 0x168   :  { %v525_v30 = vadd.f32 %v524_v3, %v430_v38  ;;  %v535_v21 = vadd.f32 %v534_v31, %v439_v51  ;;  %18548 = vst [vmem:[#allocation27_spill] sm:$0xff] %v16320_v29  ;;  %v18551_v3 = vld [vmem:[#allocation35_spill] sm:$0xff]  ;;  %v441_v51 = vmul.f32 %v16306_v11, %v16306_v11  ;;  %v16338_v10 = vsub.f32 %v18553_v36, %v16286_v48 }
 0x169   :  { %18550 = vst [vmem:[#allocation55_spill] sm:$0xff] %v16324_v37  ;;  %v16332_v49 = vsub.f32 %v18551_v3, %v16136_v52  ;;  %v16342_v15 = vsub.f32 %v18555_v47, %v16136_v52  ;;  %v442_v23 = vmul.f32 %v16314_v16, %v16314_v16  ;;  %v18557_v3 = vld [vmem:[#allocation28_spill] sm:$0xff]  ;;  %v476_v47 = vmul.f32 %v16272_v20, %v16272_v20 }
 0x16a   :  { %v526_v38 = vadd.f32 %v525_v30, %v431_v8  ;;  %v536_v31 = vadd.f32 %v535_v21, %v440_v33  ;;  %18554 = vst [vmem:[#allocation29_spill] sm:$0xff] %v16338_v10  ;;  %v570_v30 = vadd.f32 %v569_v60, %v473_v40  ;;  %v16348_v59 = vsub.f32 %v18557_v3, %v16286_v48  ;;  %v18561_v60 = vld [vmem:[#allocation41_spill] sm:$0xff]  ;;  %v18563_v3 = vld [vmem:[#allocation30_spill] sm:$0xff] }
 0x16b   :  { %18552 = vst [vmem:[#allocation58_spill] sm:$0xff] %v16332_v49  ;;  %18556 = vst [vmem:[#allocation32_spill] sm:$0xff] %v16342_v15  ;;  %v481_v33 = vmul.f32 %v16320_v29, %v16320_v29  ;;  %v482_v21 = vmul.f32 %v16324_v37, %v16324_v37  ;;  %v16368_v11 = vsub.f32 %v18563_v3, %v16286_v48 }
 0x16c   :  { %v527_v8 = vadd.f32 %v526_v38, %v432_v32  ;;  %v537_v17 = vadd.f32 %v536_v31, %v441_v51  ;;  %18558 = vst [vmem:[#allocation24_spill] sm:$0xff] %v16348_v59  ;;  %v18559_v32 = vld [vmem:[#allocation61_spill] sm:$0xff]  ;;  %v571_v38 = vadd.f32 %v570_v30, %v474_v27  ;;  %v16362_v51 = vsub.f32 %v18561_v60, %v16136_v52  ;;  %v18565_v27 = vld [vmem:[#allocation44_spill] sm:$0xff] }
 0x16d   :  { %v16356_v40 = vsub.f32 %v18559_v32, %v16012_v19  ;;  %v443_v31 = vmul.f32 %v16332_v49, %v16332_v49  ;;  %18564 = vst [vmem:[#allocation26_spill] sm:$0xff] %v16368_v11  ;;  %v483_v19 = vmul.f32 %v16338_v10, %v16338_v10  ;;  %v16376_v30 = vsub.f32 %v18565_v27, %v16136_v52 }
 0x16e   :  { %528 = vadd.xlane.f32.xlu0 %v527_v8  ;;  %18562 = vst [vmem:[#allocation35_spill] sm:$0xff] %v16362_v51  ;;  %v538_v36 = vadd.f32 %v537_v17, %v442_v23  ;;  %v477_v8 = vmul.f32 %v16282_v55, %v16282_v55  ;;  %v572_v32 = vadd.f32 %v571_v38, %v475_v41  ;;  %v18567_v23 = vld [vmem:[#allocation33_spill] sm:$0xff]  ;;  %v18569_v38 = vld [vmem:[#allocation47_spill] sm:$0xff] }
 0x16f   :  { %18560 = vst [vmem:[#allocation25_spill] sm:$0xff] %v16356_v40  ;;  %18566 = vst [vmem:[#allocation38_spill] sm:$0xff] %v16376_v30  ;;  %v444_v60 = vmul.f32 %v16342_v15, %v16342_v15  ;;  %v16382_v17 = vsub.f32 %v18567_v23, %v16286_v48  ;;  %v484_v3 = vmul.f32 %v16348_v59, %v16348_v59 }
 0x170   :  { %v539_v16 = vadd.f32 %v538_v36, %v443_v31  ;;  %v580_v20 = vadd.f32 %v482_v21, %v481_v33  ;;  %v478_v55 = vmul.f32 %v16296_v24, %v16296_v24  ;;  %v573_v41 = vadd.f32 %v572_v32, %v476_v47  ;;  %v18571_v36 = vld [vmem:[#allocation36_spill] sm:$0xff]  ;;  %v18573_v32 = vld [vmem:[#allocation50_spill] sm:$0xff] }
 0x171   :  { %18568 = vst [vmem:[#allocation28_spill] sm:$0xff] %v16382_v17  ;;  %v16390_v27 = vsub.f32 %v18569_v38, %v16136_v52  ;;  %v445_v49 = vmul.f32 %v16362_v51, %v16362_v51  ;;  %v16396_v23 = vsub.f32 %v18571_v36, %v16286_v48  ;;  %v485_v59 = vmul.f32 %v16368_v11, %v16368_v11 }
 0x172   :  { %v540_v31 = vadd.f32 %v539_v16, %v444_v60  ;;  %v581_v33 = vadd.f32 %v580_v20, %v483_v19  ;;  %v479_v21 = vmul.f32 %v16302_v25, %v16302_v25  ;;  %v574_v47 = vadd.f32 %v573_v41, %v477_v8  ;;  %v18575_v60 = vld [vmem:[#allocation39_spill] sm:$0xff]  ;;  %v18577_v41 = vld [vmem:[#allocation53_spill] sm:$0xff] }
 0x173   :  { %18570 = vst [vmem:[#allocation61_spill] sm:$0xff] %v16390_v27  ;;  %18572 = vst [vmem:[#allocation41_spill] sm:$0xff] %v16396_v23  ;;  %v16404_v38 = vsub.f32 %v18573_v32, %v16136_v52  ;;  %v446_v24 = vmul.f32 %v16376_v30, %v16376_v30  ;;  %v16410_v36 = vsub.f32 %v18575_v60, %v16286_v48 }
 0x174   :  { %v541_v16 = vadd.f32 %v540_v31, %v445_v49  ;;  %v486_v51 = vmul.f32 %v16382_v17, %v16382_v17  ;;  %v582_v20 = vadd.f32 %v581_v33, %v484_v3  ;;  %v480_v19 = vmul.f32 %v16356_v40, %v16356_v40  ;;  %v18579_v31 = vld [vmem:[#allocation42_spill] sm:$0xff]  ;;  %v18581_v40 = vld [vmem:[#allocation56_spill] sm:$0xff] }
 0x175   :  { %18574 = vst [vmem:[#allocation30_spill] sm:$0xff] %v16404_v38  ;;  %18576 = vst [vmem:[#allocation44_spill] sm:$0xff] %v16410_v36  ;;  %v575_v8 = vadd.f32 %v574_v47, %v478_v55  ;;  %v16418_v32 = vsub.f32 %v18577_v41, %v16136_v52  ;;  %v447_v25 = vmul.f32 %v16390_v27, %v16390_v27  ;;  %v18583_v27 = vld [vmem:[#allocation45_spill] sm:$0xff] }
 0x176   :  { %v542_v49 = vadd.f32 %v541_v16, %v446_v24  ;;  %v16424_v60 = vsub.f32 %v18579_v31, %v16286_v48  ;;  %v487_v30 = vmul.f32 %v16396_v23, %v16396_v23  ;;  %v583_v3 = vadd.f32 %v582_v20, %v485_v59  ;;  %v18585_v59 = vld [vmem:[#allocation59_spill] sm:$0xff] }
 0x177   :  { %18578 = vst [vmem:[#allocation33_spill] sm:$0xff] %v16418_v32  ;;  %v576_v33 = vadd.f32 %v575_v8, %v479_v21  ;;  %v16430_v55 = vsub.f32 %v18581_v40, %v16136_v52  ;;  %v448_v47 = vmul.f32 %v16404_v38, %v16404_v38  ;;  %v16436_v24 = vsub.f32 %v18583_v27, %v16286_v48  ;;  %v18587_v8 = vld [vmem:[#allocation48_spill] sm:$0xff] }
 0x178   :  { %18580 = vst [vmem:[#allocation47_spill] sm:$0xff] %v16424_v60  ;;  %v543_v41 = vadd.f32 %v542_v49, %v447_v25  ;;  %v488_v16 = vmul.f32 %v16410_v36, %v16410_v36  ;;  %v584_v31 = vadd.f32 %v583_v3, %v486_v51  ;;  %v16442_v21 = vsub.f32 %v18585_v59, %v16136_v52  ;;  %v18589_v51 = vld [vmem:[#allocation62_spill] sm:$0xff]  ;;  %v18591_v59 = vld [vmem:[#allocation51_spill] sm:$0xff] }
 0x179   :  { %18582 = vst [vmem:[#allocation36_spill] sm:$0xff] %v16430_v55  ;;  %18584 = vst [vmem:[#allocation50_spill] sm:$0xff] %v16436_v24  ;;  %v577_v15 = vadd.f32 %v576_v33, %v480_v19  ;;  %v449_v40 = vmul.f32 %v16418_v32, %v16418_v32  ;;  %v16448_v25 = vsub.f32 %v18587_v8, %v16286_v48  ;;  %v18593_v32 = vld [vmem:[#allocation64_spill] sm:$0xff] }
 0x17a   :  { %18586 = vst [vmem:[#allocation39_spill] sm:$0xff] %v16442_v21  ;;  %v544_v20 = vadd.f32 %v543_v41, %v448_v47  ;;  %v489_v27 = vmul.f32 %v16424_v60, %v16424_v60  ;;  %v585_v49 = vadd.f32 %v584_v31, %v487_v30  ;;  %v16454_v19 = vsub.f32 %v18589_v51, %v16136_v52 }
 0x17b   :  { %18588 = vst [vmem:[#allocation53_spill] sm:$0xff] %v16448_v25  ;;  %578 = vadd.xlane.f32.xlu0 %v577_v15  ;;  %v450_v3 = vmul.f32 %v16430_v55, %v16430_v55  ;;  %v16460_v47 = vsub.f32 %v18591_v59, %v16286_v48  ;;  %v490_v41 = vmul.f32 %v16436_v24, %v16436_v24  ;;  %v18595_v15 = vld [vmem:[#allocation66_spill] sm:$0xff] }
 0x17c   :  { %18590 = vst [vmem:[#allocation42_spill] sm:$0xff] %v16454_v19  ;;  %v545_v33 = vadd.f32 %v544_v20, %v449_v40  ;;  %v586_v8 = vadd.f32 %v585_v49, %v488_v16  ;;  %v16466_v30 = vsub.f32 %v18593_v32, %v16136_v52  ;;  %v16470_v31 = vsub.f32 %v18595_v15, %v16136_v52  ;;  %v18597_v20 = vld [vmem:[#allocation54_spill] sm:$0xff]  ;;  %v18599_v49 = vld [vmem:[#allocation57_spill] sm:$0xff] }
 0x17d   :  { %18592 = vst [vmem:[#allocation56_spill] sm:$0xff] %v16460_v47  ;;  %v451_v51 = vmul.f32 %v16442_v21, %v16442_v21  ;;  %v16476_v59 = vsub.f32 %v18597_v20, %v16286_v48  ;;  %v491_v55 = vmul.f32 %v16448_v25, %v16448_v25  ;;  %v452_v32 = vmul.f32 %v16454_v19, %v16454_v19  ;;  %v16492_v20 = vld [vmem:[#allocation8 + $0x2a0] sm:$0xff]  ;;  %v16494_v24 = vld [vmem:[#allocation8 + $0x288] sm:$0xff] }
 0x17e   :  { %18594 = vst [vmem:[#allocation45_spill] sm:$0xff] %v16466_v30  ;;  %18596 = vst [vmem:[#allocation59_spill] sm:$0xff] %v16470_v31  ;;  %v546_v40 = vadd.f32 %v545_v33, %v450_v3  ;;  %v587_v16 = vadd.f32 %v586_v8, %v489_v27  ;;  %v16484_v60 = vsub.f32 %v18599_v49, %v16286_v48  ;;  %v16490_v33 = vld [vmem:[#allocation8 + $0x280] sm:$0xff]  ;;  %v16500_v19 = vld [vmem:[#allocation8 + $0x2a8] sm:$0xff] }
 0x17f   :  { %18598 = vst [vmem:[#allocation48_spill] sm:$0xff] %v16476_v59  ;;  %v13464_v15 = vcombine.low %v15990_v62, %v15996_v2  ;;  %v13466_v3 = vcombine.low %v15998_v18, %v16000_v7  ;;  %v492_v8 = vmul.f32 %v16460_v47, %v16460_v47  ;;  %v13473_v49 = vcombine.high %v16490_v33, %v16492_v20  ;;  %v18601_v62 = vld [vmem:[#allocation68_spill] sm:$0xff]  ;;  %v16692_v47 = vld [vmem:[#allocation7 + $0x8] sm:$0xff] }
 0x180   :  { %18600 = vst [vmem:[#allocation62_spill] sm:$0xff] %v16484_v60  ;;  %v547_v27 = vadd.f32 %v546_v40, %v451_v51  ;;  %v588_v21 = vadd.f32 %v587_v16, %v490_v41  ;;  %v16504_v2 = vsub.f32 %v18601_v62, %v16136_v52  ;;  %v453_v18 = vmul.f32 %v16466_v30, %v16466_v30  ;;  %v18603_v41 = vld [vmem:[#allocation60_spill] sm:$0xff]  ;;  %v18605_v62 = vld [vmem:[#allocation70_spill] sm:$0xff] }
 0x181   :  { %10482 = vmatpush1.bf16.msra.mxu0 %v13464_v15  ;;  %11118 = vmatpush1.bf16.msra.mxu1 %v13466_v3  ;;  %v13475_v7 = vcombine.high %v16494_v24, %v16500_v19  ;;  %v16512_v40 = vsub.f32 %v18603_v41, %v16286_v48  ;;  %v493_v16 = vmul.f32 %v16476_v59, %v16476_v59 }
 0x182   :  { %18602 = vst [vmem:[#allocation51_spill] sm:$0xff] %v16504_v2  ;;  %v548_v51 = vadd.f32 %v547_v27, %v452_v32  ;;  %v589_v38 = vadd.f32 %v588_v21, %v491_v55  ;;  %10483 = vmatprep.subr.bf16.mxu0 %v13473_v49  ;;  %v16518_v25 = vsub.f32 %v18605_v62, %v16136_v52  ;;  %v18607_v32 = vld [vmem:[#allocation63_spill] sm:$0xff]  ;;  %v18609_v52 = vld [vmem:[#allocation65_spill] sm:$0xff] }
 0x183   :  { %18604 = vst [vmem:[#allocation64_spill] sm:$0xff] %v16512_v40  ;;  %v454_v15 = vmul.f32 %v16470_v31, %v16470_v31  ;;  %11119 = vmatprep.subr.bf16.mxu1 %v13475_v7  ;;  %v16524_v27 = vsub.f32 %v18607_v32, %v16286_v48  ;;  %v494_v41 = vmul.f32 %v16484_v60, %v16484_v60  ;;  %v18611_v32 = vld [vmem:[#allocation67_spill] sm:$0xff] }
 0x184   :  { %18606 = vst [vmem:[#allocation66_spill] sm:$0xff] %v16518_v25  ;;  %v549_v3 = vadd.f32 %v548_v51, %v453_v18  ;;  %v590_v30 = vadd.f32 %v589_v38, %v492_v8  ;;  %v455_v55 = vmul.f32 %v16504_v2, %v16504_v2  ;;  %v16532_v49 = vsub.f32 %v18609_v52, %v16286_v48 }
 0x185   :  { %18608 = vst [vmem:[#allocation54_spill] sm:$0xff] %v16524_v27  ;;  %v495_v7 = vmul.f32 %v16512_v40, %v16512_v40  ;;  %v456_v51 = vmul.f32 %v16518_v25, %v16518_v25  ;;  %v16540_v31 = vsub.f32 %v18611_v32, %v16286_v48  ;;  %v496_v38 = vmul.f32 %v16524_v27, %v16524_v27 }
 0x186   :  { %v550_v21 = vadd.f32 %v549_v3, %v454_v15  ;;  %18610 = vst [vmem:[#allocation57_spill] sm:$0xff] %v16532_v49  ;;  %v591_v18 = vadd.f32 %v590_v30, %v493_v16  ;;  %v18613_v3 = vld [vmem:[#allocation69_spill] sm:$0xff]  ;;  %v497_v30 = vmul.f32 %v16532_v49, %v16532_v49 }
 0x187   :  { %18612 = vst [vmem:[#allocation68_spill] sm:$0xff] %v16540_v31  ;;  %v16546_v52 = vsub.f32 %v18613_v3, %v16286_v48  ;;  %v498_v32 = vmul.f32 %v16540_v31, %v16540_v31  ;;  %v18619_v3 = vld [vmem:[#allocation73_spill] sm:$0xff] }
 0x188   :  { %v551_v62 = vadd.f32 %v550_v21, %v455_v55  ;;  %v592_v8 = vadd.f32 %v591_v18, %v494_v41  ;;  %v18615_v55 = vld [vmem:[#allocation71_spill] sm:$0xff]  ;;  %v18617_v41 = vld [vmem:[#allocation72_spill] sm:$0xff] }
 0x189   :  { %18614 = vst [vmem:[#allocation60_spill] sm:$0xff] %v16546_v52  ;;  %v16552_v21 = vsub.f32 %v18615_v55, %v16286_v48  ;;  %v16558_v18 = vsub.f32 %v18617_v41, %v16286_v48  ;;  %v18621_v55 = vld [vmem:[#allocation74_spill] sm:$0xff]  ;;  %v18623_v41 = vld [vmem:[#allocation75_spill] sm:$0xff] }
 0x18a   :  { %v552_v15 = vadd.f32 %v551_v62, %v456_v51  ;;  %v593_v16 = vadd.f32 %v592_v8, %v495_v7  ;;  %v499_v51 = vmul.f32 %v16546_v52, %v16546_v52  ;;  %v16564_v7 = vsub.f32 %v18619_v3, %v16286_v48 }
 0x18b   :  { %18616 = vst [vmem:[#allocation70_spill] sm:$0xff] %v16552_v21  ;;  %18618 = vst [vmem:[#allocation63_spill] sm:$0xff] %v16558_v18  ;;  %v500_v8 = vmul.f32 %v16552_v21, %v16552_v21  ;;  %v16570_v49 = vsub.f32 %v18621_v55, %v16286_v48  ;;  %v16576_v31 = vsub.f32 %v18623_v41, %v16286_v48  ;;  %v1249_v41 = vld [vmem:[#allocation8 + $0x2e0] sm:$0xff] }
 0x18c   :  { %553 = vadd.xlane.f32.xlu1 %v552_v15  ;;  %v594_v2 = vadd.f32 %v593_v16, %v496_v38  ;;  %18620 = vst [vmem:[#allocation65_spill] sm:$0xff] %v16564_v7  ;;  %v501_v38 = vmul.f32 %v16558_v18, %v16558_v18  ;;  %v13474_v48 = vcombine.low %v16494_v24, %v16500_v19  ;;  %v1250_v18 = vld [vmem:[#allocation8 + $0x2e8] sm:$0xff] }
 0x18d   :  { %18622 = vst [vmem:[#allocation67_spill] sm:$0xff] %v16570_v49  ;;  %18624 = vst [vmem:[#allocation69_spill] sm:$0xff] %v16576_v31  ;;  %v503_v3 = vmul.f32 %v16570_v49, %v16570_v49  ;;  %v1274_v49 = vld [vmem:[#allocation8 + $0x3a8] sm:$0xff] }
 0x18e   :  { %v595_v62 = vadd.f32 %v594_v2, %v497_v30  ;;  %v502_v2 = vmul.f32 %v16564_v7, %v16564_v7  ;;  %11120 = vmatpush1.bf16.msra.mxu1 %v13474_v48 }
 0x190   :  { %v596_v15 = vadd.f32 %v595_v62, %v498_v32  ;;  %v504_v62 = vmul.f32 %v16576_v31, %v16576_v31  ;;  %v1277_v31 = vld [vmem:[#allocation8 + $0x3c0] sm:$0xff] }
 0x192   :  { %v597_v16 = vadd.f32 %v596_v15, %v499_v51  ;;  %v13472_v51 = vcombine.low %v16490_v33, %v16492_v20  ;;  %v1245_v15 = vld [vmem:[#allocation8 + $0x2c0] sm:$0xff]  ;;  %v1254_v33 = vld [vmem:[#allocation8 + $0x308] sm:$0xff] }
 0x194   :  { %v598_v30 = vadd.f32 %v597_v16, %v500_v8  ;;  %v1246_v8 = vld [vmem:[#allocation8 + $0x2c8] sm:$0xff]  ;;  %v13481_v16 = vcombine.high %v1245_v15, %v1249_v41  ;;  %10484 = vmatpush1.bf16.msra.mxu0 %v13472_v51 }
 0x195   :  { %v1262_v51 = vld [vmem:[#allocation8 + $0x348] sm:$0xff] }
 0x196   :  { %v599_v32 = vadd.f32 %v598_v30, %v501_v38  ;;  %v13483_v38 = vcombine.high %v1246_v8, %v1250_v18  ;;  %10485 = vmatprep.subr.bf16.mxu0 %v13481_v16  ;;  %v13482_v30 = vcombine.low %v1246_v8, %v1250_v18  ;;  %v1273_v8 = vld [vmem:[#allocation8 + $0x3a0] sm:$0xff] }
 0x198   :  { %v600_v55 = vadd.f32 %v599_v32, %v502_v2  ;;  %11121 = vmatprep.subr.bf16.mxu1 %v13483_v38  ;;  %v13480_v2 = vcombine.low %v1245_v15, %v1249_v41  ;;  %v1266_v15 = vld [vmem:[#allocation8 + $0x368] sm:$0xff]  ;;  %v1269_v41 = vld [vmem:[#allocation8 + $0x380] sm:$0xff] }
 0x199   :  { %11122 = vmatpush1.bf16.msra.mxu1 %v13482_v30  ;;  %v13499_v16 = vcombine.high %v1262_v51, %v1266_v15  ;;  %v13498_v38 = vcombine.low %v1262_v51, %v1266_v15  ;;  %v1270_v30 = vld [vmem:[#allocation8 + $0x388] sm:$0xff] }
 0x19a   :  { %v601_v25 = vadd.f32 %v600_v55, %v503_v3  ;;  %10486 = vmatpush1.bf16.msra.mxu0 %v13480_v2  ;;  %v1258_v3 = vld [vmem:[#allocation8 + $0x328] sm:$0xff]  ;;  %v1265_v55 = vld [vmem:[#allocation8 + $0x360] sm:$0xff]  ;;  %v13505_v2 = vcombine.high %v1269_v41, %v1273_v8 }
 0x19b   :  { %v13491_v24 = vcombine.high %v1254_v33, %v1258_v3  ;;  %v13490_v32 = vcombine.low %v1254_v33, %v1258_v3  ;;  %v1278_v33 = vld [vmem:[#allocation8 + $0x3c8] sm:$0xff]  ;;  %v13504_v3 = vcombine.low %v1269_v41, %v1273_v8 }
 0x19c   :  { %v602_v52 = vadd.f32 %v601_v25, %v504_v62  ;;  %v1253_v25 = vld [vmem:[#allocation8 + $0x300] sm:$0xff]  ;;  %v16596_v15 = vld [vmem:[#allocation8 + $0x428] sm:$0xff] }
 0x19d   :  { %11123 = vmatprep.subr.bf16.mxu1 %v13491_v24  ;;  %v1261_v62 = vld [vmem:[#allocation8 + $0x340] sm:$0xff]  ;;  %v13506_v24 = vcombine.low %v1270_v30, %v1274_v49 }
 0x19e   :  { %603 = vadd.xlane.f32.xlu1 %v602_v52  ;;  %v1257_v52 = vld [vmem:[#allocation8 + $0x320] sm:$0xff]  ;;  %11124 = vmatpush1.bf16.msra.mxu1 %v13490_v32  ;;  %v13497_v48 = vcombine.high %v1261_v62, %v1265_v55  ;;  %v13496_v18 = vcombine.low %v1261_v62, %v1265_v55 }
 0x19f   :  { %v13489_v20 = vcombine.high %v1253_v25, %v1257_v52  ;;  %v13488_v19 = vcombine.low %v1253_v25, %v1257_v52  ;;  %v13507_v25 = vcombine.high %v1270_v30, %v1274_v49  ;;  %v1281_v52 = vld [vmem:[#allocation8 + $0x3e0] sm:$0xff]  ;;  %11125 = vmatprep.subr.bf16.mxu1 %v13499_v16  ;;  %v719_v30 = vlaneseq }
 0x1a0   :  { %v16588_v32 = vld [vmem:[#allocation8 + $0x400] sm:$0xff]  ;;  %v13512_v41 = vcombine.low %v1277_v31, %v1281_v52 }
 0x1a1   :  { %10487 = vmatprep.subr.bf16.mxu0 %v13489_v20  ;;  %v1282_v20 = vld [vmem:[#allocation8 + $0x3e8] sm:$0xff]  ;;  %v16590_v62 = vld [vmem:[#allocation8 + $0x420] sm:$0xff] }
 0x1a2   :  { %10488 = vmatpush1.bf16.msra.mxu0 %v13488_v19  ;;  %11126 = vmatpush1.bf16.msra.mxu1 %v13498_v38  ;;  %v13513_v19 = vcombine.high %v1277_v31, %v1281_v52  ;;  %v13515_v55 = vcombine.high %v1278_v33, %v1282_v20  ;;  %v13514_v49 = vcombine.low %v1278_v33, %v1282_v20  ;;  %v16604_v31 = vshrl.u32 %v719_v30, 7  ;;  %v16609_v33 = vld [vmem:[#allocation5] sm:$0xff] }
 0x1a3   :  { %10489 = vmatprep.subr.bf16.mxu0 %v13497_v48  ;;  %11127 = vmatprep.subr.bf16.mxu1 %v13507_v25  ;;  %v16594_v48 = vld [vmem:[#allocation8 + $0x408] sm:$0xff]  ;;  %v13521_v8 = vcombine.high %v16588_v32, %v16590_v62 }
 0x1a4   :  { %v13523_v16 = vcombine.high %v16594_v48, %v16596_v15  ;;  %v16607_v52 = vsub.s32 2, %v16604_v31  ;;  %v16612_v20 = vsub.s32 5, %v16604_v31 }
 0x1a6   :  { %10490 = vmatpush1.bf16.msra.mxu0 %v13496_v18  ;;  %11128 = vmatpush1.bf16.msra.mxu1 %v13506_v24  ;;  %18625 = vst [vmem:[#allocation71_spill] sm:$0xff] %v16607_v52  ;;  %18626 = vst [vmem:[#allocation72_spill] sm:$0xff] %v16612_v20  ;;  %v16617_v24 = vsub.s32 4, %v16604_v31 }
 0x1a7   :  { %10491 = vmatprep.subr.bf16.mxu0 %v13505_v2  ;;  %11129 = vmatprep.subr.bf16.mxu1 %v13515_v55  ;;  %v16621_v55 = vrot.slane %v16609_v33, %v16607_v52 }
 0x1a8   :  { %18627 = vst [vmem:[#allocation73_spill] sm:$0xff] %v16617_v24 }
 0x1aa   :  { %10492 = vmatpush1.bf16.msra.mxu0 %v13504_v3  ;;  %11130 = vmatpush1.bf16.msra.mxu1 %v13514_v49  ;;  %v16614_v3 = vld [vmem:[#allocation7] sm:$0xff] }
 0x1ab   :  { %10493 = vmatprep.subr.bf16.mxu0 %v13513_v19  ;;  %11152 = vmatprep.subr.bf16.mxu1 %v13523_v16  ;;  %v16630_v16 = vrot.slane %v16609_v33, %v16612_v20  ;;  %v16640_v30 = vrot.slane %v16614_v3, %v16612_v20 }
 0x1ae   :  { %10494 = vmatpush1.bf16.msra.mxu0 %v13512_v41  ;;  %v16624_v41 = vsub.s32 7, %v16604_v31 }
 0x1af   :  { %10516 = vmatprep.subr.bf16.mxu0 %v13521_v8 }
 0x1b0   :  { %18628 = vst [vmem:[#allocation74_spill] sm:$0xff] %v16624_v41  ;;  %v16658_v40 = vrot.slane %v16609_v33, %v16624_v41 }
 0x1fb   :  { %v529_v38 = vpop.xlane.xlu0 %528 }
 0x1fc   :  { %v605_v2 = vmul.f32 0.00032552084, %v529_v38 }
 0x1fe   :  { %v609_v25 = vadd.f32 1e-05, %v605_v2  ;;  %v16636_v2 = vrot.slane %v16614_v3, %v16607_v52 }
 0x200   :  { %15326 = vrsqrt.f32 %v609_v25  ;;  %v16643_v25 = vsub.s32 6, %v16604_v31 }
 0x202   :  { %18629 = vst [vmem:[#allocation75_spill] sm:$0xff] %v16643_v25 }
 0x208   :  { %v579_v19 = vpop.xlane.xlu0 %578 }
 0x209   :  { %v607_v8 = vmul.f32 0.00032552084, %v579_v19 }
 0x20a   :  { %v16626_v49 = vpop.eup %15326 }
 0x20b   :  { %v619_v38 = vmul.f32 %v16626_v49, %v15984_v0  ;;  %v611_v18 = vadd.f32 1e-05, %v607_v8  ;;  %v622_v19 = vmul.f32 %v16626_v49, %v16016_v50  ;;  %v621_v51 = vmul.f32 %v16626_v49, %v16004_v58 }
 0x20c   :  { %v16651_v0 = vrot.slane %v16609_v33, %v16617_v24  ;;  %v624_v21 = vmul.f32 %v16626_v49, %v16028_v1  ;;  %v16661_v8 = vsub.s32 3, %v16604_v31  ;;  %v16666_v58 = vrot.slane %v16614_v3, %v16617_v24 }
 0x20d   :  { %v841_v7 = vmul.f32 %v16621_v55, %v619_v38  ;;  %15328 = vrsqrt.f32 %v611_v18  ;;  %v844_v50 = vmul.f32 %v16630_v16, %v622_v19  ;;  %v16673_v1 = vrot.slane %v16614_v3, %v16624_v41  ;;  %v16679_v18 = vld [vmem:[#allocation5 + $0x8] sm:$0xff] }
 0x20e   :  { %18630 = vst [vmem:[#allocation93_spill] sm:$0xff] %v16661_v8  ;;  %v16677_v38 = vrot.slane %v16609_v33, %v16643_v25  ;;  %18631 = vst [vmem:[#allocation94_spill] sm:$0xff] %v16679_v18  ;;  %v843_v19 = vmul.f32 %v16651_v0, %v621_v51  ;;  %v846_v60 = vmul.f32 %v16658_v40, %v624_v21 }
 0x20f   :  { %v16669_v27 = vadd.f32 %v16636_v2, %v841_v7  ;;  %v16682_v59 = vadd.f32 %v16640_v30, %v844_v50  ;;  %v623_v7 = vmul.f32 %v16626_v49, %v16022_v44  ;;  %v16690_v41 = vrot.slane %v16614_v3, %v16643_v25 }
 0x210   :  { %v16695_v23 = vadd.f32 %v16666_v58, %v843_v19  ;;  %v16699_v50 = vrot.slane %v16679_v18, %v16661_v8  ;;  %v16702_v51 = vadd.f32 %v16673_v1, %v846_v60  ;;  %v628_v44 = vmul.f32 %v16626_v49, %v16078_v57 }
 0x211   :  { %v845_v21 = vmul.f32 %v16677_v38, %v623_v7  ;;  %v16709_v25 = vrot.slane %v16692_v47, %v16661_v8  ;;  %v16724_v57 = vrot.slane %v16679_v18, %v16607_v52  ;;  %v16728_v10 = vrot.slane %v16679_v18, %v16612_v20 }
 0x212   :  { %v850_v19 = vmul.f32 %v16699_v50, %v628_v44 }
 0x213   :  { %v16712_v36 = vadd.f32 %v16690_v41, %v845_v21  ;;  %18634 = vst [vmem:[#allocation97_spill] sm:$0xff] %v16728_v10  ;;  %v16732_v21 = vrot.slane %v16679_v18, %v16617_v24 }
 0x214   :  { %v16718_v17 = vadd.f32 %v16709_v25, %v850_v19  ;;  %v627_v19 = vmul.f32 %v16626_v49, %v16066_v13 }
 0x215   :  { %18632 = vst [vmem:[#allocation95_spill] sm:$0xff] %v16712_v36  ;;  %18635 = vst [vmem:[#allocation98_spill] sm:$0xff] %v16732_v21 }
 0x216   :  { %18633 = vst [vmem:[#allocation96_spill] sm:$0xff] %v16718_v17  ;;  %v629_v17 = vmul.f32 %v16626_v49, %v16082_v6  ;;  %v16756_v6 = vrot.slane %v16692_v47, %v16612_v20 }
 0x217   :  { %v16715_v11 = vpop.eup %15328 }
 0x218   :  { %v667_v60 = vmul.f32 %v16715_v11, %v16048_v61  ;;  %v630_v61 = vmul.f32 %v16626_v49, %v16086_v26  ;;  %v670_v37 = vmul.f32 %v16715_v11, %v16092_v34  ;;  %v669_v36 = vmul.f32 %v16715_v11, %v16072_v35  ;;  %18638 = vst [vmem:[#allocation101_spill] sm:$0xff] %v16756_v6 }
 0x219   :  { %v554_v7 = vpop.xlane.xlu1 %553  ;;  %v16752_v26 = vrot.slane %v16692_v47, %v16607_v52  ;;  %v16760_v34 = vrot.slane %v16692_v47, %v16617_v24  ;;  %v851_v20 = vmul.f32 %v16732_v21, %v629_v17  ;;  %v676_v17 = vmul.f32 %v16715_v11, %v16200_v53  ;;  %v1294_v21 = vld [vmem:[#allocation8 + $0x448] sm:$0xff] }
 0x21a   :  { %v606_v44 = vmul.f32 0.00032552084, %v554_v7  ;;  %v889_v29 = vmul.f32 %v16621_v55, %v667_v60  ;;  %v672_v7 = vmul.f32 %v16715_v11, %v16132_v4  ;;  %v892_v35 = vmul.f32 %v16630_v16, %v670_v37 }
 0x21b   :  { %18637 = vst [vmem:[#allocation100_spill] sm:$0xff] %v16752_v26  ;;  %18639 = vst [vmem:[#allocation102_spill] sm:$0xff] %v16760_v34  ;;  %v891_v4 = vmul.f32 %v16651_v0, %v669_v36  ;;  %v852_v52 = vmul.f32 %v16728_v10, %v630_v61  ;;  %v617_v53 = vmul.f32 %v16626_v49, %v15976_v63 }
 0x21c   :  { %v610_v18 = vadd.f32 1e-05, %v606_v44  ;;  %v16748_v13 = vadd.f32 %v16636_v2, %v889_v29  ;;  %v849_v29 = vmul.f32 %v16724_v57, %v627_v19  ;;  %v894_v60 = vmul.f32 %v16658_v40, %v672_v7 }
 0x21d   :  { %v671_v44 = vmul.f32 %v16715_v11, %v16112_v45  ;;  %v16777_v37 = vadd.f32 %v16640_v30, %v892_v35  ;;  %v16780_v36 = vadd.f32 %v16666_v58, %v891_v4  ;;  %v675_v7 = vmul.f32 %v16715_v11, %v16186_v28 }
 0x21e   :  { %18636 = vst [vmem:[#allocation99_spill] sm:$0xff] %v16748_v13  ;;  %15330 = vrsqrt.f32 %v610_v18  ;;  %v16771_v13 = vsub.s32 1, %v16604_v31  ;;  %v16774_v18 = vsub.s32 0, %v16604_v31  ;;  %v16783_v19 = vadd.f32 %v16673_v1, %v894_v60 }
 0x21f   :  { %v893_v45 = vmul.f32 %v16677_v38, %v671_v44  ;;  %v16787_v61 = vadd.f32 %v16752_v26, %v849_v29  ;;  %v16797_v35 = vadd.f32 %v16756_v6, %v852_v52  ;;  %v16800_v4 = vadd.f32 %v16760_v34, %v851_v20 }
 0x220   :  { %18640 = vst [vmem:[#allocation103_spill] sm:$0xff] %v16771_v13  ;;  %18641 = vst [vmem:[#allocation104_spill] sm:$0xff] %v16774_v18  ;;  %v618_v60 = vmul.f32 %v16626_v49, %v15980_v22  ;;  %v16806_v29 = vrot.slane %v16609_v33, %v16771_v13  ;;  %v16812_v44 = vrot.slane %v16609_v33, %v16774_v18 }
 0x221   :  { %18642 = vst [vmem:[#allocation105_spill] sm:$0xff] %v16787_v61  ;;  %v16792_v31 = vadd.f32 %v16690_v41, %v893_v45  ;;  %18644 = vst [vmem:[#allocation107_spill] sm:$0xff] %v16797_v35  ;;  %v898_v28 = vmul.f32 %v16699_v50, %v676_v17  ;;  %v897_v52 = vmul.f32 %v16724_v57, %v675_v7  ;;  %v1298_v61 = vld [vmem:[#allocation8 + $0x468] sm:$0xff] }
 0x222   :  { %18645 = vst [vmem:[#allocation108_spill] sm:$0xff] %v16800_v4  ;;  %v840_v24 = vmul.f32 %v16806_v29, %v618_v60  ;;  %v16827_v63 = vrot.slane %v16614_v3, %v16771_v13  ;;  %v839_v4 = vmul.f32 %v16812_v44, %v617_v53  ;;  %v16832_v17 = vrot.slane %v16614_v3, %v16774_v18 }
 0x223   :  { %18643 = vst [vmem:[#allocation106_spill] sm:$0xff] %v16792_v31  ;;  %v16817_v20 = vadd.f32 %v16709_v25, %v898_v28  ;;  %v16820_v22 = vadd.f32 %v16752_v26, %v897_v52  ;;  %v13531_v31 = vcombine.high %v1294_v21, %v1298_v61  ;;  %v16873_v26 = vld [vmem:[#allocation8 + $0x488] sm:$0xff] }
 0x224   :  { %v1062_v6 = vadd.f32 %v16827_v63, %v840_v24  ;;  %v16855_v24 = vld [vmem:[#allocation8 + $0x4a0] sm:$0xff] }
 0x225   :  { %18646 = vst [vmem:[#allocation109_spill] sm:$0xff] %v16817_v20  ;;  %18647 = vst [vmem:[#allocation110_spill] sm:$0xff] %v16820_v22  ;;  %v1293_v22 = vld [vmem:[#allocation8 + $0x440] sm:$0xff] }
 0x228   :  { %v16822_v45 = vpop.eup %15330 }
 0x229   :  { %v642_v7 = vmul.f32 %v16822_v45, %v16182_v12  ;;  %v641_v28 = vmul.f32 %v16822_v45, %v16178_v54  ;;  %v643_v52 = vmul.f32 %v16822_v45, %v16208_v43  ;;  %v646_v60 = vmul.f32 %v16822_v45, %v16260_v14  ;;  %v1297_v54 = vld [vmem:[#allocation8 + $0x460] sm:$0xff] }
 0x22a   :  { %v1061_v12 = vadd.f32 %v16832_v17, %v839_v4  ;;  %v16859_v4 = vrot.slane %v16609_v33, %v16661_v8  ;;  %v13528_v10 = vcombine.low %v1293_v22, %v1297_v54  ;;  %v16875_v33 = vld [vmem:[#allocation8 + $0x4a8] sm:$0xff] }
 0x22b   :  { %v604_v13 = vpop.xlane.xlu1 %603  ;;  %v864_v35 = vmul.f32 %v16806_v29, %v642_v7  ;;  %v863_v53 = vmul.f32 %v16812_v44, %v641_v28  ;;  %v865_v18 = vmul.f32 %v16621_v55, %v643_v52  ;;  %v868_v20 = vmul.f32 %v16630_v16, %v646_v60  ;;  %v16853_v52 = vld [vmem:[#allocation8 + $0x480] sm:$0xff] }
 0x22c   :  { %v608_v34 = vmul.f32 0.00032552084, %v604_v13  ;;  %v645_v28 = vmul.f32 %v16822_v45, %v16244_v46  ;;  %v13529_v46 = vcombine.high %v1293_v22, %v1297_v54  ;;  %v648_v54 = vmul.f32 %v16822_v45, %v16290_v5  ;;  %v16909_v5 = vld [vmem:[#allocation8 + $0x4e8] sm:$0xff] }
 0x22d   :  { %v1086_v43 = vadd.f32 %v16827_v63, %v864_v35  ;;  %v1085_v14 = vadd.f32 %v16832_v17, %v863_v53  ;;  %v1087_v7 = vadd.f32 %v16636_v2, %v865_v18  ;;  %v16863_v35 = vrot.slane %v16614_v3, %v16661_v8 }
 0x22e   :  { %v612_v13 = vadd.f32 1e-05, %v608_v34  ;;  %v1090_v60 = vadd.f32 %v16640_v30, %v868_v20  ;;  %v13536_v20 = vcombine.low %v16853_v52, %v16855_v24  ;;  %v867_v22 = vmul.f32 %v16651_v0, %v645_v28  ;;  %v16907_v28 = vld [vmem:[#allocation8 + $0x4c8] sm:$0xff] }
 0x22f   :  { %v16866_v53 = vpack.c.bf16 %v1086_v43, %v1062_v6  ;;  %v16868_v18 = vpack.c.bf16 %v1085_v14, %v1061_v12  ;;  %v16871_v34 = vpack.c.bf16 %v1087_v7, %v16669_v27  ;;  %v13530_v6 = vcombine.low %v1294_v21, %v1298_v61  ;;  %v16884_v27 = vld [vmem:[#allocation8 + $0x4c0] sm:$0xff] }
 0x230   :  { %15332 = vrsqrt.f32 %v612_v13  ;;  %v16878_v3 = vpack.c.bf16 %v1090_v60, %v16682_v59  ;;  %v16886_v12 = vld [vmem:[#allocation8 + $0x4e0] sm:$0xff]  ;;  %v13537_v59 = vcombine.high %v16853_v52, %v16855_v24  ;;  %v647_v21 = vmul.f32 %v16822_v45, %v16276_v42 }
 0x231   :  { %18648 = vst [vmem:[#allocation111_spill] sm:$0xff] %v16866_v53  ;;  %18649 = vst [vmem:[#allocation112_spill] sm:$0xff] %v16868_v18  ;;  %10495 = vmatprep.mubr.bf16.mxu0 %v16866_v53  ;;  %11131 = vmatprep.mubr.bf16.mxu1 %v16866_v53  ;;  %v18651_v61 = vcombine.low %v16588_v32, %v16590_v62  ;;  %v18652_v43 = vcombine.low %v16594_v48, %v16596_v15  ;;  %v16914_v62 = vld [vmem:[#allocation8 + $0x500] sm:$0xff]  ;;  %v18661_v53 = vld [vmem:[#allocation26_spill] sm:$0xff] }
 0x232   :  { %18650 = vst [vmem:[#allocation113_spill] sm:$0xff] %v16878_v3  ;;  %10496 = vmatmul.mubr.bf16.vlgmr.msra.gmra.mrb[0].mxu0 %v16868_v18  ;;  %11132 = vmatmul.mubr.bf16.vlgmr.msra.gmra.mrb[0].mxu1 %v16868_v18  ;;  %v13538_v14 = vcombine.low %v16873_v26, %v16875_v33  ;;  %v13539_v7 = vcombine.high %v16873_v26, %v16875_v33  ;;  %v16916_v48 = vld [vmem:[#allocation8 + $0x520] sm:$0xff]  ;;  %v16933_v33 = vld [vmem:[#allocation8 + $0x508] sm:$0xff]  ;;  %v18660_v18 = vld [vmem:[#allocation28_spill] sm:$0xff] }
 0x233   :  { %10517 = vmatpush1.bf16.msra.mxu0 %v18651_v61  ;;  %11153 = vmatpush1.bf16.msra.mxu1 %v18652_v43  ;;  %v1089_v42 = vadd.f32 %v16666_v58, %v867_v22  ;;  %v13544_v32 = vcombine.low %v16884_v27, %v16886_v12  ;;  %v870_v15 = vmul.f32 %v16658_v40, %v648_v54  ;;  %v16935_v22 = vld [vmem:[#allocation8 + $0x528] sm:$0xff] }
 0x234   :  { %10518 = vmatprep.subr.bf16.mxu0 %v13529_v46  ;;  %11154 = vmatprep.subr.bf16.mxu1 %v13531_v31  ;;  %v869_v13 = vmul.f32 %v16677_v38, %v647_v21  ;;  %v666_v26 = vmul.f32 %v16715_v11, %v16038_v9  ;;  %v665_v52 = vmul.f32 %v16715_v11, %v16034_v39  ;;  %v16937_v9 = vld [vmem:[#allocation8 + $0x540] sm:$0xff]  ;;  %v16949_v61 = vld [vmem:[#allocation8 + $0x548] sm:$0xff] }
 0x235   :  { %v13545_v31 = vcombine.high %v16884_v27, %v16886_v12  ;;  %v16927_v24 = vpack.c.bf16 %v1089_v42, %v16695_v23  ;;  %v644_v60 = vmul.f32 %v16822_v45, %v16230_v56  ;;  %v13546_v46 = vcombine.low %v16907_v28, %v16909_v5  ;;  %v18653_v23 = vld [vmem:[#allocation76_spill] sm:$0xff]  ;;  %v16947_v21 = vld [vmem:[#allocation8 + $0x560] sm:$0xff]  ;;  %v16951_v43 = vld [vmem:[#allocation8 + $0x568] sm:$0xff] }
 0x236   :  { %v1092_v39 = vadd.f32 %v16673_v1, %v870_v15  ;;  %v1091_v54 = vadd.f32 %v16690_v41, %v869_v13  ;;  %v620_v27 = vmul.f32 %v16626_v49, %v18653_v23  ;;  %v13547_v56 = vcombine.high %v16907_v28, %v16909_v5  ;;  %v18655_v42 = vld [vmem:[#allocation95_spill] sm:$0xff] }
 0x237   :  { %10519 = vmatpush1.bf16.msra.mxu0 %v13528_v10  ;;  %11155 = vmatpush1.bf16.msra.mxu1 %v13530_v6  ;;  %v13553_v10 = vcombine.high %v16914_v62, %v16916_v48  ;;  %v888_v28 = vmul.f32 %v16806_v29, %v666_v26  ;;  %v887_v5 = vmul.f32 %v16812_v44, %v665_v52  ;;  %v18657_v52 = vld [vmem:[#allocation55_spill] sm:$0xff] }
 0x238   :  { %10520 = vmatprep.subr.bf16.mxu0 %v13537_v59  ;;  %11156 = vmatprep.subr.bf16.mxu1 %v13539_v7  ;;  %v16956_v6 = vpack.c.bf16 %v1092_v39, %v16702_v51  ;;  %v16959_v15 = vpack.c.bf16 %v1091_v54, %v18655_v42  ;;  %v13555_v59 = vcombine.high %v16933_v33, %v16935_v22  ;;  %v18658_v42 = vld [vmem:[#allocation27_spill] sm:$0xff] }
 0x239   :  { %v866_v23 = vmul.f32 %v16859_v4, %v644_v60  ;;  %v842_v12 = vmul.f32 %v16859_v4, %v620_v27  ;;  %v18659_v60 = vld [vmem:[#allocation29_spill] sm:$0xff] }
 0x23a   :  { %18654 = vst [vmem:[#allocation76_spill] sm:$0xff] %v16956_v6  ;;  %18656 = vst [vmem:[#allocation95_spill] sm:$0xff] %v16959_v15  ;;  %v16967_v7 = vpop.eup %15332  ;;  %v1110_v15 = vadd.f32 %v16827_v63, %v888_v28 }
 0x23b   :  { %v690_v54 = vmul.f32 %v16967_v7, %v18657_v52  ;;  %v689_v13 = vmul.f32 %v16967_v7, %v18658_v42  ;;  %10521 = vmatpush1.bf16.msra.mxu0 %v13536_v20  ;;  %11157 = vmatpush1.bf16.msra.mxu1 %v13538_v14  ;;  %v691_v51 = vmul.f32 %v16967_v7, %v18659_v60  ;;  %v17040_v60 = vld [vmem:[#allocation8 + $0x5c8] sm:$0xff] }
 0x23c   :  { %10522 = vmatprep.subr.bf16.mxu0 %v13545_v31  ;;  %11158 = vmatprep.subr.bf16.mxu1 %v13547_v56  ;;  %v694_v39 = vmul.f32 %v16967_v7, %v18660_v18  ;;  %v693_v26 = vmul.f32 %v16967_v7, %v18661_v53  ;;  %v1109_v14 = vadd.f32 %v16832_v17, %v887_v5  ;;  %v17001_v5 = vld [vmem:[#allocation8 + $0x5a0] sm:$0xff] }
 0x23d   :  { %v912_v52 = vmul.f32 %v16806_v29, %v690_v54  ;;  %v911_v20 = vmul.f32 %v16812_v44, %v689_v13  ;;  %v1088_v31 = vadd.f32 %v16863_v35, %v866_v23  ;;  %v913_v27 = vmul.f32 %v16621_v55, %v691_v51  ;;  %v18662_v29 = vld [vmem:[#allocation32_spill] sm:$0xff]  ;;  %v16999_v44 = vld [vmem:[#allocation8 + $0x580] sm:$0xff] }
 0x23e   :  { %v916_v56 = vmul.f32 %v16630_v16, %v694_v39  ;;  %v915_v42 = vmul.f32 %v16651_v0, %v693_v26  ;;  %v652_v28 = vmul.f32 %v16822_v45, %v18662_v29  ;;  %v18664_v13 = vld [vmem:[#allocation44_spill] sm:$0xff]  ;;  %v13568_v26 = vcombine.low %v16999_v44, %v17001_v5 }
 0x23f   :  { %v1134_v18 = vadd.f32 %v16827_v63, %v912_v52  ;;  %v1133_v53 = vadd.f32 %v16832_v17, %v911_v20  ;;  %10523 = vmatpush1.bf16.msra.mxu0 %v13544_v32  ;;  %11159 = vmatpush1.bf16.msra.mxu1 %v13546_v46  ;;  %v1135_v55 = vadd.f32 %v16636_v2, %v913_v27  ;;  %v17011_v46 = vld [vmem:[#allocation8 + $0x588] sm:$0xff]  ;;  %v17019_v2 = vld [vmem:[#allocation8 + $0x5c0] sm:$0xff] }
 0x240   :  { %10524 = vmatprep.subr.bf16.mxu0 %v13553_v10  ;;  %11160 = vmatprep.subr.bf16.mxu1 %v13555_v59  ;;  %v1138_v16 = vadd.f32 %v16640_v30, %v916_v56  ;;  %v1137_v0 = vadd.f32 %v16666_v58, %v915_v42  ;;  %v1064_v17 = vadd.f32 %v16863_v35, %v842_v12  ;;  %v17013_v10 = vld [vmem:[#allocation8 + $0x5a8] sm:$0xff]  ;;  %v17021_v30 = vld [vmem:[#allocation8 + $0x5e0] sm:$0xff]  ;;  %v18666_v58 = vld [vmem:[#allocation99_spill] sm:$0xff] }
 0x241   :  { %v17006_v63 = vpack.c.bf16 %v1134_v18, %v1110_v15  ;;  %v13563_v32 = vcombine.high %v16949_v61, %v16951_v43  ;;  %v696_v59 = vmul.f32 %v16967_v7, %v18664_v13  ;;  %v17017_v23 = vpack.c.bf16 %v1133_v53, %v1109_v14  ;;  %v17042_v52 = vld [vmem:[#allocation8 + $0x5e8] sm:$0xff]  ;;  %v17050_v20 = vld [vmem:[#allocation8 + $0x620] sm:$0xff] }
 0x242   :  { %v17024_v15 = vpack.c.bf16 %v1135_v55, %v18666_v58  ;;  %v17027_v12 = vpack.c.bf16 %v1138_v16, %v16777_v37  ;;  %v17030_v51 = vpack.c.bf16 %v1137_v0, %v16780_v36  ;;  %v17034_v39 = vpack.c.bf16 %v1088_v31, %v1064_v17  ;;  %v17048_v36 = vld [vmem:[#allocation8 + $0x600] sm:$0xff]  ;;  %v18670_v31 = vld [vmem:[#allocation58_spill] sm:$0xff] }
 0x243   :  { %18663 = vst [vmem:[#allocation55_spill] sm:$0xff] %v17006_v63  ;;  %18665 = vst [vmem:[#allocation27_spill] sm:$0xff] %v17017_v23  ;;  %10505 = vmatprep.mubr.bf16.mxu0 %v17006_v63  ;;  %11141 = vmatprep.mubr.bf16.mxu1 %v17006_v63  ;;  %v13569_v54 = vcombine.high %v16999_v44, %v17001_v5  ;;  %v13570_v37 = vcombine.low %v17011_v46, %v17013_v10  ;;  %v17073_v5 = vld [vmem:[#allocation8 + $0x608] sm:$0xff] }
 0x244   :  { %18667 = vst [vmem:[#allocation29_spill] sm:$0xff] %v17024_v15  ;;  %18668 = vst [vmem:[#allocation28_spill] sm:$0xff] %v17030_v51  ;;  %10506 = vmatmul.mubr.bf16.gmra.mrb[4].mxu0 %v17017_v23  ;;  %11142 = vmatmul.mubr.bf16.gmra.mrb[4].mxu1 %v17017_v23  ;;  %v874_v14 = vmul.f32 %v16699_v50, %v652_v28  ;;  %v651_v27 = vmul.f32 %v16822_v45, %v18670_v31  ;;  %v17075_v55 = vld [vmem:[#allocation8 + $0x628] sm:$0xff] }
 0x245   :  { %18669 = vst [vmem:[#allocation26_spill] sm:$0xff] %v17034_v39  ;;  %10548 = vmatprep.mubr.bf16.mxu0 %v17034_v39  ;;  %11184 = vmatprep.mubr.bf16.mxu1 %v17034_v39  ;;  %v13571_v56 = vcombine.high %v17011_v46, %v17013_v10  ;;  %v13577_v18 = vcombine.high %v17019_v2, %v17021_v30  ;;  %v18675_v10 = vld [vmem:[#allocation56_spill] sm:$0xff]  ;;  %v18695_v42 = vld [vmem:[#allocation62_spill] sm:$0xff] }
 0x246   :  { %v18671_v53 = vcombine.low %v16914_v62, %v16916_v48  ;;  %v18672_v29 = vcombine.low %v16933_v33, %v16935_v22  ;;  %v13578_v28 = vcombine.low %v17040_v60, %v17042_v52  ;;  %v13579_v44 = vcombine.high %v17040_v60, %v17042_v52  ;;  %v18674_v22 = vld [vmem:[#allocation41_spill] sm:$0xff]  ;;  %v18676_v60 = vld [vmem:[#allocation74_spill] sm:$0xff]  ;;  %v18694_v48 = vld [vmem:[#allocation35_spill] sm:$0xff] }
 0x247   :  { %v918_v16 = vmul.f32 %v16658_v40, %v696_v59  ;;  %v18673_v62 = vcombine.high %v16937_v9, %v16947_v21  ;;  %v13585_v33 = vcombine.high %v17048_v36, %v17050_v20  ;;  %v695_v0 = vmul.f32 %v16967_v7, %v18674_v22  ;;  %v18677_v52 = vld [vmem:[#allocation94_spill] sm:$0xff] }
 0x248   :  { %10525 = vmatpush1.bf16.msra.mxu0 %v18671_v53  ;;  %11161 = vmatpush1.bf16.msra.mxu1 %v18672_v29  ;;  %v1096_v46 = vadd.f32 %v16709_v25, %v874_v14  ;;  %v873_v40 = vmul.f32 %v16724_v57, %v651_v27  ;;  %v700_v13 = vmul.f32 %v16967_v7, %v18675_v10  ;;  %v17107_v27 = vld [vmem:[#allocation8 + $0x640] sm:$0xff]  ;;  %v18696_v39 = vld [vmem:[#allocation98_spill] sm:$0xff] }
 0x249   :  { %10526 = vmatprep.subr.bf16.mxu0 %v18673_v62  ;;  %11162 = vmatprep.subr.bf16.mxu1 %v13563_v32  ;;  %v1140_v17 = vadd.f32 %v16673_v1, %v918_v16  ;;  %v13587_v59 = vcombine.high %v17073_v5, %v17075_v55  ;;  %v917_v58 = vmul.f32 %v16677_v38, %v695_v0  ;;  %v17109_v53 = vld [vmem:[#allocation8 + $0x660] sm:$0xff]  ;;  %v18681_v38 = vld [vmem:[#allocation31_spill] sm:$0xff] }
 0x24a   :  { %v17099_v31 = vrot.slane %v18677_v52, %v18676_v60  ;;  %v18678_v1 = vcombine.low %v16937_v9, %v16947_v21  ;;  %v18679_v14 = vcombine.low %v16949_v61, %v16951_v43  ;;  %v678_v16 = vmul.f32 %v16715_v11, %v18681_v38  ;;  %v18682_v62 = vld [vmem:[#allocation75_spill] sm:$0xff]  ;;  %v18683_v21 = vld [vmem:[#allocation92_spill] sm:$0xff] }
 0x24b   :  { %v17112_v29 = vpack.c.bf16 %v1140_v17, %v16783_v19  ;;  %v17118_v22 = vrot.slane %v18677_v52, %v18682_v62  ;;  %v1139_v9 = vadd.f32 %v16690_v41, %v917_v58  ;;  %v677_v61 = vmul.f32 %v16715_v11, %v18683_v21  ;;  %v18684_v19 = vld [vmem:[#allocation96_spill] sm:$0xff]  ;;  %v18686_v52 = vld [vmem:[#allocation53_spill] sm:$0xff]  ;;  %v18687_v58 = vld [vmem:[#allocation106_spill] sm:$0xff] }
 0x24c   :  { %10527 = vmatpush1.bf16.msra.mxu0 %v18678_v1  ;;  %11163 = vmatpush1.bf16.msra.mxu1 %v18679_v14  ;;  %v17125_v43 = vrot.slane %v16692_v47, %v18676_v60  ;;  %v17128_v0 = vpack.c.bf16 %v1096_v46, %v18684_v19  ;;  %v18685_v17 = vld [vmem:[#allocation100_spill] sm:$0xff]  ;;  %v922_v1 = vmul.f32 %v16699_v50, %v700_v13  ;;  %v1362_v50 = vld [vmem:[#allocation8 + $0x668] sm:$0xff]  ;;  %v18689_v13 = vld [vmem:[#allocation97_spill] sm:$0xff] }
 0x24d   :  { %18680 = vst [vmem:[#allocation32_spill] sm:$0xff] %v17112_v29  ;;  %10528 = vmatprep.subr.bf16.mxu0 %v13569_v54  ;;  %11164 = vmatprep.subr.bf16.mxu1 %v13571_v56  ;;  %v1095_v10 = vadd.f32 %v18685_v17, %v873_v40  ;;  %v699_v54 = vmul.f32 %v16967_v7, %v18686_v52  ;;  %v17145_v40 = vld [vmem:[#allocation8 + $0x648] sm:$0xff]  ;;  %v18690_v21 = vld [vmem:[#allocation81_spill] sm:$0xff]  ;;  %v18691_v52 = vld [vmem:[#allocation80_spill] sm:$0xff] }
 0x24e   :  { %v13593_v56 = vcombine.high %v17107_v27, %v17109_v53  ;;  %v17139_v14 = vpack.c.bf16 %v1139_v9, %v18687_v58  ;;  %v17143_v46 = vrot.slane %v16692_v47, %v18682_v62  ;;  %v900_v38 = vmul.f32 %v18689_v13, %v678_v16  ;;  %v18692_v9 = vld [vmem:[#allocation105_spill] sm:$0xff] }
 0x24f   :  { %v632_v19 = vmul.f32 %v16626_v49, %v18690_v21  ;;  %v631_v41 = vmul.f32 %v16626_v49, %v18691_v52  ;;  %v17153_v58 = vpack.c.bf16 %v1095_v10, %v18692_v9  ;;  %v1144_v47 = vadd.f32 %v16709_v25, %v922_v1  ;;  %v17166_v10 = vld [vmem:[#allocation8 + $0x680] sm:$0xff] }
 0x250   :  { %18688 = vst [vmem:[#allocation44_spill] sm:$0xff] %v17139_v14  ;;  %10529 = vmatpush1.bf16.msra.mxu0 %v13568_v26  ;;  %11165 = vmatpush1.bf16.msra.mxu1 %v13570_v37  ;;  %v921_v26 = vmul.f32 %v16724_v57, %v699_v54  ;;  %v18693_v37 = vld [vmem:[#allocation38_spill] sm:$0xff]  ;;  %v653_v16 = vmul.f32 %v16822_v45, %v18694_v48  ;;  %v18697_v25 = vld [vmem:[#allocation109_spill] sm:$0xff] }
 0x251   :  { %10530 = vmatprep.subr.bf16.mxu0 %v13577_v18  ;;  %11166 = vmatprep.subr.bf16.mxu1 %v13579_v44  ;;  %v654_v32 = vmul.f32 %v16822_v45, %v18693_v37  ;;  %v702_v21 = vmul.f32 %v16967_v7, %v18695_v42  ;;  %v899_v52 = vmul.f32 %v18696_v39, %v677_v61  ;;  %v17175_v48 = vld [vmem:[#allocation8 + $0x6a0] sm:$0xff]  ;;  %v17177_v42 = vld [vmem:[#allocation8 + $0x688] sm:$0xff] }
 0x252   :  { %v13594_v18 = vcombine.low %v17145_v40, %v1362_v50  ;;  %v13595_v44 = vcombine.high %v17145_v40, %v1362_v50  ;;  %v17169_v1 = vpack.c.bf16 %v1144_v47, %v18697_v25  ;;  %v1143_v57 = vadd.f32 %v18685_v17, %v921_v26  ;;  %v1370_v61 = vld [vmem:[#allocation8 + $0x6a8] sm:$0xff]  ;;  %v18701_v25 = vld [vmem:[#allocation48_spill] sm:$0xff] }
 0x253   :  { %v18698_v54 = vcombine.low %v17019_v2, %v17021_v30  ;;  %v876_v9 = vmul.f32 %v18689_v13, %v654_v32  ;;  %v854_v40 = vmul.f32 %v17099_v31, %v632_v19  ;;  %v853_v50 = vmul.f32 %v17118_v22, %v631_v41  ;;  %v18699_v47 = vld [vmem:[#allocation110_spill] sm:$0xff] }
 0x254   :  { %11167 = vmatpush1.bf16.msra.mxu1 %v13578_v28  ;;  %v17183_v17 = vpack.c.bf16 %v1143_v57, %v18699_v47  ;;  %v875_v2 = vmul.f32 %v18696_v39, %v653_v16  ;;  %v924_v30 = vmul.f32 %v18689_v13, %v702_v21  ;;  %v18700_v28 = vld [vmem:[#allocation101_spill] sm:$0xff]  ;;  %v701_v32 = vmul.f32 %v16967_v7, %v18701_v25  ;;  %v18705_v57 = vld [vmem:[#allocation107_spill] sm:$0xff]  ;;  %v18707_v25 = vld [vmem:[#allocation20_spill] sm:$0xff] }
 0x255   :  { %10531 = vmatpush1.bf16.msra.mxu0 %v18698_v54  ;;  %11168 = vmatprep.subr.bf16.mxu1 %v13587_v59  ;;  %v1098_v26 = vadd.f32 %v18700_v28, %v876_v9  ;;  %v1122_v37 = vadd.f32 %v18700_v28, %v900_v38  ;;  %v18702_v54 = vld [vmem:[#allocation102_spill] sm:$0xff]  ;;  %v13603_v59 = vcombine.high %v17177_v42, %v1370_v61  ;;  %v1373_v21 = vld [vmem:[#allocation8 + $0x6c0] sm:$0xff] }
 0x256   :  { %10532 = vmatprep.subr.bf16.mxu0 %v13585_v33  ;;  %v1121_v19 = vadd.f32 %v18702_v54, %v899_v52  ;;  %v13601_v33 = vcombine.high %v17166_v10, %v17175_v48  ;;  %v1097_v41 = vadd.f32 %v18702_v54, %v875_v2  ;;  %v1146_v16 = vadd.f32 %v18700_v28, %v924_v30  ;;  %v18706_v9 = vld [vmem:[#allocation34_spill] sm:$0xff]  ;;  %v1377_v30 = vld [vmem:[#allocation8 + $0x6e0] sm:$0xff] }
 0x257   :  { %v18703_v13 = vcombine.low %v17048_v36, %v17050_v20  ;;  %v18704_v38 = vcombine.low %v17073_v5, %v17075_v55  ;;  %v17204_v52 = vpack.c.bf16 %v1098_v26, %v18705_v57  ;;  %v680_v47 = vmul.f32 %v16715_v11, %v18706_v9  ;;  %v1374_v28 = vld [vmem:[#allocation8 + $0x6c8] sm:$0xff]  ;;  %v18708_v20 = vld [vmem:[#allocation108_spill] sm:$0xff]  ;;  %v18710_v9 = vld [vmem:[#allocation61_spill] sm:$0xff] }
 0x258   :  { %v679_v2 = vmul.f32 %v16715_v11, %v18707_v25  ;;  %v1378_v36 = vld [vmem:[#allocation8 + $0x6e8] sm:$0xff]  ;;  %v17213_v5 = vpack.c.bf16 %v1146_v16, %v1122_v37  ;;  %v923_v55 = vmul.f32 %v18696_v39, %v701_v32  ;;  %v1076_v57 = vadd.f32 %v17125_v43, %v854_v40 }
 0x259   :  { %10533 = vmatpush1.bf16.msra.mxu0 %v18703_v13  ;;  %11169 = vmatpush1.bf16.msra.mxu1 %v18704_v38  ;;  %v17211_v13 = vpack.c.bf16 %v1097_v41, %v18708_v20  ;;  %v18709_v26 = vld [vmem:[#allocation30_spill] sm:$0xff]  ;;  %v655_v25 = vmul.f32 %v16822_v45, %v18710_v9  ;;  %v13602_v41 = vcombine.low %v17177_v42, %v1370_v61 }
 0x25a   :  { %10534 = vmatprep.subr.bf16.mxu0 %v13593_v56  ;;  %11170 = vmatprep.subr.bf16.mxu1 %v13595_v44  ;;  %v656_v38 = vmul.f32 %v16822_v45, %v18709_v26  ;;  %v1075_v56 = vadd.f32 %v17143_v46, %v853_v50  ;;  %v13600_v44 = vcombine.low %v17166_v10, %v17175_v48  ;;  %v18711_v16 = vld [vmem:[#allocation54_spill] sm:$0xff]  ;;  %v1381_v26 = vld [vmem:[#allocation8 + $0x700] sm:$0xff] }
 0x25b   :  { %v1145_v37 = vadd.f32 %v18702_v54, %v923_v55  ;;  %v704_v39 = vmul.f32 %v16967_v7, %v18711_v16  ;;  %v18712_v32 = vcombine.low %v17107_v27, %v17109_v53  ;;  %v13609_v40 = vcombine.high %v1373_v21, %v1377_v30  ;;  %v1385_v10 = vld [vmem:[#allocation8 + $0x720] sm:$0xff]  ;;  %v1382_v48 = vld [vmem:[#allocation8 + $0x708] sm:$0xff] }
 0x25c   :  { %v13611_v20 = vcombine.high %v1374_v28, %v1378_v36  ;;  %v878_v50 = vmul.f32 %v17099_v31, %v656_v38  ;;  %v1386_v42 = vld [vmem:[#allocation8 + $0x728] sm:$0xff]  ;;  %v877_v54 = vmul.f32 %v17118_v22, %v655_v25  ;;  %v902_v55 = vmul.f32 %v17099_v31, %v680_v47 }
 0x25d   :  { %10535 = vmatpush1.bf16.msra.mxu0 %v18712_v32  ;;  %11171 = vmatpush1.bf16.msra.mxu1 %v13594_v18  ;;  %v17232_v61 = vpack.c.bf16 %v1145_v37, %v1121_v19  ;;  %v926_v53 = vmul.f32 %v17099_v31, %v704_v39  ;;  %v18713_v18 = vld [vmem:[#allocation64_spill] sm:$0xff]  ;;  %v901_v38 = vmul.f32 %v17118_v22, %v679_v2  ;;  %v1389_v31 = vld [vmem:[#allocation8 + $0x740] sm:$0xff] }
 0x25e   :  { %10536 = vmatprep.subr.bf16.mxu0 %v13601_v33  ;;  %11172 = vmatprep.subr.bf16.mxu1 %v13603_v59  ;;  %v1100_v27 = vadd.f32 %v17125_v43, %v878_v50  ;;  %v703_v9 = vmul.f32 %v16967_v7, %v18713_v18  ;;  %v13608_v33 = vcombine.low %v1373_v21, %v1377_v30  ;;  %v1393_v2 = vld [vmem:[#allocation8 + $0x760] sm:$0xff]  ;;  %v1390_v30 = vld [vmem:[#allocation8 + $0x748] sm:$0xff] }
 0x25f   :  { %v13610_v59 = vcombine.low %v1374_v28, %v1378_v36  ;;  %v1099_v16 = vadd.f32 %v17143_v46, %v877_v54  ;;  %v1124_v19 = vadd.f32 %v17125_v43, %v902_v55  ;;  %v13617_v25 = vcombine.high %v1381_v26, %v1385_v10  ;;  %v1394_v28 = vld [vmem:[#allocation8 + $0x768] sm:$0xff]  ;;  %v17255_v50 = vld [vmem:[#allocation5 + $0x10] sm:$0xff] }
 0x260   :  { %v13619_v37 = vcombine.high %v1382_v48, %v1386_v42  ;;  %v17243_v47 = vpack.c.bf16 %v1100_v27, %v1076_v57  ;;  %v1148_v32 = vadd.f32 %v17125_v43, %v926_v53  ;;  %v925_v21 = vmul.f32 %v17118_v22, %v703_v9  ;;  %v1398_v54 = vld [vmem:[#allocation8 + $0x788] sm:$0xff]  ;;  %v17259_v53 = vld [vmem:[#allocation7 + $0x10] sm:$0xff] }
 0x261   :  { %10537 = vmatpush1.bf16.msra.mxu0 %v13600_v44  ;;  %11173 = vmatpush1.bf16.msra.mxu1 %v13602_v41  ;;  %v17245_v39 = vpack.c.bf16 %v1099_v16, %v1075_v56  ;;  %v1123_v36 = vadd.f32 %v17143_v46, %v901_v38  ;;  %v13616_v57 = vcombine.low %v1381_v26, %v1385_v10  ;;  %v1401_v56 = vld [vmem:[#allocation8 + $0x7a0] sm:$0xff]  ;;  %v1402_v55 = vld [vmem:[#allocation8 + $0x7a8] sm:$0xff]  ;;  %v18717_v16 = vld [vmem:[#allocation24_spill] sm:$0xff] }
 0x262   :  { %10538 = vmatprep.subr.bf16.mxu0 %v13609_v40  ;;  %11174 = vmatprep.subr.bf16.mxu1 %v13611_v20  ;;  %v17250_v44 = vpack.c.bf16 %v1148_v32, %v1124_v19  ;;  %v1147_v41 = vadd.f32 %v17143_v46, %v925_v21  ;;  %v13618_v40 = vcombine.low %v1382_v48, %v1386_v42  ;;  %v17253_v20 = vld [vmem:[#allocation8 + $0x780] sm:$0xff]  ;;  %v18718_v32 = vld [vmem:[#allocation79_spill] sm:$0xff] }
 0x263   :  { %18714 = vst [vmem:[#allocation99_spill] sm:$0xff] %v17245_v39  ;;  %v13625_v22 = vcombine.high %v1389_v31, %v1393_v2  ;;  %v13627_v43 = vcombine.high %v1390_v30, %v1394_v28  ;;  %v13624_v46 = vcombine.low %v1389_v31, %v1393_v2  ;;  %v13626_v18 = vcombine.low %v1390_v30, %v1394_v28  ;;  %v17262_v10 = vld [vmem:[#allocation8 + $0x7c0] sm:$0xff] }
 0x264   :  { %18715 = vst [vmem:[#allocation58_spill] sm:$0xff] %v17250_v44  ;;  %v17257_v27 = vpack.c.bf16 %v1147_v41, %v1123_v36  ;;  %v13632_v26 = vcombine.low %v17253_v20, %v1401_v56  ;;  %v17264_v48 = vld [vmem:[#allocation8 + $0x7e0] sm:$0xff]  ;;  %v17268_v42 = vrot.slane %v17255_v50, %v16661_v8  ;;  %v13633_v9 = vcombine.high %v17253_v20, %v1401_v56  ;;  %v17287_v36 = vld [vmem:[#allocation8 + $0x808] sm:$0xff]  ;;  %v18720_v20 = vld [vmem:[#allocation71_spill] sm:$0xff] }
 0x265   :  { %10539 = vmatpush1.bf16.msra.mxu0 %v13608_v33  ;;  %11175 = vmatpush1.bf16.msra.mxu1 %v13610_v59  ;;  %v13634_v38 = vcombine.low %v1398_v54, %v1402_v55  ;;  %v1406_v33 = vld [vmem:[#allocation8 + $0x7c8] sm:$0xff]  ;;  %v692_v19 = vmul.f32 %v16967_v7, %v18717_v16  ;;  %v17275_v31 = vld [vmem:[#allocation8 + $0x820] sm:$0xff]  ;;  %v668_v21 = vmul.f32 %v16715_v11, %v18718_v32  ;;  %v18727_v44 = vld [vmem:[#allocation40_spill] sm:$0xff] }
 0x266   :  { %10540 = vmatprep.subr.bf16.mxu0 %v13617_v25  ;;  %11176 = vmatprep.subr.bf16.mxu1 %v13619_v37  ;;  %18716 = vst [vmem:[#allocation41_spill] sm:$0xff] %v17257_v27  ;;  %v1410_v59 = vld [vmem:[#allocation8 + $0x7e8] sm:$0xff]  ;;  %v13635_v25 = vcombine.high %v1398_v54, %v1402_v55  ;;  %v17273_v37 = vld [vmem:[#allocation8 + $0x800] sm:$0xff]  ;;  %v17281_v2 = vrot.slane %v17259_v53, %v16661_v8  ;;  %v18724_v27 = vld [vmem:[#allocation39_spill] sm:$0xff] }
 0x267   :  { %v13640_v30 = vcombine.low %v17262_v10, %v17264_v48  ;;  %v13641_v28 = vcombine.high %v17262_v10, %v17264_v48  ;;  %v17289_v41 = vld [vmem:[#allocation8 + $0x828] sm:$0xff]  ;;  %v17295_v56 = vrot.slane %v17255_v50, %v18720_v20  ;;  %v17297_v54 = vld [vmem:[#allocation8 + $0x840] sm:$0xff]  ;;  %v17301_v55 = vrot.slane %v17259_v53, %v18720_v20  ;;  %v18721_v10 = vld [vmem:[#allocation72_spill] sm:$0xff] }
 0x268   :  { %v17305_v48 = vrot.slane %v17255_v50, %v18721_v10  ;;  %v13648_v16 = vcombine.low %v17273_v37, %v17275_v31  ;;  %v13649_v32 = vcombine.high %v17273_v37, %v17275_v31  ;;  %v17316_v8 = vld [vmem:[#allocation8 + $0x868] sm:$0xff]  ;;  %v13651_v37 = vcombine.high %v17287_v36, %v17289_v41  ;;  %v18723_v31 = vld [vmem:[#allocation84_spill] sm:$0xff] }
 0x269   :  { %10541 = vmatpush1.bf16.msra.mxu0 %v13616_v57  ;;  %11177 = vmatpush1.bf16.msra.mxu1 %v13618_v40  ;;  %v18719_v57 = vld [vmem:[#allocation85_spill] sm:$0xff]  ;;  %v18722_v20 = vld [vmem:[#allocation42_spill] sm:$0xff]  ;;  %v635_v63 = vmul.f32 %v16626_v49, %v18723_v31  ;;  %v683_v39 = vmul.f32 %v16715_v11, %v18727_v44 }
 0x26a   :  { %10542 = vmatprep.subr.bf16.mxu0 %v13625_v22  ;;  %11178 = vmatprep.subr.bf16.mxu1 %v13627_v43  ;;  %v636_v40 = vmul.f32 %v16626_v49, %v18719_v57  ;;  %v13642_v22 = vcombine.low %v1406_v33, %v1410_v59  ;;  %v13643_v43 = vcombine.high %v1406_v33, %v1410_v59  ;;  %v17312_v59 = vld [vmem:[#allocation8 + $0x860] sm:$0xff]  ;;  %v17314_v57 = vld [vmem:[#allocation8 + $0x848] sm:$0xff] }
 0x26b   :  { %v914_v33 = vmul.f32 %v16859_v4, %v692_v19  ;;  %v660_v23 = vmul.f32 %v16822_v45, %v18722_v20 }
 0x26c   :  { %v858_v19 = vmul.f32 %v17268_v42, %v636_v40 }
 0x26d   :  { %10543 = vmatpush1.bf16.msra.mxu0 %v13624_v46  ;;  %11179 = vmatpush1.bf16.msra.mxu1 %v13626_v18  ;;  %v13650_v46 = vcombine.low %v17287_v36, %v17289_v41  ;;  %v890_v18 = vmul.f32 %v16859_v4, %v668_v21  ;;  %v13657_v4 = vcombine.high %v17297_v54, %v17312_v59 }
 0x26e   :  { %10544 = vmatprep.subr.bf16.mxu0 %v13633_v9  ;;  %11180 = vmatprep.subr.bf16.mxu1 %v13635_v25  ;;  %v659_v9 = vmul.f32 %v16822_v45, %v18724_v27  ;;  %v882_v20 = vmul.f32 %v17268_v42, %v660_v23  ;;  %v1136_v36 = vadd.f32 %v16863_v35, %v914_v33  ;;  %v18725_v23 = vld [vmem:[#allocation43_spill] sm:$0xff] }
 0x26f   :  { %v13659_v41 = vcombine.high %v17314_v57, %v17316_v8  ;;  %v1080_v27 = vadd.f32 %v17281_v2, %v858_v19  ;;  %v1112_v40 = vadd.f32 %v16863_v35, %v890_v18  ;;  %v857_v25 = vmul.f32 %v17295_v56, %v635_v63  ;;  %v18728_v63 = vld [vmem:[#allocation73_spill] sm:$0xff] }
 0x270   :  { %v1104_v31 = vadd.f32 %v17281_v2, %v882_v20  ;;  %v881_v21 = vmul.f32 %v17295_v56, %v659_v9  ;;  %v17356_v35 = vrot.slane %v17259_v53, %v18721_v10  ;;  %v17367_v44 = vrot.slane %v17259_v53, %v18728_v63  ;;  %v1433_v20 = vld [vmem:[#allocation8 + $0x8a0] sm:$0xff] }
 0x271   :  { %10545 = vmatpush1.bf16.msra.mxu0 %v13632_v26  ;;  %11181 = vmatpush1.bf16.msra.mxu1 %v13634_v38  ;;  %v684_v26 = vmul.f32 %v16715_v11, %v18725_v23  ;;  %v18726_v38 = vld [vmem:[#allocation70_spill] sm:$0xff]  ;;  %v17362_v18 = vpack.c.bf16 %v1136_v36, %v1112_v40  ;;  %v18729_v23 = vld [vmem:[#allocation60_spill] sm:$0xff]  ;;  %v905_v40 = vmul.f32 %v17295_v56, %v683_v39 }
 0x272   :  { %10546 = vmatprep.subr.bf16.mxu0 %v13641_v28  ;;  %11182 = vmatprep.subr.bf16.mxu1 %v13643_v43  ;;  %v708_v33 = vmul.f32 %v16967_v7, %v18726_v38  ;;  %v17351_v19 = vpack.c.bf16 %v1104_v31, %v1080_v27  ;;  %v1079_v28 = vadd.f32 %v17301_v55, %v857_v25  ;;  %v17369_v25 = vld [vmem:[#allocation8 + $0x880] sm:$0xff]  ;;  %v1434_v36 = vld [vmem:[#allocation8 + $0x8a8] sm:$0xff]  ;;  %v18730_v38 = vld [vmem:[#allocation87_spill] sm:$0xff] }
 0x273   :  { %v17360_v43 = vrot.slane %v17255_v50, %v18728_v63  ;;  %v1103_v9 = vadd.f32 %v17301_v55, %v881_v21  ;;  %v906_v27 = vmul.f32 %v17268_v42, %v684_v26  ;;  %v17388_v26 = vld [vmem:[#allocation8 + $0x8e0] sm:$0xff]  ;;  %v17400_v63 = vld [vmem:[#allocation8 + $0x8c8] sm:$0xff] }
 0x274   :  { %v930_v31 = vmul.f32 %v17268_v42, %v708_v33  ;;  %v17386_v42 = vld [vmem:[#allocation8 + $0x8c0] sm:$0xff] }
 0x275   :  { %10547 = vmatpush1.bf16.msra.mxu0 %v13640_v30  ;;  %11183 = vmatpush1.bf16.msra.mxu1 %v13642_v22  ;;  %v707_v30 = vmul.f32 %v16967_v7, %v18729_v23  ;;  %v17375_v22 = vld [vmem:[#allocation8 + $0x888] sm:$0xff]  ;;  %v17377_v21 = vpack.c.bf16 %v1103_v9, %v1079_v28  ;;  %v1128_v33 = vadd.f32 %v17281_v2, %v906_v27 }
 0x276   :  { %10569 = vmatprep.subr.bf16.mxu0 %v13649_v32  ;;  %11205 = vmatprep.subr.bf16.mxu1 %v13651_v37  ;;  %v638_v32 = vmul.f32 %v16626_v49, %v18730_v38  ;;  %v18731_v37 = vld [vmem:[#allocation59_spill] sm:$0xff]  ;;  %v1152_v28 = vadd.f32 %v17281_v2, %v930_v31  ;;  %v13664_v9 = vcombine.low %v17369_v25, %v1433_v20  ;;  %v17402_v2 = vld [vmem:[#allocation8 + $0x8e8] sm:$0xff] }
 0x277   :  { %v662_v10 = vmul.f32 %v16822_v45, %v18731_v37  ;;  %v929_v39 = vmul.f32 %v17295_v56, %v707_v30  ;;  %v13665_v23 = vcombine.high %v17369_v25, %v1433_v20  ;;  %v1127_v38 = vadd.f32 %v17301_v55, %v905_v40  ;;  %v17410_v20 = vld [vmem:[#allocation8 + $0x900] sm:$0xff] }
 0x278   :  { %10549 = vmatmul.mubr.bf16.vlgmr.msra.gmra.mrb[0].mxu0 %v16871_v34  ;;  %11185 = vmatmul.mubr.bf16.vlgmr.msra.gmra.mrb[0].mxu1 %v16871_v34  ;;  %v13666_v37 = vcombine.low %v17375_v22, %v1434_v36  ;;  %v13667_v27 = vcombine.high %v17375_v22, %v1434_v36  ;;  %v17404_v56 = vpack.c.bf16 %v1152_v28, %v1128_v33  ;;  %v18732_v36 = vld [vmem:[#allocation86_spill] sm:$0xff] }
 0x279   :  { %10558 = vmatprep.mubr.bf16.mxu0 %v17362_v18  ;;  %10570 = vmatpush1.bf16.msra.mxu0 %v13648_v16  ;;  %v13672_v16 = vcombine.low %v17386_v42, %v17388_v26  ;;  %v13673_v25 = vcombine.high %v17386_v42, %v17388_v26  ;;  %v1151_v31 = vadd.f32 %v17301_v55, %v929_v39 }
 0x27a   :  { %11194 = vmatprep.mubr.bf16.mxu1 %v17362_v18  ;;  %11206 = vmatpush1.bf16.msra.mxu1 %v13650_v46  ;;  %v17412_v46 = vld [vmem:[#allocation8 + $0x920] sm:$0xff]  ;;  %v860_v30 = vmul.f32 %v17305_v48, %v638_v32  ;;  %v884_v22 = vmul.f32 %v17305_v48, %v662_v10  ;;  %v18734_v33 = vcombine.low %v17297_v54, %v17312_v59  ;;  %v18735_v32 = vld [vmem:[#allocation46_spill] sm:$0xff] }
 0x27b   :  { %10571 = vmatprep.subr.bf16.mxu0 %v13657_v4  ;;  %11207 = vmatprep.subr.bf16.mxu1 %v13659_v41  ;;  %v637_v4 = vmul.f32 %v16626_v49, %v18732_v36  ;;  %v18733_v41 = vld [vmem:[#allocation45_spill] sm:$0xff]  ;;  %v13674_v42 = vcombine.low %v17400_v63, %v17402_v2  ;;  %v13675_v55 = vcombine.high %v17400_v63, %v17402_v2  ;;  %v18738_v36 = vld [vmem:[#allocation22_spill] sm:$0xff] }
 0x27c   :  { %v661_v40 = vmul.f32 %v16822_v45, %v18733_v41  ;;  %v17428_v26 = vpack.c.bf16 %v1151_v31, %v1127_v38  ;;  %v686_v10 = vmul.f32 %v16715_v11, %v18735_v32  ;;  %v18736_v28 = vcombine.low %v17314_v57, %v17316_v8  ;;  %v18737_v31 = vld [vmem:[#allocation65_spill] sm:$0xff]  ;;  %v1446_v57 = vld [vmem:[#allocation8 + $0x908] sm:$0xff]  ;;  %v18739_v41 = vld [vmem:[#allocation63_spill] sm:$0xff] }
 0x27d   :  { %10572 = vmatpush1.bf16.msra.mxu0 %v18734_v33  ;;  %v13680_v54 = vcombine.low %v17410_v20, %v17412_v46  ;;  %v1082_v59 = vadd.f32 %v17356_v35, %v860_v30  ;;  %v17440_v39 = vrot.slane %v17255_v50, %v18676_v60  ;;  %v1106_v63 = vadd.f32 %v17356_v35, %v884_v22 }
 0x27e   :  { %11208 = vmatpush1.bf16.msra.mxu1 %v18736_v28  ;;  %10573 = vmatprep.subr.bf16.mxu0 %v13665_v23  ;;  %v859_v38 = vmul.f32 %v17360_v43, %v637_v4  ;;  %v883_v2 = vmul.f32 %v17360_v43, %v661_v40  ;;  %v710_v8 = vmul.f32 %v16967_v7, %v18737_v31  ;;  %v1450_v23 = vld [vmem:[#allocation8 + $0x928] sm:$0xff]  ;;  %v1457_v28 = vld [vmem:[#allocation8 + $0x960] sm:$0xff] }
 0x27f   :  { %11209 = vmatprep.subr.bf16.mxu1 %v13667_v27  ;;  %v908_v30 = vmul.f32 %v17305_v48, %v686_v10  ;;  %v685_v27 = vmul.f32 %v16715_v11, %v18738_v36  ;;  %v709_v22 = vmul.f32 %v16967_v7, %v18739_v41  ;;  %v17455_v4 = vpack.c.bf16 %v1106_v63, %v1082_v59  ;;  %v1453_v10 = vld [vmem:[#allocation8 + $0x940] sm:$0xff]  ;;  %v18740_v41 = vld [vmem:[#allocation90_spill] sm:$0xff] }
 0x280   :  { %10559 = vmatmul.mubr.bf16.gmra.mrb[4].mxu0 %v17024_v15  ;;  %11195 = vmatmul.mubr.bf16.gmra.mrb[4].mxu1 %v17024_v15  ;;  %v1081_v40 = vadd.f32 %v17367_v44, %v859_v38  ;;  %v1105_v33 = vadd.f32 %v17367_v44, %v883_v2  ;;  %v13681_v32 = vcombine.high %v17410_v20, %v17412_v46  ;;  %v1454_v38 = vld [vmem:[#allocation8 + $0x948] sm:$0xff] }
 0x281   :  { %10574 = vmatpush1.bf16.msra.mxu0 %v13664_v9  ;;  %10601 = vmatprep.mubr.bf16.mxu0 %v16878_v3  ;;  %v932_v31 = vmul.f32 %v17305_v48, %v710_v8  ;;  %v17465_v9 = vrot.slane %v17259_v53, %v18676_v60  ;;  %v13682_v59 = vcombine.low %v1446_v57, %v1450_v23  ;;  %v1458_v2 = vld [vmem:[#allocation8 + $0x968] sm:$0xff] }
 0x282   :  { %11210 = vmatpush1.bf16.msra.mxu1 %v13666_v37  ;;  %11237 = vmatprep.mubr.bf16.mxu1 %v16878_v3  ;;  %v13683_v63 = vcombine.high %v1446_v57, %v1450_v23  ;;  %v17467_v37 = vpack.c.bf16 %v1105_v33, %v1081_v40  ;;  %v1130_v36 = vadd.f32 %v17356_v35, %v908_v30  ;;  %v1470_v3 = vld [vmem:[#allocation8 + $0x9c8] sm:$0xff] }
 0x283   :  { %10575 = vmatprep.subr.bf16.mxu0 %v13673_v25  ;;  %11211 = vmatprep.subr.bf16.mxu1 %v13675_v55  ;;  %v1154_v20 = vadd.f32 %v17356_v35, %v932_v31  ;;  %v907_v46 = vmul.f32 %v17360_v43, %v685_v27  ;;  %v931_v48 = vmul.f32 %v17360_v43, %v709_v22  ;;  %v18741_v55 = vld [vmem:[#allocation66_spill] sm:$0xff]  ;;  %v1461_v35 = vld [vmem:[#allocation8 + $0x980] sm:$0xff] }
 0x284   :  { %v13688_v8 = vcombine.low %v1453_v10, %v1457_v28  ;;  %v640_v25 = vmul.f32 %v16626_v49, %v18740_v41  ;;  %v664_v57 = vmul.f32 %v16822_v45, %v18741_v55  ;;  %v810_v23 = vrot.slane %v17255_v50, %v18682_v62  ;;  %v1465_v43 = vld [vmem:[#allocation8 + $0x9a0] sm:$0xff]  ;;  %v1466_v27 = vld [vmem:[#allocation8 + $0x9a8] sm:$0xff] }
 0x285   :  { %10576 = vmatpush1.bf16.msra.mxu0 %v13672_v16  ;;  %v13689_v30 = vcombine.high %v1453_v10, %v1457_v28  ;;  %v13691_v40 = vcombine.high %v1454_v38, %v1458_v2  ;;  %v17479_v33 = vpack.c.bf16 %v1154_v20, %v1130_v36  ;;  %v1462_v16 = vld [vmem:[#allocation8 + $0x988] sm:$0xff]  ;;  %v1129_v22 = vadd.f32 %v17367_v44, %v907_v46  ;;  %v18742_v50 = vld [vmem:[#allocation89_spill] sm:$0xff] }
 0x286   :  { %11212 = vmatpush1.bf16.msra.mxu1 %v13674_v42  ;;  %10577 = vmatprep.subr.bf16.mxu0 %v13681_v32  ;;  %v1153_v31 = vadd.f32 %v17367_v44, %v931_v48  ;;  %v862_v41 = vmul.f32 %v17440_v39, %v640_v25  ;;  %v886_v55 = vmul.f32 %v17440_v39, %v664_v57  ;;  %v18743_v32 = vld [vmem:[#allocation51_spill] sm:$0xff]  ;;  %v18744_v28 = vld [vmem:[#allocation25_spill] sm:$0xff] }
 0x287   :  { %11213 = vmatprep.subr.bf16.mxu1 %v13683_v63  ;;  %v639_v42 = vmul.f32 %v16626_v49, %v18742_v50  ;;  %v663_v10 = vmul.f32 %v16822_v45, %v18743_v32  ;;  %v688_v63 = vmul.f32 %v16715_v11, %v18744_v28  ;;  %v18745_v36 = vld [vmem:[#allocation69_spill] sm:$0xff]  ;;  %v13690_v46 = vcombine.low %v1454_v38, %v1458_v2 }
 0x288   :  { %v712_v20 = vmul.f32 %v16967_v7, %v18745_v36  ;;  %v17493_v60 = vpack.c.bf16 %v1153_v31, %v1129_v22  ;;  %v1084_v44 = vadd.f32 %v17465_v9, %v862_v41  ;;  %v1032_v48 = vrot.slane %v17259_v53, %v18682_v62  ;;  %v1469_v50 = vld [vmem:[#allocation8 + $0x9c0] sm:$0xff]  ;;  %v1474_v36 = vld [vmem:[#allocation8 + $0x9e8] sm:$0xff] }
 0x289   :  { %10578 = vmatpush1.bf16.msra.mxu0 %v13680_v54  ;;  %v13697_v25 = vcombine.high %v1461_v35, %v1465_v43  ;;  %v13699_v57 = vcombine.high %v1462_v16, %v1466_v27  ;;  %v1108_v32 = vadd.f32 %v17465_v9, %v886_v55  ;;  %v1473_v28 = vld [vmem:[#allocation8 + $0x9e0] sm:$0xff]  ;;  %v861_v54 = vmul.f32 %v810_v23, %v639_v42 }
 0x28a   :  { %11214 = vmatpush1.bf16.msra.mxu1 %v13682_v59  ;;  %10579 = vmatprep.subr.bf16.mxu0 %v13689_v30  ;;  %v885_v38 = vmul.f32 %v810_v23, %v663_v10  ;;  %v910_v2 = vmul.f32 %v17440_v39, %v688_v63  ;;  %v934_v22 = vmul.f32 %v17440_v39, %v712_v20  ;;  %v18746_v53 = vld [vmem:[#allocation49_spill] sm:$0xff]  ;;  %v18747_v30 = vld [vmem:[#allocation67_spill] sm:$0xff] }
 0x28b   :  { %11215 = vmatprep.subr.bf16.mxu1 %v13691_v40  ;;  %v17501_v31 = vpack.c.bf16 %v1108_v32, %v1084_v44  ;;  %v687_v59 = vmul.f32 %v16715_v11, %v18746_v53  ;;  %v711_v41 = vmul.f32 %v16967_v7, %v18747_v30  ;;  %v13696_v55 = vcombine.low %v1461_v35, %v1465_v43  ;;  %v1477_v39 = vld [vmem:[#allocation8 + $0xa00] sm:$0xff]  ;;  %v1482_v35 = vld [vmem:[#allocation8 + $0xa28] sm:$0xff] }
 0x28c   :  { %v13698_v40 = vcombine.low %v1462_v16, %v1466_v27  ;;  %v1083_v62 = vadd.f32 %v1032_v48, %v861_v54  ;;  %v1107_v15 = vadd.f32 %v1032_v48, %v885_v38  ;;  %v13705_v42 = vcombine.high %v1469_v50, %v1473_v28  ;;  %v1481_v20 = vld [vmem:[#allocation8 + $0xa20] sm:$0xff]  ;;  %v1486_v38 = vld [vmem:[#allocation8 + $0xa48] sm:$0xff] }
 0x28d   :  { %10580 = vmatpush1.bf16.msra.mxu0 %v13688_v8  ;;  %v13707_v10 = vcombine.high %v1470_v3, %v1474_v36  ;;  %v1132_v63 = vadd.f32 %v17465_v9, %v910_v2  ;;  %v1156_v32 = vadd.f32 %v17465_v9, %v934_v22  ;;  %v909_v53 = vmul.f32 %v810_v23, %v687_v59  ;;  %v1478_v8 = vld [vmem:[#allocation8 + $0xa08] sm:$0xff]  ;;  %v1493_v59 = vld [vmem:[#allocation8 + $0xa80] sm:$0xff] }
 0x28e   :  { %11216 = vmatpush1.bf16.msra.mxu1 %v13690_v46  ;;  %10581 = vmatprep.subr.bf16.mxu0 %v13697_v25  ;;  %v17508_v44 = vpack.c.bf16 %v1107_v15, %v1083_v62  ;;  %v933_v30 = vmul.f32 %v810_v23, %v711_v41  ;;  %v13704_v43 = vcombine.low %v1469_v50, %v1473_v28  ;;  %v1485_v15 = vld [vmem:[#allocation8 + $0xa40] sm:$0xff]  ;;  %v1490_v9 = vld [vmem:[#allocation8 + $0xa68] sm:$0xff] }
 0x28f   :  { %11217 = vmatprep.subr.bf16.mxu1 %v13699_v57  ;;  %v17511_v16 = vpack.c.bf16 %v1156_v32, %v1132_v63  ;;  %v1131_v27 = vadd.f32 %v1032_v48, %v909_v53  ;;  %v13706_v46 = vcombine.low %v1470_v3, %v1474_v36  ;;  %v13713_v25 = vcombine.high %v1477_v39, %v1481_v20  ;;  %v1489_v62 = vld [vmem:[#allocation8 + $0xa60] sm:$0xff]  ;;  %v1494_v36 = vld [vmem:[#allocation8 + $0xa88] sm:$0xff] }
 0x290   :  { %v1155_v57 = vadd.f32 %v1032_v48, %v933_v30  ;;  %v13715_v54 = vcombine.high %v1478_v8, %v1482_v35  ;;  %v13712_v23 = vcombine.low %v1477_v39, %v1481_v20  ;;  %v13714_v50 = vcombine.low %v1478_v8, %v1482_v35  ;;  %v1497_v3 = vld [vmem:[#allocation8 + $0xaa0] sm:$0xff]  ;;  %v1498_v48 = vld [vmem:[#allocation8 + $0xaa8] sm:$0xff] }
 0x291   :  { %10582 = vmatpush1.bf16.msra.mxu0 %v13696_v55  ;;  %v13721_v28 = vcombine.high %v1485_v15, %v1489_v62  ;;  %v13723_v22 = vcombine.high %v1486_v38, %v1490_v9  ;;  %v13720_v41 = vcombine.low %v1485_v15, %v1489_v62  ;;  %v13722_v55 = vcombine.low %v1486_v38, %v1490_v9  ;;  %v1505_v63 = vld [vmem:[#allocation8 + $0xae0] sm:$0xff]  ;;  %v1502_v39 = vld [vmem:[#allocation8 + $0xac8] sm:$0xff] }
 0x292   :  { %11218 = vmatpush1.bf16.msra.mxu1 %v13698_v40  ;;  %10583 = vmatprep.subr.bf16.mxu0 %v13705_v42  ;;  %v17513_v2 = vpack.c.bf16 %v1155_v57, %v1131_v27  ;;  %v13729_v40 = vcombine.high %v1493_v59, %v1497_v3  ;;  %v13731_v42 = vcombine.high %v1494_v36, %v1498_v48  ;;  %v1506_v20 = vld [vmem:[#allocation8 + $0xae8] sm:$0xff]  ;;  %v1509_v35 = vld [vmem:[#allocation8 + $0xb00] sm:$0xff] }
 0x293   :  { %11219 = vmatprep.subr.bf16.mxu1 %v13707_v10  ;;  %v1501_v10 = vld [vmem:[#allocation8 + $0xac0] sm:$0xff]  ;;  %v13728_v32 = vcombine.low %v1493_v59, %v1497_v3  ;;  %v13730_v53 = vcombine.low %v1494_v36, %v1498_v48  ;;  %v13739_v8 = vcombine.high %v1502_v39, %v1506_v20  ;;  %v1510_v27 = vld [vmem:[#allocation8 + $0xb08] sm:$0xff]  ;;  %v13738_v57 = vcombine.low %v1502_v39, %v1506_v20 }
 0x294   :  { %v13737_v30 = vcombine.high %v1501_v10, %v1505_v63  ;;  %v1517_v62 = vld [vmem:[#allocation8 + $0xb40] sm:$0xff]  ;;  %v1518_v9 = vld [vmem:[#allocation8 + $0xb48] sm:$0xff] }
 0x295   :  { %10584 = vmatpush1.bf16.msra.mxu0 %v13704_v43  ;;  %v1513_v43 = vld [vmem:[#allocation8 + $0xb20] sm:$0xff]  ;;  %v1526_v48 = vld [vmem:[#allocation8 + $0xb88] sm:$0xff] }
 0x296   :  { %11220 = vmatpush1.bf16.msra.mxu1 %v13706_v46  ;;  %10585 = vmatprep.subr.bf16.mxu0 %v13713_v25  ;;  %v1514_v46 = vld [vmem:[#allocation8 + $0xb28] sm:$0xff]  ;;  %v13736_v25 = vcombine.low %v1501_v10, %v1505_v63  ;;  %v1521_v38 = vld [vmem:[#allocation8 + $0xb60] sm:$0xff] }
 0x297   :  { %11221 = vmatprep.subr.bf16.mxu1 %v13715_v54  ;;  %v13745_v54 = vcombine.high %v1509_v35, %v1513_v43  ;;  %v13747_v15 = vcombine.high %v1510_v27, %v1514_v46  ;;  %v1525_v3 = vld [vmem:[#allocation8 + $0xb80] sm:$0xff]  ;;  %v1534_v20 = vld [vmem:[#allocation8 + $0xbc8] sm:$0xff] }
 0x298   :  { %v1529_v36 = vld [vmem:[#allocation8 + $0xba0] sm:$0xff] }
 0x299   :  { %10586 = vmatpush1.bf16.msra.mxu0 %v13712_v23  ;;  %v1522_v23 = vld [vmem:[#allocation8 + $0xb68] sm:$0xff]  ;;  %v1533_v63 = vld [vmem:[#allocation8 + $0xbc0] sm:$0xff] }
 0x29a   :  { %11222 = vmatpush1.bf16.msra.mxu1 %v13714_v50  ;;  %10587 = vmatprep.subr.bf16.mxu0 %v13721_v28  ;;  %v13744_v50 = vcombine.low %v1509_v35, %v1513_v43  ;;  %v13746_v28 = vcombine.low %v1510_v27, %v1514_v46  ;;  %v13755_v59 = vcombine.high %v1518_v9, %v1522_v23  ;;  %v1537_v39 = vld [vmem:[#allocation8 + $0xbe0] sm:$0xff]  ;;  %v1542_v46 = vld [vmem:[#allocation8 + $0xc08] sm:$0xff] }
 0x29b   :  { %11223 = vmatprep.subr.bf16.mxu1 %v13723_v22  ;;  %v13753_v22 = vcombine.high %v1517_v62, %v1521_v38  ;;  %v1541_v43 = vld [vmem:[#allocation8 + $0xc00] sm:$0xff] }
 0x29c   :  { %v1545_v27 = vld [vmem:[#allocation8 + $0xc20] sm:$0xff] }
 0x29d   :  { %10588 = vmatpush1.bf16.msra.mxu0 %v13720_v41  ;;  %v1530_v41 = vld [vmem:[#allocation8 + $0xba8] sm:$0xff] }
 0x29e   :  { %11224 = vmatpush1.bf16.msra.mxu1 %v13722_v55  ;;  %10589 = vmatprep.subr.bf16.mxu0 %v13729_v40  ;;  %v13752_v55 = vcombine.low %v1517_v62, %v1521_v38  ;;  %v13754_v40 = vcombine.low %v1518_v9, %v1522_v23  ;;  %v13763_v10 = vcombine.high %v1526_v48, %v1530_v41  ;;  %v1549_v38 = vld [vmem:[#allocation8 + $0xc40] sm:$0xff]  ;;  %v1550_v23 = vld [vmem:[#allocation8 + $0xc48] sm:$0xff] }
 0x29f   :  { %11225 = vmatprep.subr.bf16.mxu1 %v13731_v42  ;;  %v13761_v42 = vcombine.high %v1525_v3, %v1529_v36  ;;  %v1553_v9 = vld [vmem:[#allocation8 + $0xc60] sm:$0xff] }
 0x2a1   :  { %10590 = vmatpush1.bf16.msra.mxu0 %v13728_v32  ;;  %v1538_v32 = vld [vmem:[#allocation8 + $0xbe8] sm:$0xff] }
 0x2a2   :  { %11226 = vmatpush1.bf16.msra.mxu1 %v13730_v53  ;;  %10591 = vmatprep.subr.bf16.mxu0 %v13737_v30  ;;  %v13760_v53 = vcombine.low %v1525_v3, %v1529_v36  ;;  %v13762_v30 = vcombine.low %v1526_v48, %v1530_v41  ;;  %v13771_v35 = vcombine.high %v1534_v20, %v1538_v32  ;;  %v1557_v36 = vld [vmem:[#allocation8 + $0xc80] sm:$0xff]  ;;  %v1558_v41 = vld [vmem:[#allocation8 + $0xc88] sm:$0xff] }
 0x2a3   :  { %11227 = vmatprep.subr.bf16.mxu1 %v13739_v8  ;;  %v13769_v8 = vcombine.high %v1533_v63, %v1537_v39  ;;  %v1561_v48 = vld [vmem:[#allocation8 + $0xca0] sm:$0xff] }
 0x2a5   :  { %10592 = vmatpush1.bf16.msra.mxu0 %v13736_v25  ;;  %v1546_v25 = vld [vmem:[#allocation8 + $0xc28] sm:$0xff] }
 0x2a6   :  { %11228 = vmatpush1.bf16.msra.mxu1 %v13738_v57  ;;  %10593 = vmatprep.subr.bf16.mxu0 %v13745_v54  ;;  %v13768_v57 = vcombine.low %v1533_v63, %v1537_v39  ;;  %v13770_v54 = vcombine.low %v1534_v20, %v1538_v32  ;;  %v13779_v62 = vcombine.high %v1542_v46, %v1546_v25  ;;  %v1565_v39 = vld [vmem:[#allocation8 + $0xcc0] sm:$0xff]  ;;  %v1566_v32 = vld [vmem:[#allocation8 + $0xcc8] sm:$0xff] }
 0x2a7   :  { %11229 = vmatprep.subr.bf16.mxu1 %v13747_v15  ;;  %v13777_v15 = vcombine.high %v1541_v43, %v1545_v27  ;;  %v1569_v20 = vld [vmem:[#allocation8 + $0xce0] sm:$0xff] }
 0x2a9   :  { %10594 = vmatpush1.bf16.msra.mxu0 %v13744_v50  ;;  %v1554_v50 = vld [vmem:[#allocation8 + $0xc68] sm:$0xff] }
 0x2aa   :  { %11230 = vmatpush1.bf16.msra.mxu1 %v13746_v28  ;;  %10595 = vmatprep.subr.bf16.mxu0 %v13753_v22  ;;  %v13776_v28 = vcombine.low %v1541_v43, %v1545_v27  ;;  %v13778_v22 = vcombine.low %v1542_v46, %v1546_v25  ;;  %v13787_v3 = vcombine.high %v1550_v23, %v1554_v50  ;;  %v1573_v27 = vld [vmem:[#allocation8 + $0xd00] sm:$0xff]  ;;  %v1574_v25 = vld [vmem:[#allocation8 + $0xd08] sm:$0xff] }
 0x2ab   :  { %11231 = vmatprep.subr.bf16.mxu1 %v13755_v59  ;;  %v13785_v59 = vcombine.high %v1549_v38, %v1553_v9  ;;  %v1577_v46 = vld [vmem:[#allocation8 + $0xd20] sm:$0xff] }
 0x2ad   :  { %10596 = vmatpush1.bf16.msra.mxu0 %v13752_v55  ;;  %v1562_v55 = vld [vmem:[#allocation8 + $0xca8] sm:$0xff] }
 0x2ae   :  { %11232 = vmatpush1.bf16.msra.mxu1 %v13754_v40  ;;  %10597 = vmatprep.subr.bf16.mxu0 %v13761_v42  ;;  %v13784_v40 = vcombine.low %v1549_v38, %v1553_v9  ;;  %v13786_v42 = vcombine.low %v1550_v23, %v1554_v50  ;;  %v13795_v63 = vcombine.high %v1558_v41, %v1562_v55  ;;  %v1581_v9 = vld [vmem:[#allocation8 + $0xd40] sm:$0xff]  ;;  %v1582_v50 = vld [vmem:[#allocation8 + $0xd48] sm:$0xff] }
 0x2af   :  { %11233 = vmatprep.subr.bf16.mxu1 %v13763_v10  ;;  %v13793_v10 = vcombine.high %v1557_v36, %v1561_v48  ;;  %v1585_v23 = vld [vmem:[#allocation8 + $0xd60] sm:$0xff] }
 0x2b1   :  { %10598 = vmatpush1.bf16.msra.mxu0 %v13760_v53  ;;  %v1570_v53 = vld [vmem:[#allocation8 + $0xce8] sm:$0xff] }
 0x2b2   :  { %11234 = vmatpush1.bf16.msra.mxu1 %v13762_v30  ;;  %10599 = vmatprep.subr.bf16.mxu0 %v13769_v8  ;;  %v13792_v30 = vcombine.low %v1557_v36, %v1561_v48  ;;  %v13794_v8 = vcombine.low %v1558_v41, %v1562_v55  ;;  %v13803_v43 = vcombine.high %v1566_v32, %v1570_v53  ;;  %v1589_v48 = vld [vmem:[#allocation8 + $0xd80] sm:$0xff]  ;;  %v1590_v55 = vld [vmem:[#allocation8 + $0xd88] sm:$0xff] }
 0x2b3   :  { %11235 = vmatprep.subr.bf16.mxu1 %v13771_v35  ;;  %v13801_v35 = vcombine.high %v1565_v39, %v1569_v20  ;;  %v1593_v41 = vld [vmem:[#allocation8 + $0xda0] sm:$0xff] }
 0x2b5   :  { %10600 = vmatpush1.bf16.msra.mxu0 %v13768_v57  ;;  %v1578_v57 = vld [vmem:[#allocation8 + $0xd28] sm:$0xff] }
 0x2b6   :  { %11236 = vmatpush1.bf16.msra.mxu1 %v13770_v54  ;;  %10622 = vmatprep.subr.bf16.mxu0 %v13777_v15  ;;  %v13800_v54 = vcombine.low %v1565_v39, %v1569_v20  ;;  %v13802_v15 = vcombine.low %v1566_v32, %v1570_v53  ;;  %v13811_v38 = vcombine.high %v1574_v25, %v1578_v57  ;;  %v1597_v20 = vld [vmem:[#allocation8 + $0xdc0] sm:$0xff]  ;;  %v1598_v53 = vld [vmem:[#allocation8 + $0xdc8] sm:$0xff] }
 0x2b7   :  { %11258 = vmatprep.subr.bf16.mxu1 %v13779_v62  ;;  %v13809_v62 = vcombine.high %v1573_v27, %v1577_v46  ;;  %v1601_v32 = vld [vmem:[#allocation8 + $0xde0] sm:$0xff] }
 0x2b8   :  { %10602 = vmatmul.mubr.bf16.vlgmr.msra.gmra.mrb[0].mxu0 %v16927_v24 }
 0x2b9   :  { %11238 = vmatmul.mubr.bf16.vlgmr.msra.gmra.mrb[0].mxu1 %v16927_v24  ;;  %10611 = vmatprep.mubr.bf16.mxu0 %v17027_v12 }
 0x2ba   :  { %10623 = vmatpush1.bf16.msra.mxu0 %v13776_v28  ;;  %11247 = vmatprep.mubr.bf16.mxu1 %v17027_v12  ;;  %v1586_v28 = vld [vmem:[#allocation8 + $0xd68] sm:$0xff] }
 0x2bb   :  { %11259 = vmatpush1.bf16.msra.mxu1 %v13778_v22  ;;  %10624 = vmatprep.subr.bf16.mxu0 %v13785_v59  ;;  %v13808_v22 = vcombine.low %v1573_v27, %v1577_v46  ;;  %v13810_v59 = vcombine.low %v1574_v25, %v1578_v57  ;;  %v13819_v36 = vcombine.high %v1582_v50, %v1586_v28  ;;  %v1605_v46 = vld [vmem:[#allocation8 + $0xe00] sm:$0xff]  ;;  %v1606_v57 = vld [vmem:[#allocation8 + $0xe08] sm:$0xff] }
 0x2bc   :  { %11260 = vmatprep.subr.bf16.mxu1 %v13787_v3  ;;  %v13817_v3 = vcombine.high %v1581_v9, %v1585_v23  ;;  %v1609_v25 = vld [vmem:[#allocation8 + $0xe20] sm:$0xff] }
 0x2be   :  { %10625 = vmatpush1.bf16.msra.mxu0 %v13784_v40  ;;  %v1594_v40 = vld [vmem:[#allocation8 + $0xda8] sm:$0xff] }
 0x2bf   :  { %11261 = vmatpush1.bf16.msra.mxu1 %v13786_v42  ;;  %10626 = vmatprep.subr.bf16.mxu0 %v13793_v10  ;;  %v13816_v42 = vcombine.low %v1581_v9, %v1585_v23  ;;  %v13818_v10 = vcombine.low %v1582_v50, %v1586_v28  ;;  %v13827_v39 = vcombine.high %v1590_v55, %v1594_v40  ;;  %v1613_v23 = vld [vmem:[#allocation8 + $0xe40] sm:$0xff]  ;;  %v1614_v28 = vld [vmem:[#allocation8 + $0xe48] sm:$0xff] }
 0x2c0   :  { %10612 = vmatmul.mubr.bf16.gmra.mrb[4].mxu0 %v17030_v51  ;;  %11262 = vmatprep.subr.bf16.mxu1 %v13795_v63  ;;  %v13825_v63 = vcombine.high %v1589_v48, %v1593_v41  ;;  %v1617_v50 = vld [vmem:[#allocation8 + $0xe60] sm:$0xff] }
 0x2c1   :  { %11248 = vmatmul.mubr.bf16.gmra.mrb[4].mxu1 %v17030_v51  ;;  %10654 = vmatprep.mubr.bf16.mxu0 %v16956_v6  ;;  %v18759_v51 = vld [vmem:[#allocation88_spill] sm:$0xff] }
 0x2c2   :  { %10627 = vmatpush1.bf16.msra.mxu0 %v13792_v30  ;;  %11290 = vmatprep.mubr.bf16.mxu1 %v16956_v6  ;;  %v1602_v30 = vld [vmem:[#allocation8 + $0xde8] sm:$0xff]  ;;  %v1809_v6 = vld [vmem:[#allocation8 + $0x1460] sm:$0xff] }
 0x2c3   :  { %11263 = vmatpush1.bf16.msra.mxu1 %v13794_v8  ;;  %10628 = vmatprep.subr.bf16.mxu0 %v13801_v35  ;;  %v13824_v8 = vcombine.low %v1589_v48, %v1593_v41  ;;  %v13826_v35 = vcombine.low %v1590_v55, %v1594_v40  ;;  %v13835_v27 = vcombine.high %v1598_v53, %v1602_v30  ;;  %v1621_v41 = vld [vmem:[#allocation8 + $0xe80] sm:$0xff]  ;;  %v1622_v40 = vld [vmem:[#allocation8 + $0xe88] sm:$0xff] }
 0x2c4   :  { %11264 = vmatprep.subr.bf16.mxu1 %v13803_v43  ;;  %v13833_v43 = vcombine.high %v1597_v20, %v1601_v32  ;;  %v1625_v55 = vld [vmem:[#allocation8 + $0xea0] sm:$0xff] }
 0x2c6   :  { %10629 = vmatpush1.bf16.msra.mxu0 %v13800_v54  ;;  %v1610_v54 = vld [vmem:[#allocation8 + $0xe28] sm:$0xff] }
 0x2c7   :  { %11265 = vmatpush1.bf16.msra.mxu1 %v13802_v15  ;;  %10630 = vmatprep.subr.bf16.mxu0 %v13809_v62  ;;  %v13832_v15 = vcombine.low %v1597_v20, %v1601_v32  ;;  %v13834_v62 = vcombine.low %v1598_v53, %v1602_v30  ;;  %v13843_v9 = vcombine.high %v1606_v57, %v1610_v54  ;;  %v1629_v32 = vld [vmem:[#allocation8 + $0xec0] sm:$0xff]  ;;  %v1630_v30 = vld [vmem:[#allocation8 + $0xec8] sm:$0xff] }
 0x2c8   :  { %11266 = vmatprep.subr.bf16.mxu1 %v13811_v38  ;;  %v13841_v38 = vcombine.high %v1605_v46, %v1609_v25  ;;  %v1633_v53 = vld [vmem:[#allocation8 + $0xee0] sm:$0xff] }
 0x2ca   :  { %10631 = vmatpush1.bf16.msra.mxu0 %v13808_v22  ;;  %v1618_v22 = vld [vmem:[#allocation8 + $0xe68] sm:$0xff] }
 0x2cb   :  { %11267 = vmatpush1.bf16.msra.mxu1 %v13810_v59  ;;  %10632 = vmatprep.subr.bf16.mxu0 %v13817_v3  ;;  %v13840_v59 = vcombine.low %v1605_v46, %v1609_v25  ;;  %v13842_v3 = vcombine.low %v1606_v57, %v1610_v54  ;;  %v13851_v48 = vcombine.high %v1614_v28, %v1618_v22  ;;  %v1637_v25 = vld [vmem:[#allocation8 + $0xf00] sm:$0xff]  ;;  %v1638_v54 = vld [vmem:[#allocation8 + $0xf08] sm:$0xff] }
 0x2cc   :  { %11268 = vmatprep.subr.bf16.mxu1 %v13819_v36  ;;  %v13849_v36 = vcombine.high %v1613_v23, %v1617_v50  ;;  %v1641_v57 = vld [vmem:[#allocation8 + $0xf20] sm:$0xff] }
 0x2ce   :  { %10633 = vmatpush1.bf16.msra.mxu0 %v13816_v42  ;;  %v1626_v42 = vld [vmem:[#allocation8 + $0xea8] sm:$0xff] }
 0x2cf   :  { %11269 = vmatpush1.bf16.msra.mxu1 %v13818_v10  ;;  %10634 = vmatprep.subr.bf16.mxu0 %v13825_v63  ;;  %v13848_v10 = vcombine.low %v1613_v23, %v1617_v50  ;;  %v13850_v63 = vcombine.low %v1614_v28, %v1618_v22  ;;  %v13859_v20 = vcombine.high %v1622_v40, %v1626_v42  ;;  %v1645_v50 = vld [vmem:[#allocation8 + $0xf40] sm:$0xff]  ;;  %v1646_v22 = vld [vmem:[#allocation8 + $0xf48] sm:$0xff] }
 0x2d0   :  { %11270 = vmatprep.subr.bf16.mxu1 %v13827_v39  ;;  %v13857_v39 = vcombine.high %v1621_v41, %v1625_v55  ;;  %v1649_v28 = vld [vmem:[#allocation8 + $0xf60] sm:$0xff] }
 0x2d2   :  { %10635 = vmatpush1.bf16.msra.mxu0 %v13824_v8  ;;  %v1634_v8 = vld [vmem:[#allocation8 + $0xee8] sm:$0xff] }
 0x2d3   :  { %11271 = vmatpush1.bf16.msra.mxu1 %v13826_v35  ;;  %10636 = vmatprep.subr.bf16.mxu0 %v13833_v43  ;;  %v13856_v35 = vcombine.low %v1621_v41, %v1625_v55  ;;  %v13858_v43 = vcombine.low %v1622_v40, %v1626_v42  ;;  %v13867_v46 = vcombine.high %v1630_v30, %v1634_v8  ;;  %v1653_v55 = vld [vmem:[#allocation8 + $0xf80] sm:$0xff]  ;;  %v1654_v42 = vld [vmem:[#allocation8 + $0xf88] sm:$0xff] }
 0x2d4   :  { %11272 = vmatprep.subr.bf16.mxu1 %v13835_v27  ;;  %v13865_v27 = vcombine.high %v1629_v32, %v1633_v53  ;;  %v1657_v40 = vld [vmem:[#allocation8 + $0xfa0] sm:$0xff] }
 0x2d6   :  { %10637 = vmatpush1.bf16.msra.mxu0 %v13832_v15  ;;  %v1642_v15 = vld [vmem:[#allocation8 + $0xf28] sm:$0xff] }
 0x2d7   :  { %11273 = vmatpush1.bf16.msra.mxu1 %v13834_v62  ;;  %10638 = vmatprep.subr.bf16.mxu0 %v13841_v38  ;;  %v13864_v62 = vcombine.low %v1629_v32, %v1633_v53  ;;  %v13866_v38 = vcombine.low %v1630_v30, %v1634_v8  ;;  %v13875_v23 = vcombine.high %v1638_v54, %v1642_v15  ;;  %v1661_v53 = vld [vmem:[#allocation8 + $0xfc0] sm:$0xff]  ;;  %v1662_v8 = vld [vmem:[#allocation8 + $0xfc8] sm:$0xff] }
 0x2d8   :  { %11274 = vmatprep.subr.bf16.mxu1 %v13843_v9  ;;  %v13873_v9 = vcombine.high %v1637_v25, %v1641_v57  ;;  %v1665_v30 = vld [vmem:[#allocation8 + $0xfe0] sm:$0xff] }
 0x2da   :  { %10639 = vmatpush1.bf16.msra.mxu0 %v13840_v59  ;;  %v1650_v59 = vld [vmem:[#allocation8 + $0xf68] sm:$0xff] }
 0x2db   :  { %11275 = vmatpush1.bf16.msra.mxu1 %v13842_v3  ;;  %10640 = vmatprep.subr.bf16.mxu0 %v13849_v36  ;;  %v13872_v3 = vcombine.low %v1637_v25, %v1641_v57  ;;  %v13874_v36 = vcombine.low %v1638_v54, %v1642_v15  ;;  %v13883_v41 = vcombine.high %v1646_v22, %v1650_v59  ;;  %v1669_v57 = vld [vmem:[#allocation8 + $0x1000] sm:$0xff]  ;;  %v1670_v15 = vld [vmem:[#allocation8 + $0x1008] sm:$0xff] }
 0x2dc   :  { %11276 = vmatprep.subr.bf16.mxu1 %v13851_v48  ;;  %v13881_v48 = vcombine.high %v1645_v50, %v1649_v28  ;;  %v1673_v54 = vld [vmem:[#allocation8 + $0x1020] sm:$0xff] }
 0x2de   :  { %10641 = vmatpush1.bf16.msra.mxu0 %v13848_v10  ;;  %v1658_v10 = vld [vmem:[#allocation8 + $0xfa8] sm:$0xff] }
 0x2df   :  { %11277 = vmatpush1.bf16.msra.mxu1 %v13850_v63  ;;  %10642 = vmatprep.subr.bf16.mxu0 %v13857_v39  ;;  %v13880_v63 = vcombine.low %v1645_v50, %v1649_v28  ;;  %v13882_v39 = vcombine.low %v1646_v22, %v1650_v59  ;;  %v13891_v32 = vcombine.high %v1654_v42, %v1658_v10  ;;  %v18748_v28 = vld [vmem:[#allocation52_spill] sm:$0xff]  ;;  %v1677_v59 = vld [vmem:[#allocation8 + $0x1040] sm:$0xff] }
 0x2e0   :  { %11278 = vmatprep.subr.bf16.mxu1 %v13859_v20  ;;  %v13889_v20 = vcombine.high %v1653_v55, %v1657_v40  ;;  %v650_v22 = vmul.f32 %v16822_v45, %v18748_v28 }
 0x2e2   :  { %10643 = vmatpush1.bf16.msra.mxu0 %v13856_v35  ;;  %v1666_v35 = vld [vmem:[#allocation8 + $0xfe8] sm:$0xff] }
 0x2e3   :  { %11279 = vmatpush1.bf16.msra.mxu1 %v13858_v43  ;;  %10644 = vmatprep.subr.bf16.mxu0 %v13865_v27  ;;  %v13888_v43 = vcombine.low %v1653_v55, %v1657_v40  ;;  %v13890_v27 = vcombine.low %v1654_v42, %v1658_v10  ;;  %v13899_v25 = vcombine.high %v1662_v8, %v1666_v35  ;;  %v17527_v40 = vld [vmem:[#allocation5 + $0x8] sm:$0xff]  ;;  %v18750_v42 = vld [vmem:[#allocation103_spill] sm:$0xff] }
 0x2e4   :  { %11280 = vmatprep.subr.bf16.mxu1 %v13867_v46  ;;  %v13897_v46 = vcombine.high %v1661_v53, %v1665_v30  ;;  %v17531_v10 = vrot.slane %v17527_v40, %v18750_v42 }
 0x2e6   :  { %10645 = vmatpush1.bf16.msra.mxu0 %v13864_v62  ;;  %v1674_v62 = vld [vmem:[#allocation8 + $0x1028] sm:$0xff] }
 0x2e7   :  { %11281 = vmatpush1.bf16.msra.mxu1 %v13866_v38  ;;  %10646 = vmatprep.subr.bf16.mxu0 %v13873_v9  ;;  %v13896_v38 = vcombine.low %v1661_v53, %v1665_v30  ;;  %v13898_v9 = vcombine.low %v1662_v8, %v1666_v35  ;;  %v13907_v50 = vcombine.high %v1670_v15, %v1674_v62  ;;  %v18751_v53 = vld [vmem:[#allocation95_spill] sm:$0xff]  ;;  %v1685_v8 = vld [vmem:[#allocation8 + $0x1080] sm:$0xff] }
 0x2e8   :  { %11282 = vmatprep.subr.bf16.mxu1 %v13875_v23  ;;  %v13905_v23 = vcombine.high %v1669_v57, %v1673_v54  ;;  %v1689_v35 = vld [vmem:[#allocation8 + $0x10a0] sm:$0xff] }
 0x2ea   :  { %10647 = vmatpush1.bf16.msra.mxu0 %v13872_v3  ;;  %v1681_v3 = vld [vmem:[#allocation8 + $0x1060] sm:$0xff] }
 0x2eb   :  { %11283 = vmatpush1.bf16.msra.mxu1 %v13874_v36  ;;  %10648 = vmatprep.subr.bf16.mxu0 %v13881_v48  ;;  %v1678_v36 = vld [vmem:[#allocation8 + $0x1048] sm:$0xff] }
 0x2ec   :  { %11284 = vmatprep.subr.bf16.mxu1 %v13883_v41  ;;  %v1682_v48 = vld [vmem:[#allocation8 + $0x1068] sm:$0xff] }
 0x2ed   :  { %v18749_v41 = vld [vmem:[#allocation78_spill] sm:$0xff]  ;;  %v13915_v30 = vcombine.high %v1678_v36, %v1682_v48 }
 0x2ee   :  { %10649 = vmatpush1.bf16.msra.mxu0 %v13880_v63  ;;  %v626_v55 = vmul.f32 %v16626_v49, %v18749_v41  ;;  %v13904_v63 = vcombine.low %v1669_v57, %v1673_v54  ;;  %v13912_v54 = vcombine.low %v1677_v59, %v1681_v3  ;;  %v1698_v41 = vld [vmem:[#allocation8 + $0x10e8] sm:$0xff] }
 0x2ef   :  { %11285 = vmatpush1.bf16.msra.mxu1 %v13882_v39  ;;  %10650 = vmatprep.subr.bf16.mxu0 %v13889_v20  ;;  %v13906_v39 = vcombine.low %v1670_v15, %v1674_v62  ;;  %v13913_v20 = vcombine.high %v1677_v59, %v1681_v3  ;;  %v13914_v15 = vcombine.low %v1678_v36, %v1682_v48  ;;  %v1701_v48 = vld [vmem:[#allocation8 + $0x1100] sm:$0xff] }
 0x2f0   :  { %11286 = vmatprep.subr.bf16.mxu1 %v13891_v32  ;;  %v872_v32 = vmul.f32 %v17531_v10, %v650_v22  ;;  %v13921_v62 = vcombine.high %v1685_v8, %v1689_v35  ;;  %v1694_v22 = vld [vmem:[#allocation8 + $0x10c8] sm:$0xff] }
 0x2f1   :  { %v13931_v36 = vcombine.high %v1694_v22, %v1698_v41 }
 0x2f2   :  { %10651 = vmatpush1.bf16.msra.mxu0 %v13888_v43  ;;  %v1686_v43 = vld [vmem:[#allocation8 + $0x1088] sm:$0xff] }
 0x2f3   :  { %11287 = vmatpush1.bf16.msra.mxu1 %v13890_v27  ;;  %10652 = vmatprep.subr.bf16.mxu0 %v13897_v46  ;;  %v1690_v27 = vld [vmem:[#allocation8 + $0x10a8] sm:$0xff]  ;;  %v848_v46 = vmul.f32 %v17531_v10, %v626_v55  ;;  %v13920_v55 = vcombine.low %v1685_v8, %v1689_v35  ;;  %v13930_v8 = vcombine.low %v1694_v22, %v1698_v41 }
 0x2f4   :  { %11288 = vmatprep.subr.bf16.mxu1 %v13899_v25  ;;  %v17538_v25 = vld [vmem:[#allocation7 + $0x8] sm:$0xff] }
 0x2f5   :  { %v17542_v57 = vrot.slane %v17538_v25, %v18750_v42 }
 0x2f6   :  { %10653 = vmatpush1.bf16.msra.mxu0 %v13896_v38 }
 0x2f7   :  { %11289 = vmatpush1.bf16.msra.mxu1 %v13898_v9  ;;  %10675 = vmatprep.subr.bf16.mxu0 %v13905_v23  ;;  %v1094_v38 = vadd.f32 %v17542_v57, %v872_v32  ;;  %v13923_v9 = vcombine.high %v1686_v43, %v1690_v27  ;;  %v1693_v23 = vld [vmem:[#allocation8 + $0x10c0] sm:$0xff]  ;;  %v1070_v28 = vadd.f32 %v17542_v57, %v848_v46  ;;  %v1706_v32 = vld [vmem:[#allocation8 + $0x1128] sm:$0xff] }
 0x2f8   :  { %11311 = vmatprep.subr.bf16.mxu1 %v13907_v50  ;;  %v1697_v50 = vld [vmem:[#allocation8 + $0x10e0] sm:$0xff] }
 0x2f9   :  { %10655 = vmatmul.mubr.bf16.vlgmr.msra.gmra.mrb[0].mxu0 %v18751_v53  ;;  %v17547_v59 = vpack.c.bf16 %v1094_v38, %v1070_v28  ;;  %v13929_v3 = vcombine.high %v1693_v23, %v1697_v50  ;;  %v1713_v46 = vld [vmem:[#allocation8 + $0x1160] sm:$0xff] }
 0x2fa   :  { %11291 = vmatmul.mubr.bf16.vlgmr.msra.gmra.mrb[0].mxu1 %v18751_v53  ;;  %10664 = vmatprep.mubr.bf16.mxu0 %v17112_v29 }
 0x2fb   :  { %10676 = vmatpush1.bf16.msra.mxu0 %v13904_v63  ;;  %11300 = vmatprep.mubr.bf16.mxu1 %v17112_v29  ;;  %v13922_v63 = vcombine.low %v1686_v43, %v1690_v27  ;;  %18752 = vst [vmem:[#allocation56_spill] sm:$0xff] %v17547_v59  ;;  %v1709_v27 = vld [vmem:[#allocation8 + $0x1140] sm:$0xff] }
 0x2fc   :  { %11312 = vmatpush1.bf16.msra.mxu1 %v13906_v39  ;;  %10677 = vmatprep.subr.bf16.mxu0 %v13913_v20  ;;  %v1705_v39 = vld [vmem:[#allocation8 + $0x1120] sm:$0xff]  ;;  %v1702_v20 = vld [vmem:[#allocation8 + $0x1108] sm:$0xff]  ;;  %v13944_v22 = vcombine.low %v1709_v27, %v1713_v46 }
 0x2fd   :  { %11313 = vmatprep.subr.bf16.mxu1 %v13915_v30  ;;  %v13928_v30 = vcombine.low %v1693_v23, %v1697_v50  ;;  %v13937_v35 = vcombine.high %v1701_v48, %v1705_v39  ;;  %v13939_v43 = vcombine.high %v1702_v20, %v1706_v32  ;;  %v13938_v38 = vcombine.low %v1702_v20, %v1706_v32  ;;  %v1721_v23 = vld [vmem:[#allocation8 + $0x11a0] sm:$0xff]  ;;  %v1718_v50 = vld [vmem:[#allocation8 + $0x1188] sm:$0xff] }
 0x2fe   :  { %v1801_v29 = vld [vmem:[#allocation8 + $0x1420] sm:$0xff] }
 0x2ff   :  { %10678 = vmatpush1.bf16.msra.mxu0 %v13912_v54  ;;  %v1710_v54 = vld [vmem:[#allocation8 + $0x1148] sm:$0xff] }
 0x300   :  { %11314 = vmatpush1.bf16.msra.mxu1 %v13914_v15  ;;  %10679 = vmatprep.subr.bf16.mxu0 %v13921_v62  ;;  %v1714_v15 = vld [vmem:[#allocation8 + $0x1168] sm:$0xff]  ;;  %v13936_v62 = vcombine.low %v1701_v48, %v1705_v39  ;;  %v1729_v48 = vld [vmem:[#allocation8 + $0x11e0] sm:$0xff] }
 0x301   :  { %10665 = vmatmul.mubr.bf16.gmra.mrb[4].mxu0 %v17139_v14  ;;  %11315 = vmatprep.subr.bf16.mxu1 %v13923_v9  ;;  %v13945_v9 = vcombine.high %v1709_v27, %v1713_v46  ;;  %v13947_v28 = vcombine.high %v1710_v54, %v1714_v15  ;;  %v13946_v41 = vcombine.low %v1710_v54, %v1714_v15  ;;  %v1726_v39 = vld [vmem:[#allocation8 + $0x11c8] sm:$0xff]  ;;  %v1737_v27 = vld [vmem:[#allocation8 + $0x1220] sm:$0xff] }
 0x302   :  { %11301 = vmatmul.mubr.bf16.gmra.mrb[4].mxu1 %v17139_v14  ;;  %10707 = vmatprep.mubr.bf16.mxu0 %v17547_v59  ;;  %v1734_v46 = vld [vmem:[#allocation8 + $0x1208] sm:$0xff]  ;;  %v1797_v14 = vld [vmem:[#allocation8 + $0x1400] sm:$0xff] }
 0x303   :  { %10680 = vmatpush1.bf16.msra.mxu0 %v13920_v55  ;;  %11343 = vmatprep.mubr.bf16.mxu1 %v17547_v59  ;;  %v1717_v55 = vld [vmem:[#allocation8 + $0x1180] sm:$0xff]  ;;  %v1790_v59 = vld [vmem:[#allocation8 + $0x13c8] sm:$0xff] }
 0x304   :  { %11316 = vmatpush1.bf16.msra.mxu1 %v13922_v63  ;;  %10681 = vmatprep.subr.bf16.mxu0 %v13929_v3  ;;  %v1722_v63 = vld [vmem:[#allocation8 + $0x11a8] sm:$0xff]  ;;  %v13953_v3 = vcombine.high %v1717_v55, %v1721_v23  ;;  %v13952_v20 = vcombine.low %v1717_v55, %v1721_v23  ;;  %v1745_v55 = vld [vmem:[#allocation8 + $0x1260] sm:$0xff] }
 0x305   :  { %11317 = vmatprep.subr.bf16.mxu1 %v13931_v36  ;;  %v13955_v36 = vcombine.high %v1718_v50, %v1722_v63  ;;  %v13954_v32 = vcombine.low %v1718_v50, %v1722_v63  ;;  %v1742_v23 = vld [vmem:[#allocation8 + $0x1248] sm:$0xff] }
 0x307   :  { %10682 = vmatpush1.bf16.msra.mxu0 %v13928_v30  ;;  %v1725_v30 = vld [vmem:[#allocation8 + $0x11c0] sm:$0xff] }
 0x308   :  { %11318 = vmatpush1.bf16.msra.mxu1 %v13930_v8  ;;  %10683 = vmatprep.subr.bf16.mxu0 %v13937_v35  ;;  %v1730_v8 = vld [vmem:[#allocation8 + $0x11e8] sm:$0xff]  ;;  %v13961_v35 = vcombine.high %v1725_v30, %v1729_v48  ;;  %v13960_v54 = vcombine.low %v1725_v30, %v1729_v48  ;;  %v1753_v30 = vld [vmem:[#allocation8 + $0x12a0] sm:$0xff] }
 0x309   :  { %11319 = vmatprep.subr.bf16.mxu1 %v13939_v43  ;;  %v13963_v43 = vcombine.high %v1726_v39, %v1730_v8  ;;  %v13962_v15 = vcombine.low %v1726_v39, %v1730_v8  ;;  %v1750_v48 = vld [vmem:[#allocation8 + $0x1288] sm:$0xff] }
 0x30b   :  { %10684 = vmatpush1.bf16.msra.mxu0 %v13936_v62  ;;  %v1733_v62 = vld [vmem:[#allocation8 + $0x1200] sm:$0xff] }
 0x30c   :  { %11320 = vmatpush1.bf16.msra.mxu1 %v13938_v38  ;;  %10685 = vmatprep.subr.bf16.mxu0 %v13945_v9  ;;  %v1738_v38 = vld [vmem:[#allocation8 + $0x1228] sm:$0xff]  ;;  %v13969_v9 = vcombine.high %v1733_v62, %v1737_v27  ;;  %v13968_v50 = vcombine.low %v1733_v62, %v1737_v27  ;;  %v1761_v62 = vld [vmem:[#allocation8 + $0x12e0] sm:$0xff] }
 0x30d   :  { %11321 = vmatprep.subr.bf16.mxu1 %v13947_v28  ;;  %v13971_v28 = vcombine.high %v1734_v46, %v1738_v38  ;;  %v13970_v63 = vcombine.low %v1734_v46, %v1738_v38  ;;  %v1758_v27 = vld [vmem:[#allocation8 + $0x12c8] sm:$0xff] }
 0x30f   :  { %10686 = vmatpush1.bf16.msra.mxu0 %v13944_v22  ;;  %v1741_v22 = vld [vmem:[#allocation8 + $0x1240] sm:$0xff] }
 0x310   :  { %11322 = vmatpush1.bf16.msra.mxu1 %v13946_v41  ;;  %10687 = vmatprep.subr.bf16.mxu0 %v13953_v3  ;;  %v1746_v41 = vld [vmem:[#allocation8 + $0x1268] sm:$0xff]  ;;  %v13977_v3 = vcombine.high %v1741_v22, %v1745_v55  ;;  %v13976_v39 = vcombine.low %v1741_v22, %v1745_v55  ;;  %v1769_v22 = vld [vmem:[#allocation8 + $0x1320] sm:$0xff] }
 0x311   :  { %11323 = vmatprep.subr.bf16.mxu1 %v13955_v36  ;;  %v13979_v36 = vcombine.high %v1742_v23, %v1746_v41  ;;  %v13978_v8 = vcombine.low %v1742_v23, %v1746_v41  ;;  %v1766_v55 = vld [vmem:[#allocation8 + $0x1308] sm:$0xff] }
 0x313   :  { %10688 = vmatpush1.bf16.msra.mxu0 %v13952_v20  ;;  %v1749_v20 = vld [vmem:[#allocation8 + $0x1280] sm:$0xff] }
 0x314   :  { %11324 = vmatpush1.bf16.msra.mxu1 %v13954_v32  ;;  %10689 = vmatprep.subr.bf16.mxu0 %v13961_v35  ;;  %v1754_v32 = vld [vmem:[#allocation8 + $0x12a8] sm:$0xff]  ;;  %v13985_v35 = vcombine.high %v1749_v20, %v1753_v30  ;;  %v13984_v46 = vcombine.low %v1749_v20, %v1753_v30  ;;  %v1777_v20 = vld [vmem:[#allocation8 + $0x1360] sm:$0xff] }
 0x315   :  { %11325 = vmatprep.subr.bf16.mxu1 %v13963_v43  ;;  %v13987_v43 = vcombine.high %v1750_v48, %v1754_v32  ;;  %v13986_v38 = vcombine.low %v1750_v48, %v1754_v32  ;;  %v1774_v30 = vld [vmem:[#allocation8 + $0x1348] sm:$0xff] }
 0x317   :  { %10690 = vmatpush1.bf16.msra.mxu0 %v13960_v54  ;;  %v1757_v54 = vld [vmem:[#allocation8 + $0x12c0] sm:$0xff] }
 0x318   :  { %11326 = vmatpush1.bf16.msra.mxu1 %v13962_v15  ;;  %10691 = vmatprep.subr.bf16.mxu0 %v13969_v9  ;;  %v1762_v15 = vld [vmem:[#allocation8 + $0x12e8] sm:$0xff]  ;;  %v13993_v9 = vcombine.high %v1757_v54, %v1761_v62  ;;  %v13992_v23 = vcombine.low %v1757_v54, %v1761_v62  ;;  %v1785_v54 = vld [vmem:[#allocation8 + $0x13a0] sm:$0xff] }
 0x319   :  { %11327 = vmatprep.subr.bf16.mxu1 %v13971_v28  ;;  %v13995_v28 = vcombine.high %v1758_v27, %v1762_v15  ;;  %v13994_v41 = vcombine.low %v1758_v27, %v1762_v15  ;;  %v1782_v62 = vld [vmem:[#allocation8 + $0x1388] sm:$0xff]  ;;  %v18753_v15 = vld [vmem:[#allocation23_spill] sm:$0xff] }
 0x31b   :  { %10692 = vmatpush1.bf16.msra.mxu0 %v13968_v50  ;;  %v1765_v50 = vld [vmem:[#allocation8 + $0x1300] sm:$0xff] }
 0x31c   :  { %11328 = vmatpush1.bf16.msra.mxu1 %v13970_v63  ;;  %10693 = vmatprep.subr.bf16.mxu0 %v13977_v3  ;;  %v1770_v63 = vld [vmem:[#allocation8 + $0x1328] sm:$0xff]  ;;  %v14001_v3 = vcombine.high %v1765_v50, %v1769_v22  ;;  %v14000_v48 = vcombine.low %v1765_v50, %v1769_v22  ;;  %v1789_v22 = vld [vmem:[#allocation8 + $0x13c0] sm:$0xff] }
 0x31d   :  { %11329 = vmatprep.subr.bf16.mxu1 %v13979_v36  ;;  %v14003_v36 = vcombine.high %v1766_v55, %v1770_v63  ;;  %v14002_v32 = vcombine.low %v1766_v55, %v1770_v63  ;;  %v1793_v55 = vld [vmem:[#allocation8 + $0x13e0] sm:$0xff]  ;;  %v18754_v63 = vld [vmem:[#allocation104_spill] sm:$0xff] }
 0x31f   :  { %10694 = vmatpush1.bf16.msra.mxu0 %v13976_v39  ;;  %v1773_v39 = vld [vmem:[#allocation8 + $0x1340] sm:$0xff] }
 0x320   :  { %11330 = vmatpush1.bf16.msra.mxu1 %v13978_v8  ;;  %10695 = vmatprep.subr.bf16.mxu0 %v13985_v35  ;;  %v1778_v8 = vld [vmem:[#allocation8 + $0x1368] sm:$0xff]  ;;  %v14009_v35 = vcombine.high %v1773_v39, %v1777_v20  ;;  %v14008_v27 = vcombine.low %v1773_v39, %v1777_v20  ;;  %v18756_v39 = vld [vmem:[#allocation77_spill] sm:$0xff] }
 0x321   :  { %11331 = vmatprep.subr.bf16.mxu1 %v13987_v43  ;;  %v14011_v43 = vcombine.high %v1774_v30, %v1778_v8  ;;  %v625_v20 = vmul.f32 %v16626_v49, %v18756_v39 }
 0x323   :  { %10696 = vmatpush1.bf16.msra.mxu0 %v13984_v46  ;;  %v1781_v46 = vld [vmem:[#allocation8 + $0x1380] sm:$0xff] }
 0x324   :  { %11332 = vmatpush1.bf16.msra.mxu1 %v13986_v38  ;;  %10697 = vmatprep.subr.bf16.mxu0 %v13993_v9  ;;  %v1786_v38 = vld [vmem:[#allocation8 + $0x13a8] sm:$0xff]  ;;  %v649_v9 = vmul.f32 %v16822_v45, %v18753_v15  ;;  %v14025_v15 = vcombine.high %v1789_v22, %v1793_v55 }
 0x325   :  { %11333 = vmatprep.subr.bf16.mxu1 %v13995_v28  ;;  %v14010_v28 = vcombine.low %v1774_v30, %v1778_v8  ;;  %v14019_v50 = vcombine.high %v1782_v62, %v1786_v38  ;;  %v18757_v30 = vld [vmem:[#allocation91_spill] sm:$0xff] }
 0x326   :  { %v674_v8 = vmul.f32 %v16715_v11, %v18757_v30 }
 0x327   :  { %10698 = vmatpush1.bf16.msra.mxu0 %v13992_v23  ;;  %v14017_v23 = vcombine.high %v1781_v46, %v1785_v54 }
 0x328   :  { %11334 = vmatpush1.bf16.msra.mxu1 %v13994_v41  ;;  %10699 = vmatprep.subr.bf16.mxu0 %v14001_v3  ;;  %v754_v41 = vrot.slane %v17527_v40, %v18754_v63  ;;  %v18755_v3 = vld [vmem:[#allocation50_spill] sm:$0xff] }
 0x329   :  { %11335 = vmatprep.subr.bf16.mxu1 %v14003_v36  ;;  %v698_v36 = vmul.f32 %v16967_v7, %v18755_v3  ;;  %v976_v3 = vrot.slane %v17538_v25, %v18754_v63 }
 0x32a   :  { %v847_v39 = vmul.f32 %v754_v41, %v625_v20  ;;  %v1805_v20 = vld [vmem:[#allocation8 + $0x1440] sm:$0xff] }
 0x32b   :  { %10700 = vmatpush1.bf16.msra.mxu0 %v14000_v48  ;;  %v1794_v48 = vld [vmem:[#allocation8 + $0x13e8] sm:$0xff]  ;;  %v920_v53 = vmul.f32 %v17531_v10, %v698_v36 }
 0x32c   :  { %11336 = vmatpush1.bf16.msra.mxu1 %v14002_v32  ;;  %10701 = vmatprep.subr.bf16.mxu0 %v14009_v35  ;;  %v14016_v32 = vcombine.low %v1781_v46, %v1785_v54  ;;  %v871_v35 = vmul.f32 %v754_v41, %v649_v9  ;;  %v14027_v40 = vcombine.high %v1790_v59, %v1794_v48  ;;  %v1802_v46 = vld [vmem:[#allocation8 + $0x1428] sm:$0xff] }
 0x32d   :  { %11337 = vmatprep.subr.bf16.mxu1 %v14011_v43  ;;  %v14018_v43 = vcombine.low %v1782_v62, %v1786_v38  ;;  %v14024_v54 = vcombine.low %v1789_v22, %v1793_v55  ;;  %v14026_v62 = vcombine.low %v1790_v59, %v1794_v48  ;;  %v14033_v38 = vcombine.high %v1797_v14, %v1801_v29  ;;  %v1806_v55 = vld [vmem:[#allocation8 + $0x1448] sm:$0xff] }
 0x32e   :  { %v1093_v9 = vadd.f32 %v976_v3, %v871_v35  ;;  %v1142_v30 = vadd.f32 %v17542_v57, %v920_v53  ;;  %v1069_v36 = vadd.f32 %v976_v3, %v847_v39  ;;  %v673_v22 = vmul.f32 %v16715_v11, %v18759_v51  ;;  %v1817_v39 = vld [vmem:[#allocation8 + $0x14a0] sm:$0xff] }
 0x32f   :  { %10702 = vmatpush1.bf16.msra.mxu0 %v14008_v27  ;;  %v1798_v27 = vld [vmem:[#allocation8 + $0x1408] sm:$0xff]  ;;  %v14032_v48 = vcombine.low %v1797_v14, %v1801_v29  ;;  %v14040_v29 = vcombine.low %v1805_v20, %v1809_v6 }
 0x330   :  { %11338 = vmatpush1.bf16.msra.mxu1 %v14010_v28  ;;  %10703 = vmatprep.subr.bf16.mxu0 %v14017_v23  ;;  %v896_v28 = vmul.f32 %v17531_v10, %v674_v8  ;;  %v18758_v23 = vld [vmem:[#allocation47_spill] sm:$0xff]  ;;  %v14035_v25 = vcombine.high %v1798_v27, %v1802_v46  ;;  %v17573_v59 = vpack.c.bf16 %v1093_v9, %v1069_v36 }
 0x331   :  { %11339 = vmatprep.subr.bf16.mxu1 %v14019_v50  ;;  %v697_v50 = vmul.f32 %v16967_v7, %v18758_v23  ;;  %v14034_v8 = vcombine.low %v1798_v27, %v1802_v46  ;;  %v895_v51 = vmul.f32 %v754_v41, %v673_v22  ;;  %v1826_v23 = vld [vmem:[#allocation8 + $0x14e8] sm:$0xff]  ;;  %v1833_v22 = vld [vmem:[#allocation8 + $0x1520] sm:$0xff] }
 0x332   :  { %v1118_v10 = vadd.f32 %v17542_v57, %v896_v28  ;;  %v1814_v57 = vld [vmem:[#allocation8 + $0x1488] sm:$0xff]  ;;  %v1821_v28 = vld [vmem:[#allocation8 + $0x14c0] sm:$0xff] }
 0x333   :  { %10704 = vmatpush1.bf16.msra.mxu0 %v14016_v32  ;;  %v1810_v32 = vld [vmem:[#allocation8 + $0x1468] sm:$0xff]  ;;  %v919_v35 = vmul.f32 %v754_v41, %v697_v50  ;;  %v1117_v9 = vadd.f32 %v976_v3, %v895_v51 }
 0x334   :  { %11340 = vmatpush1.bf16.msra.mxu1 %v14018_v43  ;;  %10705 = vmatprep.subr.bf16.mxu0 %v14025_v15  ;;  %v17575_v53 = vpack.c.bf16 %v1142_v30, %v1118_v10  ;;  %v14041_v43 = vcombine.high %v1805_v20, %v1809_v6  ;;  %v14043_v15 = vcombine.high %v1806_v55, %v1810_v32  ;;  %v1829_v20 = vld [vmem:[#allocation8 + $0x1500] sm:$0xff]  ;;  %v1834_v10 = vld [vmem:[#allocation8 + $0x1528] sm:$0xff] }
 0x335   :  { %11341 = vmatprep.subr.bf16.mxu1 %v14027_v40  ;;  %v1813_v40 = vld [vmem:[#allocation8 + $0x1480] sm:$0xff]  ;;  %v1141_v14 = vadd.f32 %v976_v3, %v919_v35  ;;  %v14042_v27 = vcombine.low %v1806_v55, %v1810_v32  ;;  %v1830_v3 = vld [vmem:[#allocation8 + $0x1508] sm:$0xff] }
 0x336   :  { %v14049_v46 = vcombine.high %v1813_v40, %v1817_v39  ;;  %v14067_v35 = vcombine.high %v1830_v3, %v1834_v10  ;;  %v1842_v51 = vld [vmem:[#allocation8 + $0x1568] sm:$0xff] }
 0x337   :  { %10706 = vmatpush1.bf16.msra.mxu0 %v14024_v54  ;;  %v1818_v54 = vld [vmem:[#allocation8 + $0x14a8] sm:$0xff]  ;;  %v17581_v50 = vpack.c.bf16 %v1141_v14, %v1117_v9  ;;  %v1849_v14 = vld [vmem:[#allocation8 + $0x15a0] sm:$0xff] }
 0x338   :  { %11342 = vmatpush1.bf16.msra.mxu1 %v14026_v62  ;;  %10728 = vmatprep.subr.bf16.mxu0 %v14033_v38  ;;  %v14051_v41 = vcombine.high %v1814_v57, %v1818_v54  ;;  %v1825_v62 = vld [vmem:[#allocation8 + $0x14e0] sm:$0xff]  ;;  %v1822_v38 = vld [vmem:[#allocation8 + $0x14c8] sm:$0xff]  ;;  %v14050_v30 = vcombine.low %v1814_v57, %v1818_v54 }
 0x339   :  { %11364 = vmatprep.subr.bf16.mxu1 %v14035_v25  ;;  %v14048_v25 = vcombine.low %v1813_v40, %v1817_v39  ;;  %v14057_v6 = vcombine.high %v1821_v28, %v1825_v62  ;;  %v14059_v36 = vcombine.high %v1822_v38, %v1826_v23  ;;  %v14056_v55 = vcombine.low %v1821_v28, %v1825_v62 }
 0x33a   :  { %10708 = vmatmul.mubr.bf16.vlgmr.msra.gmra.mrb[0].mxu0 %v17573_v59  ;;  %v14058_v32 = vcombine.low %v1822_v38, %v1826_v23  ;;  %v14064_v40 = vcombine.low %v1829_v20, %v1833_v22  ;;  %v14066_v39 = vcombine.low %v1830_v3, %v1834_v10  ;;  %v1853_v38 = vld [vmem:[#allocation8 + $0x15c0] sm:$0xff] }
 0x33b   :  { %11344 = vmatmul.mubr.bf16.vlgmr.msra.gmra.mrb[0].mxu1 %v17573_v59  ;;  %10717 = vmatprep.mubr.bf16.mxu0 %v17575_v53  ;;  %v1857_v23 = vld [vmem:[#allocation8 + $0x15e0] sm:$0xff] }
 0x33c   :  { %10729 = vmatpush1.bf16.msra.mxu0 %v14032_v48  ;;  %11353 = vmatprep.mubr.bf16.mxu1 %v17575_v53  ;;  %v14065_v48 = vcombine.high %v1829_v20, %v1833_v22  ;;  %v14089_v20 = vcombine.high %v1853_v38, %v1857_v23  ;;  %v1861_v3 = vld [vmem:[#allocation8 + $0x1600] sm:$0xff] }
 0x33d   :  { %11365 = vmatpush1.bf16.msra.mxu1 %v14034_v8  ;;  %10730 = vmatprep.subr.bf16.mxu0 %v14041_v43  ;;  %v1837_v8 = vld [vmem:[#allocation8 + $0x1540] sm:$0xff] }
 0x33e   :  { %11366 = vmatprep.subr.bf16.mxu1 %v14043_v15  ;;  %v1841_v43 = vld [vmem:[#allocation8 + $0x1560] sm:$0xff]  ;;  %v1838_v15 = vld [vmem:[#allocation8 + $0x1548] sm:$0xff] }
 0x33f   :  { %v14073_v57 = vcombine.high %v1837_v8, %v1841_v43  ;;  %v14075_v54 = vcombine.high %v1838_v15, %v1842_v51  ;;  %v14072_v9 = vcombine.low %v1837_v8, %v1841_v43  ;;  %v1865_v10 = vld [vmem:[#allocation8 + $0x1620] sm:$0xff] }
 0x340   :  { %10731 = vmatpush1.bf16.msra.mxu0 %v14040_v29  ;;  %v1845_v29 = vld [vmem:[#allocation8 + $0x1580] sm:$0xff]  ;;  %v14097_v8 = vcombine.high %v1861_v3, %v1865_v10 }
 0x341   :  { %11367 = vmatpush1.bf16.msra.mxu1 %v14042_v27  ;;  %10732 = vmatprep.subr.bf16.mxu0 %v14049_v46  ;;  %v1846_v27 = vld [vmem:[#allocation8 + $0x1588] sm:$0xff]  ;;  %v14081_v28 = vcombine.high %v1845_v29, %v1849_v14 }
 0x342   :  { %10718 = vmatmul.mubr.bf16.gmra.mrb[4].mxu0 %v17581_v50  ;;  %11368 = vmatprep.subr.bf16.mxu1 %v14051_v41  ;;  %v1850_v46 = vld [vmem:[#allocation8 + $0x15a8] sm:$0xff]  ;;  %v14074_v41 = vcombine.low %v1838_v15, %v1842_v51  ;;  %v1869_v15 = vld [vmem:[#allocation8 + $0x1640] sm:$0xff] }
 0x343   :  { %11354 = vmatmul.mubr.bf16.gmra.mrb[4].mxu1 %v17581_v50  ;;  %10760 = vmatprep.mubr.bf16.mxu0 %v17128_v0  ;;  %v14083_v62 = vcombine.high %v1846_v27, %v1850_v46  ;;  %v1873_v51 = vld [vmem:[#allocation8 + $0x1660] sm:$0xff] }
 0x344   :  { %10733 = vmatpush1.bf16.msra.mxu0 %v14048_v25  ;;  %11396 = vmatprep.mubr.bf16.mxu1 %v17128_v0  ;;  %v1854_v25 = vld [vmem:[#allocation8 + $0x15c8] sm:$0xff] }
 0x345   :  { %11369 = vmatpush1.bf16.msra.mxu1 %v14050_v30  ;;  %10734 = vmatprep.subr.bf16.mxu0 %v14057_v6  ;;  %v1858_v30 = vld [vmem:[#allocation8 + $0x15e8] sm:$0xff]  ;;  %v14080_v6 = vcombine.low %v1845_v29, %v1849_v14  ;;  %v14105_v29 = vcombine.high %v1869_v15, %v1873_v51 }
 0x346   :  { %11370 = vmatprep.subr.bf16.mxu1 %v14059_v36  ;;  %v14082_v36 = vcombine.low %v1846_v27, %v1850_v46  ;;  %v14091_v22 = vcombine.high %v1854_v25, %v1858_v30  ;;  %v1877_v27 = vld [vmem:[#allocation8 + $0x1680] sm:$0xff] }
 0x347   :  { %v1881_v46 = vld [vmem:[#allocation8 + $0x16a0] sm:$0xff] }
 0x348   :  { %10735 = vmatpush1.bf16.msra.mxu0 %v14056_v55  ;;  %v1862_v55 = vld [vmem:[#allocation8 + $0x1608] sm:$0xff] }
 0x349   :  { %11371 = vmatpush1.bf16.msra.mxu1 %v14058_v32  ;;  %10736 = vmatprep.subr.bf16.mxu0 %v14065_v48  ;;  %v1866_v32 = vld [vmem:[#allocation8 + $0x1628] sm:$0xff]  ;;  %v14088_v48 = vcombine.low %v1853_v38, %v1857_v23  ;;  %v14113_v38 = vcombine.high %v1877_v27, %v1881_v46 }
 0x34a   :  { %11372 = vmatprep.subr.bf16.mxu1 %v14067_v35  ;;  %v14090_v35 = vcombine.low %v1854_v25, %v1858_v30  ;;  %v14099_v43 = vcombine.high %v1862_v55, %v1866_v32  ;;  %v1885_v25 = vld [vmem:[#allocation8 + $0x16c0] sm:$0xff] }
 0x34b   :  { %v1889_v30 = vld [vmem:[#allocation8 + $0x16e0] sm:$0xff] }
 0x34c   :  { %10737 = vmatpush1.bf16.msra.mxu0 %v14064_v40  ;;  %v1870_v40 = vld [vmem:[#allocation8 + $0x1648] sm:$0xff] }
 0x34d   :  { %11373 = vmatpush1.bf16.msra.mxu1 %v14066_v39  ;;  %10738 = vmatprep.subr.bf16.mxu0 %v14073_v57  ;;  %v1874_v39 = vld [vmem:[#allocation8 + $0x1668] sm:$0xff]  ;;  %v14096_v57 = vcombine.low %v1861_v3, %v1865_v10  ;;  %v14121_v3 = vcombine.high %v1885_v25, %v1889_v30 }
 0x34e   :  { %11374 = vmatprep.subr.bf16.mxu1 %v14075_v54  ;;  %v14098_v54 = vcombine.low %v1862_v55, %v1866_v32  ;;  %v14107_v14 = vcombine.high %v1870_v40, %v1874_v39  ;;  %v1893_v55 = vld [vmem:[#allocation8 + $0x1700] sm:$0xff] }
 0x34f   :  { %v1897_v32 = vld [vmem:[#allocation8 + $0x1720] sm:$0xff] }
 0x350   :  { %10739 = vmatpush1.bf16.msra.mxu0 %v14072_v9  ;;  %v1878_v9 = vld [vmem:[#allocation8 + $0x1688] sm:$0xff] }
 0x351   :  { %11375 = vmatpush1.bf16.msra.mxu1 %v14074_v41  ;;  %10740 = vmatprep.subr.bf16.mxu0 %v14081_v28  ;;  %v1882_v41 = vld [vmem:[#allocation8 + $0x16a8] sm:$0xff]  ;;  %v14104_v28 = vcombine.low %v1869_v15, %v1873_v51  ;;  %v14129_v15 = vcombine.high %v1893_v55, %v1897_v32 }
 0x352   :  { %11376 = vmatprep.subr.bf16.mxu1 %v14083_v62  ;;  %v14106_v62 = vcombine.low %v1870_v40, %v1874_v39  ;;  %v14115_v23 = vcombine.high %v1878_v9, %v1882_v41  ;;  %v1901_v40 = vld [vmem:[#allocation8 + $0x1740] sm:$0xff] }
 0x353   :  { %v1905_v39 = vld [vmem:[#allocation8 + $0x1760] sm:$0xff] }
 0x354   :  { %10741 = vmatpush1.bf16.msra.mxu0 %v14080_v6  ;;  %v1886_v6 = vld [vmem:[#allocation8 + $0x16c8] sm:$0xff] }
 0x355   :  { %11377 = vmatpush1.bf16.msra.mxu1 %v14082_v36  ;;  %10742 = vmatprep.subr.bf16.mxu0 %v14089_v20  ;;  %v1890_v36 = vld [vmem:[#allocation8 + $0x16e8] sm:$0xff]  ;;  %v14112_v20 = vcombine.low %v1877_v27, %v1881_v46  ;;  %v14137_v27 = vcombine.high %v1901_v40, %v1905_v39 }
 0x356   :  { %11378 = vmatprep.subr.bf16.mxu1 %v14091_v22  ;;  %v14114_v22 = vcombine.low %v1878_v9, %v1882_v41  ;;  %v14123_v10 = vcombine.high %v1886_v6, %v1890_v36  ;;  %v1909_v9 = vld [vmem:[#allocation8 + $0x1780] sm:$0xff] }
 0x357   :  { %v1913_v41 = vld [vmem:[#allocation8 + $0x17a0] sm:$0xff] }
 0x358   :  { %10743 = vmatpush1.bf16.msra.mxu0 %v14088_v48  ;;  %v1894_v48 = vld [vmem:[#allocation8 + $0x1708] sm:$0xff] }
 0x359   :  { %11379 = vmatpush1.bf16.msra.mxu1 %v14090_v35  ;;  %10744 = vmatprep.subr.bf16.mxu0 %v14097_v8  ;;  %v1898_v35 = vld [vmem:[#allocation8 + $0x1728] sm:$0xff]  ;;  %v14120_v8 = vcombine.low %v1885_v25, %v1889_v30  ;;  %v14145_v25 = vcombine.high %v1909_v9, %v1913_v41 }
 0x35a   :  { %11380 = vmatprep.subr.bf16.mxu1 %v14099_v43  ;;  %v14122_v43 = vcombine.low %v1886_v6, %v1890_v36  ;;  %v14131_v51 = vcombine.high %v1894_v48, %v1898_v35  ;;  %v1917_v6 = vld [vmem:[#allocation8 + $0x17c0] sm:$0xff] }
 0x35b   :  { %v1921_v36 = vld [vmem:[#allocation8 + $0x17e0] sm:$0xff] }
 0x35c   :  { %10745 = vmatpush1.bf16.msra.mxu0 %v14096_v57  ;;  %v1902_v57 = vld [vmem:[#allocation8 + $0x1748] sm:$0xff] }
 0x35d   :  { %11381 = vmatpush1.bf16.msra.mxu1 %v14098_v54  ;;  %10746 = vmatprep.subr.bf16.mxu0 %v14105_v29  ;;  %v1906_v54 = vld [vmem:[#allocation8 + $0x1768] sm:$0xff]  ;;  %v14128_v29 = vcombine.low %v1893_v55, %v1897_v32  ;;  %v14153_v55 = vcombine.high %v1917_v6, %v1921_v36 }
 0x35e   :  { %11382 = vmatprep.subr.bf16.mxu1 %v14107_v14  ;;  %v14130_v14 = vcombine.low %v1894_v48, %v1898_v35  ;;  %v14139_v46 = vcombine.high %v1902_v57, %v1906_v54  ;;  %v1925_v48 = vld [vmem:[#allocation8 + $0x1800] sm:$0xff] }
 0x35f   :  { %v1929_v35 = vld [vmem:[#allocation8 + $0x1820] sm:$0xff] }
 0x360   :  { %10747 = vmatpush1.bf16.msra.mxu0 %v14104_v28  ;;  %v1910_v28 = vld [vmem:[#allocation8 + $0x1788] sm:$0xff] }
 0x361   :  { %11383 = vmatpush1.bf16.msra.mxu1 %v14106_v62  ;;  %10748 = vmatprep.subr.bf16.mxu0 %v14113_v38  ;;  %v1914_v62 = vld [vmem:[#allocation8 + $0x17a8] sm:$0xff]  ;;  %v14136_v38 = vcombine.low %v1901_v40, %v1905_v39  ;;  %v14161_v40 = vcombine.high %v1925_v48, %v1929_v35 }
 0x362   :  { %11384 = vmatprep.subr.bf16.mxu1 %v14115_v23  ;;  %v14138_v23 = vcombine.low %v1902_v57, %v1906_v54  ;;  %v14147_v30 = vcombine.high %v1910_v28, %v1914_v62  ;;  %v1933_v57 = vld [vmem:[#allocation8 + $0x1840] sm:$0xff] }
 0x363   :  { %v1937_v54 = vld [vmem:[#allocation8 + $0x1860] sm:$0xff] }
 0x364   :  { %10749 = vmatpush1.bf16.msra.mxu0 %v14112_v20  ;;  %v1918_v20 = vld [vmem:[#allocation8 + $0x17c8] sm:$0xff] }
 0x365   :  { %11385 = vmatpush1.bf16.msra.mxu1 %v14114_v22  ;;  %10750 = vmatprep.subr.bf16.mxu0 %v14121_v3  ;;  %v1922_v22 = vld [vmem:[#allocation8 + $0x17e8] sm:$0xff]  ;;  %v14144_v3 = vcombine.low %v1909_v9, %v1913_v41  ;;  %v14169_v9 = vcombine.high %v1933_v57, %v1937_v54 }
 0x366   :  { %11386 = vmatprep.subr.bf16.mxu1 %v14123_v10  ;;  %v14146_v10 = vcombine.low %v1910_v28, %v1914_v62  ;;  %v14155_v32 = vcombine.high %v1918_v20, %v1922_v22  ;;  %v1941_v28 = vld [vmem:[#allocation8 + $0x1880] sm:$0xff] }
 0x367   :  { %v1945_v62 = vld [vmem:[#allocation8 + $0x18a0] sm:$0xff] }
 0x368   :  { %10751 = vmatpush1.bf16.msra.mxu0 %v14120_v8  ;;  %v1926_v8 = vld [vmem:[#allocation8 + $0x1808] sm:$0xff] }
 0x369   :  { %11387 = vmatpush1.bf16.msra.mxu1 %v14122_v43  ;;  %10752 = vmatprep.subr.bf16.mxu0 %v14129_v15  ;;  %v1930_v43 = vld [vmem:[#allocation8 + $0x1828] sm:$0xff]  ;;  %v14152_v15 = vcombine.low %v1917_v6, %v1921_v36  ;;  %v14177_v6 = vcombine.high %v1941_v28, %v1945_v62 }
 0x36a   :  { %11388 = vmatprep.subr.bf16.mxu1 %v14131_v51  ;;  %v14154_v51 = vcombine.low %v1918_v20, %v1922_v22  ;;  %v14163_v39 = vcombine.high %v1926_v8, %v1930_v43  ;;  %v1949_v20 = vld [vmem:[#allocation8 + $0x18c0] sm:$0xff] }
 0x36b   :  { %v1953_v22 = vld [vmem:[#allocation8 + $0x18e0] sm:$0xff] }
 0x36c   :  { %10753 = vmatpush1.bf16.msra.mxu0 %v14128_v29  ;;  %v1934_v29 = vld [vmem:[#allocation8 + $0x1848] sm:$0xff] }
 0x36d   :  { %11389 = vmatpush1.bf16.msra.mxu1 %v14130_v14  ;;  %10754 = vmatprep.subr.bf16.mxu0 %v14137_v27  ;;  %v1938_v14 = vld [vmem:[#allocation8 + $0x1868] sm:$0xff]  ;;  %v14160_v27 = vcombine.low %v1925_v48, %v1929_v35  ;;  %v14185_v48 = vcombine.high %v1949_v20, %v1953_v22 }
 0x36e   :  { %11390 = vmatprep.subr.bf16.mxu1 %v14139_v46  ;;  %v14162_v46 = vcombine.low %v1926_v8, %v1930_v43  ;;  %v14171_v41 = vcombine.high %v1934_v29, %v1938_v14  ;;  %v1957_v8 = vld [vmem:[#allocation8 + $0x1900] sm:$0xff] }
 0x36f   :  { %v1961_v43 = vld [vmem:[#allocation8 + $0x1920] sm:$0xff] }
 0x370   :  { %10755 = vmatpush1.bf16.msra.mxu0 %v14136_v38  ;;  %v1942_v38 = vld [vmem:[#allocation8 + $0x1888] sm:$0xff] }
 0x371   :  { %11391 = vmatpush1.bf16.msra.mxu1 %v14138_v23  ;;  %10756 = vmatprep.subr.bf16.mxu0 %v14145_v25  ;;  %v1946_v23 = vld [vmem:[#allocation8 + $0x18a8] sm:$0xff]  ;;  %v14168_v25 = vcombine.low %v1933_v57, %v1937_v54  ;;  %v14193_v57 = vcombine.high %v1957_v8, %v1961_v43 }
 0x372   :  { %11392 = vmatprep.subr.bf16.mxu1 %v14147_v30  ;;  %v14170_v30 = vcombine.low %v1934_v29, %v1938_v14  ;;  %v14179_v36 = vcombine.high %v1942_v38, %v1946_v23  ;;  %v1965_v29 = vld [vmem:[#allocation8 + $0x1940] sm:$0xff] }
 0x373   :  { %v1969_v14 = vld [vmem:[#allocation8 + $0x1960] sm:$0xff] }
 0x374   :  { %10757 = vmatpush1.bf16.msra.mxu0 %v14144_v3  ;;  %v1950_v3 = vld [vmem:[#allocation8 + $0x18c8] sm:$0xff] }
 0x375   :  { %11393 = vmatpush1.bf16.msra.mxu1 %v14146_v10  ;;  %10758 = vmatprep.subr.bf16.mxu0 %v14153_v55  ;;  %v1954_v10 = vld [vmem:[#allocation8 + $0x18e8] sm:$0xff]  ;;  %v14176_v55 = vcombine.low %v1941_v28, %v1945_v62  ;;  %v14201_v28 = vcombine.high %v1965_v29, %v1969_v14 }
 0x376   :  { %11394 = vmatprep.subr.bf16.mxu1 %v14155_v32  ;;  %v14178_v32 = vcombine.low %v1942_v38, %v1946_v23  ;;  %v14187_v35 = vcombine.high %v1950_v3, %v1954_v10  ;;  %v1973_v38 = vld [vmem:[#allocation8 + $0x1980] sm:$0xff] }
 0x377   :  { %v1977_v23 = vld [vmem:[#allocation8 + $0x19a0] sm:$0xff] }
 0x378   :  { %10759 = vmatpush1.bf16.msra.mxu0 %v14152_v15  ;;  %v1958_v15 = vld [vmem:[#allocation8 + $0x1908] sm:$0xff] }
 0x379   :  { %11395 = vmatpush1.bf16.msra.mxu1 %v14154_v51  ;;  %10781 = vmatprep.subr.bf16.mxu0 %v14161_v40  ;;  %v1962_v51 = vld [vmem:[#allocation8 + $0x1928] sm:$0xff]  ;;  %v14184_v40 = vcombine.low %v1949_v20, %v1953_v22  ;;  %v14209_v20 = vcombine.high %v1973_v38, %v1977_v23 }
 0x37a   :  { %11417 = vmatprep.subr.bf16.mxu1 %v14163_v39  ;;  %v14186_v39 = vcombine.low %v1950_v3, %v1954_v10  ;;  %v14195_v54 = vcombine.high %v1958_v15, %v1962_v51  ;;  %v1981_v3 = vld [vmem:[#allocation8 + $0x19c0] sm:$0xff] }
 0x37b   :  { %10761 = vmatmul.mubr.bf16.vlgmr.msra.gmra.mrb[0].mxu0 %v17153_v58  ;;  %v1985_v10 = vld [vmem:[#allocation8 + $0x19e0] sm:$0xff] }
 0x37c   :  { %11397 = vmatmul.mubr.bf16.vlgmr.msra.gmra.mrb[0].mxu1 %v17153_v58  ;;  %10770 = vmatprep.mubr.bf16.mxu0 %v17169_v1 }
 0x37d   :  { %10782 = vmatpush1.bf16.msra.mxu0 %v14160_v27  ;;  %11406 = vmatprep.mubr.bf16.mxu1 %v17169_v1  ;;  %v1966_v27 = vld [vmem:[#allocation8 + $0x1948] sm:$0xff] }
 0x37e   :  { %11418 = vmatpush1.bf16.msra.mxu1 %v14162_v46  ;;  %10783 = vmatprep.subr.bf16.mxu0 %v14169_v9  ;;  %v1970_v46 = vld [vmem:[#allocation8 + $0x1968] sm:$0xff]  ;;  %v14192_v9 = vcombine.low %v1957_v8, %v1961_v43  ;;  %v14217_v8 = vcombine.high %v1981_v3, %v1985_v10 }
 0x37f   :  { %11419 = vmatprep.subr.bf16.mxu1 %v14171_v41  ;;  %v14194_v41 = vcombine.low %v1958_v15, %v1962_v51  ;;  %v14203_v62 = vcombine.high %v1966_v27, %v1970_v46  ;;  %v1989_v15 = vld [vmem:[#allocation8 + $0x1a00] sm:$0xff] }
 0x380   :  { %v1993_v51 = vld [vmem:[#allocation8 + $0x1a20] sm:$0xff] }
 0x381   :  { %10784 = vmatpush1.bf16.msra.mxu0 %v14168_v25  ;;  %v1974_v25 = vld [vmem:[#allocation8 + $0x1988] sm:$0xff] }
 0x382   :  { %11420 = vmatpush1.bf16.msra.mxu1 %v14170_v30  ;;  %10785 = vmatprep.subr.bf16.mxu0 %v14177_v6  ;;  %v1978_v30 = vld [vmem:[#allocation8 + $0x19a8] sm:$0xff]  ;;  %v14200_v6 = vcombine.low %v1965_v29, %v1969_v14  ;;  %v14225_v29 = vcombine.high %v1989_v15, %v1993_v51 }
 0x383   :  { %10771 = vmatmul.mubr.bf16.gmra.mrb[4].mxu0 %v17183_v17  ;;  %11421 = vmatprep.subr.bf16.mxu1 %v14179_v36  ;;  %v14202_v36 = vcombine.low %v1966_v27, %v1970_v46  ;;  %v14211_v22 = vcombine.high %v1974_v25, %v1978_v30  ;;  %v1997_v27 = vld [vmem:[#allocation8 + $0x1a40] sm:$0xff] }
 0x384   :  { %11407 = vmatmul.mubr.bf16.gmra.mrb[4].mxu1 %v17183_v17  ;;  %10813 = vmatprep.mubr.bf16.mxu0 %v17204_v52  ;;  %v2001_v46 = vld [vmem:[#allocation8 + $0x1a60] sm:$0xff] }
 0x385   :  { %10786 = vmatpush1.bf16.msra.mxu0 %v14176_v55  ;;  %11449 = vmatprep.mubr.bf16.mxu1 %v17204_v52  ;;  %v1982_v55 = vld [vmem:[#allocation8 + $0x19c8] sm:$0xff] }
 0x386   :  { %11422 = vmatpush1.bf16.msra.mxu1 %v14178_v32  ;;  %10787 = vmatprep.subr.bf16.mxu0 %v14185_v48  ;;  %v1986_v32 = vld [vmem:[#allocation8 + $0x19e8] sm:$0xff]  ;;  %v14208_v48 = vcombine.low %v1973_v38, %v1977_v23  ;;  %v14233_v38 = vcombine.high %v1997_v27, %v2001_v46 }
 0x387   :  { %11423 = vmatprep.subr.bf16.mxu1 %v14187_v35  ;;  %v14210_v35 = vcombine.low %v1974_v25, %v1978_v30  ;;  %v14219_v43 = vcombine.high %v1982_v55, %v1986_v32  ;;  %v2005_v25 = vld [vmem:[#allocation8 + $0x1a80] sm:$0xff] }
 0x388   :  { %v2009_v30 = vld [vmem:[#allocation8 + $0x1aa0] sm:$0xff] }
 0x389   :  { %10788 = vmatpush1.bf16.msra.mxu0 %v14184_v40  ;;  %v1990_v40 = vld [vmem:[#allocation8 + $0x1a08] sm:$0xff] }
 0x38a   :  { %11424 = vmatpush1.bf16.msra.mxu1 %v14186_v39  ;;  %10789 = vmatprep.subr.bf16.mxu0 %v14193_v57  ;;  %v1994_v39 = vld [vmem:[#allocation8 + $0x1a28] sm:$0xff]  ;;  %v14216_v57 = vcombine.low %v1981_v3, %v1985_v10  ;;  %v14241_v3 = vcombine.high %v2005_v25, %v2009_v30 }
 0x38b   :  { %11425 = vmatprep.subr.bf16.mxu1 %v14195_v54  ;;  %v14218_v54 = vcombine.low %v1982_v55, %v1986_v32  ;;  %v14227_v14 = vcombine.high %v1990_v40, %v1994_v39  ;;  %v2013_v55 = vld [vmem:[#allocation8 + $0x1ac0] sm:$0xff] }
 0x38c   :  { %v2017_v32 = vld [vmem:[#allocation8 + $0x1ae0] sm:$0xff] }
 0x38d   :  { %10790 = vmatpush1.bf16.msra.mxu0 %v14192_v9  ;;  %v1998_v9 = vld [vmem:[#allocation8 + $0x1a48] sm:$0xff] }
 0x38e   :  { %11426 = vmatpush1.bf16.msra.mxu1 %v14194_v41  ;;  %10791 = vmatprep.subr.bf16.mxu0 %v14201_v28  ;;  %v2002_v41 = vld [vmem:[#allocation8 + $0x1a68] sm:$0xff]  ;;  %v14224_v28 = vcombine.low %v1989_v15, %v1993_v51  ;;  %v14249_v15 = vcombine.high %v2013_v55, %v2017_v32 }
 0x38f   :  { %11427 = vmatprep.subr.bf16.mxu1 %v14203_v62  ;;  %v14226_v62 = vcombine.low %v1990_v40, %v1994_v39  ;;  %v14235_v23 = vcombine.high %v1998_v9, %v2002_v41  ;;  %v2021_v40 = vld [vmem:[#allocation8 + $0x1b00] sm:$0xff] }
 0x390   :  { %v2025_v39 = vld [vmem:[#allocation8 + $0x1b20] sm:$0xff] }
 0x391   :  { %10792 = vmatpush1.bf16.msra.mxu0 %v14200_v6  ;;  %v2006_v6 = vld [vmem:[#allocation8 + $0x1a88] sm:$0xff] }
 0x392   :  { %11428 = vmatpush1.bf16.msra.mxu1 %v14202_v36  ;;  %10793 = vmatprep.subr.bf16.mxu0 %v14209_v20  ;;  %v2010_v36 = vld [vmem:[#allocation8 + $0x1aa8] sm:$0xff]  ;;  %v14232_v20 = vcombine.low %v1997_v27, %v2001_v46  ;;  %v14257_v27 = vcombine.high %v2021_v40, %v2025_v39 }
 0x393   :  { %11429 = vmatprep.subr.bf16.mxu1 %v14211_v22  ;;  %v14234_v22 = vcombine.low %v1998_v9, %v2002_v41  ;;  %v14243_v10 = vcombine.high %v2006_v6, %v2010_v36  ;;  %v2029_v9 = vld [vmem:[#allocation8 + $0x1b40] sm:$0xff] }
 0x394   :  { %v2033_v41 = vld [vmem:[#allocation8 + $0x1b60] sm:$0xff] }
 0x395   :  { %10794 = vmatpush1.bf16.msra.mxu0 %v14208_v48  ;;  %v2014_v48 = vld [vmem:[#allocation8 + $0x1ac8] sm:$0xff] }
 0x396   :  { %11430 = vmatpush1.bf16.msra.mxu1 %v14210_v35  ;;  %10795 = vmatprep.subr.bf16.mxu0 %v14217_v8  ;;  %v2018_v35 = vld [vmem:[#allocation8 + $0x1ae8] sm:$0xff]  ;;  %v14240_v8 = vcombine.low %v2005_v25, %v2009_v30  ;;  %v14265_v25 = vcombine.high %v2029_v9, %v2033_v41 }
 0x397   :  { %11431 = vmatprep.subr.bf16.mxu1 %v14219_v43  ;;  %v14242_v43 = vcombine.low %v2006_v6, %v2010_v36  ;;  %v14251_v51 = vcombine.high %v2014_v48, %v2018_v35  ;;  %v2037_v6 = vld [vmem:[#allocation8 + $0x1b80] sm:$0xff] }
 0x398   :  { %v2041_v36 = vld [vmem:[#allocation8 + $0x1ba0] sm:$0xff] }
 0x399   :  { %10796 = vmatpush1.bf16.msra.mxu0 %v14216_v57  ;;  %v2022_v57 = vld [vmem:[#allocation8 + $0x1b08] sm:$0xff] }
 0x39a   :  { %11432 = vmatpush1.bf16.msra.mxu1 %v14218_v54  ;;  %10797 = vmatprep.subr.bf16.mxu0 %v14225_v29  ;;  %v2026_v54 = vld [vmem:[#allocation8 + $0x1b28] sm:$0xff]  ;;  %v14248_v29 = vcombine.low %v2013_v55, %v2017_v32  ;;  %v14273_v55 = vcombine.high %v2037_v6, %v2041_v36 }
 0x39b   :  { %11433 = vmatprep.subr.bf16.mxu1 %v14227_v14  ;;  %v14250_v14 = vcombine.low %v2014_v48, %v2018_v35  ;;  %v14259_v46 = vcombine.high %v2022_v57, %v2026_v54  ;;  %v2045_v48 = vld [vmem:[#allocation8 + $0x1bc0] sm:$0xff] }
 0x39c   :  { %v2049_v35 = vld [vmem:[#allocation8 + $0x1be0] sm:$0xff] }
 0x39d   :  { %10798 = vmatpush1.bf16.msra.mxu0 %v14224_v28  ;;  %v2030_v28 = vld [vmem:[#allocation8 + $0x1b48] sm:$0xff] }
 0x39e   :  { %11434 = vmatpush1.bf16.msra.mxu1 %v14226_v62  ;;  %10799 = vmatprep.subr.bf16.mxu0 %v14233_v38  ;;  %v2034_v62 = vld [vmem:[#allocation8 + $0x1b68] sm:$0xff]  ;;  %v14256_v38 = vcombine.low %v2021_v40, %v2025_v39  ;;  %v14281_v40 = vcombine.high %v2045_v48, %v2049_v35 }
 0x39f   :  { %11435 = vmatprep.subr.bf16.mxu1 %v14235_v23  ;;  %v14258_v23 = vcombine.low %v2022_v57, %v2026_v54  ;;  %v14267_v30 = vcombine.high %v2030_v28, %v2034_v62  ;;  %v2053_v57 = vld [vmem:[#allocation8 + $0x1c00] sm:$0xff] }
 0x3a0   :  { %v2057_v54 = vld [vmem:[#allocation8 + $0x1c20] sm:$0xff] }
 0x3a1   :  { %10800 = vmatpush1.bf16.msra.mxu0 %v14232_v20  ;;  %v2038_v20 = vld [vmem:[#allocation8 + $0x1b88] sm:$0xff] }
 0x3a2   :  { %11436 = vmatpush1.bf16.msra.mxu1 %v14234_v22  ;;  %10801 = vmatprep.subr.bf16.mxu0 %v14241_v3  ;;  %v2042_v22 = vld [vmem:[#allocation8 + $0x1ba8] sm:$0xff]  ;;  %v14264_v3 = vcombine.low %v2029_v9, %v2033_v41  ;;  %v14289_v9 = vcombine.high %v2053_v57, %v2057_v54 }
 0x3a3   :  { %11437 = vmatprep.subr.bf16.mxu1 %v14243_v10  ;;  %v14266_v10 = vcombine.low %v2030_v28, %v2034_v62  ;;  %v14275_v32 = vcombine.high %v2038_v20, %v2042_v22  ;;  %v2061_v28 = vld [vmem:[#allocation8 + $0x1c40] sm:$0xff] }
 0x3a4   :  { %v2065_v62 = vld [vmem:[#allocation8 + $0x1c60] sm:$0xff] }
 0x3a5   :  { %10802 = vmatpush1.bf16.msra.mxu0 %v14240_v8  ;;  %v2046_v8 = vld [vmem:[#allocation8 + $0x1bc8] sm:$0xff] }
 0x3a6   :  { %11438 = vmatpush1.bf16.msra.mxu1 %v14242_v43  ;;  %10803 = vmatprep.subr.bf16.mxu0 %v14249_v15  ;;  %v2050_v43 = vld [vmem:[#allocation8 + $0x1be8] sm:$0xff]  ;;  %v14272_v15 = vcombine.low %v2037_v6, %v2041_v36  ;;  %v14297_v6 = vcombine.high %v2061_v28, %v2065_v62 }
 0x3a7   :  { %11439 = vmatprep.subr.bf16.mxu1 %v14251_v51  ;;  %v14274_v51 = vcombine.low %v2038_v20, %v2042_v22  ;;  %v14283_v39 = vcombine.high %v2046_v8, %v2050_v43  ;;  %v2069_v20 = vld [vmem:[#allocation8 + $0x1c80] sm:$0xff] }
 0x3a8   :  { %v2073_v22 = vld [vmem:[#allocation8 + $0x1ca0] sm:$0xff] }
 0x3a9   :  { %10804 = vmatpush1.bf16.msra.mxu0 %v14248_v29  ;;  %v2054_v29 = vld [vmem:[#allocation8 + $0x1c08] sm:$0xff] }
 0x3aa   :  { %11440 = vmatpush1.bf16.msra.mxu1 %v14250_v14  ;;  %10805 = vmatprep.subr.bf16.mxu0 %v14257_v27  ;;  %v2058_v14 = vld [vmem:[#allocation8 + $0x1c28] sm:$0xff]  ;;  %v14280_v27 = vcombine.low %v2045_v48, %v2049_v35  ;;  %v14305_v48 = vcombine.high %v2069_v20, %v2073_v22 }
 0x3ab   :  { %11441 = vmatprep.subr.bf16.mxu1 %v14259_v46  ;;  %v14282_v46 = vcombine.low %v2046_v8, %v2050_v43  ;;  %v14291_v41 = vcombine.high %v2054_v29, %v2058_v14  ;;  %v2077_v8 = vld [vmem:[#allocation8 + $0x1cc0] sm:$0xff] }
 0x3ac   :  { %v2081_v43 = vld [vmem:[#allocation8 + $0x1ce0] sm:$0xff] }
 0x3ad   :  { %10806 = vmatpush1.bf16.msra.mxu0 %v14256_v38  ;;  %v2062_v38 = vld [vmem:[#allocation8 + $0x1c48] sm:$0xff] }
 0x3ae   :  { %11442 = vmatpush1.bf16.msra.mxu1 %v14258_v23  ;;  %10807 = vmatprep.subr.bf16.mxu0 %v14265_v25  ;;  %v2066_v23 = vld [vmem:[#allocation8 + $0x1c68] sm:$0xff]  ;;  %v14288_v25 = vcombine.low %v2053_v57, %v2057_v54  ;;  %v14313_v57 = vcombine.high %v2077_v8, %v2081_v43 }
 0x3af   :  { %11443 = vmatprep.subr.bf16.mxu1 %v14267_v30  ;;  %v14290_v30 = vcombine.low %v2054_v29, %v2058_v14  ;;  %v14299_v36 = vcombine.high %v2062_v38, %v2066_v23  ;;  %v2085_v29 = vld [vmem:[#allocation8 + $0x1d00] sm:$0xff] }
 0x3b0   :  { %v2089_v14 = vld [vmem:[#allocation8 + $0x1d20] sm:$0xff] }
 0x3b1   :  { %10808 = vmatpush1.bf16.msra.mxu0 %v14264_v3  ;;  %v2070_v3 = vld [vmem:[#allocation8 + $0x1c88] sm:$0xff] }
 0x3b2   :  { %11444 = vmatpush1.bf16.msra.mxu1 %v14266_v10  ;;  %10809 = vmatprep.subr.bf16.mxu0 %v14273_v55  ;;  %v2074_v10 = vld [vmem:[#allocation8 + $0x1ca8] sm:$0xff]  ;;  %v14296_v55 = vcombine.low %v2061_v28, %v2065_v62  ;;  %v14321_v28 = vcombine.high %v2085_v29, %v2089_v14 }
 0x3b3   :  { %11445 = vmatprep.subr.bf16.mxu1 %v14275_v32  ;;  %v14298_v32 = vcombine.low %v2062_v38, %v2066_v23  ;;  %v14307_v35 = vcombine.high %v2070_v3, %v2074_v10  ;;  %v2093_v38 = vld [vmem:[#allocation8 + $0x1d40] sm:$0xff] }
 0x3b4   :  { %v2097_v23 = vld [vmem:[#allocation8 + $0x1d60] sm:$0xff] }
 0x3b5   :  { %10810 = vmatpush1.bf16.msra.mxu0 %v14272_v15  ;;  %v2078_v15 = vld [vmem:[#allocation8 + $0x1cc8] sm:$0xff] }
 0x3b6   :  { %11446 = vmatpush1.bf16.msra.mxu1 %v14274_v51  ;;  %10811 = vmatprep.subr.bf16.mxu0 %v14281_v40  ;;  %v2082_v51 = vld [vmem:[#allocation8 + $0x1ce8] sm:$0xff]  ;;  %v14304_v40 = vcombine.low %v2069_v20, %v2073_v22  ;;  %v14329_v20 = vcombine.high %v2093_v38, %v2097_v23 }
 0x3b7   :  { %11447 = vmatprep.subr.bf16.mxu1 %v14283_v39  ;;  %v14306_v39 = vcombine.low %v2070_v3, %v2074_v10  ;;  %v14315_v54 = vcombine.high %v2078_v15, %v2082_v51  ;;  %v2101_v3 = vld [vmem:[#allocation8 + $0x1d80] sm:$0xff] }
 0x3b8   :  { %v2105_v10 = vld [vmem:[#allocation8 + $0x1da0] sm:$0xff] }
 0x3b9   :  { %10812 = vmatpush1.bf16.msra.mxu0 %v14280_v27  ;;  %v2086_v27 = vld [vmem:[#allocation8 + $0x1d08] sm:$0xff] }
 0x3ba   :  { %11448 = vmatpush1.bf16.msra.mxu1 %v14282_v46  ;;  %10834 = vmatprep.subr.bf16.mxu0 %v14289_v9  ;;  %v2090_v46 = vld [vmem:[#allocation8 + $0x1d28] sm:$0xff]  ;;  %v14312_v9 = vcombine.low %v2077_v8, %v2081_v43  ;;  %v14337_v8 = vcombine.high %v2101_v3, %v2105_v10 }
 0x3bb   :  { %11470 = vmatprep.subr.bf16.mxu1 %v14291_v41  ;;  %v14314_v41 = vcombine.low %v2078_v15, %v2082_v51  ;;  %v14323_v62 = vcombine.high %v2086_v27, %v2090_v46  ;;  %v2109_v15 = vld [vmem:[#allocation8 + $0x1dc0] sm:$0xff] }
 0x3bc   :  { %10814 = vmatmul.mubr.bf16.vlgmr.msra.gmra.mrb[0].mxu0 %v17211_v13  ;;  %v2113_v51 = vld [vmem:[#allocation8 + $0x1de0] sm:$0xff] }
 0x3bd   :  { %11450 = vmatmul.mubr.bf16.vlgmr.msra.gmra.mrb[0].mxu1 %v17211_v13  ;;  %10823 = vmatprep.mubr.bf16.mxu0 %v17213_v5 }
 0x3be   :  { %10835 = vmatpush1.bf16.msra.mxu0 %v14288_v25  ;;  %11459 = vmatprep.mubr.bf16.mxu1 %v17213_v5  ;;  %v2094_v25 = vld [vmem:[#allocation8 + $0x1d48] sm:$0xff] }
 0x3bf   :  { %11471 = vmatpush1.bf16.msra.mxu1 %v14290_v30  ;;  %10836 = vmatprep.subr.bf16.mxu0 %v14297_v6  ;;  %v2098_v30 = vld [vmem:[#allocation8 + $0x1d68] sm:$0xff]  ;;  %v14320_v6 = vcombine.low %v2085_v29, %v2089_v14  ;;  %v14345_v29 = vcombine.high %v2109_v15, %v2113_v51 }
 0x3c0   :  { %11472 = vmatprep.subr.bf16.mxu1 %v14299_v36  ;;  %v14322_v36 = vcombine.low %v2086_v27, %v2090_v46  ;;  %v14331_v22 = vcombine.high %v2094_v25, %v2098_v30  ;;  %v2117_v27 = vld [vmem:[#allocation8 + $0x1e00] sm:$0xff] }
 0x3c1   :  { %v2121_v46 = vld [vmem:[#allocation8 + $0x1e20] sm:$0xff] }
 0x3c2   :  { %10837 = vmatpush1.bf16.msra.mxu0 %v14296_v55  ;;  %v2102_v55 = vld [vmem:[#allocation8 + $0x1d88] sm:$0xff] }
 0x3c3   :  { %11473 = vmatpush1.bf16.msra.mxu1 %v14298_v32  ;;  %10838 = vmatprep.subr.bf16.mxu0 %v14305_v48  ;;  %v2106_v32 = vld [vmem:[#allocation8 + $0x1da8] sm:$0xff]  ;;  %v14328_v48 = vcombine.low %v2093_v38, %v2097_v23  ;;  %v14353_v38 = vcombine.high %v2117_v27, %v2121_v46 }
 0x3c4   :  { %10824 = vmatmul.mubr.bf16.gmra.mrb[4].mxu0 %v17232_v61  ;;  %11474 = vmatprep.subr.bf16.mxu1 %v14307_v35  ;;  %v14330_v35 = vcombine.low %v2094_v25, %v2098_v30  ;;  %v14339_v43 = vcombine.high %v2102_v55, %v2106_v32  ;;  %v2125_v25 = vld [vmem:[#allocation8 + $0x1e40] sm:$0xff] }
 0x3c5   :  { %11460 = vmatmul.mubr.bf16.gmra.mrb[4].mxu1 %v17232_v61  ;;  %10866 = vmatprep.mubr.bf16.mxu0 %v17243_v47  ;;  %v2129_v30 = vld [vmem:[#allocation8 + $0x1e60] sm:$0xff] }
 0x3c6   :  { %10839 = vmatpush1.bf16.msra.mxu0 %v14304_v40  ;;  %11502 = vmatprep.mubr.bf16.mxu1 %v17243_v47  ;;  %v2110_v40 = vld [vmem:[#allocation8 + $0x1dc8] sm:$0xff] }
 0x3c7   :  { %11475 = vmatpush1.bf16.msra.mxu1 %v14306_v39  ;;  %10840 = vmatprep.subr.bf16.mxu0 %v14313_v57  ;;  %v2114_v39 = vld [vmem:[#allocation8 + $0x1de8] sm:$0xff]  ;;  %v14336_v57 = vcombine.low %v2101_v3, %v2105_v10  ;;  %v14361_v3 = vcombine.high %v2125_v25, %v2129_v30 }
 0x3c8   :  { %11476 = vmatprep.subr.bf16.mxu1 %v14315_v54  ;;  %v14338_v54 = vcombine.low %v2102_v55, %v2106_v32  ;;  %v14347_v14 = vcombine.high %v2110_v40, %v2114_v39  ;;  %v2133_v55 = vld [vmem:[#allocation8 + $0x1e80] sm:$0xff] }
 0x3c9   :  { %v2137_v32 = vld [vmem:[#allocation8 + $0x1ea0] sm:$0xff] }
 0x3ca   :  { %10841 = vmatpush1.bf16.msra.mxu0 %v14312_v9  ;;  %v2118_v9 = vld [vmem:[#allocation8 + $0x1e08] sm:$0xff] }
 0x3cb   :  { %11477 = vmatpush1.bf16.msra.mxu1 %v14314_v41  ;;  %10842 = vmatprep.subr.bf16.mxu0 %v14321_v28  ;;  %v2122_v41 = vld [vmem:[#allocation8 + $0x1e28] sm:$0xff]  ;;  %v14344_v28 = vcombine.low %v2109_v15, %v2113_v51  ;;  %v14369_v15 = vcombine.high %v2133_v55, %v2137_v32 }
 0x3cc   :  { %11478 = vmatprep.subr.bf16.mxu1 %v14323_v62  ;;  %v14346_v62 = vcombine.low %v2110_v40, %v2114_v39  ;;  %v14355_v23 = vcombine.high %v2118_v9, %v2122_v41  ;;  %v2141_v40 = vld [vmem:[#allocation8 + $0x1ec0] sm:$0xff] }
 0x3cd   :  { %v2145_v39 = vld [vmem:[#allocation8 + $0x1ee0] sm:$0xff] }
 0x3ce   :  { %10843 = vmatpush1.bf16.msra.mxu0 %v14320_v6  ;;  %v2126_v6 = vld [vmem:[#allocation8 + $0x1e48] sm:$0xff] }
 0x3cf   :  { %11479 = vmatpush1.bf16.msra.mxu1 %v14322_v36  ;;  %10844 = vmatprep.subr.bf16.mxu0 %v14329_v20  ;;  %v2130_v36 = vld [vmem:[#allocation8 + $0x1e68] sm:$0xff]  ;;  %v14352_v20 = vcombine.low %v2117_v27, %v2121_v46  ;;  %v14377_v27 = vcombine.high %v2141_v40, %v2145_v39 }
 0x3d0   :  { %11480 = vmatprep.subr.bf16.mxu1 %v14331_v22  ;;  %v14354_v22 = vcombine.low %v2118_v9, %v2122_v41  ;;  %v14363_v10 = vcombine.high %v2126_v6, %v2130_v36  ;;  %v2149_v9 = vld [vmem:[#allocation8 + $0x1f00] sm:$0xff] }
 0x3d1   :  { %v2153_v41 = vld [vmem:[#allocation8 + $0x1f20] sm:$0xff] }
 0x3d2   :  { %10845 = vmatpush1.bf16.msra.mxu0 %v14328_v48  ;;  %v2134_v48 = vld [vmem:[#allocation8 + $0x1e88] sm:$0xff] }
 0x3d3   :  { %11481 = vmatpush1.bf16.msra.mxu1 %v14330_v35  ;;  %10846 = vmatprep.subr.bf16.mxu0 %v14337_v8  ;;  %v2138_v35 = vld [vmem:[#allocation8 + $0x1ea8] sm:$0xff]  ;;  %v14360_v8 = vcombine.low %v2125_v25, %v2129_v30  ;;  %v14385_v25 = vcombine.high %v2149_v9, %v2153_v41 }
 0x3d4   :  { %11482 = vmatprep.subr.bf16.mxu1 %v14339_v43  ;;  %v14362_v43 = vcombine.low %v2126_v6, %v2130_v36  ;;  %v14371_v51 = vcombine.high %v2134_v48, %v2138_v35  ;;  %v2157_v6 = vld [vmem:[#allocation8 + $0x1f40] sm:$0xff] }
 0x3d5   :  { %v2161_v36 = vld [vmem:[#allocation8 + $0x1f60] sm:$0xff] }
 0x3d6   :  { %10847 = vmatpush1.bf16.msra.mxu0 %v14336_v57  ;;  %v2142_v57 = vld [vmem:[#allocation8 + $0x1ec8] sm:$0xff] }
 0x3d7   :  { %11483 = vmatpush1.bf16.msra.mxu1 %v14338_v54  ;;  %10848 = vmatprep.subr.bf16.mxu0 %v14345_v29  ;;  %v2146_v54 = vld [vmem:[#allocation8 + $0x1ee8] sm:$0xff]  ;;  %v14368_v29 = vcombine.low %v2133_v55, %v2137_v32  ;;  %v14393_v55 = vcombine.high %v2157_v6, %v2161_v36 }
 0x3d8   :  { %11484 = vmatprep.subr.bf16.mxu1 %v14347_v14  ;;  %v14370_v14 = vcombine.low %v2134_v48, %v2138_v35  ;;  %v14379_v46 = vcombine.high %v2142_v57, %v2146_v54  ;;  %v2165_v48 = vld [vmem:[#allocation8 + $0x1f80] sm:$0xff] }
 0x3d9   :  { %v2169_v35 = vld [vmem:[#allocation8 + $0x1fa0] sm:$0xff] }
 0x3da   :  { %10849 = vmatpush1.bf16.msra.mxu0 %v14344_v28  ;;  %v2150_v28 = vld [vmem:[#allocation8 + $0x1f08] sm:$0xff] }
 0x3db   :  { %11485 = vmatpush1.bf16.msra.mxu1 %v14346_v62  ;;  %10850 = vmatprep.subr.bf16.mxu0 %v14353_v38  ;;  %v2154_v62 = vld [vmem:[#allocation8 + $0x1f28] sm:$0xff]  ;;  %v14376_v38 = vcombine.low %v2141_v40, %v2145_v39  ;;  %v14401_v40 = vcombine.high %v2165_v48, %v2169_v35 }
 0x3dc   :  { %11486 = vmatprep.subr.bf16.mxu1 %v14355_v23  ;;  %v14378_v23 = vcombine.low %v2142_v57, %v2146_v54  ;;  %v14387_v30 = vcombine.high %v2150_v28, %v2154_v62  ;;  %v2173_v57 = vld [vmem:[#allocation8 + $0x1fc0] sm:$0xff] }
 0x3dd   :  { %v2177_v54 = vld [vmem:[#allocation8 + $0x1fe0] sm:$0xff] }
 0x3de   :  { %10851 = vmatpush1.bf16.msra.mxu0 %v14352_v20  ;;  %v2158_v20 = vld [vmem:[#allocation8 + $0x1f48] sm:$0xff] }
 0x3df   :  { %11487 = vmatpush1.bf16.msra.mxu1 %v14354_v22  ;;  %10852 = vmatprep.subr.bf16.mxu0 %v14361_v3  ;;  %v2162_v22 = vld [vmem:[#allocation8 + $0x1f68] sm:$0xff]  ;;  %v14384_v3 = vcombine.low %v2149_v9, %v2153_v41  ;;  %v14409_v9 = vcombine.high %v2173_v57, %v2177_v54 }
 0x3e0   :  { %11488 = vmatprep.subr.bf16.mxu1 %v14363_v10  ;;  %v14386_v10 = vcombine.low %v2150_v28, %v2154_v62  ;;  %v14395_v32 = vcombine.high %v2158_v20, %v2162_v22  ;;  %v2181_v28 = vld [vmem:[#allocation8 + $0x2000] sm:$0xff] }
 0x3e1   :  { %v2185_v62 = vld [vmem:[#allocation8 + $0x2020] sm:$0xff] }
 0x3e2   :  { %10853 = vmatpush1.bf16.msra.mxu0 %v14360_v8  ;;  %v2166_v8 = vld [vmem:[#allocation8 + $0x1f88] sm:$0xff] }
 0x3e3   :  { %11489 = vmatpush1.bf16.msra.mxu1 %v14362_v43  ;;  %10854 = vmatprep.subr.bf16.mxu0 %v14369_v15  ;;  %v2170_v43 = vld [vmem:[#allocation8 + $0x1fa8] sm:$0xff]  ;;  %v14392_v15 = vcombine.low %v2157_v6, %v2161_v36  ;;  %v14417_v6 = vcombine.high %v2181_v28, %v2185_v62 }
 0x3e4   :  { %11490 = vmatprep.subr.bf16.mxu1 %v14371_v51  ;;  %v14394_v51 = vcombine.low %v2158_v20, %v2162_v22  ;;  %v14403_v39 = vcombine.high %v2166_v8, %v2170_v43  ;;  %v18760_v20 = vld [vmem:[#allocation36_spill] sm:$0xff] }
 0x3e5   :  { %v658_v22 = vmul.f32 %v16822_v45, %v18760_v20  ;;  %v2209_v20 = vld [vmem:[#allocation8 + $0x20e0] sm:$0xff] }
 0x3e6   :  { %10855 = vmatpush1.bf16.msra.mxu0 %v14368_v29  ;;  %v2174_v29 = vld [vmem:[#allocation8 + $0x1fc8] sm:$0xff] }
 0x3e7   :  { %11491 = vmatpush1.bf16.msra.mxu1 %v14370_v14  ;;  %10856 = vmatprep.subr.bf16.mxu0 %v14377_v27  ;;  %v2178_v14 = vld [vmem:[#allocation8 + $0x1fe8] sm:$0xff]  ;;  %v14400_v27 = vcombine.low %v2165_v48, %v2169_v35  ;;  %v18761_v48 = vld [vmem:[#allocation83_spill] sm:$0xff] }
 0x3e8   :  { %11492 = vmatprep.subr.bf16.mxu1 %v14379_v46  ;;  %v14402_v46 = vcombine.low %v2166_v8, %v2170_v43  ;;  %v14411_v41 = vcombine.high %v2174_v29, %v2178_v14  ;;  %v634_v35 = vmul.f32 %v16626_v49, %v18761_v48  ;;  %v17607_v8 = vld [vmem:[#allocation5 + $0x10] sm:$0xff]  ;;  %v2206_v48 = vld [vmem:[#allocation8 + $0x20c8] sm:$0xff] }
 0x3e9   :  { %v17611_v43 = vrot.slane %v17607_v8, %v18750_v42 }
 0x3ea   :  { %10857 = vmatpush1.bf16.msra.mxu0 %v14376_v38  ;;  %v2182_v38 = vld [vmem:[#allocation8 + $0x2008] sm:$0xff] }
 0x3eb   :  { %11493 = vmatpush1.bf16.msra.mxu1 %v14378_v23  ;;  %10858 = vmatprep.subr.bf16.mxu0 %v14385_v25  ;;  %v2186_v23 = vld [vmem:[#allocation8 + $0x2028] sm:$0xff]  ;;  %v14408_v25 = vcombine.low %v2173_v57, %v2177_v54  ;;  %v18762_v57 = vld [vmem:[#allocation99_spill] sm:$0xff] }
 0x3ec   :  { %11494 = vmatprep.subr.bf16.mxu1 %v14387_v30  ;;  %v14410_v30 = vcombine.low %v2174_v29, %v2178_v14  ;;  %v14419_v36 = vcombine.high %v2182_v38, %v2186_v23  ;;  %v2197_v29 = vld [vmem:[#allocation8 + $0x2080] sm:$0xff] }
 0x3ed   :  { %v2201_v14 = vld [vmem:[#allocation8 + $0x20a0] sm:$0xff] }
 0x3ee   :  { %10859 = vmatpush1.bf16.msra.mxu0 %v14384_v3  ;;  %v2189_v3 = vld [vmem:[#allocation8 + $0x2040] sm:$0xff] }
 0x3ef   :  { %11495 = vmatpush1.bf16.msra.mxu1 %v14386_v10  ;;  %10860 = vmatprep.subr.bf16.mxu0 %v14393_v55  ;;  %v2193_v10 = vld [vmem:[#allocation8 + $0x2060] sm:$0xff]  ;;  %v2190_v55 = vld [vmem:[#allocation8 + $0x2048] sm:$0xff] }
 0x3f0   :  { %11496 = vmatprep.subr.bf16.mxu1 %v14395_v32  ;;  %v2194_v32 = vld [vmem:[#allocation8 + $0x2068] sm:$0xff] }
 0x3f1   :  { %v14427_v54 = vcombine.high %v2190_v55, %v2194_v32 }
 0x3f2   :  { %10861 = vmatpush1.bf16.msra.mxu0 %v14392_v15  ;;  %v14416_v15 = vcombine.low %v2181_v28, %v2185_v62  ;;  %v17618_v28 = vld [vmem:[#allocation7 + $0x10] sm:$0xff] }
 0x3f3   :  { %11497 = vmatpush1.bf16.msra.mxu1 %v14394_v51  ;;  %10862 = vmatprep.subr.bf16.mxu0 %v14401_v40  ;;  %v14418_v51 = vcombine.low %v2182_v38, %v2186_v23  ;;  %v14425_v40 = vcombine.high %v2189_v3, %v2193_v10  ;;  %v17622_v62 = vrot.slane %v17618_v28, %v18750_v42 }
 0x3f4   :  { %11498 = vmatprep.subr.bf16.mxu1 %v14403_v39  ;;  %v880_v39 = vmul.f32 %v17611_v43, %v658_v22  ;;  %v14424_v38 = vcombine.low %v2189_v3, %v2193_v10  ;;  %v14426_v23 = vcombine.low %v2190_v55, %v2194_v32  ;;  %v14432_v42 = vcombine.low %v2197_v29, %v2201_v14  ;;  %v18765_v55 = vld [vmem:[#allocation41_spill] sm:$0xff] }
 0x3f6   :  { %10863 = vmatpush1.bf16.msra.mxu0 %v14400_v27  ;;  %v18763_v27 = vld [vmem:[#allocation58_spill] sm:$0xff] }
 0x3f7   :  { %11499 = vmatpush1.bf16.msra.mxu1 %v14402_v46  ;;  %10864 = vmatprep.subr.bf16.mxu0 %v14409_v9  ;;  %v2198_v46 = vld [vmem:[#allocation8 + $0x2088] sm:$0xff] }
 0x3f8   :  { %11500 = vmatprep.subr.bf16.mxu1 %v14411_v41  ;;  %v2202_v9 = vld [vmem:[#allocation8 + $0x20a8] sm:$0xff]  ;;  %v856_v41 = vmul.f32 %v17611_v43, %v634_v35 }
 0x3f9   :  { %v2210_v35 = vld [vmem:[#allocation8 + $0x20e8] sm:$0xff] }
 0x3fa   :  { %10865 = vmatpush1.bf16.msra.mxu0 %v14408_v25  ;;  %v14433_v25 = vcombine.high %v2197_v29, %v2201_v14  ;;  %v1078_v22 = vadd.f32 %v17622_v62, %v856_v41  ;;  %v14443_v32 = vcombine.high %v2206_v48, %v2210_v35  ;;  %v14442_v14 = vcombine.low %v2206_v48, %v2210_v35  ;;  %v2221_v41 = vld [vmem:[#allocation8 + $0x2140] sm:$0xff] }
 0x3fb   :  { %11501 = vmatpush1.bf16.msra.mxu1 %v14410_v30  ;;  %10887 = vmatprep.subr.bf16.mxu0 %v14417_v6  ;;  %v1102_v30 = vadd.f32 %v17622_v62, %v880_v39  ;;  %v14435_v6 = vcombine.high %v2198_v46, %v2202_v9  ;;  %v2214_v39 = vld [vmem:[#allocation8 + $0x2108] sm:$0xff] }
 0x3fc   :  { %11523 = vmatprep.subr.bf16.mxu1 %v14419_v36  ;;  %v2205_v36 = vld [vmem:[#allocation8 + $0x20c0] sm:$0xff] }
 0x3fd   :  { %10867 = vmatmul.mubr.bf16.vlgmr.msra.gmra.mrb[0].mxu0 %v18762_v57  ;;  %v17627_v3 = vpack.c.bf16 %v1102_v30, %v1078_v22  ;;  %v14441_v10 = vcombine.high %v2205_v36, %v2209_v20  ;;  %v14440_v29 = vcombine.low %v2205_v36, %v2209_v20  ;;  %v2233_v36 = vld [vmem:[#allocation8 + $0x21a0] sm:$0xff]  ;;  %v2230_v20 = vld [vmem:[#allocation8 + $0x2188] sm:$0xff] }
 0x3fe   :  { %11503 = vmatmul.mubr.bf16.vlgmr.msra.gmra.mrb[0].mxu1 %v18762_v57  ;;  %10876 = vmatprep.mubr.bf16.mxu0 %v18763_v27 }
 0x3ff   :  { %10888 = vmatpush1.bf16.msra.mxu0 %v14416_v15  ;;  %11512 = vmatprep.mubr.bf16.mxu1 %v18763_v27  ;;  %v14434_v15 = vcombine.low %v2198_v46, %v2202_v9  ;;  %18764 = vst [vmem:[#allocation94_spill] sm:$0xff] %v17627_v3 }
 0x400   :  { %11524 = vmatpush1.bf16.msra.mxu1 %v14418_v51  ;;  %10889 = vmatprep.subr.bf16.mxu0 %v14425_v40  ;;  %v2213_v51 = vld [vmem:[#allocation8 + $0x2100] sm:$0xff] }
 0x401   :  { %11525 = vmatprep.subr.bf16.mxu1 %v14427_v54  ;;  %v2217_v40 = vld [vmem:[#allocation8 + $0x2120] sm:$0xff]  ;;  %v2218_v54 = vld [vmem:[#allocation8 + $0x2128] sm:$0xff] }
 0x402   :  { %v14449_v46 = vcombine.high %v2213_v51, %v2217_v40  ;;  %v14451_v9 = vcombine.high %v2214_v39, %v2218_v54  ;;  %v14448_v30 = vcombine.low %v2213_v51, %v2217_v40  ;;  %v2241_v51 = vld [vmem:[#allocation8 + $0x21e0] sm:$0xff]  ;;  %v2238_v40 = vld [vmem:[#allocation8 + $0x21c8] sm:$0xff] }
 0x403   :  { %10890 = vmatpush1.bf16.msra.mxu0 %v14424_v38  ;;  %v2225_v38 = vld [vmem:[#allocation8 + $0x2160] sm:$0xff] }
 0x404   :  { %11526 = vmatpush1.bf16.msra.mxu1 %v14426_v23  ;;  %10891 = vmatprep.subr.bf16.mxu0 %v14433_v25  ;;  %v2222_v23 = vld [vmem:[#allocation8 + $0x2148] sm:$0xff]  ;;  %v14457_v22 = vcombine.high %v2221_v41, %v2225_v38  ;;  %v14456_v48 = vcombine.low %v2221_v41, %v2225_v38  ;;  %v2249_v41 = vld [vmem:[#allocation8 + $0x2220] sm:$0xff] }
 0x405   :  { %10877 = vmatmul.mubr.bf16.gmra.mrb[4].mxu0 %v18765_v55  ;;  %11527 = vmatprep.subr.bf16.mxu1 %v14435_v6  ;;  %v2226_v25 = vld [vmem:[#allocation8 + $0x2168] sm:$0xff]  ;;  %v14450_v6 = vcombine.low %v2214_v39, %v2218_v54 }
 0x406   :  { %11513 = vmatmul.mubr.bf16.gmra.mrb[4].mxu1 %v18765_v55  ;;  %10919 = vmatprep.mubr.bf16.mxu0 %v17627_v3  ;;  %v14458_v35 = vcombine.low %v2222_v23, %v2226_v25  ;;  %v2246_v38 = vld [vmem:[#allocation8 + $0x2208] sm:$0xff]  ;;  %v2313_v55 = vld [vmem:[#allocation8 + $0x2420] sm:$0xff] }
 0x407   :  { %10892 = vmatpush1.bf16.msra.mxu0 %v14432_v42  ;;  %11555 = vmatprep.mubr.bf16.mxu1 %v17627_v3  ;;  %v14459_v42 = vcombine.high %v2222_v23, %v2226_v25  ;;  %v2229_v3 = vld [vmem:[#allocation8 + $0x2180] sm:$0xff] }
 0x408   :  { %11528 = vmatpush1.bf16.msra.mxu1 %v14434_v15  ;;  %10893 = vmatprep.subr.bf16.mxu0 %v14441_v10  ;;  %v2234_v15 = vld [vmem:[#allocation8 + $0x21a8] sm:$0xff]  ;;  %v14465_v10 = vcombine.high %v2229_v3, %v2233_v36  ;;  %v14464_v39 = vcombine.low %v2229_v3, %v2233_v36  ;;  %v2257_v3 = vld [vmem:[#allocation8 + $0x2260] sm:$0xff] }
 0x409   :  { %11529 = vmatprep.subr.bf16.mxu1 %v14443_v32  ;;  %v14467_v32 = vcombine.high %v2230_v20, %v2234_v15  ;;  %v14466_v54 = vcombine.low %v2230_v20, %v2234_v15  ;;  %v2254_v36 = vld [vmem:[#allocation8 + $0x2248] sm:$0xff] }
 0x40b   :  { %10894 = vmatpush1.bf16.msra.mxu0 %v14440_v29  ;;  %v2237_v29 = vld [vmem:[#allocation8 + $0x21c0] sm:$0xff] }
 0x40c   :  { %11530 = vmatpush1.bf16.msra.mxu1 %v14442_v14  ;;  %10895 = vmatprep.subr.bf16.mxu0 %v14449_v46  ;;  %v2242_v14 = vld [vmem:[#allocation8 + $0x21e8] sm:$0xff]  ;;  %v14473_v46 = vcombine.high %v2237_v29, %v2241_v51  ;;  %v14472_v23 = vcombine.low %v2237_v29, %v2241_v51  ;;  %v2265_v29 = vld [vmem:[#allocation8 + $0x22a0] sm:$0xff] }
 0x40d   :  { %11531 = vmatprep.subr.bf16.mxu1 %v14451_v9  ;;  %v14475_v9 = vcombine.high %v2238_v40, %v2242_v14  ;;  %v14474_v25 = vcombine.low %v2238_v40, %v2242_v14  ;;  %v2262_v51 = vld [vmem:[#allocation8 + $0x2288] sm:$0xff] }
 0x40f   :  { %10896 = vmatpush1.bf16.msra.mxu0 %v14448_v30  ;;  %v2245_v30 = vld [vmem:[#allocation8 + $0x2200] sm:$0xff] }
 0x410   :  { %11532 = vmatpush1.bf16.msra.mxu1 %v14450_v6  ;;  %10897 = vmatprep.subr.bf16.mxu0 %v14457_v22  ;;  %v2250_v6 = vld [vmem:[#allocation8 + $0x2228] sm:$0xff]  ;;  %v14481_v22 = vcombine.high %v2245_v30, %v2249_v41  ;;  %v14480_v20 = vcombine.low %v2245_v30, %v2249_v41  ;;  %v2273_v30 = vld [vmem:[#allocation8 + $0x22e0] sm:$0xff] }
 0x411   :  { %11533 = vmatprep.subr.bf16.mxu1 %v14459_v42  ;;  %v14483_v42 = vcombine.high %v2246_v38, %v2250_v6  ;;  %v14482_v15 = vcombine.low %v2246_v38, %v2250_v6  ;;  %v2270_v41 = vld [vmem:[#allocation8 + $0x22c8] sm:$0xff] }
 0x413   :  { %10898 = vmatpush1.bf16.msra.mxu0 %v14456_v48  ;;  %v2253_v48 = vld [vmem:[#allocation8 + $0x2240] sm:$0xff] }
 0x414   :  { %11534 = vmatpush1.bf16.msra.mxu1 %v14458_v35  ;;  %10899 = vmatprep.subr.bf16.mxu0 %v14465_v10  ;;  %v2258_v35 = vld [vmem:[#allocation8 + $0x2268] sm:$0xff]  ;;  %v14489_v10 = vcombine.high %v2253_v48, %v2257_v3  ;;  %v14488_v40 = vcombine.low %v2253_v48, %v2257_v3  ;;  %v2281_v48 = vld [vmem:[#allocation8 + $0x2320] sm:$0xff] }
 0x415   :  { %11535 = vmatprep.subr.bf16.mxu1 %v14467_v32  ;;  %v14491_v32 = vcombine.high %v2254_v36, %v2258_v35  ;;  %v14490_v14 = vcombine.low %v2254_v36, %v2258_v35  ;;  %v2278_v3 = vld [vmem:[#allocation8 + $0x2308] sm:$0xff] }
 0x417   :  { %10900 = vmatpush1.bf16.msra.mxu0 %v14464_v39  ;;  %v2261_v39 = vld [vmem:[#allocation8 + $0x2280] sm:$0xff] }
 0x418   :  { %11536 = vmatpush1.bf16.msra.mxu1 %v14466_v54  ;;  %10901 = vmatprep.subr.bf16.mxu0 %v14473_v46  ;;  %v2266_v54 = vld [vmem:[#allocation8 + $0x22a8] sm:$0xff]  ;;  %v14497_v46 = vcombine.high %v2261_v39, %v2265_v29  ;;  %v14496_v38 = vcombine.low %v2261_v39, %v2265_v29  ;;  %v2289_v39 = vld [vmem:[#allocation8 + $0x2360] sm:$0xff] }
 0x419   :  { %11537 = vmatprep.subr.bf16.mxu1 %v14475_v9  ;;  %v14499_v9 = vcombine.high %v2262_v51, %v2266_v54  ;;  %v14498_v6 = vcombine.low %v2262_v51, %v2266_v54  ;;  %v2286_v29 = vld [vmem:[#allocation8 + $0x2348] sm:$0xff] }
 0x41b   :  { %10902 = vmatpush1.bf16.msra.mxu0 %v14472_v23  ;;  %v2269_v23 = vld [vmem:[#allocation8 + $0x22c0] sm:$0xff] }
 0x41c   :  { %11538 = vmatpush1.bf16.msra.mxu1 %v14474_v25  ;;  %10903 = vmatprep.subr.bf16.mxu0 %v14481_v22  ;;  %v2274_v25 = vld [vmem:[#allocation8 + $0x22e8] sm:$0xff]  ;;  %v14505_v22 = vcombine.high %v2269_v23, %v2273_v30  ;;  %v14504_v36 = vcombine.low %v2269_v23, %v2273_v30  ;;  %v2297_v23 = vld [vmem:[#allocation8 + $0x23a0] sm:$0xff] }
 0x41d   :  { %11539 = vmatprep.subr.bf16.mxu1 %v14483_v42  ;;  %v14507_v42 = vcombine.high %v2270_v41, %v2274_v25  ;;  %v14506_v35 = vcombine.low %v2270_v41, %v2274_v25  ;;  %v2294_v30 = vld [vmem:[#allocation8 + $0x2388] sm:$0xff]  ;;  %v18766_v25 = vld [vmem:[#allocation33_spill] sm:$0xff] }
 0x41f   :  { %10904 = vmatpush1.bf16.msra.mxu0 %v14480_v20  ;;  %v2277_v20 = vld [vmem:[#allocation8 + $0x2300] sm:$0xff] }
 0x420   :  { %11540 = vmatpush1.bf16.msra.mxu1 %v14482_v15  ;;  %10905 = vmatprep.subr.bf16.mxu0 %v14489_v10  ;;  %v2282_v15 = vld [vmem:[#allocation8 + $0x2328] sm:$0xff]  ;;  %v14513_v10 = vcombine.high %v2277_v20, %v2281_v48  ;;  %v14512_v51 = vcombine.low %v2277_v20, %v2281_v48  ;;  %v2301_v48 = vld [vmem:[#allocation8 + $0x23c0] sm:$0xff] }
 0x421   :  { %11541 = vmatprep.subr.bf16.mxu1 %v14491_v32  ;;  %v14515_v32 = vcombine.high %v2278_v3, %v2282_v15  ;;  %v14514_v54 = vcombine.low %v2278_v3, %v2282_v15  ;;  %v2305_v3 = vld [vmem:[#allocation8 + $0x23e0] sm:$0xff]  ;;  %v786_v15 = vrot.slane %v17607_v8, %v18754_v63 }
 0x423   :  { %10906 = vmatpush1.bf16.msra.mxu0 %v14488_v40  ;;  %v2285_v40 = vld [vmem:[#allocation8 + $0x2340] sm:$0xff] }
 0x424   :  { %11542 = vmatpush1.bf16.msra.mxu1 %v14490_v14  ;;  %10907 = vmatprep.subr.bf16.mxu0 %v14497_v46  ;;  %v2290_v14 = vld [vmem:[#allocation8 + $0x2368] sm:$0xff]  ;;  %v14521_v46 = vcombine.high %v2285_v40, %v2289_v39  ;;  %v14520_v41 = vcombine.low %v2285_v40, %v2289_v39 }
 0x425   :  { %11543 = vmatprep.subr.bf16.mxu1 %v14499_v9  ;;  %v14523_v9 = vcombine.high %v2286_v29, %v2290_v14  ;;  %v18768_v40 = vld [vmem:[#allocation82_spill] sm:$0xff] }
 0x426   :  { %v633_v39 = vmul.f32 %v16626_v49, %v18768_v40 }
 0x427   :  { %10908 = vmatpush1.bf16.msra.mxu0 %v14496_v38  ;;  %v2293_v38 = vld [vmem:[#allocation8 + $0x2380] sm:$0xff] }
 0x428   :  { %11544 = vmatpush1.bf16.msra.mxu1 %v14498_v6  ;;  %10909 = vmatprep.subr.bf16.mxu0 %v14505_v22  ;;  %v2298_v6 = vld [vmem:[#allocation8 + $0x23a8] sm:$0xff]  ;;  %v657_v22 = vmul.f32 %v16822_v45, %v18766_v25  ;;  %v14528_v45 = vcombine.low %v2293_v38, %v2297_v23  ;;  %v1008_v25 = vrot.slane %v17618_v28, %v18754_v63  ;;  %v18771_v63 = vld [vmem:[#allocation37_spill] sm:$0xff] }
 0x429   :  { %11545 = vmatprep.subr.bf16.mxu1 %v14507_v42  ;;  %v14522_v42 = vcombine.low %v2286_v29, %v2290_v14  ;;  %v14531_v20 = vcombine.high %v2294_v30, %v2298_v6  ;;  %v18769_v29 = vld [vmem:[#allocation21_spill] sm:$0xff]  ;;  %v855_v49 = vmul.f32 %v786_v15, %v633_v39 }
 0x42a   :  { %v682_v14 = vmul.f32 %v16715_v11, %v18769_v29  ;;  %v2317_v39 = vld [vmem:[#allocation8 + $0x2440] sm:$0xff] }
 0x42b   :  { %10910 = vmatpush1.bf16.msra.mxu0 %v14504_v36  ;;  %v14529_v36 = vcombine.high %v2293_v38, %v2297_v23  ;;  %v2314_v38 = vld [vmem:[#allocation8 + $0x2428] sm:$0xff]  ;;  %v14536_v23 = vcombine.low %v2301_v48, %v2305_v3  ;;  %v2321_v29 = vld [vmem:[#allocation8 + $0x2460] sm:$0xff] }
 0x42c   :  { %11546 = vmatpush1.bf16.msra.mxu1 %v14506_v35  ;;  %10911 = vmatprep.subr.bf16.mxu0 %v14513_v10  ;;  %v18767_v35 = vld [vmem:[#allocation68_spill] sm:$0xff] }
 0x42d   :  { %11547 = vmatprep.subr.bf16.mxu1 %v14515_v32  ;;  %v706_v10 = vmul.f32 %v16967_v7, %v18767_v35  ;;  %v2302_v32 = vld [vmem:[#allocation8 + $0x23c8] sm:$0xff]  ;;  %v2309_v35 = vld [vmem:[#allocation8 + $0x2400] sm:$0xff] }
 0x42f   :  { %10912 = vmatpush1.bf16.msra.mxu0 %v14512_v51  ;;  %v2306_v51 = vld [vmem:[#allocation8 + $0x23e8] sm:$0xff]  ;;  %v928_v27 = vmul.f32 %v17611_v43, %v706_v10  ;;  %v1077_v10 = vadd.f32 %v1008_v25, %v855_v49 }
 0x430   :  { %11548 = vmatpush1.bf16.msra.mxu1 %v14514_v54  ;;  %10913 = vmatprep.subr.bf16.mxu0 %v14521_v46  ;;  %v879_v54 = vmul.f32 %v786_v15, %v657_v22  ;;  %v14530_v46 = vcombine.low %v2294_v30, %v2298_v6  ;;  %v14539_v8 = vcombine.high %v2302_v32, %v2306_v51 }
 0x431   :  { %11549 = vmatprep.subr.bf16.mxu1 %v14523_v9  ;;  %v14537_v9 = vcombine.high %v2301_v48, %v2305_v3  ;;  %v14538_v30 = vcombine.low %v2302_v32, %v2306_v51  ;;  %v14545_v6 = vcombine.high %v2309_v35, %v2313_v55  ;;  %v1150_v40 = vadd.f32 %v17622_v62, %v928_v27  ;;  %v2318_v3 = vld [vmem:[#allocation8 + $0x2448] sm:$0xff] }
 0x432   :  { %v1101_v22 = vadd.f32 %v1008_v25, %v879_v54  ;;  %v681_v48 = vmul.f32 %v16715_v11, %v18771_v63  ;;  %v14544_v51 = vcombine.low %v2309_v35, %v2313_v55  ;;  %v2325_v63 = vld [vmem:[#allocation8 + $0x2480] sm:$0xff]  ;;  %v14552_v55 = vcombine.low %v2317_v39, %v2321_v29 }
 0x433   :  { %10914 = vmatpush1.bf16.msra.mxu0 %v14520_v41  ;;  %v2310_v41 = vld [vmem:[#allocation8 + $0x2408] sm:$0xff] }
 0x434   :  { %11550 = vmatpush1.bf16.msra.mxu1 %v14522_v42  ;;  %10915 = vmatprep.subr.bf16.mxu0 %v14529_v36  ;;  %v904_v42 = vmul.f32 %v17611_v43, %v682_v14  ;;  %v18770_v36 = vld [vmem:[#allocation57_spill] sm:$0xff]  ;;  %v14547_v28 = vcombine.high %v2310_v41, %v2314_v38  ;;  %v17653_v32 = vpack.c.bf16 %v1101_v22, %v1077_v10 }
 0x435   :  { %11551 = vmatprep.subr.bf16.mxu1 %v14531_v20  ;;  %v705_v20 = vmul.f32 %v16967_v7, %v18770_v36  ;;  %v14546_v54 = vcombine.low %v2310_v41, %v2314_v38  ;;  %v14553_v14 = vcombine.high %v2317_v39, %v2321_v29  ;;  %v903_v11 = vmul.f32 %v786_v15, %v681_v48  ;;  %v2337_v22 = vld [vmem:[#allocation8 + $0x24e0] sm:$0xff]  ;;  %v2346_v29 = vld [vmem:[#allocation8 + $0x2528] sm:$0xff] }
 0x436   :  { %v1126_v43 = vadd.f32 %v17622_v62, %v904_v42  ;;  %v2326_v62 = vld [vmem:[#allocation8 + $0x2488] sm:$0xff]  ;;  %v2341_v10 = vld [vmem:[#allocation8 + $0x2500] sm:$0xff] }
 0x437   :  { %10916 = vmatpush1.bf16.msra.mxu0 %v14528_v45  ;;  %v2322_v45 = vld [vmem:[#allocation8 + $0x2468] sm:$0xff]  ;;  %v927_v7 = vmul.f32 %v786_v15, %v705_v20  ;;  %v1125_v38 = vadd.f32 %v1008_v25, %v903_v11  ;;  %v2345_v39 = vld [vmem:[#allocation8 + $0x2520] sm:$0xff] }
 0x438   :  { %11552 = vmatpush1.bf16.msra.mxu1 %v14530_v46  ;;  %10917 = vmatprep.subr.bf16.mxu0 %v14537_v9  ;;  %v17655_v27 = vpack.c.bf16 %v1150_v40, %v1126_v43  ;;  %v14555_v46 = vcombine.high %v2318_v3, %v2322_v45  ;;  %v2329_v9 = vld [vmem:[#allocation8 + $0x24a0] sm:$0xff]  ;;  %v14554_v49 = vcombine.low %v2318_v3, %v2322_v45  ;;  %v2334_v42 = vld [vmem:[#allocation8 + $0x24c8] sm:$0xff] }
 0x439   :  { %11553 = vmatprep.subr.bf16.mxu1 %v14539_v8  ;;  %v2330_v8 = vld [vmem:[#allocation8 + $0x24a8] sm:$0xff]  ;;  %v1149_v35 = vadd.f32 %v1008_v25, %v927_v7  ;;  %v14561_v41 = vcombine.high %v2325_v63, %v2329_v9  ;;  %v14560_v36 = vcombine.low %v2325_v63, %v2329_v9  ;;  %v14577_v3 = vcombine.high %v2341_v10, %v2345_v39  ;;  %v2353_v7 = vld [vmem:[#allocation8 + $0x2560] sm:$0xff] }
 0x43a   :  { %v14563_v15 = vcombine.high %v2326_v62, %v2330_v8  ;;  %v14562_v20 = vcombine.low %v2326_v62, %v2330_v8  ;;  %v2342_v25 = vld [vmem:[#allocation8 + $0x2508] sm:$0xff]  ;;  %v2357_v62 = vld [vmem:[#allocation8 + $0x2580] sm:$0xff] }
 0x43b   :  { %10918 = vmatpush1.bf16.msra.mxu0 %v14536_v23  ;;  %v2333_v23 = vld [vmem:[#allocation8 + $0x24c0] sm:$0xff]  ;;  %v14579_v45 = vcombine.high %v2342_v25, %v2346_v29  ;;  %v14578_v11 = vcombine.low %v2342_v25, %v2346_v29  ;;  %v2374_v25 = vld [vmem:[#allocation8 + $0x2608] sm:$0xff] }
 0x43c   :  { %11554 = vmatpush1.bf16.msra.mxu1 %v14538_v30  ;;  %10940 = vmatprep.subr.bf16.mxu0 %v14545_v6  ;;  %v2338_v30 = vld [vmem:[#allocation8 + $0x24e8] sm:$0xff]  ;;  %v17661_v6 = vpack.c.bf16 %v1149_v35, %v1125_v38  ;;  %v14568_v48 = vcombine.low %v2333_v23, %v2337_v22  ;;  %v2361_v8 = vld [vmem:[#allocation8 + $0x25a0] sm:$0xff] }
 0x43d   :  { %11576 = vmatprep.subr.bf16.mxu1 %v14547_v28  ;;  %v14569_v28 = vcombine.high %v2333_v23, %v2337_v22  ;;  %v14571_v40 = vcombine.high %v2334_v42, %v2338_v30  ;;  %v14570_v43 = vcombine.low %v2334_v42, %v2338_v30  ;;  %v2362_v35 = vld [vmem:[#allocation8 + $0x25a8] sm:$0xff]  ;;  %v14593_v38 = vcombine.high %v2357_v62, %v2361_v8  ;;  %v2365_v23 = vld [vmem:[#allocation8 + $0x25c0] sm:$0xff] }
 0x43e   :  { %10920 = vmatmul.mubr.bf16.vlgmr.msra.gmra.mrb[0].mxu0 %v17653_v32  ;;  %v2369_v22 = vld [vmem:[#allocation8 + $0x25e0] sm:$0xff]  ;;  %v2366_v42 = vld [vmem:[#allocation8 + $0x25c8] sm:$0xff] }
 0x43f   :  { %11556 = vmatmul.mubr.bf16.vlgmr.msra.gmra.mrb[0].mxu1 %v17653_v32  ;;  %10929 = vmatprep.mubr.bf16.mxu0 %v17655_v27  ;;  %v2370_v30 = vld [vmem:[#allocation8 + $0x25e8] sm:$0xff] }
 0x440   :  { %10941 = vmatpush1.bf16.msra.mxu0 %v14544_v51  ;;  %11565 = vmatprep.mubr.bf16.mxu1 %v17655_v27  ;;  %v2349_v51 = vld [vmem:[#allocation8 + $0x2540] sm:$0xff]  ;;  %v2378_v29 = vld [vmem:[#allocation8 + $0x2628] sm:$0xff] }
 0x441   :  { %11577 = vmatpush1.bf16.msra.mxu1 %v14546_v54  ;;  %10942 = vmatprep.subr.bf16.mxu0 %v14553_v14  ;;  %v2350_v54 = vld [vmem:[#allocation8 + $0x2548] sm:$0xff]  ;;  %v14585_v63 = vcombine.high %v2349_v51, %v2353_v7 }
 0x442   :  { %11578 = vmatprep.subr.bf16.mxu1 %v14555_v46  ;;  %v2354_v14 = vld [vmem:[#allocation8 + $0x2568] sm:$0xff]  ;;  %v14576_v46 = vcombine.low %v2341_v10, %v2345_v39  ;;  %v2373_v10 = vld [vmem:[#allocation8 + $0x2600] sm:$0xff] }
 0x443   :  { %v14587_v9 = vcombine.high %v2350_v54, %v2354_v14  ;;  %v2377_v39 = vld [vmem:[#allocation8 + $0x2620] sm:$0xff] }
 0x444   :  { %10943 = vmatpush1.bf16.msra.mxu0 %v14552_v55  ;;  %v2358_v55 = vld [vmem:[#allocation8 + $0x2588] sm:$0xff] }
 0x445   :  { %11579 = vmatpush1.bf16.msra.mxu1 %v14554_v49  ;;  %10944 = vmatprep.subr.bf16.mxu0 %v14561_v41  ;;  %v14584_v49 = vcombine.low %v2349_v51, %v2353_v7  ;;  %v14586_v41 = vcombine.low %v2350_v54, %v2354_v14  ;;  %v2381_v51 = vld [vmem:[#allocation8 + $0x2640] sm:$0xff]  ;;  %v2382_v54 = vld [vmem:[#allocation8 + $0x2648] sm:$0xff] }
 0x446   :  { %10930 = vmatmul.mubr.bf16.gmra.mrb[4].mxu0 %v17661_v6  ;;  %11580 = vmatprep.subr.bf16.mxu1 %v14563_v15  ;;  %v14595_v15 = vcombine.high %v2358_v55, %v2362_v35  ;;  %v2385_v7 = vld [vmem:[#allocation8 + $0x2660] sm:$0xff]  ;;  %v2386_v14 = vld [vmem:[#allocation8 + $0x2668] sm:$0xff] }
 0x447   :  { %11566 = vmatmul.mubr.bf16.gmra.mrb[4].mxu1 %v17661_v6  ;;  %10972 = vmatprep.mubr.bf16.mxu0 %v17351_v19 }
 0x448   :  { %10945 = vmatpush1.bf16.msra.mxu0 %v14560_v36  ;;  %11608 = vmatprep.mubr.bf16.mxu1 %v17351_v19  ;;  %v14592_v36 = vcombine.low %v2357_v62, %v2361_v8  ;;  %v2389_v62 = vld [vmem:[#allocation8 + $0x2680] sm:$0xff] }
 0x449   :  { %11581 = vmatpush1.bf16.msra.mxu1 %v14562_v20  ;;  %10946 = vmatprep.subr.bf16.mxu0 %v14569_v28  ;;  %v14594_v20 = vcombine.low %v2358_v55, %v2362_v35  ;;  %v14601_v28 = vcombine.high %v2365_v23, %v2369_v22  ;;  %v2393_v8 = vld [vmem:[#allocation8 + $0x26a0] sm:$0xff]  ;;  %v2390_v55 = vld [vmem:[#allocation8 + $0x2688] sm:$0xff] }
 0x44a   :  { %11582 = vmatprep.subr.bf16.mxu1 %v14571_v40  ;;  %v14603_v40 = vcombine.high %v2366_v42, %v2370_v30  ;;  %v2394_v35 = vld [vmem:[#allocation8 + $0x26a8] sm:$0xff] }
 0x44c   :  { %10947 = vmatpush1.bf16.msra.mxu0 %v14568_v48  ;;  %v14600_v48 = vcombine.low %v2365_v23, %v2369_v22  ;;  %v2397_v23 = vld [vmem:[#allocation8 + $0x26c0] sm:$0xff] }
 0x44d   :  { %11583 = vmatpush1.bf16.msra.mxu1 %v14570_v43  ;;  %10948 = vmatprep.subr.bf16.mxu0 %v14577_v3  ;;  %v14602_v43 = vcombine.low %v2366_v42, %v2370_v30  ;;  %v14609_v3 = vcombine.high %v2373_v10, %v2377_v39  ;;  %v2401_v22 = vld [vmem:[#allocation8 + $0x26e0] sm:$0xff]  ;;  %v2398_v42 = vld [vmem:[#allocation8 + $0x26c8] sm:$0xff] }
 0x44e   :  { %11584 = vmatprep.subr.bf16.mxu1 %v14579_v45  ;;  %v14611_v45 = vcombine.high %v2374_v25, %v2378_v29  ;;  %v2402_v30 = vld [vmem:[#allocation8 + $0x26e8] sm:$0xff] }
 0x450   :  { %10949 = vmatpush1.bf16.msra.mxu0 %v14576_v46  ;;  %v14608_v46 = vcombine.low %v2373_v10, %v2377_v39  ;;  %v2405_v10 = vld [vmem:[#allocation8 + $0x2700] sm:$0xff] }
 0x451   :  { %11585 = vmatpush1.bf16.msra.mxu1 %v14578_v11  ;;  %10950 = vmatprep.subr.bf16.mxu0 %v14585_v63  ;;  %v14610_v11 = vcombine.low %v2374_v25, %v2378_v29  ;;  %v14617_v63 = vcombine.high %v2381_v51, %v2385_v7  ;;  %v2409_v39 = vld [vmem:[#allocation8 + $0x2720] sm:$0xff]  ;;  %v2406_v25 = vld [vmem:[#allocation8 + $0x2708] sm:$0xff] }
 0x452   :  { %11586 = vmatprep.subr.bf16.mxu1 %v14587_v9  ;;  %v14619_v9 = vcombine.high %v2382_v54, %v2386_v14  ;;  %v2410_v29 = vld [vmem:[#allocation8 + $0x2728] sm:$0xff] }
 0x454   :  { %10951 = vmatpush1.bf16.msra.mxu0 %v14584_v49  ;;  %v14616_v49 = vcombine.low %v2381_v51, %v2385_v7  ;;  %v2413_v51 = vld [vmem:[#allocation8 + $0x2740] sm:$0xff] }
 0x455   :  { %11587 = vmatpush1.bf16.msra.mxu1 %v14586_v41  ;;  %10952 = vmatprep.subr.bf16.mxu0 %v14593_v38  ;;  %v14618_v41 = vcombine.low %v2382_v54, %v2386_v14  ;;  %v14625_v38 = vcombine.high %v2389_v62, %v2393_v8  ;;  %v2417_v7 = vld [vmem:[#allocation8 + $0x2760] sm:$0xff]  ;;  %v2414_v54 = vld [vmem:[#allocation8 + $0x2748] sm:$0xff] }
 0x456   :  { %11588 = vmatprep.subr.bf16.mxu1 %v14595_v15  ;;  %v14627_v15 = vcombine.high %v2390_v55, %v2394_v35  ;;  %v2418_v14 = vld [vmem:[#allocation8 + $0x2768] sm:$0xff] }
 0x458   :  { %10953 = vmatpush1.bf16.msra.mxu0 %v14592_v36  ;;  %v14624_v36 = vcombine.low %v2389_v62, %v2393_v8  ;;  %v2421_v62 = vld [vmem:[#allocation8 + $0x2780] sm:$0xff] }
 0x459   :  { %11589 = vmatpush1.bf16.msra.mxu1 %v14594_v20  ;;  %10954 = vmatprep.subr.bf16.mxu0 %v14601_v28  ;;  %v14626_v20 = vcombine.low %v2390_v55, %v2394_v35  ;;  %v14633_v28 = vcombine.high %v2397_v23, %v2401_v22  ;;  %v2425_v8 = vld [vmem:[#allocation8 + $0x27a0] sm:$0xff]  ;;  %v2422_v55 = vld [vmem:[#allocation8 + $0x2788] sm:$0xff] }
 0x45a   :  { %11590 = vmatprep.subr.bf16.mxu1 %v14603_v40  ;;  %v14635_v40 = vcombine.high %v2398_v42, %v2402_v30  ;;  %v2426_v35 = vld [vmem:[#allocation8 + $0x27a8] sm:$0xff] }
 0x45c   :  { %10955 = vmatpush1.bf16.msra.mxu0 %v14600_v48  ;;  %v14632_v48 = vcombine.low %v2397_v23, %v2401_v22  ;;  %v2429_v23 = vld [vmem:[#allocation8 + $0x27c0] sm:$0xff] }
 0x45d   :  { %11591 = vmatpush1.bf16.msra.mxu1 %v14602_v43  ;;  %10956 = vmatprep.subr.bf16.mxu0 %v14609_v3  ;;  %v14634_v43 = vcombine.low %v2398_v42, %v2402_v30  ;;  %v14641_v3 = vcombine.high %v2405_v10, %v2409_v39  ;;  %v2433_v22 = vld [vmem:[#allocation8 + $0x27e0] sm:$0xff]  ;;  %v2430_v42 = vld [vmem:[#allocation8 + $0x27c8] sm:$0xff] }
 0x45e   :  { %11592 = vmatprep.subr.bf16.mxu1 %v14611_v45  ;;  %v14643_v45 = vcombine.high %v2406_v25, %v2410_v29  ;;  %v2434_v30 = vld [vmem:[#allocation8 + $0x27e8] sm:$0xff] }
 0x460   :  { %10957 = vmatpush1.bf16.msra.mxu0 %v14608_v46  ;;  %v14640_v46 = vcombine.low %v2405_v10, %v2409_v39  ;;  %v2437_v10 = vld [vmem:[#allocation8 + $0x2800] sm:$0xff] }
 0x461   :  { %11593 = vmatpush1.bf16.msra.mxu1 %v14610_v11  ;;  %10958 = vmatprep.subr.bf16.mxu0 %v14617_v63  ;;  %v14642_v11 = vcombine.low %v2406_v25, %v2410_v29  ;;  %v14649_v63 = vcombine.high %v2413_v51, %v2417_v7  ;;  %v2441_v39 = vld [vmem:[#allocation8 + $0x2820] sm:$0xff]  ;;  %v2438_v25 = vld [vmem:[#allocation8 + $0x2808] sm:$0xff] }
 0x462   :  { %11594 = vmatprep.subr.bf16.mxu1 %v14619_v9  ;;  %v14651_v9 = vcombine.high %v2414_v54, %v2418_v14  ;;  %v2442_v29 = vld [vmem:[#allocation8 + $0x2828] sm:$0xff] }
 0x464   :  { %10959 = vmatpush1.bf16.msra.mxu0 %v14616_v49  ;;  %v14648_v49 = vcombine.low %v2413_v51, %v2417_v7  ;;  %v2445_v51 = vld [vmem:[#allocation8 + $0x2840] sm:$0xff] }
 0x465   :  { %11595 = vmatpush1.bf16.msra.mxu1 %v14618_v41  ;;  %10960 = vmatprep.subr.bf16.mxu0 %v14625_v38  ;;  %v14650_v41 = vcombine.low %v2414_v54, %v2418_v14  ;;  %v14657_v38 = vcombine.high %v2421_v62, %v2425_v8  ;;  %v2449_v7 = vld [vmem:[#allocation8 + $0x2860] sm:$0xff]  ;;  %v2446_v54 = vld [vmem:[#allocation8 + $0x2848] sm:$0xff] }
 0x466   :  { %11596 = vmatprep.subr.bf16.mxu1 %v14627_v15  ;;  %v14659_v15 = vcombine.high %v2422_v55, %v2426_v35  ;;  %v2450_v14 = vld [vmem:[#allocation8 + $0x2868] sm:$0xff] }
 0x468   :  { %10961 = vmatpush1.bf16.msra.mxu0 %v14624_v36  ;;  %v14656_v36 = vcombine.low %v2421_v62, %v2425_v8  ;;  %v2453_v62 = vld [vmem:[#allocation8 + $0x2880] sm:$0xff] }
 0x469   :  { %11597 = vmatpush1.bf16.msra.mxu1 %v14626_v20  ;;  %10962 = vmatprep.subr.bf16.mxu0 %v14633_v28  ;;  %v14658_v20 = vcombine.low %v2422_v55, %v2426_v35  ;;  %v14665_v28 = vcombine.high %v2429_v23, %v2433_v22  ;;  %v2457_v8 = vld [vmem:[#allocation8 + $0x28a0] sm:$0xff]  ;;  %v2454_v55 = vld [vmem:[#allocation8 + $0x2888] sm:$0xff] }
 0x46a   :  { %11598 = vmatprep.subr.bf16.mxu1 %v14635_v40  ;;  %v14667_v40 = vcombine.high %v2430_v42, %v2434_v30  ;;  %v2458_v35 = vld [vmem:[#allocation8 + $0x28a8] sm:$0xff] }
 0x46c   :  { %10963 = vmatpush1.bf16.msra.mxu0 %v14632_v48  ;;  %v14664_v48 = vcombine.low %v2429_v23, %v2433_v22  ;;  %v2461_v23 = vld [vmem:[#allocation8 + $0x28c0] sm:$0xff] }
 0x46d   :  { %11599 = vmatpush1.bf16.msra.mxu1 %v14634_v43  ;;  %10964 = vmatprep.subr.bf16.mxu0 %v14641_v3  ;;  %v14666_v43 = vcombine.low %v2430_v42, %v2434_v30  ;;  %v14673_v3 = vcombine.high %v2437_v10, %v2441_v39  ;;  %v2465_v22 = vld [vmem:[#allocation8 + $0x28e0] sm:$0xff]  ;;  %v2462_v42 = vld [vmem:[#allocation8 + $0x28c8] sm:$0xff] }
 0x46e   :  { %11600 = vmatprep.subr.bf16.mxu1 %v14643_v45  ;;  %v14675_v45 = vcombine.high %v2438_v25, %v2442_v29  ;;  %v2466_v30 = vld [vmem:[#allocation8 + $0x28e8] sm:$0xff] }
 0x470   :  { %10965 = vmatpush1.bf16.msra.mxu0 %v14640_v46  ;;  %v14672_v46 = vcombine.low %v2437_v10, %v2441_v39  ;;  %v2469_v10 = vld [vmem:[#allocation8 + $0x2900] sm:$0xff] }
 0x471   :  { %11601 = vmatpush1.bf16.msra.mxu1 %v14642_v11  ;;  %10966 = vmatprep.subr.bf16.mxu0 %v14649_v63  ;;  %v14674_v11 = vcombine.low %v2438_v25, %v2442_v29  ;;  %v14681_v63 = vcombine.high %v2445_v51, %v2449_v7  ;;  %v2473_v39 = vld [vmem:[#allocation8 + $0x2920] sm:$0xff]  ;;  %v2470_v25 = vld [vmem:[#allocation8 + $0x2908] sm:$0xff] }
 0x472   :  { %11602 = vmatprep.subr.bf16.mxu1 %v14651_v9  ;;  %v14683_v9 = vcombine.high %v2446_v54, %v2450_v14  ;;  %v2474_v29 = vld [vmem:[#allocation8 + $0x2928] sm:$0xff] }
 0x474   :  { %10967 = vmatpush1.bf16.msra.mxu0 %v14648_v49  ;;  %v14680_v49 = vcombine.low %v2445_v51, %v2449_v7  ;;  %v2477_v51 = vld [vmem:[#allocation8 + $0x2940] sm:$0xff] }
 0x475   :  { %11603 = vmatpush1.bf16.msra.mxu1 %v14650_v41  ;;  %10968 = vmatprep.subr.bf16.mxu0 %v14657_v38  ;;  %v14682_v41 = vcombine.low %v2446_v54, %v2450_v14  ;;  %v14689_v38 = vcombine.high %v2453_v62, %v2457_v8  ;;  %v2481_v7 = vld [vmem:[#allocation8 + $0x2960] sm:$0xff]  ;;  %v2478_v54 = vld [vmem:[#allocation8 + $0x2948] sm:$0xff] }
 0x476   :  { %11604 = vmatprep.subr.bf16.mxu1 %v14659_v15  ;;  %v14691_v15 = vcombine.high %v2454_v55, %v2458_v35  ;;  %v2482_v14 = vld [vmem:[#allocation8 + $0x2968] sm:$0xff] }
 0x478   :  { %10969 = vmatpush1.bf16.msra.mxu0 %v14656_v36  ;;  %v14688_v36 = vcombine.low %v2453_v62, %v2457_v8  ;;  %v2485_v62 = vld [vmem:[#allocation8 + $0x2980] sm:$0xff] }
 0x479   :  { %11605 = vmatpush1.bf16.msra.mxu1 %v14658_v20  ;;  %10970 = vmatprep.subr.bf16.mxu0 %v14665_v28  ;;  %v14690_v20 = vcombine.low %v2454_v55, %v2458_v35  ;;  %v14697_v28 = vcombine.high %v2461_v23, %v2465_v22  ;;  %v2489_v8 = vld [vmem:[#allocation8 + $0x29a0] sm:$0xff]  ;;  %v2486_v55 = vld [vmem:[#allocation8 + $0x2988] sm:$0xff] }
 0x47a   :  { %11606 = vmatprep.subr.bf16.mxu1 %v14667_v40  ;;  %v14699_v40 = vcombine.high %v2462_v42, %v2466_v30  ;;  %v2490_v35 = vld [vmem:[#allocation8 + $0x29a8] sm:$0xff] }
 0x47c   :  { %10971 = vmatpush1.bf16.msra.mxu0 %v14664_v48  ;;  %v14696_v48 = vcombine.low %v2461_v23, %v2465_v22  ;;  %v2493_v23 = vld [vmem:[#allocation8 + $0x29c0] sm:$0xff] }
 0x47d   :  { %11607 = vmatpush1.bf16.msra.mxu1 %v14666_v43  ;;  %10993 = vmatprep.subr.bf16.mxu0 %v14673_v3  ;;  %v14698_v43 = vcombine.low %v2462_v42, %v2466_v30  ;;  %v14705_v3 = vcombine.high %v2469_v10, %v2473_v39  ;;  %v2497_v22 = vld [vmem:[#allocation8 + $0x29e0] sm:$0xff]  ;;  %v2494_v42 = vld [vmem:[#allocation8 + $0x29c8] sm:$0xff] }
 0x47e   :  { %11629 = vmatprep.subr.bf16.mxu1 %v14675_v45  ;;  %v14707_v45 = vcombine.high %v2470_v25, %v2474_v29  ;;  %v2498_v30 = vld [vmem:[#allocation8 + $0x29e8] sm:$0xff] }
 0x47f   :  { %10973 = vmatmul.mubr.bf16.vlgmr.msra.gmra.mrb[0].mxu0 %v17377_v21 }
 0x480   :  { %11609 = vmatmul.mubr.bf16.vlgmr.msra.gmra.mrb[0].mxu1 %v17377_v21  ;;  %10982 = vmatprep.mubr.bf16.mxu0 %v17404_v56 }
 0x481   :  { %10994 = vmatpush1.bf16.msra.mxu0 %v14672_v46  ;;  %11618 = vmatprep.mubr.bf16.mxu1 %v17404_v56  ;;  %v14704_v46 = vcombine.low %v2469_v10, %v2473_v39  ;;  %v2501_v10 = vld [vmem:[#allocation8 + $0x2a00] sm:$0xff] }
 0x482   :  { %11630 = vmatpush1.bf16.msra.mxu1 %v14674_v11  ;;  %10995 = vmatprep.subr.bf16.mxu0 %v14681_v63  ;;  %v14706_v11 = vcombine.low %v2470_v25, %v2474_v29  ;;  %v14713_v63 = vcombine.high %v2477_v51, %v2481_v7  ;;  %v2505_v39 = vld [vmem:[#allocation8 + $0x2a20] sm:$0xff]  ;;  %v2502_v25 = vld [vmem:[#allocation8 + $0x2a08] sm:$0xff] }
 0x483   :  { %11631 = vmatprep.subr.bf16.mxu1 %v14683_v9  ;;  %v14715_v9 = vcombine.high %v2478_v54, %v2482_v14  ;;  %v2506_v29 = vld [vmem:[#allocation8 + $0x2a28] sm:$0xff] }
 0x485   :  { %10996 = vmatpush1.bf16.msra.mxu0 %v14680_v49  ;;  %v14712_v49 = vcombine.low %v2477_v51, %v2481_v7  ;;  %v2509_v51 = vld [vmem:[#allocation8 + $0x2a40] sm:$0xff] }
 0x486   :  { %11632 = vmatpush1.bf16.msra.mxu1 %v14682_v41  ;;  %10997 = vmatprep.subr.bf16.mxu0 %v14689_v38  ;;  %v14714_v41 = vcombine.low %v2478_v54, %v2482_v14  ;;  %v14721_v38 = vcombine.high %v2485_v62, %v2489_v8  ;;  %v2513_v7 = vld [vmem:[#allocation8 + $0x2a60] sm:$0xff]  ;;  %v2510_v54 = vld [vmem:[#allocation8 + $0x2a48] sm:$0xff] }
 0x487   :  { %10983 = vmatmul.mubr.bf16.gmra.mrb[4].mxu0 %v17428_v26  ;;  %11633 = vmatprep.subr.bf16.mxu1 %v14691_v15  ;;  %v14723_v15 = vcombine.high %v2486_v55, %v2490_v35  ;;  %v2514_v14 = vld [vmem:[#allocation8 + $0x2a68] sm:$0xff] }
 0x488   :  { %11619 = vmatmul.mubr.bf16.gmra.mrb[4].mxu1 %v17428_v26  ;;  %11025 = vmatprep.mubr.bf16.mxu0 %v17455_v4 }
 0x489   :  { %10998 = vmatpush1.bf16.msra.mxu0 %v14688_v36  ;;  %11661 = vmatprep.mubr.bf16.mxu1 %v17455_v4  ;;  %v14720_v36 = vcombine.low %v2485_v62, %v2489_v8  ;;  %v2517_v62 = vld [vmem:[#allocation8 + $0x2a80] sm:$0xff] }
 0x48a   :  { %11634 = vmatpush1.bf16.msra.mxu1 %v14690_v20  ;;  %10999 = vmatprep.subr.bf16.mxu0 %v14697_v28  ;;  %v14722_v20 = vcombine.low %v2486_v55, %v2490_v35  ;;  %v14729_v28 = vcombine.high %v2493_v23, %v2497_v22  ;;  %v2521_v8 = vld [vmem:[#allocation8 + $0x2aa0] sm:$0xff]  ;;  %v2518_v55 = vld [vmem:[#allocation8 + $0x2a88] sm:$0xff] }
 0x48b   :  { %11635 = vmatprep.subr.bf16.mxu1 %v14699_v40  ;;  %v14731_v40 = vcombine.high %v2494_v42, %v2498_v30  ;;  %v2522_v35 = vld [vmem:[#allocation8 + $0x2aa8] sm:$0xff] }
 0x48d   :  { %11000 = vmatpush1.bf16.msra.mxu0 %v14696_v48  ;;  %v14728_v48 = vcombine.low %v2493_v23, %v2497_v22  ;;  %v2525_v23 = vld [vmem:[#allocation8 + $0x2ac0] sm:$0xff] }
 0x48e   :  { %11636 = vmatpush1.bf16.msra.mxu1 %v14698_v43  ;;  %11001 = vmatprep.subr.bf16.mxu0 %v14705_v3  ;;  %v14730_v43 = vcombine.low %v2494_v42, %v2498_v30  ;;  %v14737_v3 = vcombine.high %v2501_v10, %v2505_v39  ;;  %v2529_v22 = vld [vmem:[#allocation8 + $0x2ae0] sm:$0xff]  ;;  %v2526_v42 = vld [vmem:[#allocation8 + $0x2ac8] sm:$0xff] }
 0x48f   :  { %11637 = vmatprep.subr.bf16.mxu1 %v14707_v45  ;;  %v14739_v45 = vcombine.high %v2502_v25, %v2506_v29  ;;  %v2530_v30 = vld [vmem:[#allocation8 + $0x2ae8] sm:$0xff] }
 0x491   :  { %11002 = vmatpush1.bf16.msra.mxu0 %v14704_v46  ;;  %v14736_v46 = vcombine.low %v2501_v10, %v2505_v39  ;;  %v2533_v10 = vld [vmem:[#allocation8 + $0x2b00] sm:$0xff] }
 0x492   :  { %11638 = vmatpush1.bf16.msra.mxu1 %v14706_v11  ;;  %11003 = vmatprep.subr.bf16.mxu0 %v14713_v63  ;;  %v14738_v11 = vcombine.low %v2502_v25, %v2506_v29  ;;  %v14745_v63 = vcombine.high %v2509_v51, %v2513_v7  ;;  %v2537_v39 = vld [vmem:[#allocation8 + $0x2b20] sm:$0xff]  ;;  %v2534_v25 = vld [vmem:[#allocation8 + $0x2b08] sm:$0xff] }
 0x493   :  { %11639 = vmatprep.subr.bf16.mxu1 %v14715_v9  ;;  %v14747_v9 = vcombine.high %v2510_v54, %v2514_v14  ;;  %v2538_v29 = vld [vmem:[#allocation8 + $0x2b28] sm:$0xff] }
 0x495   :  { %11004 = vmatpush1.bf16.msra.mxu0 %v14712_v49  ;;  %v14744_v49 = vcombine.low %v2509_v51, %v2513_v7  ;;  %v2541_v51 = vld [vmem:[#allocation8 + $0x2b40] sm:$0xff] }
 0x496   :  { %11640 = vmatpush1.bf16.msra.mxu1 %v14714_v41  ;;  %11005 = vmatprep.subr.bf16.mxu0 %v14721_v38  ;;  %v14746_v41 = vcombine.low %v2510_v54, %v2514_v14  ;;  %v14753_v38 = vcombine.high %v2517_v62, %v2521_v8  ;;  %v2545_v7 = vld [vmem:[#allocation8 + $0x2b60] sm:$0xff]  ;;  %v2542_v54 = vld [vmem:[#allocation8 + $0x2b48] sm:$0xff] }
 0x497   :  { %11641 = vmatprep.subr.bf16.mxu1 %v14723_v15  ;;  %v14755_v15 = vcombine.high %v2518_v55, %v2522_v35  ;;  %v2546_v14 = vld [vmem:[#allocation8 + $0x2b68] sm:$0xff] }
 0x499   :  { %11006 = vmatpush1.bf16.msra.mxu0 %v14720_v36  ;;  %v14752_v36 = vcombine.low %v2517_v62, %v2521_v8  ;;  %v2549_v62 = vld [vmem:[#allocation8 + $0x2b80] sm:$0xff] }
 0x49a   :  { %11642 = vmatpush1.bf16.msra.mxu1 %v14722_v20  ;;  %11007 = vmatprep.subr.bf16.mxu0 %v14729_v28  ;;  %v14754_v20 = vcombine.low %v2518_v55, %v2522_v35  ;;  %v14761_v28 = vcombine.high %v2525_v23, %v2529_v22  ;;  %v2553_v8 = vld [vmem:[#allocation8 + $0x2ba0] sm:$0xff]  ;;  %v2550_v55 = vld [vmem:[#allocation8 + $0x2b88] sm:$0xff] }
 0x49b   :  { %11643 = vmatprep.subr.bf16.mxu1 %v14731_v40  ;;  %v14763_v40 = vcombine.high %v2526_v42, %v2530_v30  ;;  %v2554_v35 = vld [vmem:[#allocation8 + $0x2ba8] sm:$0xff] }
 0x49d   :  { %11008 = vmatpush1.bf16.msra.mxu0 %v14728_v48  ;;  %v14760_v48 = vcombine.low %v2525_v23, %v2529_v22  ;;  %v2557_v23 = vld [vmem:[#allocation8 + $0x2bc0] sm:$0xff] }
 0x49e   :  { %11644 = vmatpush1.bf16.msra.mxu1 %v14730_v43  ;;  %11009 = vmatprep.subr.bf16.mxu0 %v14737_v3  ;;  %v14762_v43 = vcombine.low %v2526_v42, %v2530_v30  ;;  %v14769_v3 = vcombine.high %v2533_v10, %v2537_v39  ;;  %v2561_v22 = vld [vmem:[#allocation8 + $0x2be0] sm:$0xff]  ;;  %v2558_v42 = vld [vmem:[#allocation8 + $0x2bc8] sm:$0xff] }
 0x49f   :  { %11645 = vmatprep.subr.bf16.mxu1 %v14739_v45  ;;  %v14771_v45 = vcombine.high %v2534_v25, %v2538_v29  ;;  %v2562_v30 = vld [vmem:[#allocation8 + $0x2be8] sm:$0xff] }
 0x4a1   :  { %11010 = vmatpush1.bf16.msra.mxu0 %v14736_v46  ;;  %v14768_v46 = vcombine.low %v2533_v10, %v2537_v39  ;;  %v2565_v10 = vld [vmem:[#allocation8 + $0x2c00] sm:$0xff] }
 0x4a2   :  { %11646 = vmatpush1.bf16.msra.mxu1 %v14738_v11  ;;  %11011 = vmatprep.subr.bf16.mxu0 %v14745_v63  ;;  %v14770_v11 = vcombine.low %v2534_v25, %v2538_v29  ;;  %v14777_v63 = vcombine.high %v2541_v51, %v2545_v7  ;;  %v2569_v39 = vld [vmem:[#allocation8 + $0x2c20] sm:$0xff]  ;;  %v2566_v25 = vld [vmem:[#allocation8 + $0x2c08] sm:$0xff] }
 0x4a3   :  { %11647 = vmatprep.subr.bf16.mxu1 %v14747_v9  ;;  %v14779_v9 = vcombine.high %v2542_v54, %v2546_v14  ;;  %v2570_v29 = vld [vmem:[#allocation8 + $0x2c28] sm:$0xff] }
 0x4a5   :  { %11012 = vmatpush1.bf16.msra.mxu0 %v14744_v49  ;;  %v14776_v49 = vcombine.low %v2541_v51, %v2545_v7  ;;  %v2573_v51 = vld [vmem:[#allocation8 + $0x2c40] sm:$0xff] }
 0x4a6   :  { %11648 = vmatpush1.bf16.msra.mxu1 %v14746_v41  ;;  %11013 = vmatprep.subr.bf16.mxu0 %v14753_v38  ;;  %v14778_v41 = vcombine.low %v2542_v54, %v2546_v14  ;;  %v14785_v38 = vcombine.high %v2549_v62, %v2553_v8  ;;  %v2577_v7 = vld [vmem:[#allocation8 + $0x2c60] sm:$0xff]  ;;  %v2574_v54 = vld [vmem:[#allocation8 + $0x2c48] sm:$0xff] }
 0x4a7   :  { %11649 = vmatprep.subr.bf16.mxu1 %v14755_v15  ;;  %v14787_v15 = vcombine.high %v2550_v55, %v2554_v35  ;;  %v2578_v14 = vld [vmem:[#allocation8 + $0x2c68] sm:$0xff] }
 0x4a9   :  { %11014 = vmatpush1.bf16.msra.mxu0 %v14752_v36  ;;  %v14784_v36 = vcombine.low %v2549_v62, %v2553_v8  ;;  %v2581_v62 = vld [vmem:[#allocation8 + $0x2c80] sm:$0xff] }
 0x4aa   :  { %11650 = vmatpush1.bf16.msra.mxu1 %v14754_v20  ;;  %11015 = vmatprep.subr.bf16.mxu0 %v14761_v28  ;;  %v14786_v20 = vcombine.low %v2550_v55, %v2554_v35  ;;  %v14793_v28 = vcombine.high %v2557_v23, %v2561_v22  ;;  %v2585_v8 = vld [vmem:[#allocation8 + $0x2ca0] sm:$0xff]  ;;  %v2582_v55 = vld [vmem:[#allocation8 + $0x2c88] sm:$0xff] }
 0x4ab   :  { %11651 = vmatprep.subr.bf16.mxu1 %v14763_v40  ;;  %v14795_v40 = vcombine.high %v2558_v42, %v2562_v30  ;;  %v2586_v35 = vld [vmem:[#allocation8 + $0x2ca8] sm:$0xff] }
 0x4ad   :  { %11016 = vmatpush1.bf16.msra.mxu0 %v14760_v48  ;;  %v14792_v48 = vcombine.low %v2557_v23, %v2561_v22  ;;  %v2589_v23 = vld [vmem:[#allocation8 + $0x2cc0] sm:$0xff] }
 0x4ae   :  { %11652 = vmatpush1.bf16.msra.mxu1 %v14762_v43  ;;  %11017 = vmatprep.subr.bf16.mxu0 %v14769_v3  ;;  %v14794_v43 = vcombine.low %v2558_v42, %v2562_v30  ;;  %v14801_v3 = vcombine.high %v2565_v10, %v2569_v39  ;;  %v2593_v22 = vld [vmem:[#allocation8 + $0x2ce0] sm:$0xff]  ;;  %v2590_v42 = vld [vmem:[#allocation8 + $0x2cc8] sm:$0xff] }
 0x4af   :  { %11653 = vmatprep.subr.bf16.mxu1 %v14771_v45  ;;  %v14803_v45 = vcombine.high %v2566_v25, %v2570_v29  ;;  %v2594_v30 = vld [vmem:[#allocation8 + $0x2ce8] sm:$0xff] }
 0x4b1   :  { %11018 = vmatpush1.bf16.msra.mxu0 %v14768_v46  ;;  %v14800_v46 = vcombine.low %v2565_v10, %v2569_v39  ;;  %v2597_v10 = vld [vmem:[#allocation8 + $0x2d00] sm:$0xff] }
 0x4b2   :  { %11654 = vmatpush1.bf16.msra.mxu1 %v14770_v11  ;;  %11019 = vmatprep.subr.bf16.mxu0 %v14777_v63  ;;  %v14802_v11 = vcombine.low %v2566_v25, %v2570_v29  ;;  %v14809_v63 = vcombine.high %v2573_v51, %v2577_v7  ;;  %v2601_v39 = vld [vmem:[#allocation8 + $0x2d20] sm:$0xff]  ;;  %v2598_v25 = vld [vmem:[#allocation8 + $0x2d08] sm:$0xff] }
 0x4b3   :  { %11655 = vmatprep.subr.bf16.mxu1 %v14779_v9  ;;  %v14811_v9 = vcombine.high %v2574_v54, %v2578_v14  ;;  %v2602_v29 = vld [vmem:[#allocation8 + $0x2d28] sm:$0xff] }
 0x4b5   :  { %11020 = vmatpush1.bf16.msra.mxu0 %v14776_v49  ;;  %v14808_v49 = vcombine.low %v2573_v51, %v2577_v7  ;;  %v2605_v51 = vld [vmem:[#allocation8 + $0x2d40] sm:$0xff] }
 0x4b6   :  { %11656 = vmatpush1.bf16.msra.mxu1 %v14778_v41  ;;  %11021 = vmatprep.subr.bf16.mxu0 %v14785_v38  ;;  %v14810_v41 = vcombine.low %v2574_v54, %v2578_v14  ;;  %v14817_v38 = vcombine.high %v2581_v62, %v2585_v8  ;;  %v2609_v7 = vld [vmem:[#allocation8 + $0x2d60] sm:$0xff]  ;;  %v2606_v54 = vld [vmem:[#allocation8 + $0x2d48] sm:$0xff] }
 0x4b7   :  { %11657 = vmatprep.subr.bf16.mxu1 %v14787_v15  ;;  %v14819_v15 = vcombine.high %v2582_v55, %v2586_v35  ;;  %v2610_v14 = vld [vmem:[#allocation8 + $0x2d68] sm:$0xff] }
 0x4b9   :  { %11022 = vmatpush1.bf16.msra.mxu0 %v14784_v36  ;;  %v14816_v36 = vcombine.low %v2581_v62, %v2585_v8  ;;  %v2613_v62 = vld [vmem:[#allocation8 + $0x2d80] sm:$0xff] }
 0x4ba   :  { %11658 = vmatpush1.bf16.msra.mxu1 %v14786_v20  ;;  %11023 = vmatprep.subr.bf16.mxu0 %v14793_v28  ;;  %v14818_v20 = vcombine.low %v2582_v55, %v2586_v35  ;;  %v14825_v28 = vcombine.high %v2589_v23, %v2593_v22  ;;  %v2617_v8 = vld [vmem:[#allocation8 + $0x2da0] sm:$0xff]  ;;  %v2614_v55 = vld [vmem:[#allocation8 + $0x2d88] sm:$0xff] }
 0x4bb   :  { %11659 = vmatprep.subr.bf16.mxu1 %v14795_v40  ;;  %v14827_v40 = vcombine.high %v2590_v42, %v2594_v30  ;;  %v2618_v35 = vld [vmem:[#allocation8 + $0x2da8] sm:$0xff] }
 0x4bd   :  { %11024 = vmatpush1.bf16.msra.mxu0 %v14792_v48  ;;  %v14824_v48 = vcombine.low %v2589_v23, %v2593_v22  ;;  %v2621_v23 = vld [vmem:[#allocation8 + $0x2dc0] sm:$0xff] }
 0x4be   :  { %11660 = vmatpush1.bf16.msra.mxu1 %v14794_v43  ;;  %11046 = vmatprep.subr.bf16.mxu0 %v14801_v3  ;;  %v14826_v43 = vcombine.low %v2590_v42, %v2594_v30  ;;  %v14833_v3 = vcombine.high %v2597_v10, %v2601_v39  ;;  %v2625_v22 = vld [vmem:[#allocation8 + $0x2de0] sm:$0xff]  ;;  %v2622_v42 = vld [vmem:[#allocation8 + $0x2dc8] sm:$0xff] }
 0x4bf   :  { %11682 = vmatprep.subr.bf16.mxu1 %v14803_v45  ;;  %v14835_v45 = vcombine.high %v2598_v25, %v2602_v29  ;;  %v2626_v30 = vld [vmem:[#allocation8 + $0x2de8] sm:$0xff] }
 0x4c0   :  { %11026 = vmatmul.mubr.bf16.vlgmr.msra.gmra.mrb[0].mxu0 %v17467_v37 }
 0x4c1   :  { %11662 = vmatmul.mubr.bf16.vlgmr.msra.gmra.mrb[0].mxu1 %v17467_v37  ;;  %11035 = vmatprep.mubr.bf16.mxu0 %v17479_v33 }
 0x4c2   :  { %11047 = vmatpush1.bf16.msra.mxu0 %v14800_v46  ;;  %11671 = vmatprep.mubr.bf16.mxu1 %v17479_v33  ;;  %v14832_v46 = vcombine.low %v2597_v10, %v2601_v39  ;;  %v2629_v10 = vld [vmem:[#allocation8 + $0x2e00] sm:$0xff] }
 0x4c3   :  { %11683 = vmatpush1.bf16.msra.mxu1 %v14802_v11  ;;  %11048 = vmatprep.subr.bf16.mxu0 %v14809_v63  ;;  %v14834_v11 = vcombine.low %v2598_v25, %v2602_v29  ;;  %v14841_v63 = vcombine.high %v2605_v51, %v2609_v7  ;;  %v2633_v39 = vld [vmem:[#allocation8 + $0x2e20] sm:$0xff]  ;;  %v2630_v25 = vld [vmem:[#allocation8 + $0x2e08] sm:$0xff] }
 0x4c4   :  { %11684 = vmatprep.subr.bf16.mxu1 %v14811_v9  ;;  %v14843_v9 = vcombine.high %v2606_v54, %v2610_v14  ;;  %v2634_v29 = vld [vmem:[#allocation8 + $0x2e28] sm:$0xff] }
 0x4c6   :  { %11049 = vmatpush1.bf16.msra.mxu0 %v14808_v49  ;;  %v14840_v49 = vcombine.low %v2605_v51, %v2609_v7  ;;  %v2637_v51 = vld [vmem:[#allocation8 + $0x2e40] sm:$0xff] }
 0x4c7   :  { %11685 = vmatpush1.bf16.msra.mxu1 %v14810_v41  ;;  %11050 = vmatprep.subr.bf16.mxu0 %v14817_v38  ;;  %v14842_v41 = vcombine.low %v2606_v54, %v2610_v14  ;;  %v14849_v38 = vcombine.high %v2613_v62, %v2617_v8  ;;  %v2641_v7 = vld [vmem:[#allocation8 + $0x2e60] sm:$0xff]  ;;  %v2638_v54 = vld [vmem:[#allocation8 + $0x2e48] sm:$0xff] }
 0x4c8   :  { %11036 = vmatmul.mubr.bf16.gmra.mrb[4].mxu0 %v17493_v60  ;;  %11686 = vmatprep.subr.bf16.mxu1 %v14819_v15  ;;  %v14851_v15 = vcombine.high %v2614_v55, %v2618_v35  ;;  %v2642_v14 = vld [vmem:[#allocation8 + $0x2e68] sm:$0xff] }
 0x4c9   :  { %11672 = vmatmul.mubr.bf16.gmra.mrb[4].mxu1 %v17493_v60  ;;  %11078 = vmatprep.mubr.bf16.mxu0 %v17501_v31 }
 0x4ca   :  { %11051 = vmatpush1.bf16.msra.mxu0 %v14816_v36  ;;  %11714 = vmatprep.mubr.bf16.mxu1 %v17501_v31  ;;  %v14848_v36 = vcombine.low %v2613_v62, %v2617_v8  ;;  %v2645_v62 = vld [vmem:[#allocation8 + $0x2e80] sm:$0xff] }
 0x4cb   :  { %11687 = vmatpush1.bf16.msra.mxu1 %v14818_v20  ;;  %11052 = vmatprep.subr.bf16.mxu0 %v14825_v28  ;;  %v14850_v20 = vcombine.low %v2614_v55, %v2618_v35  ;;  %v14857_v28 = vcombine.high %v2621_v23, %v2625_v22  ;;  %v2649_v8 = vld [vmem:[#allocation8 + $0x2ea0] sm:$0xff]  ;;  %v2646_v55 = vld [vmem:[#allocation8 + $0x2e88] sm:$0xff] }
 0x4cc   :  { %11688 = vmatprep.subr.bf16.mxu1 %v14827_v40  ;;  %v14859_v40 = vcombine.high %v2622_v42, %v2626_v30  ;;  %v2650_v35 = vld [vmem:[#allocation8 + $0x2ea8] sm:$0xff] }
 0x4ce   :  { %11053 = vmatpush1.bf16.msra.mxu0 %v14824_v48  ;;  %v14856_v48 = vcombine.low %v2621_v23, %v2625_v22  ;;  %v2653_v23 = vld [vmem:[#allocation8 + $0x2ec0] sm:$0xff] }
 0x4cf   :  { %11689 = vmatpush1.bf16.msra.mxu1 %v14826_v43  ;;  %11054 = vmatprep.subr.bf16.mxu0 %v14833_v3  ;;  %v14858_v43 = vcombine.low %v2622_v42, %v2626_v30  ;;  %v14865_v3 = vcombine.high %v2629_v10, %v2633_v39  ;;  %v2657_v22 = vld [vmem:[#allocation8 + $0x2ee0] sm:$0xff]  ;;  %v2654_v42 = vld [vmem:[#allocation8 + $0x2ec8] sm:$0xff] }
 0x4d0   :  { %11690 = vmatprep.subr.bf16.mxu1 %v14835_v45  ;;  %v14867_v45 = vcombine.high %v2630_v25, %v2634_v29  ;;  %v2658_v30 = vld [vmem:[#allocation8 + $0x2ee8] sm:$0xff] }
 0x4d2   :  { %11055 = vmatpush1.bf16.msra.mxu0 %v14832_v46  ;;  %v14864_v46 = vcombine.low %v2629_v10, %v2633_v39  ;;  %v2661_v10 = vld [vmem:[#allocation8 + $0x2f00] sm:$0xff] }
 0x4d3   :  { %11691 = vmatpush1.bf16.msra.mxu1 %v14834_v11  ;;  %11056 = vmatprep.subr.bf16.mxu0 %v14841_v63  ;;  %v14866_v11 = vcombine.low %v2630_v25, %v2634_v29  ;;  %v14873_v63 = vcombine.high %v2637_v51, %v2641_v7  ;;  %v2665_v39 = vld [vmem:[#allocation8 + $0x2f20] sm:$0xff]  ;;  %v2662_v25 = vld [vmem:[#allocation8 + $0x2f08] sm:$0xff] }
 0x4d4   :  { %11692 = vmatprep.subr.bf16.mxu1 %v14843_v9  ;;  %v14875_v9 = vcombine.high %v2638_v54, %v2642_v14  ;;  %v2666_v29 = vld [vmem:[#allocation8 + $0x2f28] sm:$0xff] }
 0x4d6   :  { %11057 = vmatpush1.bf16.msra.mxu0 %v14840_v49  ;;  %v14872_v49 = vcombine.low %v2637_v51, %v2641_v7  ;;  %v2669_v51 = vld [vmem:[#allocation8 + $0x2f40] sm:$0xff] }
 0x4d7   :  { %11693 = vmatpush1.bf16.msra.mxu1 %v14842_v41  ;;  %11058 = vmatprep.subr.bf16.mxu0 %v14849_v38  ;;  %v14874_v41 = vcombine.low %v2638_v54, %v2642_v14  ;;  %v14881_v38 = vcombine.high %v2645_v62, %v2649_v8  ;;  %v2673_v7 = vld [vmem:[#allocation8 + $0x2f60] sm:$0xff]  ;;  %v2670_v54 = vld [vmem:[#allocation8 + $0x2f48] sm:$0xff] }
 0x4d8   :  { %11694 = vmatprep.subr.bf16.mxu1 %v14851_v15  ;;  %v14883_v15 = vcombine.high %v2646_v55, %v2650_v35  ;;  %v2674_v14 = vld [vmem:[#allocation8 + $0x2f68] sm:$0xff] }
 0x4da   :  { %11059 = vmatpush1.bf16.msra.mxu0 %v14848_v36  ;;  %v14880_v36 = vcombine.low %v2645_v62, %v2649_v8  ;;  %v2677_v62 = vld [vmem:[#allocation8 + $0x2f80] sm:$0xff] }
 0x4db   :  { %11695 = vmatpush1.bf16.msra.mxu1 %v14850_v20  ;;  %11060 = vmatprep.subr.bf16.mxu0 %v14857_v28  ;;  %v14882_v20 = vcombine.low %v2646_v55, %v2650_v35  ;;  %v14889_v28 = vcombine.high %v2653_v23, %v2657_v22  ;;  %v2681_v8 = vld [vmem:[#allocation8 + $0x2fa0] sm:$0xff]  ;;  %v2678_v55 = vld [vmem:[#allocation8 + $0x2f88] sm:$0xff] }
 0x4dc   :  { %11696 = vmatprep.subr.bf16.mxu1 %v14859_v40  ;;  %v14891_v40 = vcombine.high %v2654_v42, %v2658_v30  ;;  %v2682_v35 = vld [vmem:[#allocation8 + $0x2fa8] sm:$0xff] }
 0x4de   :  { %11061 = vmatpush1.bf16.msra.mxu0 %v14856_v48  ;;  %v14888_v48 = vcombine.low %v2653_v23, %v2657_v22  ;;  %v2685_v23 = vld [vmem:[#allocation8 + $0x2fc0] sm:$0xff] }
 0x4df   :  { %11697 = vmatpush1.bf16.msra.mxu1 %v14858_v43  ;;  %11062 = vmatprep.subr.bf16.mxu0 %v14865_v3  ;;  %v14890_v43 = vcombine.low %v2654_v42, %v2658_v30  ;;  %v14897_v3 = vcombine.high %v2661_v10, %v2665_v39  ;;  %v2689_v22 = vld [vmem:[#allocation8 + $0x2fe0] sm:$0xff]  ;;  %v2686_v42 = vld [vmem:[#allocation8 + $0x2fc8] sm:$0xff] }
 0x4e0   :  { %11698 = vmatprep.subr.bf16.mxu1 %v14867_v45  ;;  %v14899_v45 = vcombine.high %v2662_v25, %v2666_v29  ;;  %v2690_v30 = vld [vmem:[#allocation8 + $0x2fe8] sm:$0xff] }
 0x4e2   :  { %11063 = vmatpush1.bf16.msra.mxu0 %v14864_v46  ;;  %v14896_v46 = vcombine.low %v2661_v10, %v2665_v39  ;;  %v1159_v10 = vld [vmem:[#allocation8 + $0x10] sm:$0xff] }
 0x4e3   :  { %11699 = vmatpush1.bf16.msra.mxu1 %v14866_v11  ;;  %11064 = vmatprep.subr.bf16.mxu0 %v14873_v63  ;;  %v14898_v11 = vcombine.low %v2662_v25, %v2666_v29  ;;  %v14905_v63 = vcombine.high %v2669_v51, %v2673_v7  ;;  %v1163_v39 = vld [vmem:[#allocation8 + $0x30] sm:$0xff]  ;;  %v1160_v25 = vld [vmem:[#allocation8 + $0x18] sm:$0xff] }
 0x4e4   :  { %11700 = vmatprep.subr.bf16.mxu1 %v14875_v9  ;;  %v14907_v9 = vcombine.high %v2670_v54, %v2674_v14  ;;  %v1164_v29 = vld [vmem:[#allocation8 + $0x38] sm:$0xff] }
 0x4e6   :  { %11065 = vmatpush1.bf16.msra.mxu0 %v14872_v49  ;;  %v14904_v49 = vcombine.low %v2669_v51, %v2673_v7  ;;  %v1167_v51 = vld [vmem:[#allocation8 + $0x50] sm:$0xff] }
 0x4e7   :  { %11701 = vmatpush1.bf16.msra.mxu1 %v14874_v41  ;;  %11066 = vmatprep.subr.bf16.mxu0 %v14881_v38  ;;  %v14906_v41 = vcombine.low %v2670_v54, %v2674_v14  ;;  %v14913_v38 = vcombine.high %v2677_v62, %v2681_v8  ;;  %v1171_v7 = vld [vmem:[#allocation8 + $0x70] sm:$0xff]  ;;  %v1168_v54 = vld [vmem:[#allocation8 + $0x58] sm:$0xff] }
 0x4e8   :  { %11702 = vmatprep.subr.bf16.mxu1 %v14883_v15  ;;  %v14915_v15 = vcombine.high %v2678_v55, %v2682_v35  ;;  %v1172_v14 = vld [vmem:[#allocation8 + $0x78] sm:$0xff] }
 0x4ea   :  { %11067 = vmatpush1.bf16.msra.mxu0 %v14880_v36  ;;  %v14912_v36 = vcombine.low %v2677_v62, %v2681_v8  ;;  %v1175_v62 = vld [vmem:[#allocation8 + $0x90] sm:$0xff] }
 0x4eb   :  { %11703 = vmatpush1.bf16.msra.mxu1 %v14882_v20  ;;  %11068 = vmatprep.subr.bf16.mxu0 %v14889_v28  ;;  %v14914_v20 = vcombine.low %v2678_v55, %v2682_v35  ;;  %v14921_v28 = vcombine.high %v2685_v23, %v2689_v22  ;;  %v1179_v8 = vld [vmem:[#allocation8 + $0xb0] sm:$0xff]  ;;  %v1176_v55 = vld [vmem:[#allocation8 + $0x98] sm:$0xff] }
 0x4ec   :  { %11704 = vmatprep.subr.bf16.mxu1 %v14891_v40  ;;  %v14923_v40 = vcombine.high %v2686_v42, %v2690_v30  ;;  %v1180_v35 = vld [vmem:[#allocation8 + $0xb8] sm:$0xff] }
 0x4ee   :  { %11069 = vmatpush1.bf16.msra.mxu0 %v14888_v48  ;;  %v14920_v48 = vcombine.low %v2685_v23, %v2689_v22  ;;  %v1183_v23 = vld [vmem:[#allocation8 + $0xd0] sm:$0xff] }
 0x4ef   :  { %11705 = vmatpush1.bf16.msra.mxu1 %v14890_v43  ;;  %11070 = vmatprep.subr.bf16.mxu0 %v14897_v3  ;;  %v14922_v43 = vcombine.low %v2686_v42, %v2690_v30  ;;  %v13397_v3 = vcombine.high %v1159_v10, %v1163_v39  ;;  %v1187_v22 = vld [vmem:[#allocation8 + $0xf0] sm:$0xff]  ;;  %v1184_v42 = vld [vmem:[#allocation8 + $0xd8] sm:$0xff] }
 0x4f0   :  { %11706 = vmatprep.subr.bf16.mxu1 %v14899_v45  ;;  %v13399_v45 = vcombine.high %v1160_v25, %v1164_v29  ;;  %v1188_v30 = vld [vmem:[#allocation8 + $0xf8] sm:$0xff] }
 0x4f2   :  { %11071 = vmatpush1.bf16.msra.mxu0 %v14896_v46  ;;  %v13396_v46 = vcombine.low %v1159_v10, %v1163_v39  ;;  %v1191_v10 = vld [vmem:[#allocation8 + $0x110] sm:$0xff] }
 0x4f3   :  { %11707 = vmatpush1.bf16.msra.mxu1 %v14898_v11  ;;  %11072 = vmatprep.subr.bf16.mxu0 %v14905_v63  ;;  %v13398_v11 = vcombine.low %v1160_v25, %v1164_v29  ;;  %v13405_v63 = vcombine.high %v1167_v51, %v1171_v7  ;;  %v1195_v39 = vld [vmem:[#allocation8 + $0x130] sm:$0xff]  ;;  %v1192_v29 = vld [vmem:[#allocation8 + $0x118] sm:$0xff] }
 0x4f4   :  { %11708 = vmatprep.subr.bf16.mxu1 %v14907_v9  ;;  %v13407_v9 = vcombine.high %v1168_v54, %v1172_v14  ;;  %v18772_v25 = vld [vmem:[#allocation111_spill] sm:$0xff] }
 0x4f6   :  { %11073 = vmatpush1.bf16.msra.mxu0 %v14904_v49  ;;  %v13404_v49 = vcombine.low %v1167_v51, %v1171_v7  ;;  %v1199_v7 = vld [vmem:[#allocation8 + $0x150] sm:$0xff] }
 0x4f7   :  { %11709 = vmatpush1.bf16.msra.mxu1 %v14906_v41  ;;  %11074 = vmatprep.subr.bf16.mxu0 %v14913_v38  ;;  %v13406_v41 = vcombine.low %v1168_v54, %v1172_v14  ;;  %v13413_v38 = vcombine.high %v1175_v62, %v1179_v8  ;;  %v1203_v54 = vld [vmem:[#allocation8 + $0x170] sm:$0xff]  ;;  %v1200_v14 = vld [vmem:[#allocation8 + $0x158] sm:$0xff] }
 0x4f8   :  { %11710 = vmatprep.subr.bf16.mxu1 %v14915_v15  ;;  %v13415_v15 = vcombine.high %v1176_v55, %v1180_v35 }
 0x4fa   :  { %11075 = vmatpush1.bf16.msra.mxu0 %v14912_v36  ;;  %v13412_v36 = vcombine.low %v1175_v62, %v1179_v8  ;;  %v1207_v8 = vld [vmem:[#allocation8 + $0x190] sm:$0xff] }
 0x4fb   :  { %11711 = vmatpush1.bf16.msra.mxu1 %v14914_v20  ;;  %11076 = vmatprep.subr.bf16.mxu0 %v14921_v28  ;;  %v13414_v20 = vcombine.low %v1176_v55, %v1180_v35  ;;  %v13421_v28 = vcombine.high %v1183_v23, %v1187_v22  ;;  %v1211_v55 = vld [vmem:[#allocation8 + $0x1b0] sm:$0xff]  ;;  %v1208_v35 = vld [vmem:[#allocation8 + $0x198] sm:$0xff] }
 0x4fc   :  { %11712 = vmatprep.subr.bf16.mxu1 %v14923_v40  ;;  %v13423_v40 = vcombine.high %v1184_v42, %v1188_v30 }
 0x4fe   :  { %11077 = vmatpush1.bf16.msra.mxu0 %v14920_v48  ;;  %v1196_v48 = vld [vmem:[#allocation8 + $0x138] sm:$0xff] }
 0x4ff   :  { %11713 = vmatpush1.bf16.msra.mxu1 %v14922_v43  ;;  %11735 = vmatprep.subr.bf16.mxu0 %v13397_v3  ;;  %v13420_v43 = vcombine.low %v1183_v23, %v1187_v22  ;;  %v13422_v3 = vcombine.low %v1184_v42, %v1188_v30  ;;  %v13431_v51 = vcombine.high %v1192_v29, %v1196_v48  ;;  %v1215_v22 = vld [vmem:[#allocation8 + $0x1d0] sm:$0xff]  ;;  %v1216_v30 = vld [vmem:[#allocation8 + $0x1d8] sm:$0xff] }
 0x500   :  { %12371 = vmatprep.subr.bf16.mxu1 %v13399_v45  ;;  %v13429_v45 = vcombine.high %v1191_v10, %v1195_v39  ;;  %v1219_v42 = vld [vmem:[#allocation8 + $0x1f0] sm:$0xff] }
 0x501   :  { %11079 = vmatmul.mubr.bf16.vlgmr.msra.gmra.mrb[0].mxu0 %v17508_v44 }
 0x502   :  { %11715 = vmatmul.mubr.bf16.vlgmr.msra.gmra.mrb[0].mxu1 %v17508_v44  ;;  %11088 = vmatprep.mubr.bf16.mxu0 %v17511_v16 }
 0x503   :  { %11724 = vmatprep.mubr.bf16.mxu1 %v17511_v16  ;;  %11736 = vmatpush1.bf16.msra.mxu0 %v13396_v46  ;;  %v1204_v46 = vld [vmem:[#allocation8 + $0x178] sm:$0xff] }
 0x504   :  { %12372 = vmatpush1.bf16.msra.mxu1 %v13398_v11  ;;  %11737 = vmatprep.subr.bf16.mxu0 %v13405_v63  ;;  %v13428_v11 = vcombine.low %v1191_v10, %v1195_v39  ;;  %v13430_v63 = vcombine.low %v1192_v29, %v1196_v48  ;;  %v13439_v62 = vcombine.high %v1200_v14, %v1204_v46  ;;  %v1223_v39 = vld [vmem:[#allocation8 + $0x210] sm:$0xff]  ;;  %v1224_v29 = vld [vmem:[#allocation8 + $0x218] sm:$0xff] }
 0x505   :  { %12373 = vmatprep.subr.bf16.mxu1 %v13407_v9  ;;  %v13437_v9 = vcombine.high %v1199_v7, %v1203_v54  ;;  %v1228_v48 = vld [vmem:[#allocation8 + $0x238] sm:$0xff] }
 0x507   :  { %11738 = vmatpush1.bf16.msra.mxu0 %v13404_v49  ;;  %v1212_v49 = vld [vmem:[#allocation8 + $0x1b8] sm:$0xff] }
 0x508   :  { %12374 = vmatpush1.bf16.msra.mxu1 %v13406_v41  ;;  %11739 = vmatprep.subr.bf16.mxu0 %v13413_v38  ;;  %v13436_v41 = vcombine.low %v1199_v7, %v1203_v54  ;;  %v13438_v38 = vcombine.low %v1200_v14, %v1204_v46  ;;  %v13447_v23 = vcombine.high %v1208_v35, %v1212_v49  ;;  %v1231_v7 = vld [vmem:[#allocation8 + $0x250] sm:$0xff]  ;;  %v1232_v14 = vld [vmem:[#allocation8 + $0x258] sm:$0xff] }
 0x509   :  { %11089 = vmatmul.mubr.bf16.gmra.mrb[4].mxu0 %v17513_v2  ;;  %12375 = vmatprep.subr.bf16.mxu1 %v13415_v15  ;;  %v13445_v15 = vcombine.high %v1207_v8, %v1211_v55  ;;  %v1235_v54 = vld [vmem:[#allocation8 + $0x270] sm:$0xff]  ;;  %v1236_v46 = vld [vmem:[#allocation8 + $0x278] sm:$0xff] }
 0x50a   :  { %11725 = vmatmul.mubr.bf16.gmra.mrb[4].mxu1 %v17513_v2  ;;  %11767 = vmatprep.mubr.bf16.mxu0 %v18772_v25 }
 0x50b   :  { %11740 = vmatpush1.bf16.msra.mxu0 %v13412_v36  ;;  %12403 = vmatprep.mubr.bf16.mxu1 %v18772_v25  ;;  %v1220_v36 = vld [vmem:[#allocation8 + $0x1f8] sm:$0xff]  ;;  %v1227_v25 = vld [vmem:[#allocation8 + $0x230] sm:$0xff] }
 0x50c   :  { %12376 = vmatpush1.bf16.msra.mxu1 %v13414_v20  ;;  %11741 = vmatprep.subr.bf16.mxu0 %v13421_v28  ;;  %v13444_v20 = vcombine.low %v1207_v8, %v1211_v55  ;;  %v13446_v28 = vcombine.low %v1208_v35, %v1212_v49  ;;  %v13455_v10 = vcombine.high %v1216_v30, %v1220_v36  ;;  %v1239_v8 = vld [vmem:[#allocation8 + $0x290] sm:$0xff]  ;;  %v1240_v35 = vld [vmem:[#allocation8 + $0x298] sm:$0xff] }
 0x50d   :  { %12377 = vmatprep.subr.bf16.mxu1 %v13423_v40  ;;  %v13453_v40 = vcombine.high %v1215_v22, %v1219_v42  ;;  %v1243_v55 = vld [vmem:[#allocation8 + $0x2b0] sm:$0xff]  ;;  %v1244_v49 = vld [vmem:[#allocation8 + $0x2b8] sm:$0xff] }
 0x50f   :  { %11742 = vmatpush1.bf16.msra.mxu0 %v13420_v43  ;;  %v13452_v43 = vcombine.low %v1215_v22, %v1219_v42  ;;  %v1247_v22 = vld [vmem:[#allocation8 + $0x2d0] sm:$0xff] }
 0x510   :  { %12378 = vmatpush1.bf16.msra.mxu1 %v13422_v3  ;;  %11743 = vmatprep.subr.bf16.mxu0 %v13429_v45  ;;  %v13454_v3 = vcombine.low %v1216_v30, %v1220_v36  ;;  %v13461_v45 = vcombine.high %v1223_v39, %v1227_v25  ;;  %v1251_v42 = vld [vmem:[#allocation8 + $0x2f0] sm:$0xff]  ;;  %v1248_v30 = vld [vmem:[#allocation8 + $0x2d8] sm:$0xff] }
 0x511   :  { %12379 = vmatprep.subr.bf16.mxu1 %v13431_v51  ;;  %v13463_v51 = vcombine.high %v1224_v29, %v1228_v48  ;;  %v1252_v36 = vld [vmem:[#allocation8 + $0x2f8] sm:$0xff] }
 0x513   :  { %11744 = vmatpush1.bf16.msra.mxu0 %v13428_v11  ;;  %v13460_v11 = vcombine.low %v1223_v39, %v1227_v25  ;;  %v1255_v39 = vld [vmem:[#allocation8 + $0x310] sm:$0xff] }
 0x514   :  { %12380 = vmatpush1.bf16.msra.mxu1 %v13430_v63  ;;  %11745 = vmatprep.subr.bf16.mxu0 %v13437_v9  ;;  %v13462_v63 = vcombine.low %v1224_v29, %v1228_v48  ;;  %v13469_v9 = vcombine.high %v1231_v7, %v1235_v54  ;;  %v1259_v25 = vld [vmem:[#allocation8 + $0x330] sm:$0xff]  ;;  %v1256_v29 = vld [vmem:[#allocation8 + $0x318] sm:$0xff] }
 0x515   :  { %12381 = vmatprep.subr.bf16.mxu1 %v13439_v62  ;;  %v13471_v62 = vcombine.high %v1232_v14, %v1236_v46  ;;  %v1260_v48 = vld [vmem:[#allocation8 + $0x338] sm:$0xff] }
 0x517   :  { %11746 = vmatpush1.bf16.msra.mxu0 %v13436_v41  ;;  %v13468_v41 = vcombine.low %v1231_v7, %v1235_v54  ;;  %v1263_v7 = vld [vmem:[#allocation8 + $0x350] sm:$0xff] }
 0x518   :  { %12382 = vmatpush1.bf16.msra.mxu1 %v13438_v38  ;;  %11747 = vmatprep.subr.bf16.mxu0 %v13445_v15  ;;  %v13470_v38 = vcombine.low %v1232_v14, %v1236_v46  ;;  %v13477_v15 = vcombine.high %v1239_v8, %v1243_v55  ;;  %v1267_v54 = vld [vmem:[#allocation8 + $0x370] sm:$0xff]  ;;  %v1264_v14 = vld [vmem:[#allocation8 + $0x358] sm:$0xff] }
 0x519   :  { %12383 = vmatprep.subr.bf16.mxu1 %v13447_v23  ;;  %v13479_v23 = vcombine.high %v1240_v35, %v1244_v49  ;;  %v1268_v46 = vld [vmem:[#allocation8 + $0x378] sm:$0xff] }
 0x51b   :  { %11748 = vmatpush1.bf16.msra.mxu0 %v13444_v20  ;;  %v13476_v20 = vcombine.low %v1239_v8, %v1243_v55  ;;  %v1271_v8 = vld [vmem:[#allocation8 + $0x390] sm:$0xff] }
 0x51c   :  { %12384 = vmatpush1.bf16.msra.mxu1 %v13446_v28  ;;  %11749 = vmatprep.subr.bf16.mxu0 %v13453_v40  ;;  %v13478_v28 = vcombine.low %v1240_v35, %v1244_v49  ;;  %v13485_v40 = vcombine.high %v1247_v22, %v1251_v42  ;;  %v1275_v55 = vld [vmem:[#allocation8 + $0x3b0] sm:$0xff]  ;;  %v1272_v35 = vld [vmem:[#allocation8 + $0x398] sm:$0xff] }
 0x51d   :  { %12385 = vmatprep.subr.bf16.mxu1 %v13455_v10  ;;  %v13487_v10 = vcombine.high %v1248_v30, %v1252_v36  ;;  %v1276_v49 = vld [vmem:[#allocation8 + $0x3b8] sm:$0xff] }
 0x51f   :  { %11750 = vmatpush1.bf16.msra.mxu0 %v13452_v43  ;;  %v13484_v43 = vcombine.low %v1247_v22, %v1251_v42  ;;  %v1279_v22 = vld [vmem:[#allocation8 + $0x3d0] sm:$0xff] }
 0x520   :  { %12386 = vmatpush1.bf16.msra.mxu1 %v13454_v3  ;;  %11751 = vmatprep.subr.bf16.mxu0 %v13461_v45  ;;  %v13486_v3 = vcombine.low %v1248_v30, %v1252_v36  ;;  %v13493_v45 = vcombine.high %v1255_v39, %v1259_v25  ;;  %v1283_v42 = vld [vmem:[#allocation8 + $0x3f0] sm:$0xff]  ;;  %v1280_v30 = vld [vmem:[#allocation8 + $0x3d8] sm:$0xff] }
 0x521   :  { %12387 = vmatprep.subr.bf16.mxu1 %v13463_v51  ;;  %v13495_v51 = vcombine.high %v1256_v29, %v1260_v48  ;;  %v1284_v36 = vld [vmem:[#allocation8 + $0x3f8] sm:$0xff] }
 0x523   :  { %11752 = vmatpush1.bf16.msra.mxu0 %v13460_v11  ;;  %v13492_v11 = vcombine.low %v1255_v39, %v1259_v25  ;;  %v1287_v39 = vld [vmem:[#allocation8 + $0x410] sm:$0xff] }
 0x524   :  { %12388 = vmatpush1.bf16.msra.mxu1 %v13462_v63  ;;  %11753 = vmatprep.subr.bf16.mxu0 %v13469_v9  ;;  %v13494_v63 = vcombine.low %v1256_v29, %v1260_v48  ;;  %v13501_v9 = vcombine.high %v1263_v7, %v1267_v54  ;;  %v1291_v25 = vld [vmem:[#allocation8 + $0x430] sm:$0xff]  ;;  %v1288_v29 = vld [vmem:[#allocation8 + $0x418] sm:$0xff] }
 0x525   :  { %12389 = vmatprep.subr.bf16.mxu1 %v13471_v62  ;;  %v13503_v62 = vcombine.high %v1264_v14, %v1268_v46  ;;  %v1292_v48 = vld [vmem:[#allocation8 + $0x438] sm:$0xff] }
 0x527   :  { %11754 = vmatpush1.bf16.msra.mxu0 %v13468_v41  ;;  %v13500_v41 = vcombine.low %v1263_v7, %v1267_v54  ;;  %v1295_v7 = vld [vmem:[#allocation8 + $0x450] sm:$0xff] }
 0x528   :  { %12390 = vmatpush1.bf16.msra.mxu1 %v13470_v38  ;;  %11755 = vmatprep.subr.bf16.mxu0 %v13477_v15  ;;  %v13502_v38 = vcombine.low %v1264_v14, %v1268_v46  ;;  %v13509_v15 = vcombine.high %v1271_v8, %v1275_v55  ;;  %v1299_v54 = vld [vmem:[#allocation8 + $0x470] sm:$0xff]  ;;  %v1296_v14 = vld [vmem:[#allocation8 + $0x458] sm:$0xff] }
 0x529   :  { %12391 = vmatprep.subr.bf16.mxu1 %v13479_v23  ;;  %v13511_v23 = vcombine.high %v1272_v35, %v1276_v49  ;;  %v1300_v46 = vld [vmem:[#allocation8 + $0x478] sm:$0xff] }
 0x52b   :  { %11756 = vmatpush1.bf16.msra.mxu0 %v13476_v20  ;;  %v13508_v20 = vcombine.low %v1271_v8, %v1275_v55  ;;  %v13535_v8 = vcombine.high %v1296_v14, %v1300_v46  ;;  %v1303_v55 = vld [vmem:[#allocation8 + $0x490] sm:$0xff] }
 0x52c   :  { %12392 = vmatpush1.bf16.msra.mxu1 %v13478_v28  ;;  %11757 = vmatprep.subr.bf16.mxu0 %v13485_v40  ;;  %v13510_v28 = vcombine.low %v1272_v35, %v1276_v49  ;;  %v13517_v40 = vcombine.high %v1279_v22, %v1283_v42  ;;  %v1307_v35 = vld [vmem:[#allocation8 + $0x4b0] sm:$0xff] }
 0x52d   :  { %12393 = vmatprep.subr.bf16.mxu1 %v13487_v10  ;;  %v13519_v10 = vcombine.high %v1280_v30, %v1284_v36  ;;  %v18774_v49 = vld [vmem:[#allocation55_spill] sm:$0xff] }
 0x52f   :  { %11758 = vmatpush1.bf16.msra.mxu0 %v13484_v43  ;;  %v13516_v43 = vcombine.low %v1279_v22, %v1283_v42  ;;  %v13541_v22 = vcombine.high %v1303_v55, %v1307_v35 }
 0x530   :  { %12394 = vmatpush1.bf16.msra.mxu1 %v13486_v3  ;;  %11759 = vmatprep.subr.bf16.mxu0 %v13493_v45  ;;  %v13518_v3 = vcombine.low %v1280_v30, %v1284_v36  ;;  %v13525_v45 = vcombine.high %v1287_v39, %v1291_v25  ;;  %v1311_v30 = vld [vmem:[#allocation8 + $0x4d0] sm:$0xff] }
 0x531   :  { %12395 = vmatprep.subr.bf16.mxu1 %v13495_v51  ;;  %v13527_v51 = vcombine.high %v1288_v29, %v1292_v48  ;;  %v1315_v36 = vld [vmem:[#allocation8 + $0x4f0] sm:$0xff] }
 0x533   :  { %11760 = vmatpush1.bf16.msra.mxu0 %v13492_v11  ;;  %v13524_v11 = vcombine.low %v1287_v39, %v1291_v25  ;;  %v13549_v39 = vcombine.high %v1311_v30, %v1315_v36  ;;  %v18775_v25 = vld [vmem:[#allocation27_spill] sm:$0xff] }
 0x534   :  { %12396 = vmatpush1.bf16.msra.mxu1 %v13494_v63  ;;  %11761 = vmatprep.subr.bf16.mxu0 %v13501_v9  ;;  %v13526_v63 = vcombine.low %v1288_v29, %v1292_v48  ;;  %v13533_v9 = vcombine.high %v1295_v7, %v1299_v54  ;;  %v1319_v48 = vld [vmem:[#allocation8 + $0x510] sm:$0xff] }
 0x535   :  { %12397 = vmatprep.subr.bf16.mxu1 %v13503_v62  ;;  %v18773_v62 = vld [vmem:[#allocation112_spill] sm:$0xff] }
 0x537   :  { %11762 = vmatpush1.bf16.msra.mxu0 %v13500_v41  ;;  %v1304_v41 = vld [vmem:[#allocation8 + $0x498] sm:$0xff] }
 0x538   :  { %12398 = vmatpush1.bf16.msra.mxu1 %v13502_v38  ;;  %11763 = vmatprep.subr.bf16.mxu0 %v13509_v15  ;;  %v1308_v38 = vld [vmem:[#allocation8 + $0x4b8] sm:$0xff]  ;;  %v13532_v15 = vcombine.low %v1295_v7, %v1299_v54  ;;  %v13548_v7 = vcombine.low %v1311_v30, %v1315_v36 }
 0x539   :  { %12399 = vmatprep.subr.bf16.mxu1 %v13511_v23  ;;  %v13534_v23 = vcombine.low %v1296_v14, %v1300_v46  ;;  %v13543_v42 = vcombine.high %v1304_v41, %v1308_v38 }
 0x53b   :  { %11764 = vmatpush1.bf16.msra.mxu0 %v13508_v20  ;;  %v1312_v20 = vld [vmem:[#allocation8 + $0x4d8] sm:$0xff] }
 0x53c   :  { %12400 = vmatpush1.bf16.msra.mxu1 %v13510_v28  ;;  %11765 = vmatprep.subr.bf16.mxu0 %v13517_v40  ;;  %v1316_v28 = vld [vmem:[#allocation8 + $0x4f8] sm:$0xff]  ;;  %v13540_v40 = vcombine.low %v1303_v55, %v1307_v35 }
 0x53d   :  { %12401 = vmatprep.subr.bf16.mxu1 %v13519_v10  ;;  %v13542_v10 = vcombine.low %v1304_v41, %v1308_v38  ;;  %v13551_v29 = vcombine.high %v1312_v20, %v1316_v28  ;;  %v13550_v54 = vcombine.low %v1312_v20, %v1316_v28  ;;  %v1335_v41 = vld [vmem:[#allocation8 + $0x590] sm:$0xff] }
 0x53e   :  { %v1339_v38 = vld [vmem:[#allocation8 + $0x5b0] sm:$0xff] }
 0x53f   :  { %11766 = vmatpush1.bf16.msra.mxu0 %v13516_v43  ;;  %v1323_v43 = vld [vmem:[#allocation8 + $0x530] sm:$0xff]  ;;  %v13573_v30 = vcombine.high %v1335_v41, %v1339_v38 }
 0x540   :  { %12402 = vmatpush1.bf16.msra.mxu1 %v13518_v3  ;;  %11788 = vmatprep.subr.bf16.mxu0 %v13525_v45  ;;  %v18776_v3 = vld [vmem:[#allocation26_spill] sm:$0xff]  ;;  %v1320_v45 = vld [vmem:[#allocation8 + $0x518] sm:$0xff]  ;;  %v13557_v14 = vcombine.high %v1319_v48, %v1323_v43  ;;  %v1343_v20 = vld [vmem:[#allocation8 + $0x5d0] sm:$0xff] }
 0x541   :  { %12424 = vmatprep.subr.bf16.mxu1 %v13527_v51  ;;  %v1324_v51 = vld [vmem:[#allocation8 + $0x538] sm:$0xff]  ;;  %v1347_v28 = vld [vmem:[#allocation8 + $0x5f0] sm:$0xff] }
 0x542   :  { %11768 = vmatmul.mubr.bf16.vlgmr.msra.gmra.mrb[8].mxu0 %v18773_v62  ;;  %v13559_v46 = vcombine.high %v1320_v45, %v1324_v51  ;;  %v13558_v55 = vcombine.low %v1320_v45, %v1324_v51  ;;  %v1352_v45 = vld [vmem:[#allocation8 + $0x618] sm:$0xff] }
 0x543   :  { %12404 = vmatmul.mubr.bf16.vlgmr.msra.gmra.mrb[8].mxu1 %v18773_v62  ;;  %11777 = vmatprep.mubr.bf16.mxu0 %v18774_v49  ;;  %v1332_v62 = vld [vmem:[#allocation8 + $0x578] sm:$0xff] }
 0x544   :  { %11789 = vmatpush1.bf16.msra.mxu0 %v13524_v11  ;;  %12413 = vmatprep.mubr.bf16.mxu1 %v18774_v49  ;;  %v1327_v11 = vld [vmem:[#allocation8 + $0x550] sm:$0xff]  ;;  %v1356_v51 = vld [vmem:[#allocation8 + $0x638] sm:$0xff] }
 0x545   :  { %12425 = vmatpush1.bf16.msra.mxu1 %v13526_v63  ;;  %11790 = vmatprep.subr.bf16.mxu0 %v13533_v9  ;;  %v1331_v63 = vld [vmem:[#allocation8 + $0x570] sm:$0xff]  ;;  %v1328_v9 = vld [vmem:[#allocation8 + $0x558] sm:$0xff] }
 0x546   :  { %12426 = vmatprep.subr.bf16.mxu1 %v13535_v8  ;;  %v13556_v8 = vcombine.low %v1319_v48, %v1323_v43  ;;  %v13565_v35 = vcombine.high %v1327_v11, %v1331_v63  ;;  %v13567_v49 = vcombine.high %v1328_v9, %v1332_v62  ;;  %v1351_v43 = vld [vmem:[#allocation8 + $0x610] sm:$0xff] }
 0x548   :  { %11791 = vmatpush1.bf16.msra.mxu0 %v13532_v15  ;;  %v1336_v15 = vld [vmem:[#allocation8 + $0x598] sm:$0xff] }
 0x549   :  { %12427 = vmatpush1.bf16.msra.mxu1 %v13534_v23  ;;  %11792 = vmatprep.subr.bf16.mxu0 %v13541_v22  ;;  %v1340_v23 = vld [vmem:[#allocation8 + $0x5b8] sm:$0xff]  ;;  %v13564_v22 = vcombine.low %v1327_v11, %v1331_v63  ;;  %v1359_v11 = vld [vmem:[#allocation8 + $0x650] sm:$0xff] }
 0x54a   :  { %11778 = vmatmul.mubr.bf16.gmra.mrb[12].mxu0 %v18775_v25  ;;  %12428 = vmatprep.subr.bf16.mxu1 %v13543_v42  ;;  %v13566_v42 = vcombine.low %v1328_v9, %v1332_v62  ;;  %v13575_v36 = vcombine.high %v1336_v15, %v1340_v23  ;;  %v1363_v63 = vld [vmem:[#allocation8 + $0x670] sm:$0xff]  ;;  %v1360_v9 = vld [vmem:[#allocation8 + $0x658] sm:$0xff] }
 0x54b   :  { %12414 = vmatmul.mubr.bf16.gmra.mrb[12].mxu1 %v18775_v25  ;;  %11820 = vmatprep.mubr.bf16.mxu0 %v18776_v3  ;;  %v13574_v25 = vcombine.low %v1336_v15, %v1340_v23  ;;  %v1364_v62 = vld [vmem:[#allocation8 + $0x678] sm:$0xff] }
 0x54c   :  { %11793 = vmatpush1.bf16.msra.mxu0 %v13540_v40  ;;  %12456 = vmatprep.mubr.bf16.mxu1 %v18776_v3  ;;  %v1344_v40 = vld [vmem:[#allocation8 + $0x5d8] sm:$0xff]  ;;  %v1355_v3 = vld [vmem:[#allocation8 + $0x630] sm:$0xff] }
 0x54d   :  { %12429 = vmatpush1.bf16.msra.mxu1 %v13542_v10  ;;  %11794 = vmatprep.subr.bf16.mxu0 %v13549_v39  ;;  %v1348_v10 = vld [vmem:[#allocation8 + $0x5f8] sm:$0xff]  ;;  %v13572_v39 = vcombine.low %v1335_v41, %v1339_v38  ;;  %v1367_v41 = vld [vmem:[#allocation8 + $0x690] sm:$0xff] }
 0x54e   :  { %12430 = vmatprep.subr.bf16.mxu1 %v13551_v29  ;;  %v13581_v29 = vcombine.high %v1343_v20, %v1347_v28  ;;  %v13583_v48 = vcombine.high %v1344_v40, %v1348_v10  ;;  %v1371_v38 = vld [vmem:[#allocation8 + $0x6b0] sm:$0xff]  ;;  %v1368_v15 = vld [vmem:[#allocation8 + $0x698] sm:$0xff] }
 0x54f   :  { %v1372_v23 = vld [vmem:[#allocation8 + $0x6b8] sm:$0xff] }
 0x550   :  { %11795 = vmatpush1.bf16.msra.mxu0 %v13548_v7  ;;  %v13580_v7 = vcombine.low %v1343_v20, %v1347_v28  ;;  %v1375_v20 = vld [vmem:[#allocation8 + $0x6d0] sm:$0xff] }
 0x551   :  { %12431 = vmatpush1.bf16.msra.mxu1 %v13550_v54  ;;  %11796 = vmatprep.subr.bf16.mxu0 %v13557_v14  ;;  %v13582_v54 = vcombine.low %v1344_v40, %v1348_v10  ;;  %v13589_v14 = vcombine.high %v1351_v43, %v1355_v3  ;;  %v1379_v28 = vld [vmem:[#allocation8 + $0x6f0] sm:$0xff]  ;;  %v1376_v40 = vld [vmem:[#allocation8 + $0x6d8] sm:$0xff] }
 0x552   :  { %12432 = vmatprep.subr.bf16.mxu1 %v13559_v46  ;;  %v13591_v46 = vcombine.high %v1352_v45, %v1356_v51  ;;  %v1380_v10 = vld [vmem:[#allocation8 + $0x6f8] sm:$0xff] }
 0x554   :  { %11797 = vmatpush1.bf16.msra.mxu0 %v13556_v8  ;;  %v13588_v8 = vcombine.low %v1351_v43, %v1355_v3  ;;  %v1383_v43 = vld [vmem:[#allocation8 + $0x710] sm:$0xff] }
 0x555   :  { %12433 = vmatpush1.bf16.msra.mxu1 %v13558_v55  ;;  %11798 = vmatprep.subr.bf16.mxu0 %v13565_v35  ;;  %v13590_v55 = vcombine.low %v1352_v45, %v1356_v51  ;;  %v13597_v35 = vcombine.high %v1359_v11, %v1363_v63  ;;  %v1387_v3 = vld [vmem:[#allocation8 + $0x730] sm:$0xff]  ;;  %v1384_v45 = vld [vmem:[#allocation8 + $0x718] sm:$0xff] }
 0x556   :  { %12434 = vmatprep.subr.bf16.mxu1 %v13567_v49  ;;  %v13599_v49 = vcombine.high %v1360_v9, %v1364_v62  ;;  %v1388_v51 = vld [vmem:[#allocation8 + $0x738] sm:$0xff] }
 0x558   :  { %11799 = vmatpush1.bf16.msra.mxu0 %v13564_v22  ;;  %v13596_v22 = vcombine.low %v1359_v11, %v1363_v63  ;;  %v1391_v11 = vld [vmem:[#allocation8 + $0x750] sm:$0xff] }
 0x559   :  { %12435 = vmatpush1.bf16.msra.mxu1 %v13566_v42  ;;  %11800 = vmatprep.subr.bf16.mxu0 %v13573_v30  ;;  %v13598_v42 = vcombine.low %v1360_v9, %v1364_v62  ;;  %v13605_v30 = vcombine.high %v1367_v41, %v1371_v38  ;;  %v1395_v63 = vld [vmem:[#allocation8 + $0x770] sm:$0xff]  ;;  %v1392_v9 = vld [vmem:[#allocation8 + $0x758] sm:$0xff] }
 0x55a   :  { %12436 = vmatprep.subr.bf16.mxu1 %v13575_v36  ;;  %v13607_v36 = vcombine.high %v1368_v15, %v1372_v23  ;;  %v1396_v62 = vld [vmem:[#allocation8 + $0x778] sm:$0xff] }
 0x55c   :  { %11801 = vmatpush1.bf16.msra.mxu0 %v13572_v39  ;;  %v13604_v39 = vcombine.low %v1367_v41, %v1371_v38  ;;  %v1399_v41 = vld [vmem:[#allocation8 + $0x790] sm:$0xff] }
 0x55d   :  { %12437 = vmatpush1.bf16.msra.mxu1 %v13574_v25  ;;  %11802 = vmatprep.subr.bf16.mxu0 %v13581_v29  ;;  %v13606_v25 = vcombine.low %v1368_v15, %v1372_v23  ;;  %v13613_v29 = vcombine.high %v1375_v20, %v1379_v28  ;;  %v1403_v38 = vld [vmem:[#allocation8 + $0x7b0] sm:$0xff]  ;;  %v1400_v15 = vld [vmem:[#allocation8 + $0x798] sm:$0xff] }
 0x55e   :  { %12438 = vmatprep.subr.bf16.mxu1 %v13583_v48  ;;  %v13615_v48 = vcombine.high %v1376_v40, %v1380_v10  ;;  %v1404_v23 = vld [vmem:[#allocation8 + $0x7b8] sm:$0xff] }
 0x560   :  { %11803 = vmatpush1.bf16.msra.mxu0 %v13580_v7  ;;  %v13612_v7 = vcombine.low %v1375_v20, %v1379_v28  ;;  %v1407_v20 = vld [vmem:[#allocation8 + $0x7d0] sm:$0xff] }
 0x561   :  { %12439 = vmatpush1.bf16.msra.mxu1 %v13582_v54  ;;  %11804 = vmatprep.subr.bf16.mxu0 %v13589_v14  ;;  %v13614_v54 = vcombine.low %v1376_v40, %v1380_v10  ;;  %v13621_v14 = vcombine.high %v1383_v43, %v1387_v3  ;;  %v1411_v28 = vld [vmem:[#allocation8 + $0x7f0] sm:$0xff]  ;;  %v1408_v40 = vld [vmem:[#allocation8 + $0x7d8] sm:$0xff] }
 0x562   :  { %12440 = vmatprep.subr.bf16.mxu1 %v13591_v46  ;;  %v13623_v46 = vcombine.high %v1384_v45, %v1388_v51  ;;  %v1412_v10 = vld [vmem:[#allocation8 + $0x7f8] sm:$0xff] }
 0x564   :  { %11805 = vmatpush1.bf16.msra.mxu0 %v13588_v8  ;;  %v13620_v8 = vcombine.low %v1383_v43, %v1387_v3  ;;  %v1415_v43 = vld [vmem:[#allocation8 + $0x810] sm:$0xff] }
 0x565   :  { %12441 = vmatpush1.bf16.msra.mxu1 %v13590_v55  ;;  %11806 = vmatprep.subr.bf16.mxu0 %v13597_v35  ;;  %v13622_v55 = vcombine.low %v1384_v45, %v1388_v51  ;;  %v13629_v35 = vcombine.high %v1391_v11, %v1395_v63  ;;  %v1419_v3 = vld [vmem:[#allocation8 + $0x830] sm:$0xff]  ;;  %v1416_v45 = vld [vmem:[#allocation8 + $0x818] sm:$0xff] }
 0x566   :  { %12442 = vmatprep.subr.bf16.mxu1 %v13599_v49  ;;  %v13631_v49 = vcombine.high %v1392_v9, %v1396_v62  ;;  %v1420_v51 = vld [vmem:[#allocation8 + $0x838] sm:$0xff] }
 0x568   :  { %11807 = vmatpush1.bf16.msra.mxu0 %v13596_v22  ;;  %v13628_v22 = vcombine.low %v1391_v11, %v1395_v63  ;;  %v1423_v11 = vld [vmem:[#allocation8 + $0x850] sm:$0xff] }
 0x569   :  { %12443 = vmatpush1.bf16.msra.mxu1 %v13598_v42  ;;  %11808 = vmatprep.subr.bf16.mxu0 %v13605_v30  ;;  %v13630_v42 = vcombine.low %v1392_v9, %v1396_v62  ;;  %v13637_v30 = vcombine.high %v1399_v41, %v1403_v38  ;;  %v1427_v63 = vld [vmem:[#allocation8 + $0x870] sm:$0xff]  ;;  %v1424_v9 = vld [vmem:[#allocation8 + $0x858] sm:$0xff] }
 0x56a   :  { %12444 = vmatprep.subr.bf16.mxu1 %v13607_v36  ;;  %v13639_v36 = vcombine.high %v1400_v15, %v1404_v23  ;;  %v1428_v62 = vld [vmem:[#allocation8 + $0x878] sm:$0xff] }
 0x56c   :  { %11809 = vmatpush1.bf16.msra.mxu0 %v13604_v39  ;;  %v13636_v39 = vcombine.low %v1399_v41, %v1403_v38  ;;  %v1431_v41 = vld [vmem:[#allocation8 + $0x890] sm:$0xff] }
 0x56d   :  { %12445 = vmatpush1.bf16.msra.mxu1 %v13606_v25  ;;  %11810 = vmatprep.subr.bf16.mxu0 %v13613_v29  ;;  %v13638_v25 = vcombine.low %v1400_v15, %v1404_v23  ;;  %v13645_v29 = vcombine.high %v1407_v20, %v1411_v28  ;;  %v1435_v38 = vld [vmem:[#allocation8 + $0x8b0] sm:$0xff]  ;;  %v1432_v15 = vld [vmem:[#allocation8 + $0x898] sm:$0xff] }
 0x56e   :  { %12446 = vmatprep.subr.bf16.mxu1 %v13615_v48  ;;  %v13647_v48 = vcombine.high %v1408_v40, %v1412_v10  ;;  %v1436_v23 = vld [vmem:[#allocation8 + $0x8b8] sm:$0xff] }
 0x570   :  { %11811 = vmatpush1.bf16.msra.mxu0 %v13612_v7  ;;  %v13644_v7 = vcombine.low %v1407_v20, %v1411_v28  ;;  %v1439_v20 = vld [vmem:[#allocation8 + $0x8d0] sm:$0xff] }
 0x571   :  { %12447 = vmatpush1.bf16.msra.mxu1 %v13614_v54  ;;  %11812 = vmatprep.subr.bf16.mxu0 %v13621_v14  ;;  %v13646_v54 = vcombine.low %v1408_v40, %v1412_v10  ;;  %v13653_v14 = vcombine.high %v1415_v43, %v1419_v3  ;;  %v1443_v28 = vld [vmem:[#allocation8 + $0x8f0] sm:$0xff]  ;;  %v1440_v40 = vld [vmem:[#allocation8 + $0x8d8] sm:$0xff] }
 0x572   :  { %12448 = vmatprep.subr.bf16.mxu1 %v13623_v46  ;;  %v13655_v46 = vcombine.high %v1416_v45, %v1420_v51  ;;  %v1444_v10 = vld [vmem:[#allocation8 + $0x8f8] sm:$0xff] }
 0x574   :  { %11813 = vmatpush1.bf16.msra.mxu0 %v13620_v8  ;;  %v13652_v8 = vcombine.low %v1415_v43, %v1419_v3  ;;  %v1451_v43 = vld [vmem:[#allocation8 + $0x930] sm:$0xff]  ;;  %v18778_v3 = vld [vmem:[#allocation113_spill] sm:$0xff] }
 0x575   :  { %12449 = vmatpush1.bf16.msra.mxu1 %v13622_v55  ;;  %11814 = vmatprep.subr.bf16.mxu0 %v13629_v35  ;;  %v13654_v55 = vcombine.low %v1416_v45, %v1420_v51  ;;  %v13661_v35 = vcombine.high %v1423_v11, %v1427_v63  ;;  %v1448_v45 = vld [vmem:[#allocation8 + $0x918] sm:$0xff] }
 0x576   :  { %12450 = vmatprep.subr.bf16.mxu1 %v13631_v49  ;;  %v13663_v49 = vcombine.high %v1424_v9, %v1428_v62  ;;  %v1452_v51 = vld [vmem:[#allocation8 + $0x938] sm:$0xff] }
 0x578   :  { %11815 = vmatpush1.bf16.msra.mxu0 %v13628_v22  ;;  %v13660_v22 = vcombine.low %v1423_v11, %v1427_v63  ;;  %v1455_v11 = vld [vmem:[#allocation8 + $0x950] sm:$0xff] }
 0x579   :  { %12451 = vmatpush1.bf16.msra.mxu1 %v13630_v42  ;;  %11816 = vmatprep.subr.bf16.mxu0 %v13637_v30  ;;  %v13662_v42 = vcombine.low %v1424_v9, %v1428_v62  ;;  %v13669_v30 = vcombine.high %v1431_v41, %v1435_v38  ;;  %v1459_v63 = vld [vmem:[#allocation8 + $0x970] sm:$0xff]  ;;  %v1456_v9 = vld [vmem:[#allocation8 + $0x958] sm:$0xff] }
 0x57a   :  { %12452 = vmatprep.subr.bf16.mxu1 %v13639_v36  ;;  %v13671_v36 = vcombine.high %v1432_v15, %v1436_v23  ;;  %v1460_v62 = vld [vmem:[#allocation8 + $0x978] sm:$0xff] }
 0x57c   :  { %11817 = vmatpush1.bf16.msra.mxu0 %v13636_v39  ;;  %v13670_v39 = vcombine.low %v1432_v15, %v1436_v23  ;;  %v1464_v15 = vld [vmem:[#allocation8 + $0x998] sm:$0xff] }
 0x57d   :  { %12453 = vmatpush1.bf16.msra.mxu1 %v13638_v25  ;;  %11818 = vmatprep.subr.bf16.mxu0 %v13645_v29  ;;  %v13677_v25 = vcombine.high %v1439_v20, %v1443_v28  ;;  %v18777_v29 = vld [vmem:[#allocation29_spill] sm:$0xff]  ;;  %v1468_v23 = vld [vmem:[#allocation8 + $0x9b8] sm:$0xff] }
 0x57e   :  { %12454 = vmatprep.subr.bf16.mxu1 %v13647_v48  ;;  %v1447_v48 = vld [vmem:[#allocation8 + $0x910] sm:$0xff] }
 0x580   :  { %11819 = vmatpush1.bf16.msra.mxu0 %v13644_v7  ;;  %v13676_v7 = vcombine.low %v1439_v20, %v1443_v28  ;;  %v1471_v20 = vld [vmem:[#allocation8 + $0x9d0] sm:$0xff] }
 0x581   :  { %12455 = vmatpush1.bf16.msra.mxu1 %v13646_v54  ;;  %11841 = vmatprep.subr.bf16.mxu0 %v13653_v14  ;;  %v13678_v54 = vcombine.low %v1440_v40, %v1444_v10  ;;  %v13685_v14 = vcombine.high %v1447_v48, %v1451_v43  ;;  %v1475_v28 = vld [vmem:[#allocation8 + $0x9f0] sm:$0xff] }
 0x582   :  { %12477 = vmatprep.subr.bf16.mxu1 %v13655_v46  ;;  %v13687_v46 = vcombine.high %v1448_v45, %v1452_v51 }
 0x583   :  { %11821 = vmatmul.mubr.bf16.vlgmr.msra.gmra.mrb[8].mxu0 %v16871_v34 }
 0x584   :  { %12457 = vmatmul.mubr.bf16.vlgmr.msra.gmra.mrb[8].mxu1 %v16871_v34  ;;  %11830 = vmatprep.mubr.bf16.mxu0 %v17362_v18  ;;  %v13668_v34 = vcombine.low %v1431_v41, %v1435_v38  ;;  %v1463_v41 = vld [vmem:[#allocation8 + $0x990] sm:$0xff] }
 0x585   :  { %11842 = vmatpush1.bf16.msra.mxu0 %v13652_v8  ;;  %12466 = vmatprep.mubr.bf16.mxu1 %v17362_v18  ;;  %v13679_v18 = vcombine.high %v1440_v40, %v1444_v10  ;;  %v13684_v8 = vcombine.low %v1447_v48, %v1451_v43  ;;  %v1467_v38 = vld [vmem:[#allocation8 + $0x9b0] sm:$0xff]  ;;  %v1472_v40 = vld [vmem:[#allocation8 + $0x9d8] sm:$0xff] }
 0x586   :  { %12478 = vmatpush1.bf16.msra.mxu1 %v13654_v55  ;;  %11843 = vmatprep.subr.bf16.mxu0 %v13661_v35  ;;  %v13686_v55 = vcombine.low %v1448_v45, %v1452_v51  ;;  %v13693_v35 = vcombine.high %v1455_v11, %v1459_v63  ;;  %v1476_v10 = vld [vmem:[#allocation8 + $0x9f8] sm:$0xff]  ;;  %v1483_v48 = vld [vmem:[#allocation8 + $0xa30] sm:$0xff]  ;;  %v13708_v45 = vcombine.low %v1471_v20, %v1475_v28 }
 0x587   :  { %12479 = vmatprep.subr.bf16.mxu1 %v13663_v49  ;;  %v13695_v49 = vcombine.high %v1456_v9, %v1460_v62  ;;  %v1480_v43 = vld [vmem:[#allocation8 + $0xa18] sm:$0xff]  ;;  %v13710_v51 = vcombine.low %v1472_v40, %v1476_v10 }
 0x589   :  { %11844 = vmatpush1.bf16.msra.mxu0 %v13660_v22  ;;  %v13692_v22 = vcombine.low %v1455_v11, %v1459_v63  ;;  %v1488_v11 = vld [vmem:[#allocation8 + $0xa58] sm:$0xff] }
 0x58a   :  { %12480 = vmatpush1.bf16.msra.mxu1 %v13662_v42  ;;  %11845 = vmatprep.subr.bf16.mxu0 %v13669_v30  ;;  %v13694_v42 = vcombine.low %v1456_v9, %v1460_v62  ;;  %v13701_v30 = vcombine.high %v1463_v41, %v1467_v38  ;;  %v1492_v63 = vld [vmem:[#allocation8 + $0xa78] sm:$0xff] }
 0x58b   :  { %11831 = vmatmul.mubr.bf16.gmra.mrb[12].mxu0 %v18777_v29  ;;  %12481 = vmatprep.subr.bf16.mxu1 %v13671_v36  ;;  %v13703_v36 = vcombine.high %v1464_v15, %v1468_v23 }
 0x58c   :  { %12467 = vmatmul.mubr.bf16.gmra.mrb[12].mxu1 %v18777_v29  ;;  %11873 = vmatprep.mubr.bf16.mxu0 %v18778_v3  ;;  %v13711_v29 = vcombine.high %v1472_v40, %v1476_v10 }
 0x58d   :  { %11846 = vmatpush1.bf16.msra.mxu0 %v13668_v34  ;;  %12509 = vmatprep.mubr.bf16.mxu1 %v18778_v3  ;;  %v13700_v34 = vcombine.low %v1463_v41, %v1467_v38  ;;  %v1484_v3 = vld [vmem:[#allocation8 + $0xa38] sm:$0xff] }
 0x58e   :  { %12482 = vmatpush1.bf16.msra.mxu1 %v13670_v39  ;;  %11847 = vmatprep.subr.bf16.mxu0 %v13677_v25  ;;  %v13702_v39 = vcombine.low %v1464_v15, %v1468_v23  ;;  %v13709_v25 = vcombine.high %v1471_v20, %v1475_v28  ;;  %v13718_v62 = vcombine.low %v1480_v43, %v1484_v3  ;;  %v1496_v41 = vld [vmem:[#allocation8 + $0xa98] sm:$0xff] }
 0x58f   :  { %12483 = vmatprep.subr.bf16.mxu1 %v13679_v18  ;;  %v1479_v18 = vld [vmem:[#allocation8 + $0xa10] sm:$0xff]  ;;  %v1500_v38 = vld [vmem:[#allocation8 + $0xab8] sm:$0xff]  ;;  %v13726_v23 = vcombine.low %v1488_v11, %v1492_v63 }
 0x590   :  { %v13716_v9 = vcombine.low %v1479_v18, %v1483_v48  ;;  %v1504_v20 = vld [vmem:[#allocation8 + $0xad8] sm:$0xff]  ;;  %v13734_v10 = vcombine.low %v1496_v41, %v1500_v38 }
 0x591   :  { %11848 = vmatpush1.bf16.msra.mxu0 %v13676_v7  ;;  %v13717_v7 = vcombine.high %v1479_v18, %v1483_v48  ;;  %v1508_v28 = vld [vmem:[#allocation8 + $0xaf8] sm:$0xff] }
 0x592   :  { %12484 = vmatpush1.bf16.msra.mxu1 %v13678_v54  ;;  %11849 = vmatprep.subr.bf16.mxu0 %v13685_v14  ;;  %v13719_v54 = vcombine.high %v1480_v43, %v1484_v3  ;;  %v1487_v14 = vld [vmem:[#allocation8 + $0xa50] sm:$0xff]  ;;  %v1512_v18 = vld [vmem:[#allocation8 + $0xb18] sm:$0xff]  ;;  %v13742_v3 = vcombine.low %v1504_v20, %v1508_v28 }
 0x593   :  { %12485 = vmatprep.subr.bf16.mxu1 %v13687_v46  ;;  %v1491_v46 = vld [vmem:[#allocation8 + $0xa70] sm:$0xff]  ;;  %v1516_v48 = vld [vmem:[#allocation8 + $0xb38] sm:$0xff] }
 0x594   :  { %v13724_v15 = vcombine.low %v1487_v14, %v1491_v46 }
 0x595   :  { %11850 = vmatpush1.bf16.msra.mxu0 %v13684_v8  ;;  %v13725_v8 = vcombine.high %v1487_v14, %v1491_v46  ;;  %v1520_v14 = vld [vmem:[#allocation8 + $0xb58] sm:$0xff] }
 0x596   :  { %12486 = vmatpush1.bf16.msra.mxu1 %v13686_v55  ;;  %11851 = vmatprep.subr.bf16.mxu0 %v13693_v35  ;;  %v13727_v55 = vcombine.high %v1488_v11, %v1492_v63  ;;  %v1495_v35 = vld [vmem:[#allocation8 + $0xa90] sm:$0xff]  ;;  %v1524_v46 = vld [vmem:[#allocation8 + $0xb78] sm:$0xff]  ;;  %v13750_v63 = vcombine.low %v1512_v18, %v1516_v48 }
 0x597   :  { %12487 = vmatprep.subr.bf16.mxu1 %v13695_v49  ;;  %v1499_v49 = vld [vmem:[#allocation8 + $0xab0] sm:$0xff] }
 0x598   :  { %v13732_v40 = vcombine.low %v1495_v35, %v1499_v49 }
 0x599   :  { %11852 = vmatpush1.bf16.msra.mxu0 %v13692_v22  ;;  %v13733_v22 = vcombine.high %v1495_v35, %v1499_v49  ;;  %v1528_v35 = vld [vmem:[#allocation8 + $0xb98] sm:$0xff] }
 0x59a   :  { %12488 = vmatpush1.bf16.msra.mxu1 %v13694_v42  ;;  %11853 = vmatprep.subr.bf16.mxu0 %v13701_v30  ;;  %v13735_v42 = vcombine.high %v1496_v41, %v1500_v38  ;;  %v1503_v30 = vld [vmem:[#allocation8 + $0xad0] sm:$0xff]  ;;  %v1532_v49 = vld [vmem:[#allocation8 + $0xbb8] sm:$0xff]  ;;  %v13758_v38 = vcombine.low %v1520_v14, %v1524_v46 }
 0x59b   :  { %12489 = vmatprep.subr.bf16.mxu1 %v13703_v36  ;;  %v1507_v36 = vld [vmem:[#allocation8 + $0xaf0] sm:$0xff] }
 0x59c   :  { %v13740_v43 = vcombine.low %v1503_v30, %v1507_v36 }
 0x59d   :  { %11854 = vmatpush1.bf16.msra.mxu0 %v13700_v34  ;;  %v13741_v34 = vcombine.high %v1503_v30, %v1507_v36  ;;  %v1536_v30 = vld [vmem:[#allocation8 + $0xbd8] sm:$0xff] }
 0x59e   :  { %12490 = vmatpush1.bf16.msra.mxu1 %v13702_v39  ;;  %11855 = vmatprep.subr.bf16.mxu0 %v13709_v25  ;;  %v13743_v39 = vcombine.high %v1504_v20, %v1508_v28  ;;  %v1511_v25 = vld [vmem:[#allocation8 + $0xb10] sm:$0xff]  ;;  %v1540_v36 = vld [vmem:[#allocation8 + $0xbf8] sm:$0xff]  ;;  %v13766_v28 = vcombine.low %v1528_v35, %v1532_v49 }
 0x59f   :  { %12491 = vmatprep.subr.bf16.mxu1 %v13711_v29  ;;  %v1515_v29 = vld [vmem:[#allocation8 + $0xb30] sm:$0xff] }
 0x5a0   :  { %v13748_v11 = vcombine.low %v1511_v25, %v1515_v29 }
 0x5a1   :  { %11856 = vmatpush1.bf16.msra.mxu0 %v13708_v45  ;;  %v13749_v45 = vcombine.high %v1511_v25, %v1515_v29  ;;  %v1544_v25 = vld [vmem:[#allocation8 + $0xc18] sm:$0xff] }
 0x5a2   :  { %12492 = vmatpush1.bf16.msra.mxu1 %v13710_v51  ;;  %11857 = vmatprep.subr.bf16.mxu0 %v13717_v7  ;;  %v13751_v51 = vcombine.high %v1512_v18, %v1516_v48  ;;  %v1519_v7 = vld [vmem:[#allocation8 + $0xb50] sm:$0xff]  ;;  %v1548_v29 = vld [vmem:[#allocation8 + $0xc38] sm:$0xff]  ;;  %v13774_v48 = vcombine.low %v1536_v30, %v1540_v36 }
 0x5a3   :  { %12493 = vmatprep.subr.bf16.mxu1 %v13719_v54  ;;  %v1523_v54 = vld [vmem:[#allocation8 + $0xb70] sm:$0xff] }
 0x5a4   :  { %v13756_v41 = vcombine.low %v1519_v7, %v1523_v54 }
 0x5a5   :  { %11858 = vmatpush1.bf16.msra.mxu0 %v13716_v9  ;;  %v13757_v9 = vcombine.high %v1519_v7, %v1523_v54  ;;  %v1552_v7 = vld [vmem:[#allocation8 + $0xc58] sm:$0xff] }
 0x5a6   :  { %12494 = vmatpush1.bf16.msra.mxu1 %v13718_v62  ;;  %11859 = vmatprep.subr.bf16.mxu0 %v13725_v8  ;;  %v13759_v62 = vcombine.high %v1520_v14, %v1524_v46  ;;  %v1527_v8 = vld [vmem:[#allocation8 + $0xb90] sm:$0xff]  ;;  %v1556_v54 = vld [vmem:[#allocation8 + $0xc78] sm:$0xff]  ;;  %v13782_v46 = vcombine.low %v1544_v25, %v1548_v29 }
 0x5a7   :  { %12495 = vmatprep.subr.bf16.mxu1 %v13727_v55  ;;  %v1531_v55 = vld [vmem:[#allocation8 + $0xbb0] sm:$0xff] }
 0x5a8   :  { %v13764_v20 = vcombine.low %v1527_v8, %v1531_v55 }
 0x5a9   :  { %11860 = vmatpush1.bf16.msra.mxu0 %v13724_v15  ;;  %v13765_v15 = vcombine.high %v1527_v8, %v1531_v55  ;;  %v1560_v8 = vld [vmem:[#allocation8 + $0xc98] sm:$0xff] }
 0x5aa   :  { %12496 = vmatpush1.bf16.msra.mxu1 %v13726_v23  ;;  %11861 = vmatprep.subr.bf16.mxu0 %v13733_v22  ;;  %v13767_v23 = vcombine.high %v1528_v35, %v1532_v49  ;;  %v1535_v22 = vld [vmem:[#allocation8 + $0xbd0] sm:$0xff]  ;;  %v1564_v55 = vld [vmem:[#allocation8 + $0xcb8] sm:$0xff]  ;;  %v13790_v49 = vcombine.low %v1552_v7, %v1556_v54 }
 0x5ab   :  { %12497 = vmatprep.subr.bf16.mxu1 %v13735_v42  ;;  %v1539_v42 = vld [vmem:[#allocation8 + $0xbf0] sm:$0xff] }
 0x5ac   :  { %v13772_v18 = vcombine.low %v1535_v22, %v1539_v42 }
 0x5ad   :  { %11862 = vmatpush1.bf16.msra.mxu0 %v13732_v40  ;;  %v13773_v40 = vcombine.high %v1535_v22, %v1539_v42  ;;  %v1568_v22 = vld [vmem:[#allocation8 + $0xcd8] sm:$0xff] }
 0x5ae   :  { %12498 = vmatpush1.bf16.msra.mxu1 %v13734_v10  ;;  %11863 = vmatprep.subr.bf16.mxu0 %v13741_v34  ;;  %v13775_v10 = vcombine.high %v1536_v30, %v1540_v36  ;;  %v1543_v34 = vld [vmem:[#allocation8 + $0xc10] sm:$0xff]  ;;  %v1572_v42 = vld [vmem:[#allocation8 + $0xcf8] sm:$0xff]  ;;  %v13798_v30 = vcombine.low %v1560_v8, %v1564_v55 }
 0x5af   :  { %12499 = vmatprep.subr.bf16.mxu1 %v13743_v39  ;;  %v1547_v39 = vld [vmem:[#allocation8 + $0xc30] sm:$0xff] }
 0x5b0   :  { %v13780_v14 = vcombine.low %v1543_v34, %v1547_v39 }
 0x5b1   :  { %11864 = vmatpush1.bf16.msra.mxu0 %v13740_v43  ;;  %v13781_v43 = vcombine.high %v1543_v34, %v1547_v39  ;;  %v1576_v34 = vld [vmem:[#allocation8 + $0xd18] sm:$0xff] }
 0x5b2   :  { %12500 = vmatpush1.bf16.msra.mxu1 %v13742_v3  ;;  %11865 = vmatprep.subr.bf16.mxu0 %v13749_v45  ;;  %v13783_v3 = vcombine.high %v1544_v25, %v1548_v29  ;;  %v1551_v45 = vld [vmem:[#allocation8 + $0xc50] sm:$0xff]  ;;  %v1580_v39 = vld [vmem:[#allocation8 + $0xd38] sm:$0xff]  ;;  %v13806_v29 = vcombine.low %v1568_v22, %v1572_v42 }
 0x5b3   :  { %12501 = vmatprep.subr.bf16.mxu1 %v13751_v51  ;;  %v1555_v51 = vld [vmem:[#allocation8 + $0xc70] sm:$0xff] }
 0x5b4   :  { %v13788_v35 = vcombine.low %v1551_v45, %v1555_v51 }
 0x5b5   :  { %11866 = vmatpush1.bf16.msra.mxu0 %v13748_v11  ;;  %v13789_v11 = vcombine.high %v1551_v45, %v1555_v51  ;;  %v1584_v45 = vld [vmem:[#allocation8 + $0xd58] sm:$0xff] }
 0x5b6   :  { %12502 = vmatpush1.bf16.msra.mxu1 %v13750_v63  ;;  %11867 = vmatprep.subr.bf16.mxu0 %v13757_v9  ;;  %v13791_v63 = vcombine.high %v1552_v7, %v1556_v54  ;;  %v1559_v9 = vld [vmem:[#allocation8 + $0xc90] sm:$0xff]  ;;  %v1588_v51 = vld [vmem:[#allocation8 + $0xd78] sm:$0xff]  ;;  %v13814_v54 = vcombine.low %v1576_v34, %v1580_v39 }
 0x5b7   :  { %12503 = vmatprep.subr.bf16.mxu1 %v13759_v62  ;;  %v1563_v62 = vld [vmem:[#allocation8 + $0xcb0] sm:$0xff] }
 0x5b9   :  { %11868 = vmatpush1.bf16.msra.mxu0 %v13756_v41  ;;  %v13797_v41 = vcombine.high %v1559_v9, %v1563_v62 }
 0x5ba   :  { %12504 = vmatpush1.bf16.msra.mxu1 %v13758_v38  ;;  %11869 = vmatprep.subr.bf16.mxu0 %v13765_v15  ;;  %v13799_v38 = vcombine.high %v1560_v8, %v1564_v55  ;;  %v1567_v15 = vld [vmem:[#allocation8 + $0xcd0] sm:$0xff]  ;;  %v1592_v55 = vld [vmem:[#allocation8 + $0xd98] sm:$0xff] }
 0x5bb   :  { %12505 = vmatprep.subr.bf16.mxu1 %v13767_v23  ;;  %v1571_v23 = vld [vmem:[#allocation8 + $0xcf0] sm:$0xff] }
 0x5bc   :  { %v13805_v36 = vcombine.high %v1567_v15, %v1571_v23  ;;  %v13804_v25 = vcombine.low %v1567_v15, %v1571_v23  ;;  %v13822_v15 = vcombine.low %v1584_v45, %v1588_v51 }
 0x5bd   :  { %11870 = vmatpush1.bf16.msra.mxu0 %v13764_v20  ;;  %v18779_v20 = vld [vmem:[#allocation28_spill] sm:$0xff] }
 0x5be   :  { %12506 = vmatpush1.bf16.msra.mxu1 %v13766_v28  ;;  %11871 = vmatprep.subr.bf16.mxu0 %v13773_v40  ;;  %v1575_v28 = vld [vmem:[#allocation8 + $0xd10] sm:$0xff] }
 0x5bf   :  { %12507 = vmatprep.subr.bf16.mxu1 %v13775_v10  ;;  %v1579_v40 = vld [vmem:[#allocation8 + $0xd30] sm:$0xff]  ;;  %v18780_v10 = vld [vmem:[#allocation76_spill] sm:$0xff] }
 0x5c0   :  { %v13812_v7 = vcombine.low %v1575_v28, %v1579_v40 }
 0x5c1   :  { %11872 = vmatpush1.bf16.msra.mxu0 %v13772_v18  ;;  %v13813_v18 = vcombine.high %v1575_v28, %v1579_v40  ;;  %v1604_v28 = vld [vmem:[#allocation8 + $0xdf8] sm:$0xff] }
 0x5c2   :  { %12508 = vmatpush1.bf16.msra.mxu1 %v13774_v48  ;;  %11894 = vmatprep.subr.bf16.mxu0 %v13781_v43  ;;  %v13815_v48 = vcombine.high %v1576_v34, %v1580_v39  ;;  %v1583_v43 = vld [vmem:[#allocation8 + $0xd50] sm:$0xff] }
 0x5c3   :  { %12530 = vmatprep.subr.bf16.mxu1 %v13783_v3  ;;  %v1587_v3 = vld [vmem:[#allocation8 + $0xd70] sm:$0xff] }
 0x5c4   :  { %11874 = vmatmul.mubr.bf16.vlgmr.msra.gmra.mrb[8].mxu0 %v16927_v24 }
 0x5c5   :  { %12510 = vmatmul.mubr.bf16.vlgmr.msra.gmra.mrb[8].mxu1 %v16927_v24  ;;  %11883 = vmatprep.mubr.bf16.mxu0 %v17027_v12  ;;  %v13796_v24 = vcombine.low %v1559_v9, %v1563_v62  ;;  %v1595_v9 = vld [vmem:[#allocation8 + $0xdb0] sm:$0xff] }
 0x5c6   :  { %11895 = vmatpush1.bf16.msra.mxu0 %v13780_v14  ;;  %12519 = vmatprep.mubr.bf16.mxu1 %v17027_v12  ;;  %v13807_v12 = vcombine.high %v1568_v22, %v1572_v42  ;;  %v13821_v14 = vcombine.high %v1583_v43, %v1587_v3 }
 0x5c7   :  { %12531 = vmatpush1.bf16.msra.mxu1 %v13782_v46  ;;  %11896 = vmatprep.subr.bf16.mxu0 %v13789_v11  ;;  %v13823_v11 = vcombine.high %v1584_v45, %v1588_v51  ;;  %v1612_v45 = vld [vmem:[#allocation8 + $0xe38] sm:$0xff] }
 0x5c8   :  { %12532 = vmatprep.subr.bf16.mxu1 %v13791_v63  ;;  %v1591_v63 = vld [vmem:[#allocation8 + $0xd90] sm:$0xff] }
 0x5c9   :  { %v13829_v42 = vcombine.high %v1591_v63, %v1595_v9  ;;  %v13828_v40 = vcombine.low %v1591_v63, %v1595_v9 }
 0x5ca   :  { %11897 = vmatpush1.bf16.msra.mxu0 %v13788_v35  ;;  %v1596_v35 = vld [vmem:[#allocation8 + $0xdb8] sm:$0xff] }
 0x5cb   :  { %12533 = vmatpush1.bf16.msra.mxu1 %v13790_v49  ;;  %11898 = vmatprep.subr.bf16.mxu0 %v13797_v41  ;;  %v13820_v41 = vcombine.low %v1583_v43, %v1587_v3  ;;  %v1608_v3 = vld [vmem:[#allocation8 + $0xe18] sm:$0xff] }
 0x5cc   :  { %11884 = vmatmul.mubr.bf16.gmra.mrb[12].mxu0 %v18779_v20  ;;  %12534 = vmatprep.subr.bf16.mxu1 %v13799_v38 }
 0x5cd   :  { %12520 = vmatmul.mubr.bf16.gmra.mrb[12].mxu1 %v18779_v20  ;;  %11926 = vmatprep.mubr.bf16.mxu0 %v18780_v10  ;;  %v1603_v20 = vld [vmem:[#allocation8 + $0xdf0] sm:$0xff] }
 0x5ce   :  { %11899 = vmatpush1.bf16.msra.mxu0 %v13796_v24  ;;  %12562 = vmatprep.mubr.bf16.mxu1 %v18780_v10  ;;  %v13830_v10 = vcombine.low %v1592_v55, %v1596_v35 }
 0x5cf   :  { %12535 = vmatpush1.bf16.msra.mxu1 %v13798_v30  ;;  %11900 = vmatprep.subr.bf16.mxu0 %v13805_v36  ;;  %v13831_v30 = vcombine.high %v1592_v55, %v1596_v35  ;;  %v1599_v36 = vld [vmem:[#allocation8 + $0xdd0] sm:$0xff]  ;;  %v13847_v35 = vcombine.high %v1608_v3, %v1612_v45 }
 0x5d0   :  { %12536 = vmatprep.subr.bf16.mxu1 %v13807_v12  ;;  %v1600_v12 = vld [vmem:[#allocation8 + $0xdd8] sm:$0xff]  ;;  %v13837_v34 = vcombine.high %v1599_v36, %v1603_v20 }
 0x5d2   :  { %11901 = vmatpush1.bf16.msra.mxu0 %v13804_v25  ;;  %v13839_v25 = vcombine.high %v1600_v12, %v1604_v28 }
 0x5d3   :  { %12537 = vmatpush1.bf16.msra.mxu1 %v13806_v29  ;;  %11902 = vmatprep.subr.bf16.mxu0 %v13813_v18  ;;  %v1607_v29 = vld [vmem:[#allocation8 + $0xe10] sm:$0xff] }
 0x5d4   :  { %12538 = vmatprep.subr.bf16.mxu1 %v13815_v48  ;;  %v17715_v46 = vpop.f32.mrb[0].mxu0  ;;  %v1611_v18 = vld [vmem:[#allocation8 + $0xe30] sm:$0xff] }
 0x5d5   :  { %v17717_v62 = vpop.f32.mrb[0].mxu1  ;;  %v17719_v8 = vpop.f32.mrb[1].mxu0  ;;  %v13845_v9 = vcombine.high %v1607_v29, %v1611_v18 }
 0x5d6   :  { %11903 = vmatpush1.bf16.msra.mxu0 %v13812_v7  ;;  %v17721_v49 = vpop.f32.mrb[1].mxu1  ;;  %v17723_v38 = vpop.f32.mrb[2].mxu0  ;;  %v13836_v7 = vcombine.low %v1599_v36, %v1603_v20  ;;  %v13844_v36 = vcombine.low %v1607_v29, %v1611_v18  ;;  %v13846_v20 = vcombine.low %v1608_v3, %v1612_v45  ;;  %v1635_v29 = vld [vmem:[#allocation8 + $0xef0] sm:$0xff]  ;;  %v1632_v18 = vld [vmem:[#allocation8 + $0xed8] sm:$0xff] }
 0x5d7   :  { %12539 = vmatpush1.bf16.msra.mxu1 %v13814_v54  ;;  %11904 = vmatprep.subr.bf16.mxu0 %v13821_v14  ;;  %v17725_v23 = vpop.f32.mrb[2].mxu1  ;;  %v17727_v22 = vpop.f32.mrb[3].mxu0  ;;  %v13838_v14 = vcombine.low %v1600_v12, %v1604_v28  ;;  %v1623_v28 = vld [vmem:[#allocation8 + $0xe90] sm:$0xff] }
 0x5d8   :  { %12540 = vmatprep.subr.bf16.mxu1 %v13823_v11  ;;  %v17729_v24 = vpop.f32.mrb[3].mxu1 }
 0x5da   :  { %11905 = vmatpush1.bf16.msra.mxu0 %v13820_v41  ;;  %v1615_v41 = vld [vmem:[#allocation8 + $0xe50] sm:$0xff] }
 0x5db   :  { %12541 = vmatpush1.bf16.msra.mxu1 %v13822_v15  ;;  %11906 = vmatprep.subr.bf16.mxu0 %v13829_v42  ;;  %v1619_v15 = vld [vmem:[#allocation8 + $0xe70] sm:$0xff]  ;;  %v1616_v42 = vld [vmem:[#allocation8 + $0xe58] sm:$0xff] }
 0x5dc   :  { %12542 = vmatprep.subr.bf16.mxu1 %v13831_v30  ;;  %v17731_v39 = vpop.f32.mrb[4].mxu0  ;;  %v1620_v30 = vld [vmem:[#allocation8 + $0xe78] sm:$0xff] }
 0x5dd   :  { %v17733_v48 = vpop.f32.mrb[4].mxu1  ;;  %v17735_v43 = vpop.f32.mrb[5].mxu0  ;;  %v13855_v12 = vcombine.high %v1616_v42, %v1620_v30 }
 0x5de   :  { %18781 = vst [vmem:[#allocation31_spill] sm:$0xff] %v17733_v48  ;;  %11907 = vmatpush1.bf16.msra.mxu0 %v13828_v40  ;;  %v17737_v51 = vpop.f32.mrb[5].mxu1  ;;  %v17739_v54 = vpop.f32.mrb[6].mxu0  ;;  %v13853_v40 = vcombine.high %v1615_v41, %v1619_v15 }
 0x5df   :  { %18782 = vst [vmem:[#allocation92_spill] sm:$0xff] %v17737_v51  ;;  %12543 = vmatpush1.bf16.msra.mxu1 %v13830_v10  ;;  %11908 = vmatprep.subr.bf16.mxu0 %v13837_v34  ;;  %v17741_v11 = vpop.f32.mrb[6].mxu1  ;;  %v17743_v63 = vpop.f32.mrb[7].mxu0  ;;  %v1627_v10 = vld [vmem:[#allocation8 + $0xeb0] sm:$0xff]  ;;  %v1624_v34 = vld [vmem:[#allocation8 + $0xe98] sm:$0xff] }
 0x5e0   :  { %18783 = vst [vmem:[#allocation96_spill] sm:$0xff] %v17741_v11  ;;  %12544 = vmatprep.subr.bf16.mxu1 %v13839_v25  ;;  %v17745_v55 = vpop.f32.mrb[7].mxu1  ;;  %v1628_v51 = vld [vmem:[#allocation8 + $0xeb8] sm:$0xff]  ;;  %v13852_v25 = vcombine.low %v1615_v41, %v1619_v15  ;;  %v13861_v11 = vcombine.high %v1623_v28, %v1627_v10  ;;  %v13860_v3 = vcombine.low %v1623_v28, %v1627_v10  ;;  %v1643_v41 = vld [vmem:[#allocation8 + $0xf30] sm:$0xff] }
 0x5e1   :  { %18784 = vst [vmem:[#allocation100_spill] sm:$0xff] %v17745_v55  ;;  %v13854_v55 = vcombine.low %v1616_v42, %v1620_v30  ;;  %v13863_v48 = vcombine.high %v1624_v34, %v1628_v51  ;;  %v13862_v45 = vcombine.low %v1624_v34, %v1628_v51  ;;  %v1640_v15 = vld [vmem:[#allocation8 + $0xf18] sm:$0xff]  ;;  %v1651_v28 = vld [vmem:[#allocation8 + $0xf70] sm:$0xff] }
 0x5e2   :  { %11909 = vmatpush1.bf16.msra.mxu0 %v13836_v7  ;;  %v1631_v7 = vld [vmem:[#allocation8 + $0xed0] sm:$0xff] }
 0x5e3   :  { %12545 = vmatpush1.bf16.msra.mxu1 %v13838_v14  ;;  %11910 = vmatprep.subr.bf16.mxu0 %v13845_v9  ;;  %v1636_v14 = vld [vmem:[#allocation8 + $0xef8] sm:$0xff]  ;;  %v13869_v9 = vcombine.high %v1631_v7, %v1635_v29  ;;  %v13868_v42 = vcombine.low %v1631_v7, %v1635_v29  ;;  %v1659_v7 = vld [vmem:[#allocation8 + $0xfb0] sm:$0xff] }
 0x5e4   :  { %12546 = vmatprep.subr.bf16.mxu1 %v13847_v35  ;;  %v13871_v35 = vcombine.high %v1632_v18, %v1636_v14  ;;  %v13870_v30 = vcombine.low %v1632_v18, %v1636_v14  ;;  %v1656_v29 = vld [vmem:[#allocation8 + $0xf98] sm:$0xff] }
 0x5e6   :  { %11911 = vmatpush1.bf16.msra.mxu0 %v13844_v36  ;;  %v1639_v36 = vld [vmem:[#allocation8 + $0xf10] sm:$0xff] }
 0x5e7   :  { %12547 = vmatpush1.bf16.msra.mxu1 %v13846_v20  ;;  %11912 = vmatprep.subr.bf16.mxu0 %v13853_v40  ;;  %v1644_v20 = vld [vmem:[#allocation8 + $0xf38] sm:$0xff]  ;;  %v13877_v40 = vcombine.high %v1639_v36, %v1643_v41  ;;  %v13876_v51 = vcombine.low %v1639_v36, %v1643_v41  ;;  %v1667_v36 = vld [vmem:[#allocation8 + $0xff0] sm:$0xff] }
 0x5e8   :  { %12548 = vmatprep.subr.bf16.mxu1 %v13855_v12  ;;  %v13879_v12 = vcombine.high %v1640_v15, %v1644_v20  ;;  %v1664_v41 = vld [vmem:[#allocation8 + $0xfd8] sm:$0xff] }
 0x5ea   :  { %11913 = vmatpush1.bf16.msra.mxu0 %v13852_v25  ;;  %v1647_v25 = vld [vmem:[#allocation8 + $0xf50] sm:$0xff] }
 0x5eb   :  { %12549 = vmatpush1.bf16.msra.mxu1 %v13854_v55  ;;  %11914 = vmatprep.subr.bf16.mxu0 %v13861_v11  ;;  %v1648_v55 = vld [vmem:[#allocation8 + $0xf58] sm:$0xff]  ;;  %v13885_v10 = vcombine.high %v1647_v25, %v1651_v28  ;;  %v13884_v18 = vcombine.low %v1647_v25, %v1651_v28  ;;  %v1675_v25 = vld [vmem:[#allocation8 + $0x1030] sm:$0xff] }
 0x5ec   :  { %12550 = vmatprep.subr.bf16.mxu1 %v13863_v48  ;;  %v1652_v11 = vld [vmem:[#allocation8 + $0xf78] sm:$0xff]  ;;  %v13878_v48 = vcombine.low %v1640_v15, %v1644_v20 }
 0x5ed   :  { %v13887_v34 = vcombine.high %v1648_v55, %v1652_v11  ;;  %v13886_v14 = vcombine.low %v1648_v55, %v1652_v11  ;;  %v1672_v28 = vld [vmem:[#allocation8 + $0x1018] sm:$0xff] }
 0x5ee   :  { %11915 = vmatpush1.bf16.msra.mxu0 %v13860_v3  ;;  %v1655_v3 = vld [vmem:[#allocation8 + $0xf90] sm:$0xff] }
 0x5ef   :  { %12551 = vmatpush1.bf16.msra.mxu1 %v13862_v45  ;;  %11916 = vmatprep.subr.bf16.mxu0 %v13869_v9  ;;  %v1660_v45 = vld [vmem:[#allocation8 + $0xfb8] sm:$0xff]  ;;  %v13893_v9 = vcombine.high %v1655_v3, %v1659_v7  ;;  %v13892_v15 = vcombine.low %v1655_v3, %v1659_v7  ;;  %v1683_v3 = vld [vmem:[#allocation8 + $0x1070] sm:$0xff] }
 0x5f0   :  { %12552 = vmatprep.subr.bf16.mxu1 %v13871_v35  ;;  %v13895_v35 = vcombine.high %v1656_v29, %v1660_v45  ;;  %v13894_v20 = vcombine.low %v1656_v29, %v1660_v45  ;;  %v1680_v7 = vld [vmem:[#allocation8 + $0x1058] sm:$0xff] }
 0x5f1   :  { %v1684_v29 = vld [vmem:[#allocation8 + $0x1078] sm:$0xff] }
 0x5f2   :  { %11917 = vmatpush1.bf16.msra.mxu0 %v13868_v42  ;;  %v1663_v42 = vld [vmem:[#allocation8 + $0xfd0] sm:$0xff] }
 0x5f3   :  { %12553 = vmatpush1.bf16.msra.mxu1 %v13870_v30  ;;  %11918 = vmatprep.subr.bf16.mxu0 %v13877_v40  ;;  %v1668_v30 = vld [vmem:[#allocation8 + $0xff8] sm:$0xff]  ;;  %v13901_v40 = vcombine.high %v1663_v42, %v1667_v36  ;;  %v13900_v55 = vcombine.low %v1663_v42, %v1667_v36  ;;  %v13919_v42 = vcombine.high %v1680_v7, %v1684_v29  ;;  %v1687_v36 = vld [vmem:[#allocation8 + $0x1090] sm:$0xff] }
 0x5f4   :  { %12554 = vmatprep.subr.bf16.mxu1 %v13879_v12  ;;  %v13903_v12 = vcombine.high %v1664_v41, %v1668_v30  ;;  %v13902_v11 = vcombine.low %v1664_v41, %v1668_v30  ;;  %v18786_v41 = vld [vmem:[#allocation32_spill] sm:$0xff] }
 0x5f5   :  { %v1688_v30 = vld [vmem:[#allocation8 + $0x1098] sm:$0xff] }
 0x5f6   :  { %11919 = vmatpush1.bf16.msra.mxu0 %v13876_v51  ;;  %v1671_v51 = vld [vmem:[#allocation8 + $0x1010] sm:$0xff] }
 0x5f7   :  { %12555 = vmatpush1.bf16.msra.mxu1 %v13878_v48  ;;  %11920 = vmatprep.subr.bf16.mxu0 %v13885_v10  ;;  %v1676_v48 = vld [vmem:[#allocation8 + $0x1038] sm:$0xff]  ;;  %v13909_v10 = vcombine.high %v1671_v51, %v1675_v25  ;;  %v13908_v45 = vcombine.low %v1671_v51, %v1675_v25 }
 0x5f8   :  { %12556 = vmatprep.subr.bf16.mxu1 %v13887_v34  ;;  %v13911_v34 = vcombine.high %v1672_v28, %v1676_v48 }
 0x5fa   :  { %11921 = vmatpush1.bf16.msra.mxu0 %v13884_v18  ;;  %v1679_v18 = vld [vmem:[#allocation8 + $0x1050] sm:$0xff] }
 0x5fb   :  { %12557 = vmatpush1.bf16.msra.mxu1 %v13886_v14  ;;  %11922 = vmatprep.subr.bf16.mxu0 %v13893_v9  ;;  %v13910_v14 = vcombine.low %v1672_v28, %v1676_v48  ;;  %v13917_v9 = vcombine.high %v1679_v18, %v1683_v3  ;;  %v1695_v28 = vld [vmem:[#allocation8 + $0x10d0] sm:$0xff] }
 0x5fc   :  { %12558 = vmatprep.subr.bf16.mxu1 %v13895_v35  ;;  %v18785_v35 = vld [vmem:[#allocation95_spill] sm:$0xff] }
 0x5fd   :  { %v1699_v48 = vld [vmem:[#allocation8 + $0x10f0] sm:$0xff] }
 0x5fe   :  { %11923 = vmatpush1.bf16.msra.mxu0 %v13892_v15  ;;  %v1691_v15 = vld [vmem:[#allocation8 + $0x10b0] sm:$0xff] }
 0x5ff   :  { %12559 = vmatpush1.bf16.msra.mxu1 %v13894_v20  ;;  %11924 = vmatprep.subr.bf16.mxu0 %v13901_v40  ;;  %v1692_v20 = vld [vmem:[#allocation8 + $0x10b8] sm:$0xff]  ;;  %v13916_v40 = vcombine.low %v1679_v18, %v1683_v3  ;;  %v13925_v51 = vcombine.high %v1687_v36, %v1691_v15  ;;  %v1703_v3 = vld [vmem:[#allocation8 + $0x1110] sm:$0xff] }
 0x600   :  { %12560 = vmatprep.subr.bf16.mxu1 %v13903_v12  ;;  %v13918_v12 = vcombine.low %v1680_v7, %v1684_v29  ;;  %v13927_v25 = vcombine.high %v1688_v30, %v1692_v20  ;;  %v18788_v7 = vld [vmem:[#allocation56_spill] sm:$0xff] }
 0x601   :  { %v1704_v29 = vld [vmem:[#allocation8 + $0x1118] sm:$0xff] }
 0x602   :  { %11925 = vmatpush1.bf16.msra.mxu0 %v13900_v55  ;;  %v1696_v55 = vld [vmem:[#allocation8 + $0x10d8] sm:$0xff] }
 0x603   :  { %12561 = vmatpush1.bf16.msra.mxu1 %v13902_v11  ;;  %11947 = vmatprep.subr.bf16.mxu0 %v13909_v10  ;;  %v1700_v11 = vld [vmem:[#allocation8 + $0x10f8] sm:$0xff]  ;;  %v13924_v10 = vcombine.low %v1687_v36, %v1691_v15 }
 0x604   :  { %12583 = vmatprep.subr.bf16.mxu1 %v13911_v34  ;;  %v13926_v34 = vcombine.low %v1688_v30, %v1692_v20  ;;  %v13935_v18 = vcombine.high %v1696_v55, %v1700_v11  ;;  %v13934_v36 = vcombine.low %v1696_v55, %v1700_v11  ;;  %v1711_v30 = vld [vmem:[#allocation8 + $0x1150] sm:$0xff] }
 0x605   :  { %11927 = vmatmul.mubr.bf16.vlgmr.msra.gmra.mrb[8].mxu0 %v18785_v35  ;;  %v1715_v20 = vld [vmem:[#allocation8 + $0x1170] sm:$0xff] }
 0x606   :  { %12563 = vmatmul.mubr.bf16.vlgmr.msra.gmra.mrb[8].mxu1 %v18785_v35  ;;  %11936 = vmatprep.mubr.bf16.mxu0 %v18786_v41  ;;  %v13933_v35 = vcombine.high %v1695_v28, %v1699_v48  ;;  %v13948_v55 = vcombine.low %v1711_v30, %v1715_v20 }
 0x607   :  { %11948 = vmatpush1.bf16.msra.mxu0 %v13908_v45  ;;  %12572 = vmatprep.mubr.bf16.mxu1 %v18786_v41  ;;  %v18787_v45 = vld [vmem:[#allocation44_spill] sm:$0xff] }
 0x608   :  { %12584 = vmatpush1.bf16.msra.mxu1 %v13910_v14  ;;  %11949 = vmatprep.subr.bf16.mxu0 %v13917_v9  ;;  %v1707_v14 = vld [vmem:[#allocation8 + $0x1130] sm:$0xff]  ;;  %v1708_v9 = vld [vmem:[#allocation8 + $0x1138] sm:$0xff] }
 0x609   :  { %12585 = vmatprep.subr.bf16.mxu1 %v13919_v42  ;;  %v13932_v42 = vcombine.low %v1695_v28, %v1699_v48  ;;  %v13941_v15 = vcombine.high %v1703_v3, %v1707_v14  ;;  %v13943_v41 = vcombine.high %v1704_v29, %v1708_v9  ;;  %v1723_v28 = vld [vmem:[#allocation8 + $0x11b0] sm:$0xff]  ;;  %v1720_v48 = vld [vmem:[#allocation8 + $0x1198] sm:$0xff] }
 0x60b   :  { %11950 = vmatpush1.bf16.msra.mxu0 %v13916_v40  ;;  %v1712_v40 = vld [vmem:[#allocation8 + $0x1158] sm:$0xff] }
 0x60c   :  { %12586 = vmatpush1.bf16.msra.mxu1 %v13918_v12  ;;  %11951 = vmatprep.subr.bf16.mxu0 %v13925_v51  ;;  %v1716_v12 = vld [vmem:[#allocation8 + $0x1178] sm:$0xff]  ;;  %v13940_v51 = vcombine.low %v1703_v3, %v1707_v14  ;;  %v1731_v3 = vld [vmem:[#allocation8 + $0x11f0] sm:$0xff] }
 0x60d   :  { %11937 = vmatmul.mubr.bf16.gmra.mrb[12].mxu0 %v18787_v45  ;;  %12587 = vmatprep.subr.bf16.mxu1 %v13927_v25  ;;  %v13942_v25 = vcombine.low %v1704_v29, %v1708_v9  ;;  %v13950_v11 = vcombine.low %v1712_v40, %v1716_v12  ;;  %v1728_v14 = vld [vmem:[#allocation8 + $0x11d8] sm:$0xff] }
 0x60e   :  { %12573 = vmatmul.mubr.bf16.gmra.mrb[12].mxu1 %v18787_v45  ;;  %11979 = vmatprep.mubr.bf16.mxu0 %v18788_v7  ;;  %v13949_v45 = vcombine.high %v1711_v30, %v1715_v20  ;;  %v1739_v30 = vld [vmem:[#allocation8 + $0x1230] sm:$0xff]  ;;  %v1736_v20 = vld [vmem:[#allocation8 + $0x1218] sm:$0xff] }
 0x60f   :  { %11952 = vmatpush1.bf16.msra.mxu0 %v13924_v10  ;;  %12615 = vmatprep.mubr.bf16.mxu1 %v18788_v7  ;;  %v13951_v10 = vcombine.high %v1712_v40, %v1716_v12  ;;  %v1719_v7 = vld [vmem:[#allocation8 + $0x1190] sm:$0xff] }
 0x610   :  { %12588 = vmatpush1.bf16.msra.mxu1 %v13926_v34  ;;  %11953 = vmatprep.subr.bf16.mxu0 %v13933_v35  ;;  %v1724_v34 = vld [vmem:[#allocation8 + $0x11b8] sm:$0xff]  ;;  %v13957_v35 = vcombine.high %v1719_v7, %v1723_v28  ;;  %v13956_v29 = vcombine.low %v1719_v7, %v1723_v28  ;;  %v1747_v7 = vld [vmem:[#allocation8 + $0x1270] sm:$0xff] }
 0x611   :  { %12589 = vmatprep.subr.bf16.mxu1 %v13935_v18  ;;  %v13959_v18 = vcombine.high %v1720_v48, %v1724_v34  ;;  %v13958_v9 = vcombine.low %v1720_v48, %v1724_v34  ;;  %v1744_v28 = vld [vmem:[#allocation8 + $0x1258] sm:$0xff] }
 0x613   :  { %11954 = vmatpush1.bf16.msra.mxu0 %v13932_v42  ;;  %v1727_v42 = vld [vmem:[#allocation8 + $0x11d0] sm:$0xff] }
 0x614   :  { %12590 = vmatpush1.bf16.msra.mxu1 %v13934_v36  ;;  %11955 = vmatprep.subr.bf16.mxu0 %v13941_v15  ;;  %v1732_v36 = vld [vmem:[#allocation8 + $0x11f8] sm:$0xff]  ;;  %v13965_v15 = vcombine.high %v1727_v42, %v1731_v3  ;;  %v13964_v40 = vcombine.low %v1727_v42, %v1731_v3  ;;  %v1755_v42 = vld [vmem:[#allocation8 + $0x12b0] sm:$0xff] }
 0x615   :  { %12591 = vmatprep.subr.bf16.mxu1 %v13943_v41  ;;  %v13967_v41 = vcombine.high %v1728_v14, %v1732_v36  ;;  %v13966_v12 = vcombine.low %v1728_v14, %v1732_v36  ;;  %v1752_v3 = vld [vmem:[#allocation8 + $0x1298] sm:$0xff] }
 0x617   :  { %11956 = vmatpush1.bf16.msra.mxu0 %v13940_v51  ;;  %v1735_v51 = vld [vmem:[#allocation8 + $0x1210] sm:$0xff] }
 0x618   :  { %12592 = vmatpush1.bf16.msra.mxu1 %v13942_v25  ;;  %11957 = vmatprep.subr.bf16.mxu0 %v13949_v45  ;;  %v1740_v25 = vld [vmem:[#allocation8 + $0x1238] sm:$0xff]  ;;  %v13973_v45 = vcombine.high %v1735_v51, %v1739_v30  ;;  %v13972_v48 = vcombine.low %v1735_v51, %v1739_v30  ;;  %v1763_v51 = vld [vmem:[#allocation8 + $0x12f0] sm:$0xff] }
 0x619   :  { %12593 = vmatprep.subr.bf16.mxu1 %v13951_v10  ;;  %v13975_v10 = vcombine.high %v1736_v20, %v1740_v25  ;;  %v13974_v34 = vcombine.low %v1736_v20, %v1740_v25  ;;  %v1760_v30 = vld [vmem:[#allocation8 + $0x12d8] sm:$0xff] }
 0x61b   :  { %11958 = vmatpush1.bf16.msra.mxu0 %v13948_v55  ;;  %v1743_v55 = vld [vmem:[#allocation8 + $0x1250] sm:$0xff] }
 0x61c   :  { %12594 = vmatpush1.bf16.msra.mxu1 %v13950_v11  ;;  %11959 = vmatprep.subr.bf16.mxu0 %v13957_v35  ;;  %v1748_v11 = vld [vmem:[#allocation8 + $0x1278] sm:$0xff]  ;;  %v13981_v35 = vcombine.high %v1743_v55, %v1747_v7  ;;  %v13980_v14 = vcombine.low %v1743_v55, %v1747_v7  ;;  %v1771_v55 = vld [vmem:[#allocation8 + $0x1330] sm:$0xff] }
 0x61d   :  { %12595 = vmatprep.subr.bf16.mxu1 %v13959_v18  ;;  %v13983_v18 = vcombine.high %v1744_v28, %v1748_v11  ;;  %v13982_v36 = vcombine.low %v1744_v28, %v1748_v11  ;;  %v1768_v7 = vld [vmem:[#allocation8 + $0x1318] sm:$0xff] }
 0x61f   :  { %11960 = vmatpush1.bf16.msra.mxu0 %v13956_v29  ;;  %v1751_v29 = vld [vmem:[#allocation8 + $0x1290] sm:$0xff] }
 0x620   :  { %12596 = vmatpush1.bf16.msra.mxu1 %v13958_v9  ;;  %11961 = vmatprep.subr.bf16.mxu0 %v13965_v15  ;;  %v1756_v9 = vld [vmem:[#allocation8 + $0x12b8] sm:$0xff]  ;;  %v13989_v15 = vcombine.high %v1751_v29, %v1755_v42  ;;  %v13988_v20 = vcombine.low %v1751_v29, %v1755_v42  ;;  %v1779_v29 = vld [vmem:[#allocation8 + $0x1370] sm:$0xff] }
 0x621   :  { %12597 = vmatprep.subr.bf16.mxu1 %v13967_v41  ;;  %v13991_v41 = vcombine.high %v1752_v3, %v1756_v9  ;;  %v13990_v25 = vcombine.low %v1752_v3, %v1756_v9  ;;  %v1776_v42 = vld [vmem:[#allocation8 + $0x1358] sm:$0xff] }
 0x623   :  { %11962 = vmatpush1.bf16.msra.mxu0 %v13964_v40  ;;  %v1759_v40 = vld [vmem:[#allocation8 + $0x12d0] sm:$0xff] }
 0x624   :  { %12598 = vmatpush1.bf16.msra.mxu1 %v13966_v12  ;;  %11963 = vmatprep.subr.bf16.mxu0 %v13973_v45  ;;  %v1764_v12 = vld [vmem:[#allocation8 + $0x12f8] sm:$0xff]  ;;  %v13997_v45 = vcombine.high %v1759_v40, %v1763_v51  ;;  %v13996_v28 = vcombine.low %v1759_v40, %v1763_v51  ;;  %v1787_v40 = vld [vmem:[#allocation8 + $0x13b0] sm:$0xff] }
 0x625   :  { %12599 = vmatprep.subr.bf16.mxu1 %v13975_v10  ;;  %v13999_v10 = vcombine.high %v1760_v30, %v1764_v12  ;;  %v13998_v11 = vcombine.low %v1760_v30, %v1764_v12  ;;  %v1784_v51 = vld [vmem:[#allocation8 + $0x1398] sm:$0xff] }
 0x627   :  { %11964 = vmatpush1.bf16.msra.mxu0 %v13972_v48  ;;  %v1767_v48 = vld [vmem:[#allocation8 + $0x1310] sm:$0xff] }
 0x628   :  { %12600 = vmatpush1.bf16.msra.mxu1 %v13974_v34  ;;  %11965 = vmatprep.subr.bf16.mxu0 %v13981_v35  ;;  %v1772_v34 = vld [vmem:[#allocation8 + $0x1338] sm:$0xff]  ;;  %v14005_v35 = vcombine.high %v1767_v48, %v1771_v55  ;;  %v14004_v3 = vcombine.low %v1767_v48, %v1771_v55  ;;  %v1795_v48 = vld [vmem:[#allocation8 + $0x13f0] sm:$0xff] }
 0x629   :  { %12601 = vmatprep.subr.bf16.mxu1 %v13983_v18  ;;  %v14007_v18 = vcombine.high %v1768_v7, %v1772_v34  ;;  %v14006_v9 = vcombine.low %v1768_v7, %v1772_v34  ;;  %v1792_v55 = vld [vmem:[#allocation8 + $0x13d8] sm:$0xff] }
 0x62b   :  { %11966 = vmatpush1.bf16.msra.mxu0 %v13980_v14  ;;  %v1775_v14 = vld [vmem:[#allocation8 + $0x1350] sm:$0xff] }
 0x62c   :  { %12602 = vmatpush1.bf16.msra.mxu1 %v13982_v36  ;;  %11967 = vmatprep.subr.bf16.mxu0 %v13989_v15  ;;  %v1780_v36 = vld [vmem:[#allocation8 + $0x1378] sm:$0xff]  ;;  %v14013_v15 = vcombine.high %v1775_v14, %v1779_v29  ;;  %v14012_v30 = vcombine.low %v1775_v14, %v1779_v29  ;;  %v1803_v14 = vld [vmem:[#allocation8 + $0x1430] sm:$0xff] }
 0x62d   :  { %12603 = vmatprep.subr.bf16.mxu1 %v13991_v41  ;;  %v14015_v41 = vcombine.high %v1776_v42, %v1780_v36  ;;  %v14014_v12 = vcombine.low %v1776_v42, %v1780_v36  ;;  %v1800_v29 = vld [vmem:[#allocation8 + $0x1418] sm:$0xff] }
 0x62f   :  { %11968 = vmatpush1.bf16.msra.mxu0 %v13988_v20  ;;  %v1783_v20 = vld [vmem:[#allocation8 + $0x1390] sm:$0xff] }
 0x630   :  { %12604 = vmatpush1.bf16.msra.mxu1 %v13990_v25  ;;  %11969 = vmatprep.subr.bf16.mxu0 %v13997_v45  ;;  %v1788_v25 = vld [vmem:[#allocation8 + $0x13b8] sm:$0xff]  ;;  %v14021_v45 = vcombine.high %v1783_v20, %v1787_v40  ;;  %v14020_v7 = vcombine.low %v1783_v20, %v1787_v40  ;;  %v1811_v20 = vld [vmem:[#allocation8 + $0x1470] sm:$0xff] }
 0x631   :  { %12605 = vmatprep.subr.bf16.mxu1 %v13999_v10  ;;  %v14023_v10 = vcombine.high %v1784_v51, %v1788_v25  ;;  %v14022_v34 = vcombine.low %v1784_v51, %v1788_v25  ;;  %v1808_v40 = vld [vmem:[#allocation8 + $0x1458] sm:$0xff] }
 0x632   :  { %v1812_v51 = vld [vmem:[#allocation8 + $0x1478] sm:$0xff] }
 0x633   :  { %11970 = vmatpush1.bf16.msra.mxu0 %v13996_v28  ;;  %v1791_v28 = vld [vmem:[#allocation8 + $0x13d0] sm:$0xff] }
 0x634   :  { %12606 = vmatpush1.bf16.msra.mxu1 %v13998_v11  ;;  %11971 = vmatprep.subr.bf16.mxu0 %v14005_v35  ;;  %v1796_v11 = vld [vmem:[#allocation8 + $0x13f8] sm:$0xff]  ;;  %v14029_v35 = vcombine.high %v1791_v28, %v1795_v48  ;;  %v14028_v42 = vcombine.low %v1791_v28, %v1795_v48  ;;  %v1815_v28 = vld [vmem:[#allocation8 + $0x1490] sm:$0xff] }
 0x635   :  { %12607 = vmatprep.subr.bf16.mxu1 %v14007_v18  ;;  %v14031_v18 = vcombine.high %v1792_v55, %v1796_v11  ;;  %v14030_v36 = vcombine.low %v1792_v55, %v1796_v11  ;;  %v1819_v48 = vld [vmem:[#allocation8 + $0x14b0] sm:$0xff]  ;;  %v1816_v55 = vld [vmem:[#allocation8 + $0x1498] sm:$0xff] }
 0x636   :  { %v1820_v11 = vld [vmem:[#allocation8 + $0x14b8] sm:$0xff] }
 0x637   :  { %11972 = vmatpush1.bf16.msra.mxu0 %v14004_v3  ;;  %v1799_v3 = vld [vmem:[#allocation8 + $0x1410] sm:$0xff] }
 0x638   :  { %12608 = vmatpush1.bf16.msra.mxu1 %v14006_v9  ;;  %11973 = vmatprep.subr.bf16.mxu0 %v14013_v15  ;;  %v1804_v9 = vld [vmem:[#allocation8 + $0x1438] sm:$0xff]  ;;  %v14037_v15 = vcombine.high %v1799_v3, %v1803_v14  ;;  %v14036_v25 = vcombine.low %v1799_v3, %v1803_v14  ;;  %v1823_v3 = vld [vmem:[#allocation8 + $0x14d0] sm:$0xff] }
 0x639   :  { %12609 = vmatprep.subr.bf16.mxu1 %v14015_v41  ;;  %v14039_v41 = vcombine.high %v1800_v29, %v1804_v9  ;;  %v1827_v14 = vld [vmem:[#allocation8 + $0x14f0] sm:$0xff] }
 0x63b   :  { %11974 = vmatpush1.bf16.msra.mxu0 %v14012_v30  ;;  %v1807_v30 = vld [vmem:[#allocation8 + $0x1450] sm:$0xff] }
 0x63c   :  { %12610 = vmatpush1.bf16.msra.mxu1 %v14014_v12  ;;  %11975 = vmatprep.subr.bf16.mxu0 %v14021_v45  ;;  %v14038_v12 = vcombine.low %v1800_v29, %v1804_v9  ;;  %v14045_v45 = vcombine.high %v1807_v30, %v1811_v20  ;;  %v1824_v29 = vld [vmem:[#allocation8 + $0x14d8] sm:$0xff] }
 0x63d   :  { %12611 = vmatprep.subr.bf16.mxu1 %v14023_v10  ;;  %v14047_v10 = vcombine.high %v1808_v40, %v1812_v51  ;;  %v1828_v9 = vld [vmem:[#allocation8 + $0x14f8] sm:$0xff] }
 0x63f   :  { %11976 = vmatpush1.bf16.msra.mxu0 %v14020_v7  ;;  %v14044_v7 = vcombine.low %v1807_v30, %v1811_v20  ;;  %v1832_v30 = vld [vmem:[#allocation8 + $0x1518] sm:$0xff] }
 0x640   :  { %12612 = vmatpush1.bf16.msra.mxu1 %v14022_v34  ;;  %11977 = vmatprep.subr.bf16.mxu0 %v14029_v35  ;;  %v14046_v34 = vcombine.low %v1808_v40, %v1812_v51  ;;  %v14053_v35 = vcombine.high %v1815_v28, %v1819_v48  ;;  %v1836_v20 = vld [vmem:[#allocation8 + $0x1538] sm:$0xff]  ;;  %v14060_v40 = vcombine.low %v1823_v3, %v1827_v14 }
 0x641   :  { %12613 = vmatprep.subr.bf16.mxu1 %v14031_v18  ;;  %v14055_v18 = vcombine.high %v1816_v55, %v1820_v11  ;;  %v14062_v51 = vcombine.low %v1824_v29, %v1828_v9 }
 0x643   :  { %11978 = vmatpush1.bf16.msra.mxu0 %v14028_v42  ;;  %v14054_v42 = vcombine.low %v1816_v55, %v1820_v11  ;;  %v14070_v55 = vcombine.low %v1832_v30, %v1836_v20 }
 0x644   :  { %12614 = vmatpush1.bf16.msra.mxu1 %v14030_v36  ;;  %12000 = vmatprep.subr.bf16.mxu0 %v14037_v15  ;;  %v14061_v36 = vcombine.high %v1823_v3, %v1827_v14  ;;  %v1831_v15 = vld [vmem:[#allocation8 + $0x1510] sm:$0xff] }
 0x645   :  { %12636 = vmatprep.subr.bf16.mxu1 %v14039_v41  ;;  %v1835_v41 = vld [vmem:[#allocation8 + $0x1530] sm:$0xff] }
 0x646   :  { %11980 = vmatmul.mubr.bf16.vlgmr.msra.gmra.mrb[8].mxu0 %v17573_v59 }
 0x647   :  { %12616 = vmatmul.mubr.bf16.vlgmr.msra.gmra.mrb[8].mxu1 %v17573_v59  ;;  %11989 = vmatprep.mubr.bf16.mxu0 %v17575_v53  ;;  %v14052_v59 = vcombine.low %v1815_v28, %v1819_v48  ;;  %v1840_v28 = vld [vmem:[#allocation8 + $0x1558] sm:$0xff] }
 0x648   :  { %12001 = vmatpush1.bf16.msra.mxu0 %v14036_v25  ;;  %12625 = vmatprep.mubr.bf16.mxu1 %v17575_v53  ;;  %v14063_v53 = vcombine.high %v1824_v29, %v1828_v9  ;;  %v14069_v25 = vcombine.high %v1831_v15, %v1835_v41  ;;  %v1844_v48 = vld [vmem:[#allocation8 + $0x1578] sm:$0xff] }
 0x649   :  { %12637 = vmatpush1.bf16.msra.mxu1 %v14038_v12  ;;  %12002 = vmatprep.subr.bf16.mxu0 %v14045_v45  ;;  %v14071_v12 = vcombine.high %v1832_v30, %v1836_v20  ;;  %v1839_v45 = vld [vmem:[#allocation8 + $0x1550] sm:$0xff]  ;;  %v14078_v14 = vcombine.low %v1840_v28, %v1844_v48 }
 0x64a   :  { %12638 = vmatprep.subr.bf16.mxu1 %v14047_v10  ;;  %v1843_v10 = vld [vmem:[#allocation8 + $0x1570] sm:$0xff] }
 0x64b   :  { %v14077_v11 = vcombine.high %v1839_v45, %v1843_v10  ;;  %v14076_v3 = vcombine.low %v1839_v45, %v1843_v10 }
 0x64c   :  { %12003 = vmatpush1.bf16.msra.mxu0 %v14044_v7  ;;  %v14079_v7 = vcombine.high %v1840_v28, %v1844_v48 }
 0x64d   :  { %12639 = vmatpush1.bf16.msra.mxu1 %v14046_v34  ;;  %12004 = vmatprep.subr.bf16.mxu0 %v14053_v35  ;;  %v1851_v34 = vld [vmem:[#allocation8 + $0x15b0] sm:$0xff]  ;;  %v1848_v35 = vld [vmem:[#allocation8 + $0x1598] sm:$0xff] }
 0x64e   :  { %11990 = vmatmul.mubr.bf16.gmra.mrb[12].mxu0 %v17581_v50  ;;  %12640 = vmatprep.subr.bf16.mxu1 %v14055_v18  ;;  %v1852_v18 = vld [vmem:[#allocation8 + $0x15b8] sm:$0xff] }
 0x64f   :  { %12626 = vmatmul.mubr.bf16.gmra.mrb[12].mxu1 %v17581_v50  ;;  %12032 = vmatprep.mubr.bf16.mxu0 %v17128_v0  ;;  %v14068_v50 = vcombine.low %v1831_v15, %v1835_v41  ;;  %v14087_v9 = vcombine.high %v1848_v35, %v1852_v18  ;;  %v14086_v41 = vcombine.low %v1848_v35, %v1852_v18 }
 0x650   :  { %12005 = vmatpush1.bf16.msra.mxu0 %v14052_v59  ;;  %12668 = vmatprep.mubr.bf16.mxu1 %v17128_v0  ;;  %v1847_v0 = vld [vmem:[#allocation8 + $0x1590] sm:$0xff] }
 0x651   :  { %12641 = vmatpush1.bf16.msra.mxu1 %v14054_v42  ;;  %12006 = vmatprep.subr.bf16.mxu0 %v14061_v36  ;;  %v14085_v29 = vcombine.high %v1847_v0, %v1851_v34  ;;  %v1855_v59 = vld [vmem:[#allocation8 + $0x15d0] sm:$0xff]  ;;  %v1856_v36 = vld [vmem:[#allocation8 + $0x15d8] sm:$0xff]  ;;  %v14084_v15 = vcombine.low %v1847_v0, %v1851_v34 }
 0x652   :  { %12642 = vmatprep.subr.bf16.mxu1 %v14063_v53  ;;  %v1859_v42 = vld [vmem:[#allocation8 + $0x15f0] sm:$0xff]  ;;  %v1860_v53 = vld [vmem:[#allocation8 + $0x15f8] sm:$0xff] }
 0x653   :  { %v14093_v30 = vcombine.high %v1855_v59, %v1859_v42  ;;  %v14095_v20 = vcombine.high %v1856_v36, %v1860_v53  ;;  %v14092_v45 = vcombine.low %v1855_v59, %v1859_v42  ;;  %v14094_v10 = vcombine.low %v1856_v36, %v1860_v53 }
 0x654   :  { %12007 = vmatpush1.bf16.msra.mxu0 %v14060_v40  ;;  %v1863_v40 = vld [vmem:[#allocation8 + $0x1610] sm:$0xff] }
 0x655   :  { %12643 = vmatpush1.bf16.msra.mxu1 %v14062_v51  ;;  %12008 = vmatprep.subr.bf16.mxu0 %v14069_v25  ;;  %v1867_v51 = vld [vmem:[#allocation8 + $0x1630] sm:$0xff]  ;;  %v1864_v25 = vld [vmem:[#allocation8 + $0x1618] sm:$0xff] }
 0x656   :  { %12644 = vmatprep.subr.bf16.mxu1 %v14071_v12  ;;  %v1868_v12 = vld [vmem:[#allocation8 + $0x1638] sm:$0xff]  ;;  %v14101_v28 = vcombine.high %v1863_v40, %v1867_v51  ;;  %v14100_v0 = vcombine.low %v1863_v40, %v1867_v51 }
 0x657   :  { %v14103_v48 = vcombine.high %v1864_v25, %v1868_v12  ;;  %v14102_v34 = vcombine.low %v1864_v25, %v1868_v12 }
 0x658   :  { %12009 = vmatpush1.bf16.msra.mxu0 %v14068_v50  ;;  %v1871_v50 = vld [vmem:[#allocation8 + $0x1650] sm:$0xff] }
 0x659   :  { %12645 = vmatpush1.bf16.msra.mxu1 %v14070_v55  ;;  %12010 = vmatprep.subr.bf16.mxu0 %v14077_v11  ;;  %v1875_v55 = vld [vmem:[#allocation8 + $0x1670] sm:$0xff]  ;;  %v1872_v11 = vld [vmem:[#allocation8 + $0x1658] sm:$0xff] }
 0x65a   :  { %12646 = vmatprep.subr.bf16.mxu1 %v14079_v7  ;;  %v1876_v7 = vld [vmem:[#allocation8 + $0x1678] sm:$0xff]  ;;  %v14109_v35 = vcombine.high %v1871_v50, %v1875_v55  ;;  %v14108_v59 = vcombine.low %v1871_v50, %v1875_v55 }
 0x65b   :  { %v14111_v18 = vcombine.high %v1872_v11, %v1876_v7  ;;  %v14110_v42 = vcombine.low %v1872_v11, %v1876_v7 }
 0x65c   :  { %12011 = vmatpush1.bf16.msra.mxu0 %v14076_v3  ;;  %v1879_v3 = vld [vmem:[#allocation8 + $0x1690] sm:$0xff] }
 0x65d   :  { %12647 = vmatpush1.bf16.msra.mxu1 %v14078_v14  ;;  %12012 = vmatprep.subr.bf16.mxu0 %v14085_v29  ;;  %v1883_v14 = vld [vmem:[#allocation8 + $0x16b0] sm:$0xff]  ;;  %v1880_v29 = vld [vmem:[#allocation8 + $0x1698] sm:$0xff] }
 0x65e   :  { %12648 = vmatprep.subr.bf16.mxu1 %v14087_v9  ;;  %v1884_v9 = vld [vmem:[#allocation8 + $0x16b8] sm:$0xff]  ;;  %v14117_v36 = vcombine.high %v1879_v3, %v1883_v14  ;;  %v14116_v40 = vcombine.low %v1879_v3, %v1883_v14 }
 0x65f   :  { %v14119_v53 = vcombine.high %v1880_v29, %v1884_v9  ;;  %v14118_v51 = vcombine.low %v1880_v29, %v1884_v9 }
 0x660   :  { %12013 = vmatpush1.bf16.msra.mxu0 %v14084_v15  ;;  %v1887_v15 = vld [vmem:[#allocation8 + $0x16d0] sm:$0xff] }
 0x661   :  { %12649 = vmatpush1.bf16.msra.mxu1 %v14086_v41  ;;  %12014 = vmatprep.subr.bf16.mxu0 %v14093_v30  ;;  %v1891_v41 = vld [vmem:[#allocation8 + $0x16f0] sm:$0xff]  ;;  %v1888_v30 = vld [vmem:[#allocation8 + $0x16d8] sm:$0xff] }
 0x662   :  { %12650 = vmatprep.subr.bf16.mxu1 %v14095_v20  ;;  %v1892_v20 = vld [vmem:[#allocation8 + $0x16f8] sm:$0xff]  ;;  %v14125_v25 = vcombine.high %v1887_v15, %v1891_v41  ;;  %v14124_v50 = vcombine.low %v1887_v15, %v1891_v41 }
 0x663   :  { %v14127_v12 = vcombine.high %v1888_v30, %v1892_v20  ;;  %v14126_v55 = vcombine.low %v1888_v30, %v1892_v20 }
 0x664   :  { %12015 = vmatpush1.bf16.msra.mxu0 %v14092_v45  ;;  %v1895_v45 = vld [vmem:[#allocation8 + $0x1710] sm:$0xff] }
 0x665   :  { %12651 = vmatpush1.bf16.msra.mxu1 %v14094_v10  ;;  %12016 = vmatprep.subr.bf16.mxu0 %v14101_v28  ;;  %v1899_v10 = vld [vmem:[#allocation8 + $0x1730] sm:$0xff]  ;;  %v1896_v28 = vld [vmem:[#allocation8 + $0x1718] sm:$0xff] }
 0x666   :  { %12652 = vmatprep.subr.bf16.mxu1 %v14103_v48  ;;  %v1900_v48 = vld [vmem:[#allocation8 + $0x1738] sm:$0xff]  ;;  %v14133_v11 = vcombine.high %v1895_v45, %v1899_v10  ;;  %v14132_v3 = vcombine.low %v1895_v45, %v1899_v10 }
 0x667   :  { %v14135_v7 = vcombine.high %v1896_v28, %v1900_v48  ;;  %v14134_v14 = vcombine.low %v1896_v28, %v1900_v48 }
 0x668   :  { %12017 = vmatpush1.bf16.msra.mxu0 %v14100_v0  ;;  %v1903_v0 = vld [vmem:[#allocation8 + $0x1750] sm:$0xff] }
 0x669   :  { %12653 = vmatpush1.bf16.msra.mxu1 %v14102_v34  ;;  %12018 = vmatprep.subr.bf16.mxu0 %v14109_v35  ;;  %v1907_v34 = vld [vmem:[#allocation8 + $0x1770] sm:$0xff]  ;;  %v1904_v35 = vld [vmem:[#allocation8 + $0x1758] sm:$0xff] }
 0x66a   :  { %12654 = vmatprep.subr.bf16.mxu1 %v14111_v18  ;;  %v1908_v18 = vld [vmem:[#allocation8 + $0x1778] sm:$0xff]  ;;  %v14141_v29 = vcombine.high %v1903_v0, %v1907_v34  ;;  %v14140_v15 = vcombine.low %v1903_v0, %v1907_v34 }
 0x66b   :  { %v14143_v9 = vcombine.high %v1904_v35, %v1908_v18  ;;  %v14142_v41 = vcombine.low %v1904_v35, %v1908_v18 }
 0x66c   :  { %12019 = vmatpush1.bf16.msra.mxu0 %v14108_v59  ;;  %v1911_v59 = vld [vmem:[#allocation8 + $0x1790] sm:$0xff] }
 0x66d   :  { %12655 = vmatpush1.bf16.msra.mxu1 %v14110_v42  ;;  %12020 = vmatprep.subr.bf16.mxu0 %v14117_v36  ;;  %v1915_v42 = vld [vmem:[#allocation8 + $0x17b0] sm:$0xff]  ;;  %v1912_v36 = vld [vmem:[#allocation8 + $0x1798] sm:$0xff] }
 0x66e   :  { %12656 = vmatprep.subr.bf16.mxu1 %v14119_v53  ;;  %v1916_v53 = vld [vmem:[#allocation8 + $0x17b8] sm:$0xff]  ;;  %v14149_v30 = vcombine.high %v1911_v59, %v1915_v42  ;;  %v14148_v45 = vcombine.low %v1911_v59, %v1915_v42 }
 0x66f   :  { %v14151_v20 = vcombine.high %v1912_v36, %v1916_v53  ;;  %v14150_v10 = vcombine.low %v1912_v36, %v1916_v53 }
 0x670   :  { %12021 = vmatpush1.bf16.msra.mxu0 %v14116_v40  ;;  %v1919_v40 = vld [vmem:[#allocation8 + $0x17d0] sm:$0xff] }
 0x671   :  { %12657 = vmatpush1.bf16.msra.mxu1 %v14118_v51  ;;  %12022 = vmatprep.subr.bf16.mxu0 %v14125_v25  ;;  %v1923_v51 = vld [vmem:[#allocation8 + $0x17f0] sm:$0xff]  ;;  %v1920_v25 = vld [vmem:[#allocation8 + $0x17d8] sm:$0xff] }
 0x672   :  { %12658 = vmatprep.subr.bf16.mxu1 %v14127_v12  ;;  %v1924_v12 = vld [vmem:[#allocation8 + $0x17f8] sm:$0xff]  ;;  %v14157_v28 = vcombine.high %v1919_v40, %v1923_v51  ;;  %v14156_v0 = vcombine.low %v1919_v40, %v1923_v51 }
 0x673   :  { %v14159_v48 = vcombine.high %v1920_v25, %v1924_v12  ;;  %v14158_v34 = vcombine.low %v1920_v25, %v1924_v12 }
 0x674   :  { %12023 = vmatpush1.bf16.msra.mxu0 %v14124_v50  ;;  %v1927_v50 = vld [vmem:[#allocation8 + $0x1810] sm:$0xff] }
 0x675   :  { %12659 = vmatpush1.bf16.msra.mxu1 %v14126_v55  ;;  %12024 = vmatprep.subr.bf16.mxu0 %v14133_v11  ;;  %v1931_v55 = vld [vmem:[#allocation8 + $0x1830] sm:$0xff]  ;;  %v1928_v11 = vld [vmem:[#allocation8 + $0x1818] sm:$0xff] }
 0x676   :  { %12660 = vmatprep.subr.bf16.mxu1 %v14135_v7  ;;  %v1932_v7 = vld [vmem:[#allocation8 + $0x1838] sm:$0xff]  ;;  %v14165_v35 = vcombine.high %v1927_v50, %v1931_v55  ;;  %v14164_v59 = vcombine.low %v1927_v50, %v1931_v55 }
 0x677   :  { %v14167_v18 = vcombine.high %v1928_v11, %v1932_v7  ;;  %v14166_v42 = vcombine.low %v1928_v11, %v1932_v7  ;;  %v1959_v11 = vld [vmem:[#allocation8 + $0x1910] sm:$0xff] }
 0x678   :  { %12025 = vmatpush1.bf16.msra.mxu0 %v14132_v3  ;;  %v1935_v3 = vld [vmem:[#allocation8 + $0x1850] sm:$0xff] }
 0x679   :  { %12661 = vmatpush1.bf16.msra.mxu1 %v14134_v14  ;;  %12026 = vmatprep.subr.bf16.mxu0 %v14141_v29  ;;  %v1939_v14 = vld [vmem:[#allocation8 + $0x1870] sm:$0xff]  ;;  %v1936_v29 = vld [vmem:[#allocation8 + $0x1858] sm:$0xff] }
 0x67a   :  { %12662 = vmatprep.subr.bf16.mxu1 %v14143_v9  ;;  %v1940_v9 = vld [vmem:[#allocation8 + $0x1878] sm:$0xff]  ;;  %v14173_v36 = vcombine.high %v1935_v3, %v1939_v14  ;;  %v14172_v40 = vcombine.low %v1935_v3, %v1939_v14  ;;  %v1963_v7 = vld [vmem:[#allocation8 + $0x1930] sm:$0xff] }
 0x67b   :  { %v14175_v53 = vcombine.high %v1936_v29, %v1940_v9  ;;  %v14174_v51 = vcombine.low %v1936_v29, %v1940_v9  ;;  %v14197_v3 = vcombine.high %v1959_v11, %v1963_v7  ;;  %v1967_v29 = vld [vmem:[#allocation8 + $0x1950] sm:$0xff] }
 0x67c   :  { %12027 = vmatpush1.bf16.msra.mxu0 %v14140_v15  ;;  %v1943_v15 = vld [vmem:[#allocation8 + $0x1890] sm:$0xff] }
 0x67d   :  { %12663 = vmatpush1.bf16.msra.mxu1 %v14142_v41  ;;  %12028 = vmatprep.subr.bf16.mxu0 %v14149_v30  ;;  %v1947_v41 = vld [vmem:[#allocation8 + $0x18b0] sm:$0xff]  ;;  %v1944_v30 = vld [vmem:[#allocation8 + $0x1898] sm:$0xff] }
 0x67e   :  { %12664 = vmatprep.subr.bf16.mxu1 %v14151_v20  ;;  %v1948_v20 = vld [vmem:[#allocation8 + $0x18b8] sm:$0xff]  ;;  %v14181_v25 = vcombine.high %v1943_v15, %v1947_v41  ;;  %v1971_v9 = vld [vmem:[#allocation8 + $0x1970] sm:$0xff] }
 0x67f   :  { %v14183_v12 = vcombine.high %v1944_v30, %v1948_v20  ;;  %v14182_v50 = vcombine.low %v1944_v30, %v1948_v20  ;;  %v1976_v30 = vld [vmem:[#allocation8 + $0x1998] sm:$0xff] }
 0x680   :  { %12029 = vmatpush1.bf16.msra.mxu0 %v14148_v45  ;;  %v1951_v45 = vld [vmem:[#allocation8 + $0x18d0] sm:$0xff]  ;;  %v1980_v20 = vld [vmem:[#allocation8 + $0x19b8] sm:$0xff] }
 0x681   :  { %12665 = vmatpush1.bf16.msra.mxu1 %v14150_v10  ;;  %12030 = vmatprep.subr.bf16.mxu0 %v14157_v28  ;;  %v1955_v10 = vld [vmem:[#allocation8 + $0x18f0] sm:$0xff]  ;;  %v1952_v28 = vld [vmem:[#allocation8 + $0x18d8] sm:$0xff] }
 0x682   :  { %12666 = vmatprep.subr.bf16.mxu1 %v14159_v48  ;;  %v1956_v48 = vld [vmem:[#allocation8 + $0x18f8] sm:$0xff]  ;;  %v14189_v55 = vcombine.high %v1951_v45, %v1955_v10 }
 0x684   :  { %12031 = vmatpush1.bf16.msra.mxu0 %v14156_v0  ;;  %v1960_v0 = vld [vmem:[#allocation8 + $0x1918] sm:$0xff] }
 0x685   :  { %12667 = vmatpush1.bf16.msra.mxu1 %v14158_v34  ;;  %12053 = vmatprep.subr.bf16.mxu0 %v14165_v35  ;;  %v1964_v34 = vld [vmem:[#allocation8 + $0x1938] sm:$0xff]  ;;  %v14188_v35 = vcombine.low %v1951_v45, %v1955_v10  ;;  %v1983_v45 = vld [vmem:[#allocation8 + $0x19d0] sm:$0xff] }
 0x686   :  { %12689 = vmatprep.subr.bf16.mxu1 %v14167_v18  ;;  %v14190_v18 = vcombine.low %v1952_v28, %v1956_v48  ;;  %v14199_v14 = vcombine.high %v1960_v0, %v1964_v34  ;;  %v1987_v10 = vld [vmem:[#allocation8 + $0x19f0] sm:$0xff] }
 0x687   :  { %12033 = vmatmul.mubr.bf16.vlgmr.msra.gmra.mrb[8].mxu0 %v17153_v58 }
 0x688   :  { %12669 = vmatmul.mubr.bf16.vlgmr.msra.gmra.mrb[8].mxu1 %v17153_v58  ;;  %12042 = vmatprep.mubr.bf16.mxu0 %v17169_v1  ;;  %v14180_v58 = vcombine.low %v1943_v15, %v1947_v41  ;;  %v1979_v41 = vld [vmem:[#allocation8 + $0x19b0] sm:$0xff] }
 0x689   :  { %12054 = vmatpush1.bf16.msra.mxu0 %v14164_v59  ;;  %12678 = vmatprep.mubr.bf16.mxu1 %v17169_v1  ;;  %v14191_v1 = vcombine.high %v1952_v28, %v1956_v48  ;;  %v1968_v59 = vld [vmem:[#allocation8 + $0x1958] sm:$0xff] }
 0x68a   :  { %12690 = vmatpush1.bf16.msra.mxu1 %v14166_v42  ;;  %12055 = vmatprep.subr.bf16.mxu0 %v14173_v36  ;;  %v1972_v42 = vld [vmem:[#allocation8 + $0x1978] sm:$0xff]  ;;  %v14198_v36 = vcombine.low %v1960_v0, %v1964_v34 }
 0x68b   :  { %12691 = vmatprep.subr.bf16.mxu1 %v14175_v53  ;;  %v14205_v53 = vcombine.high %v1967_v29, %v1971_v9  ;;  %v14207_v15 = vcombine.high %v1968_v59, %v1972_v42  ;;  %v1984_v28 = vld [vmem:[#allocation8 + $0x19d8] sm:$0xff] }
 0x68c   :  { %v1988_v48 = vld [vmem:[#allocation8 + $0x19f8] sm:$0xff] }
 0x68d   :  { %12056 = vmatpush1.bf16.msra.mxu0 %v14172_v40  ;;  %v14204_v40 = vcombine.low %v1967_v29, %v1971_v9  ;;  %v1992_v0 = vld [vmem:[#allocation8 + $0x1a18] sm:$0xff]  ;;  %v1999_v29 = vld [vmem:[#allocation8 + $0x1a50] sm:$0xff] }
 0x68e   :  { %12692 = vmatpush1.bf16.msra.mxu1 %v14174_v51  ;;  %12057 = vmatprep.subr.bf16.mxu0 %v14181_v25  ;;  %v14206_v51 = vcombine.low %v1968_v59, %v1972_v42  ;;  %v1996_v34 = vld [vmem:[#allocation8 + $0x1a38] sm:$0xff]  ;;  %v2003_v9 = vld [vmem:[#allocation8 + $0x1a70] sm:$0xff] }
 0x68f   :  { %12043 = vmatmul.mubr.bf16.gmra.mrb[12].mxu0 %v17183_v17  ;;  %12693 = vmatprep.subr.bf16.mxu1 %v14183_v12  ;;  %v14215_v12 = vcombine.high %v1976_v30, %v1980_v20  ;;  %v2000_v59 = vld [vmem:[#allocation8 + $0x1a58] sm:$0xff] }
 0x690   :  { %12679 = vmatmul.mubr.bf16.gmra.mrb[12].mxu1 %v17183_v17  ;;  %12085 = vmatprep.mubr.bf16.mxu0 %v17204_v52  ;;  %v14196_v17 = vcombine.low %v1959_v11, %v1963_v7  ;;  %v1991_v11 = vld [vmem:[#allocation8 + $0x1a10] sm:$0xff]  ;;  %v2004_v42 = vld [vmem:[#allocation8 + $0x1a78] sm:$0xff] }
 0x691   :  { %12058 = vmatpush1.bf16.msra.mxu0 %v14180_v58  ;;  %12721 = vmatprep.mubr.bf16.mxu1 %v17204_v52  ;;  %v1975_v52 = vld [vmem:[#allocation8 + $0x1990] sm:$0xff] }
 0x692   :  { %12694 = vmatpush1.bf16.msra.mxu1 %v14182_v50  ;;  %12059 = vmatprep.subr.bf16.mxu0 %v14189_v55  ;;  %v14213_v25 = vcombine.high %v1975_v52, %v1979_v41  ;;  %v14212_v58 = vcombine.low %v1975_v52, %v1979_v41  ;;  %v14214_v50 = vcombine.low %v1976_v30, %v1980_v20  ;;  %v1995_v7 = vld [vmem:[#allocation8 + $0x1a30] sm:$0xff]  ;;  %v2008_v30 = vld [vmem:[#allocation8 + $0x1a98] sm:$0xff] }
 0x693   :  { %12695 = vmatprep.subr.bf16.mxu1 %v14191_v1  ;;  %v14221_v55 = vcombine.high %v1983_v45, %v1987_v10  ;;  %v14223_v1 = vcombine.high %v1984_v28, %v1988_v48  ;;  %v2007_v52 = vld [vmem:[#allocation8 + $0x1a90] sm:$0xff]  ;;  %v2012_v20 = vld [vmem:[#allocation8 + $0x1ab8] sm:$0xff] }
 0x694   :  { %v2011_v41 = vld [vmem:[#allocation8 + $0x1ab0] sm:$0xff] }
 0x695   :  { %12060 = vmatpush1.bf16.msra.mxu0 %v14188_v35  ;;  %v14220_v35 = vcombine.low %v1983_v45, %v1987_v10  ;;  %v2015_v45 = vld [vmem:[#allocation8 + $0x1ad0] sm:$0xff] }
 0x696   :  { %12696 = vmatpush1.bf16.msra.mxu1 %v14190_v18  ;;  %12061 = vmatprep.subr.bf16.mxu0 %v14197_v3  ;;  %v14222_v18 = vcombine.low %v1984_v28, %v1988_v48  ;;  %v14229_v3 = vcombine.high %v1991_v11, %v1995_v7  ;;  %v2019_v10 = vld [vmem:[#allocation8 + $0x1af0] sm:$0xff]  ;;  %v2016_v28 = vld [vmem:[#allocation8 + $0x1ad8] sm:$0xff] }
 0x697   :  { %12697 = vmatprep.subr.bf16.mxu1 %v14199_v14  ;;  %v14231_v14 = vcombine.high %v1992_v0, %v1996_v34  ;;  %v2020_v48 = vld [vmem:[#allocation8 + $0x1af8] sm:$0xff] }
 0x699   :  { %12062 = vmatpush1.bf16.msra.mxu0 %v14196_v17  ;;  %v14228_v17 = vcombine.low %v1991_v11, %v1995_v7  ;;  %v2023_v11 = vld [vmem:[#allocation8 + $0x1b10] sm:$0xff] }
 0x69a   :  { %12698 = vmatpush1.bf16.msra.mxu1 %v14198_v36  ;;  %12063 = vmatprep.subr.bf16.mxu0 %v14205_v53  ;;  %v14230_v36 = vcombine.low %v1992_v0, %v1996_v34  ;;  %v14237_v53 = vcombine.high %v1999_v29, %v2003_v9  ;;  %v2027_v7 = vld [vmem:[#allocation8 + $0x1b30] sm:$0xff]  ;;  %v2024_v0 = vld [vmem:[#allocation8 + $0x1b18] sm:$0xff] }
 0x69b   :  { %12699 = vmatprep.subr.bf16.mxu1 %v14207_v15  ;;  %v14239_v15 = vcombine.high %v2000_v59, %v2004_v42  ;;  %v2028_v34 = vld [vmem:[#allocation8 + $0x1b38] sm:$0xff] }
 0x69d   :  { %12064 = vmatpush1.bf16.msra.mxu0 %v14204_v40  ;;  %v14236_v40 = vcombine.low %v1999_v29, %v2003_v9  ;;  %v2031_v29 = vld [vmem:[#allocation8 + $0x1b50] sm:$0xff] }
 0x69e   :  { %12700 = vmatpush1.bf16.msra.mxu1 %v14206_v51  ;;  %12065 = vmatprep.subr.bf16.mxu0 %v14213_v25  ;;  %v14238_v51 = vcombine.low %v2000_v59, %v2004_v42  ;;  %v14245_v25 = vcombine.high %v2007_v52, %v2011_v41  ;;  %v2035_v9 = vld [vmem:[#allocation8 + $0x1b70] sm:$0xff]  ;;  %v2032_v59 = vld [vmem:[#allocation8 + $0x1b58] sm:$0xff] }
 0x69f   :  { %12701 = vmatprep.subr.bf16.mxu1 %v14215_v12  ;;  %v14247_v12 = vcombine.high %v2008_v30, %v2012_v20  ;;  %v2036_v42 = vld [vmem:[#allocation8 + $0x1b78] sm:$0xff] }
 0x6a1   :  { %12066 = vmatpush1.bf16.msra.mxu0 %v14212_v58  ;;  %v14244_v58 = vcombine.low %v2007_v52, %v2011_v41  ;;  %v2039_v52 = vld [vmem:[#allocation8 + $0x1b90] sm:$0xff] }
 0x6a2   :  { %12702 = vmatpush1.bf16.msra.mxu1 %v14214_v50  ;;  %12067 = vmatprep.subr.bf16.mxu0 %v14221_v55  ;;  %v14246_v50 = vcombine.low %v2008_v30, %v2012_v20  ;;  %v14253_v55 = vcombine.high %v2015_v45, %v2019_v10  ;;  %v2043_v41 = vld [vmem:[#allocation8 + $0x1bb0] sm:$0xff]  ;;  %v2040_v30 = vld [vmem:[#allocation8 + $0x1b98] sm:$0xff] }
 0x6a3   :  { %12703 = vmatprep.subr.bf16.mxu1 %v14223_v1  ;;  %v14255_v1 = vcombine.high %v2016_v28, %v2020_v48  ;;  %v2044_v20 = vld [vmem:[#allocation8 + $0x1bb8] sm:$0xff] }
 0x6a5   :  { %12068 = vmatpush1.bf16.msra.mxu0 %v14220_v35  ;;  %v14252_v35 = vcombine.low %v2015_v45, %v2019_v10  ;;  %v2047_v45 = vld [vmem:[#allocation8 + $0x1bd0] sm:$0xff] }
 0x6a6   :  { %12704 = vmatpush1.bf16.msra.mxu1 %v14222_v18  ;;  %12069 = vmatprep.subr.bf16.mxu0 %v14229_v3  ;;  %v14254_v18 = vcombine.low %v2016_v28, %v2020_v48  ;;  %v14261_v3 = vcombine.high %v2023_v11, %v2027_v7  ;;  %v2051_v10 = vld [vmem:[#allocation8 + $0x1bf0] sm:$0xff]  ;;  %v2048_v28 = vld [vmem:[#allocation8 + $0x1bd8] sm:$0xff] }
 0x6a7   :  { %12705 = vmatprep.subr.bf16.mxu1 %v14231_v14  ;;  %v14263_v14 = vcombine.high %v2024_v0, %v2028_v34  ;;  %v2052_v48 = vld [vmem:[#allocation8 + $0x1bf8] sm:$0xff] }
 0x6a9   :  { %12070 = vmatpush1.bf16.msra.mxu0 %v14228_v17  ;;  %v14260_v17 = vcombine.low %v2023_v11, %v2027_v7  ;;  %v2055_v11 = vld [vmem:[#allocation8 + $0x1c10] sm:$0xff] }
 0x6aa   :  { %12706 = vmatpush1.bf16.msra.mxu1 %v14230_v36  ;;  %12071 = vmatprep.subr.bf16.mxu0 %v14237_v53  ;;  %v14262_v36 = vcombine.low %v2024_v0, %v2028_v34  ;;  %v14269_v53 = vcombine.high %v2031_v29, %v2035_v9  ;;  %v2059_v7 = vld [vmem:[#allocation8 + $0x1c30] sm:$0xff]  ;;  %v2056_v0 = vld [vmem:[#allocation8 + $0x1c18] sm:$0xff] }
 0x6ab   :  { %12707 = vmatprep.subr.bf16.mxu1 %v14239_v15  ;;  %v14271_v15 = vcombine.high %v2032_v59, %v2036_v42  ;;  %v2060_v34 = vld [vmem:[#allocation8 + $0x1c38] sm:$0xff] }
 0x6ad   :  { %12072 = vmatpush1.bf16.msra.mxu0 %v14236_v40  ;;  %v14268_v40 = vcombine.low %v2031_v29, %v2035_v9  ;;  %v2063_v29 = vld [vmem:[#allocation8 + $0x1c50] sm:$0xff] }
 0x6ae   :  { %12708 = vmatpush1.bf16.msra.mxu1 %v14238_v51  ;;  %12073 = vmatprep.subr.bf16.mxu0 %v14245_v25  ;;  %v14270_v51 = vcombine.low %v2032_v59, %v2036_v42  ;;  %v14277_v25 = vcombine.high %v2039_v52, %v2043_v41  ;;  %v2067_v9 = vld [vmem:[#allocation8 + $0x1c70] sm:$0xff]  ;;  %v2064_v59 = vld [vmem:[#allocation8 + $0x1c58] sm:$0xff] }
 0x6af   :  { %12709 = vmatprep.subr.bf16.mxu1 %v14247_v12  ;;  %v14279_v12 = vcombine.high %v2040_v30, %v2044_v20  ;;  %v2068_v42 = vld [vmem:[#allocation8 + $0x1c78] sm:$0xff] }
 0x6b1   :  { %12074 = vmatpush1.bf16.msra.mxu0 %v14244_v58  ;;  %v14276_v58 = vcombine.low %v2039_v52, %v2043_v41  ;;  %v2071_v52 = vld [vmem:[#allocation8 + $0x1c90] sm:$0xff] }
 0x6b2   :  { %12710 = vmatpush1.bf16.msra.mxu1 %v14246_v50  ;;  %12075 = vmatprep.subr.bf16.mxu0 %v14253_v55  ;;  %v14278_v50 = vcombine.low %v2040_v30, %v2044_v20  ;;  %v14285_v55 = vcombine.high %v2047_v45, %v2051_v10  ;;  %v2075_v41 = vld [vmem:[#allocation8 + $0x1cb0] sm:$0xff]  ;;  %v2072_v30 = vld [vmem:[#allocation8 + $0x1c98] sm:$0xff] }
 0x6b3   :  { %12711 = vmatprep.subr.bf16.mxu1 %v14255_v1  ;;  %v14287_v1 = vcombine.high %v2048_v28, %v2052_v48  ;;  %v2076_v20 = vld [vmem:[#allocation8 + $0x1cb8] sm:$0xff] }
 0x6b5   :  { %12076 = vmatpush1.bf16.msra.mxu0 %v14252_v35  ;;  %v14284_v35 = vcombine.low %v2047_v45, %v2051_v10  ;;  %v2079_v45 = vld [vmem:[#allocation8 + $0x1cd0] sm:$0xff] }
 0x6b6   :  { %12712 = vmatpush1.bf16.msra.mxu1 %v14254_v18  ;;  %12077 = vmatprep.subr.bf16.mxu0 %v14261_v3  ;;  %v14286_v18 = vcombine.low %v2048_v28, %v2052_v48  ;;  %v14293_v3 = vcombine.high %v2055_v11, %v2059_v7  ;;  %v2083_v10 = vld [vmem:[#allocation8 + $0x1cf0] sm:$0xff]  ;;  %v2080_v28 = vld [vmem:[#allocation8 + $0x1cd8] sm:$0xff] }
 0x6b7   :  { %12713 = vmatprep.subr.bf16.mxu1 %v14263_v14  ;;  %v14295_v14 = vcombine.high %v2056_v0, %v2060_v34  ;;  %v2084_v48 = vld [vmem:[#allocation8 + $0x1cf8] sm:$0xff] }
 0x6b9   :  { %12078 = vmatpush1.bf16.msra.mxu0 %v14260_v17  ;;  %v14292_v17 = vcombine.low %v2055_v11, %v2059_v7  ;;  %v2088_v11 = vld [vmem:[#allocation8 + $0x1d18] sm:$0xff] }
 0x6ba   :  { %12714 = vmatpush1.bf16.msra.mxu1 %v14262_v36  ;;  %12079 = vmatprep.subr.bf16.mxu0 %v14269_v53  ;;  %v14294_v36 = vcombine.low %v2056_v0, %v2060_v34  ;;  %v14301_v53 = vcombine.high %v2063_v29, %v2067_v9  ;;  %v2092_v7 = vld [vmem:[#allocation8 + $0x1d38] sm:$0xff]  ;;  %v14316_v0 = vcombine.low %v2079_v45, %v2083_v10 }
 0x6bb   :  { %12715 = vmatprep.subr.bf16.mxu1 %v14271_v15  ;;  %v14303_v15 = vcombine.high %v2064_v59, %v2068_v42  ;;  %v14318_v34 = vcombine.low %v2080_v28, %v2084_v48 }
 0x6bd   :  { %12080 = vmatpush1.bf16.msra.mxu0 %v14268_v40  ;;  %v14300_v40 = vcombine.low %v2063_v29, %v2067_v9  ;;  %v2096_v29 = vld [vmem:[#allocation8 + $0x1d58] sm:$0xff] }
 0x6be   :  { %12716 = vmatpush1.bf16.msra.mxu1 %v14270_v51  ;;  %12081 = vmatprep.subr.bf16.mxu0 %v14277_v25  ;;  %v14302_v51 = vcombine.low %v2064_v59, %v2068_v42  ;;  %v14309_v25 = vcombine.high %v2071_v52, %v2075_v41  ;;  %v2100_v9 = vld [vmem:[#allocation8 + $0x1d78] sm:$0xff]  ;;  %v14326_v59 = vcombine.low %v2088_v11, %v2092_v7 }
 0x6bf   :  { %12717 = vmatprep.subr.bf16.mxu1 %v14279_v12  ;;  %v14311_v12 = vcombine.high %v2072_v30, %v2076_v20 }
 0x6c1   :  { %12082 = vmatpush1.bf16.msra.mxu0 %v14276_v58  ;;  %v14310_v58 = vcombine.low %v2072_v30, %v2076_v20 }
 0x6c2   :  { %12718 = vmatpush1.bf16.msra.mxu1 %v14278_v50  ;;  %12083 = vmatprep.subr.bf16.mxu0 %v14285_v55  ;;  %v14317_v50 = vcombine.high %v2079_v45, %v2083_v10  ;;  %v2087_v55 = vld [vmem:[#allocation8 + $0x1d10] sm:$0xff] }
 0x6c3   :  { %12719 = vmatprep.subr.bf16.mxu1 %v14287_v1  ;;  %v2091_v1 = vld [vmem:[#allocation8 + $0x1d30] sm:$0xff] }
 0x6c5   :  { %12084 = vmatpush1.bf16.msra.mxu0 %v14284_v35  ;;  %v14325_v35 = vcombine.high %v2087_v55, %v2091_v1 }
 0x6c6   :  { %12720 = vmatpush1.bf16.msra.mxu1 %v14286_v18  ;;  %12106 = vmatprep.subr.bf16.mxu0 %v14293_v3  ;;  %v14327_v18 = vcombine.high %v2088_v11, %v2092_v7  ;;  %v2095_v3 = vld [vmem:[#allocation8 + $0x1d50] sm:$0xff] }
 0x6c7   :  { %12742 = vmatprep.subr.bf16.mxu1 %v14295_v14  ;;  %v2099_v14 = vld [vmem:[#allocation8 + $0x1d70] sm:$0xff] }
 0x6c8   :  { %12086 = vmatmul.mubr.bf16.vlgmr.msra.gmra.mrb[8].mxu0 %v17211_v13  ;;  %v14333_v42 = vcombine.high %v2095_v3, %v2099_v14 }
 0x6c9   :  { %12722 = vmatmul.mubr.bf16.vlgmr.msra.gmra.mrb[8].mxu1 %v17211_v13  ;;  %12095 = vmatprep.mubr.bf16.mxu0 %v17213_v5  ;;  %v14308_v13 = vcombine.low %v2071_v52, %v2075_v41  ;;  %v14332_v52 = vcombine.low %v2095_v3, %v2099_v14  ;;  %v14334_v41 = vcombine.low %v2096_v29, %v2100_v9 }
 0x6ca   :  { %12107 = vmatpush1.bf16.msra.mxu0 %v14292_v17  ;;  %12731 = vmatprep.mubr.bf16.mxu1 %v17213_v5  ;;  %v14319_v5 = vcombine.high %v2080_v28, %v2084_v48  ;;  %v14335_v17 = vcombine.high %v2096_v29, %v2100_v9 }
 0x6cb   :  { %12743 = vmatpush1.bf16.msra.mxu1 %v14294_v36  ;;  %12108 = vmatprep.subr.bf16.mxu0 %v14301_v53  ;;  %v2107_v36 = vld [vmem:[#allocation8 + $0x1db0] sm:$0xff]  ;;  %v2104_v53 = vld [vmem:[#allocation8 + $0x1d98] sm:$0xff] }
 0x6cc   :  { %12744 = vmatprep.subr.bf16.mxu1 %v14303_v15  ;;  %v2108_v15 = vld [vmem:[#allocation8 + $0x1db8] sm:$0xff] }
 0x6cd   :  { %v14343_v20 = vcombine.high %v2104_v53, %v2108_v15  ;;  %v14342_v10 = vcombine.low %v2104_v53, %v2108_v15 }
 0x6ce   :  { %12109 = vmatpush1.bf16.msra.mxu0 %v14300_v40  ;;  %v2111_v40 = vld [vmem:[#allocation8 + $0x1dd0] sm:$0xff] }
 0x6cf   :  { %12745 = vmatpush1.bf16.msra.mxu1 %v14302_v51  ;;  %12110 = vmatprep.subr.bf16.mxu0 %v14309_v25  ;;  %v2115_v51 = vld [vmem:[#allocation8 + $0x1df0] sm:$0xff]  ;;  %v2112_v25 = vld [vmem:[#allocation8 + $0x1dd8] sm:$0xff] }
 0x6d0   :  { %12096 = vmatmul.mubr.bf16.gmra.mrb[12].mxu0 %v17232_v61  ;;  %12746 = vmatprep.subr.bf16.mxu1 %v14311_v12  ;;  %v2116_v12 = vld [vmem:[#allocation8 + $0x1df8] sm:$0xff]  ;;  %v14349_v28 = vcombine.high %v2111_v40, %v2115_v51 }
 0x6d1   :  { %12732 = vmatmul.mubr.bf16.gmra.mrb[12].mxu1 %v17232_v61  ;;  %12138 = vmatprep.mubr.bf16.mxu0 %v17243_v47  ;;  %v14324_v61 = vcombine.low %v2087_v55, %v2091_v1  ;;  %v14351_v48 = vcombine.high %v2112_v25, %v2116_v12  ;;  %v14348_v55 = vcombine.low %v2111_v40, %v2115_v51 }
 0x6d2   :  { %12111 = vmatpush1.bf16.msra.mxu0 %v14308_v13  ;;  %12774 = vmatprep.mubr.bf16.mxu1 %v17243_v47  ;;  %v2103_v47 = vld [vmem:[#allocation8 + $0x1d90] sm:$0xff]  ;;  %v14350_v1 = vcombine.low %v2112_v25, %v2116_v12 }
 0x6d3   :  { %12747 = vmatpush1.bf16.msra.mxu1 %v14310_v58  ;;  %12112 = vmatprep.subr.bf16.mxu0 %v14317_v50  ;;  %v14341_v30 = vcombine.high %v2103_v47, %v2107_v36  ;;  %v14340_v45 = vcombine.low %v2103_v47, %v2107_v36  ;;  %v2119_v13 = vld [vmem:[#allocation8 + $0x1e10] sm:$0xff]  ;;  %v2120_v50 = vld [vmem:[#allocation8 + $0x1e18] sm:$0xff] }
 0x6d4   :  { %12748 = vmatprep.subr.bf16.mxu1 %v14319_v5  ;;  %v2123_v58 = vld [vmem:[#allocation8 + $0x1e30] sm:$0xff]  ;;  %v2124_v5 = vld [vmem:[#allocation8 + $0x1e38] sm:$0xff] }
 0x6d5   :  { %v14357_v11 = vcombine.high %v2119_v13, %v2123_v58  ;;  %v14359_v7 = vcombine.high %v2120_v50, %v2124_v5  ;;  %v14356_v3 = vcombine.low %v2119_v13, %v2123_v58  ;;  %v14358_v14 = vcombine.low %v2120_v50, %v2124_v5 }
 0x6d6   :  { %12113 = vmatpush1.bf16.msra.mxu0 %v14316_v0  ;;  %v2127_v0 = vld [vmem:[#allocation8 + $0x1e50] sm:$0xff] }
 0x6d7   :  { %12749 = vmatpush1.bf16.msra.mxu1 %v14318_v34  ;;  %12114 = vmatprep.subr.bf16.mxu0 %v14325_v35  ;;  %v2131_v34 = vld [vmem:[#allocation8 + $0x1e70] sm:$0xff]  ;;  %v2128_v35 = vld [vmem:[#allocation8 + $0x1e58] sm:$0xff] }
 0x6d8   :  { %12750 = vmatprep.subr.bf16.mxu1 %v14327_v18  ;;  %v2132_v18 = vld [vmem:[#allocation8 + $0x1e78] sm:$0xff]  ;;  %v14365_v29 = vcombine.high %v2127_v0, %v2131_v34  ;;  %v14364_v47 = vcombine.low %v2127_v0, %v2131_v34 }
 0x6d9   :  { %v14367_v9 = vcombine.high %v2128_v35, %v2132_v18  ;;  %v14366_v36 = vcombine.low %v2128_v35, %v2132_v18 }
 0x6da   :  { %12115 = vmatpush1.bf16.msra.mxu0 %v14324_v61  ;;  %v2135_v61 = vld [vmem:[#allocation8 + $0x1e90] sm:$0xff] }
 0x6db   :  { %12751 = vmatpush1.bf16.msra.mxu1 %v14326_v59  ;;  %12116 = vmatprep.subr.bf16.mxu0 %v14333_v42  ;;  %v2139_v59 = vld [vmem:[#allocation8 + $0x1eb0] sm:$0xff]  ;;  %v2136_v42 = vld [vmem:[#allocation8 + $0x1e98] sm:$0xff] }
 0x6dc   :  { %12752 = vmatprep.subr.bf16.mxu1 %v14335_v17  ;;  %v2140_v17 = vld [vmem:[#allocation8 + $0x1eb8] sm:$0xff]  ;;  %v14373_v53 = vcombine.high %v2135_v61, %v2139_v59  ;;  %v14372_v40 = vcombine.low %v2135_v61, %v2139_v59 }
 0x6dd   :  { %v14375_v15 = vcombine.high %v2136_v42, %v2140_v17  ;;  %v14374_v51 = vcombine.low %v2136_v42, %v2140_v17 }
 0x6de   :  { %12117 = vmatpush1.bf16.msra.mxu0 %v14332_v52  ;;  %v2143_v52 = vld [vmem:[#allocation8 + $0x1ed0] sm:$0xff] }
 0x6df   :  { %12753 = vmatpush1.bf16.msra.mxu1 %v14334_v41  ;;  %12118 = vmatprep.subr.bf16.mxu0 %v14341_v30  ;;  %v2147_v41 = vld [vmem:[#allocation8 + $0x1ef0] sm:$0xff]  ;;  %v2144_v30 = vld [vmem:[#allocation8 + $0x1ed8] sm:$0xff] }
 0x6e0   :  { %12754 = vmatprep.subr.bf16.mxu1 %v14343_v20  ;;  %v2148_v20 = vld [vmem:[#allocation8 + $0x1ef8] sm:$0xff]  ;;  %v14381_v25 = vcombine.high %v2143_v52, %v2147_v41  ;;  %v14380_v13 = vcombine.low %v2143_v52, %v2147_v41 }
 0x6e1   :  { %v14383_v12 = vcombine.high %v2144_v30, %v2148_v20  ;;  %v14382_v58 = vcombine.low %v2144_v30, %v2148_v20 }
 0x6e2   :  { %12119 = vmatpush1.bf16.msra.mxu0 %v14340_v45  ;;  %v2151_v45 = vld [vmem:[#allocation8 + $0x1f10] sm:$0xff] }
 0x6e3   :  { %12755 = vmatpush1.bf16.msra.mxu1 %v14342_v10  ;;  %12120 = vmatprep.subr.bf16.mxu0 %v14349_v28  ;;  %v2155_v10 = vld [vmem:[#allocation8 + $0x1f30] sm:$0xff]  ;;  %v2152_v28 = vld [vmem:[#allocation8 + $0x1f18] sm:$0xff] }
 0x6e4   :  { %12756 = vmatprep.subr.bf16.mxu1 %v14351_v48  ;;  %v2156_v48 = vld [vmem:[#allocation8 + $0x1f38] sm:$0xff]  ;;  %v14389_v50 = vcombine.high %v2151_v45, %v2155_v10  ;;  %v14388_v0 = vcombine.low %v2151_v45, %v2155_v10 }
 0x6e5   :  { %v14391_v5 = vcombine.high %v2152_v28, %v2156_v48  ;;  %v14390_v34 = vcombine.low %v2152_v28, %v2156_v48 }
 0x6e6   :  { %12121 = vmatpush1.bf16.msra.mxu0 %v14348_v55  ;;  %v2159_v55 = vld [vmem:[#allocation8 + $0x1f50] sm:$0xff] }
 0x6e7   :  { %12757 = vmatpush1.bf16.msra.mxu1 %v14350_v1  ;;  %12122 = vmatprep.subr.bf16.mxu0 %v14357_v11  ;;  %v2163_v1 = vld [vmem:[#allocation8 + $0x1f70] sm:$0xff]  ;;  %v2160_v11 = vld [vmem:[#allocation8 + $0x1f58] sm:$0xff] }
 0x6e8   :  { %12758 = vmatprep.subr.bf16.mxu1 %v14359_v7  ;;  %v2164_v7 = vld [vmem:[#allocation8 + $0x1f78] sm:$0xff]  ;;  %v14397_v35 = vcombine.high %v2159_v55, %v2163_v1  ;;  %v14396_v61 = vcombine.low %v2159_v55, %v2163_v1 }
 0x6e9   :  { %v14399_v18 = vcombine.high %v2160_v11, %v2164_v7  ;;  %v14398_v59 = vcombine.low %v2160_v11, %v2164_v7 }
 0x6ea   :  { %12123 = vmatpush1.bf16.msra.mxu0 %v14356_v3  ;;  %v2167_v3 = vld [vmem:[#allocation8 + $0x1f90] sm:$0xff] }
 0x6eb   :  { %12759 = vmatpush1.bf16.msra.mxu1 %v14358_v14  ;;  %12124 = vmatprep.subr.bf16.mxu0 %v14365_v29  ;;  %v2171_v14 = vld [vmem:[#allocation8 + $0x1fb0] sm:$0xff]  ;;  %v2168_v29 = vld [vmem:[#allocation8 + $0x1f98] sm:$0xff] }
 0x6ec   :  { %12760 = vmatprep.subr.bf16.mxu1 %v14367_v9  ;;  %v2172_v9 = vld [vmem:[#allocation8 + $0x1fb8] sm:$0xff]  ;;  %v14405_v42 = vcombine.high %v2167_v3, %v2171_v14  ;;  %v14404_v52 = vcombine.low %v2167_v3, %v2171_v14 }
 0x6ed   :  { %v14407_v17 = vcombine.high %v2168_v29, %v2172_v9  ;;  %v14406_v41 = vcombine.low %v2168_v29, %v2172_v9  ;;  %v2204_v3 = vld [vmem:[#allocation8 + $0x20b8] sm:$0xff] }
 0x6ee   :  { %12125 = vmatpush1.bf16.msra.mxu0 %v14364_v47  ;;  %v2175_v47 = vld [vmem:[#allocation8 + $0x1fd0] sm:$0xff] }
 0x6ef   :  { %12761 = vmatpush1.bf16.msra.mxu1 %v14366_v36  ;;  %12126 = vmatprep.subr.bf16.mxu0 %v14373_v53  ;;  %v2179_v36 = vld [vmem:[#allocation8 + $0x1ff0] sm:$0xff]  ;;  %v2176_v53 = vld [vmem:[#allocation8 + $0x1fd8] sm:$0xff] }
 0x6f0   :  { %12762 = vmatprep.subr.bf16.mxu1 %v14375_v15  ;;  %v2180_v15 = vld [vmem:[#allocation8 + $0x1ff8] sm:$0xff]  ;;  %v14413_v30 = vcombine.high %v2175_v47, %v2179_v36  ;;  %v14412_v45 = vcombine.low %v2175_v47, %v2179_v36 }
 0x6f1   :  { %v14415_v20 = vcombine.high %v2176_v53, %v2180_v15  ;;  %v14414_v10 = vcombine.low %v2176_v53, %v2180_v15  ;;  %v2212_v47 = vld [vmem:[#allocation8 + $0x20f8] sm:$0xff]  ;;  %v18790_v15 = vld [vmem:[#allocation41_spill] sm:$0xff] }
 0x6f2   :  { %12127 = vmatpush1.bf16.msra.mxu0 %v14372_v40  ;;  %v2183_v40 = vld [vmem:[#allocation8 + $0x2010] sm:$0xff] }
 0x6f3   :  { %12763 = vmatpush1.bf16.msra.mxu1 %v14374_v51  ;;  %12128 = vmatprep.subr.bf16.mxu0 %v14381_v25  ;;  %v2187_v51 = vld [vmem:[#allocation8 + $0x2030] sm:$0xff]  ;;  %v2184_v25 = vld [vmem:[#allocation8 + $0x2018] sm:$0xff] }
 0x6f4   :  { %12764 = vmatprep.subr.bf16.mxu1 %v14383_v12  ;;  %v2188_v12 = vld [vmem:[#allocation8 + $0x2038] sm:$0xff]  ;;  %v14421_v28 = vcombine.high %v2183_v40, %v2187_v51  ;;  %v14420_v55 = vcombine.low %v2183_v40, %v2187_v51 }
 0x6f5   :  { %v14423_v48 = vcombine.high %v2184_v25, %v2188_v12  ;;  %v14422_v1 = vcombine.low %v2184_v25, %v2188_v12  ;;  %v2216_v40 = vld [vmem:[#allocation8 + $0x2118] sm:$0xff] }
 0x6f6   :  { %12129 = vmatpush1.bf16.msra.mxu0 %v14380_v13  ;;  %v2191_v13 = vld [vmem:[#allocation8 + $0x2050] sm:$0xff]  ;;  %v2220_v51 = vld [vmem:[#allocation8 + $0x2138] sm:$0xff] }
 0x6f7   :  { %12765 = vmatpush1.bf16.msra.mxu1 %v14382_v58  ;;  %12130 = vmatprep.subr.bf16.mxu0 %v14389_v50  ;;  %v2195_v58 = vld [vmem:[#allocation8 + $0x2070] sm:$0xff]  ;;  %v2192_v50 = vld [vmem:[#allocation8 + $0x2058] sm:$0xff] }
 0x6f8   :  { %12766 = vmatprep.subr.bf16.mxu1 %v14391_v5  ;;  %v2196_v5 = vld [vmem:[#allocation8 + $0x2078] sm:$0xff]  ;;  %v14429_v11 = vcombine.high %v2191_v13, %v2195_v58  ;;  %v14428_v14 = vcombine.low %v2191_v13, %v2195_v58 }
 0x6f9   :  { %v14431_v7 = vcombine.high %v2192_v50, %v2196_v5  ;;  %v14430_v29 = vcombine.low %v2192_v50, %v2196_v5  ;;  %v2224_v13 = vld [vmem:[#allocation8 + $0x2158] sm:$0xff]  ;;  %v14454_v5 = vcombine.low %v2216_v40, %v2220_v51 }
 0x6fa   :  { %12131 = vmatpush1.bf16.msra.mxu0 %v14388_v0  ;;  %v2199_v0 = vld [vmem:[#allocation8 + $0x2090] sm:$0xff]  ;;  %v2228_v58 = vld [vmem:[#allocation8 + $0x2178] sm:$0xff] }
 0x6fb   :  { %12767 = vmatpush1.bf16.msra.mxu1 %v14390_v34  ;;  %12132 = vmatprep.subr.bf16.mxu0 %v14397_v35  ;;  %v2203_v34 = vld [vmem:[#allocation8 + $0x20b0] sm:$0xff]  ;;  %v18789_v35 = vld [vmem:[#allocation58_spill] sm:$0xff] }
 0x6fc   :  { %12768 = vmatprep.subr.bf16.mxu1 %v14399_v18  ;;  %v2200_v18 = vld [vmem:[#allocation8 + $0x2098] sm:$0xff]  ;;  %v14437_v9 = vcombine.high %v2199_v0, %v2203_v34 }
 0x6fd   :  { %v14438_v36 = vcombine.low %v2200_v18, %v2204_v3 }
 0x6fe   :  { %12133 = vmatpush1.bf16.msra.mxu0 %v14396_v61  ;;  %v14439_v61 = vcombine.high %v2200_v18, %v2204_v3  ;;  %v14462_v18 = vcombine.low %v2224_v13, %v2228_v58 }
 0x6ff   :  { %12769 = vmatpush1.bf16.msra.mxu1 %v14398_v59  ;;  %12134 = vmatprep.subr.bf16.mxu0 %v14405_v42  ;;  %v2207_v59 = vld [vmem:[#allocation8 + $0x20d0] sm:$0xff] }
 0x700   :  { %12770 = vmatprep.subr.bf16.mxu1 %v14407_v17  ;;  %v2211_v42 = vld [vmem:[#allocation8 + $0x20f0] sm:$0xff]  ;;  %v2208_v17 = vld [vmem:[#allocation8 + $0x20d8] sm:$0xff] }
 0x701   :  { %v14445_v53 = vcombine.high %v2207_v59, %v2211_v42  ;;  %v14444_v25 = vcombine.low %v2207_v59, %v2211_v42  ;;  %v14446_v12 = vcombine.low %v2208_v17, %v2212_v47  ;;  %v2244_v59 = vld [vmem:[#allocation8 + $0x21f8] sm:$0xff] }
 0x702   :  { %12135 = vmatpush1.bf16.msra.mxu0 %v14404_v52  ;;  %v14447_v52 = vcombine.high %v2208_v17, %v2212_v47 }
 0x703   :  { %12771 = vmatpush1.bf16.msra.mxu1 %v14406_v41  ;;  %12136 = vmatprep.subr.bf16.mxu0 %v14413_v30  ;;  %v2215_v41 = vld [vmem:[#allocation8 + $0x2110] sm:$0xff] }
 0x704   :  { %12772 = vmatprep.subr.bf16.mxu1 %v14415_v20  ;;  %v2219_v30 = vld [vmem:[#allocation8 + $0x2130] sm:$0xff]  ;;  %v18791_v20 = vld [vmem:[#allocation94_spill] sm:$0xff] }
 0x705   :  { %v14452_v50 = vcombine.low %v2215_v41, %v2219_v30 }
 0x706   :  { %12137 = vmatpush1.bf16.msra.mxu0 %v14412_v45  ;;  %v14453_v45 = vcombine.high %v2215_v41, %v2219_v30 }
 0x707   :  { %12773 = vmatpush1.bf16.msra.mxu1 %v14414_v10  ;;  %12159 = vmatprep.subr.bf16.mxu0 %v14421_v28  ;;  %v14455_v10 = vcombine.high %v2216_v40, %v2220_v51  ;;  %v2223_v28 = vld [vmem:[#allocation8 + $0x2150] sm:$0xff] }
 0x708   :  { %12795 = vmatprep.subr.bf16.mxu1 %v14423_v48  ;;  %v2227_v48 = vld [vmem:[#allocation8 + $0x2170] sm:$0xff] }
 0x709   :  { %12139 = vmatmul.mubr.bf16.vlgmr.msra.gmra.mrb[8].mxu0 %v18762_v57  ;;  %v2255_v51 = vld [vmem:[#allocation8 + $0x2250] sm:$0xff] }
 0x70a   :  { %12775 = vmatmul.mubr.bf16.vlgmr.msra.gmra.mrb[8].mxu1 %v18762_v57  ;;  %12148 = vmatprep.mubr.bf16.mxu0 %v18789_v35  ;;  %v14436_v57 = vcombine.low %v2199_v0, %v2203_v34  ;;  %v2232_v0 = vld [vmem:[#allocation8 + $0x2198] sm:$0xff] }
 0x70b   :  { %12160 = vmatpush1.bf16.msra.mxu0 %v14420_v55  ;;  %12784 = vmatprep.mubr.bf16.mxu1 %v18789_v35  ;;  %v14461_v55 = vcombine.high %v2223_v28, %v2227_v48  ;;  %v2236_v34 = vld [vmem:[#allocation8 + $0x21b8] sm:$0xff]  ;;  %v14460_v35 = vcombine.low %v2223_v28, %v2227_v48 }
 0x70c   :  { %12796 = vmatpush1.bf16.msra.mxu1 %v14422_v1  ;;  %12161 = vmatprep.subr.bf16.mxu0 %v14429_v11  ;;  %v14463_v1 = vcombine.high %v2224_v13, %v2228_v58  ;;  %v2231_v11 = vld [vmem:[#allocation8 + $0x2190] sm:$0xff]  ;;  %v14470_v17 = vcombine.low %v2232_v0, %v2236_v34 }
 0x70d   :  { %12797 = vmatprep.subr.bf16.mxu1 %v14431_v7  ;;  %v2235_v7 = vld [vmem:[#allocation8 + $0x21b0] sm:$0xff] }
 0x70e   :  { %v14469_v3 = vcombine.high %v2231_v11, %v2235_v7  ;;  %v14468_v42 = vcombine.low %v2231_v11, %v2235_v7  ;;  %v2263_v58 = vld [vmem:[#allocation8 + $0x2290] sm:$0xff] }
 0x70f   :  { %12162 = vmatpush1.bf16.msra.mxu0 %v14428_v14  ;;  %v14471_v14 = vcombine.high %v2232_v0, %v2236_v34  ;;  %v2271_v34 = vld [vmem:[#allocation8 + $0x22d0] sm:$0xff] }
 0x710   :  { %12798 = vmatpush1.bf16.msra.mxu1 %v14430_v29  ;;  %12163 = vmatprep.subr.bf16.mxu0 %v14437_v9  ;;  %v2239_v29 = vld [vmem:[#allocation8 + $0x21d0] sm:$0xff] }
 0x711   :  { %12149 = vmatmul.mubr.bf16.gmra.mrb[12].mxu0 %v18790_v15  ;;  %12799 = vmatprep.subr.bf16.mxu1 %v14439_v61  ;;  %v2243_v9 = vld [vmem:[#allocation8 + $0x21f0] sm:$0xff]  ;;  %v2240_v61 = vld [vmem:[#allocation8 + $0x21d8] sm:$0xff] }
 0x712   :  { %12785 = vmatmul.mubr.bf16.gmra.mrb[12].mxu1 %v18790_v15  ;;  %12191 = vmatprep.mubr.bf16.mxu0 %v18791_v20  ;;  %v14477_v47 = vcombine.high %v2239_v29, %v2243_v9  ;;  %v2248_v15 = vld [vmem:[#allocation8 + $0x2218] sm:$0xff]  ;;  %v14476_v41 = vcombine.low %v2239_v29, %v2243_v9  ;;  %v14478_v30 = vcombine.low %v2240_v61, %v2244_v59 }
 0x713   :  { %12164 = vmatpush1.bf16.msra.mxu0 %v14436_v57  ;;  %12827 = vmatprep.mubr.bf16.mxu1 %v18791_v20  ;;  %v14479_v57 = vcombine.high %v2240_v61, %v2244_v59  ;;  %v2279_v59 = vld [vmem:[#allocation8 + $0x2310] sm:$0xff] }
 0x714   :  { %12800 = vmatpush1.bf16.msra.mxu1 %v14438_v36  ;;  %12165 = vmatprep.subr.bf16.mxu0 %v14445_v53  ;;  %v2247_v36 = vld [vmem:[#allocation8 + $0x2210] sm:$0xff] }
 0x715   :  { %12801 = vmatprep.subr.bf16.mxu1 %v14447_v52  ;;  %v2251_v53 = vld [vmem:[#allocation8 + $0x2230] sm:$0xff]  ;;  %v2252_v52 = vld [vmem:[#allocation8 + $0x2238] sm:$0xff] }
 0x716   :  { %v14485_v20 = vcombine.high %v2247_v36, %v2251_v53  ;;  %v14487_v40 = vcombine.high %v2248_v15, %v2252_v52  ;;  %v14486_v28 = vcombine.low %v2248_v15, %v2252_v52  ;;  %v2287_v52 = vld [vmem:[#allocation8 + $0x2350] sm:$0xff] }
 0x717   :  { %12166 = vmatpush1.bf16.msra.mxu0 %v14444_v25  ;;  %v2259_v25 = vld [vmem:[#allocation8 + $0x2270] sm:$0xff] }
 0x718   :  { %12802 = vmatpush1.bf16.msra.mxu1 %v14446_v12  ;;  %12167 = vmatprep.subr.bf16.mxu0 %v14453_v45  ;;  %v2256_v12 = vld [vmem:[#allocation8 + $0x2258] sm:$0xff]  ;;  %v14493_v48 = vcombine.high %v2255_v51, %v2259_v25 }
 0x719   :  { %12803 = vmatprep.subr.bf16.mxu1 %v14455_v10  ;;  %v2260_v45 = vld [vmem:[#allocation8 + $0x2278] sm:$0xff]  ;;  %v14484_v10 = vcombine.low %v2247_v36, %v2251_v53 }
 0x71a   :  { %v14495_v13 = vcombine.high %v2256_v12, %v2260_v45  ;;  %v14494_v11 = vcombine.low %v2256_v12, %v2260_v45  ;;  %v2295_v45 = vld [vmem:[#allocation8 + $0x2390] sm:$0xff] }
 0x71b   :  { %12168 = vmatpush1.bf16.msra.mxu0 %v14452_v50  ;;  %v2267_v50 = vld [vmem:[#allocation8 + $0x22b0] sm:$0xff] }
 0x71c   :  { %12804 = vmatpush1.bf16.msra.mxu1 %v14454_v5  ;;  %12169 = vmatprep.subr.bf16.mxu0 %v14461_v55  ;;  %v2264_v5 = vld [vmem:[#allocation8 + $0x2298] sm:$0xff]  ;;  %v14501_v7 = vcombine.high %v2263_v58, %v2267_v50 }
 0x71d   :  { %12805 = vmatprep.subr.bf16.mxu1 %v14463_v1  ;;  %v2268_v55 = vld [vmem:[#allocation8 + $0x22b8] sm:$0xff]  ;;  %v14492_v1 = vcombine.low %v2255_v51, %v2259_v25 }
 0x71e   :  { %v14503_v0 = vcombine.high %v2264_v5, %v2268_v55  ;;  %v14502_v29 = vcombine.low %v2264_v5, %v2268_v55  ;;  %v2303_v55 = vld [vmem:[#allocation8 + $0x23d0] sm:$0xff] }
 0x71f   :  { %12170 = vmatpush1.bf16.msra.mxu0 %v14460_v35  ;;  %v2275_v35 = vld [vmem:[#allocation8 + $0x22f0] sm:$0xff] }
 0x720   :  { %12806 = vmatpush1.bf16.msra.mxu1 %v14462_v18  ;;  %12171 = vmatprep.subr.bf16.mxu0 %v14469_v3  ;;  %v2272_v18 = vld [vmem:[#allocation8 + $0x22d8] sm:$0xff]  ;;  %v14509_v9 = vcombine.high %v2271_v34, %v2275_v35 }
 0x721   :  { %12807 = vmatprep.subr.bf16.mxu1 %v14471_v14  ;;  %v2276_v3 = vld [vmem:[#allocation8 + $0x22f8] sm:$0xff]  ;;  %v14500_v14 = vcombine.low %v2263_v58, %v2267_v50 }
 0x722   :  { %v14511_v61 = vcombine.high %v2272_v18, %v2276_v3  ;;  %v14510_v36 = vcombine.low %v2272_v18, %v2276_v3  ;;  %v2311_v3 = vld [vmem:[#allocation8 + $0x2410] sm:$0xff] }
 0x723   :  { %12172 = vmatpush1.bf16.msra.mxu0 %v14468_v42  ;;  %v2283_v42 = vld [vmem:[#allocation8 + $0x2330] sm:$0xff] }
 0x724   :  { %12808 = vmatpush1.bf16.msra.mxu1 %v14470_v17  ;;  %12173 = vmatprep.subr.bf16.mxu0 %v14477_v47  ;;  %v2280_v17 = vld [vmem:[#allocation8 + $0x2318] sm:$0xff]  ;;  %v14517_v53 = vcombine.high %v2279_v59, %v2283_v42 }
 0x725   :  { %12809 = vmatprep.subr.bf16.mxu1 %v14479_v57  ;;  %v2284_v47 = vld [vmem:[#allocation8 + $0x2338] sm:$0xff]  ;;  %v14508_v57 = vcombine.low %v2271_v34, %v2275_v35 }
 0x726   :  { %v14519_v15 = vcombine.high %v2280_v17, %v2284_v47  ;;  %v14518_v51 = vcombine.low %v2280_v17, %v2284_v47  ;;  %v2319_v47 = vld [vmem:[#allocation8 + $0x2450] sm:$0xff] }
 0x727   :  { %12174 = vmatpush1.bf16.msra.mxu0 %v14476_v41  ;;  %v2291_v41 = vld [vmem:[#allocation8 + $0x2370] sm:$0xff] }
 0x728   :  { %12810 = vmatpush1.bf16.msra.mxu1 %v14478_v30  ;;  %12175 = vmatprep.subr.bf16.mxu0 %v14485_v20  ;;  %v2288_v30 = vld [vmem:[#allocation8 + $0x2358] sm:$0xff]  ;;  %v14525_v25 = vcombine.high %v2287_v52, %v2291_v41 }
 0x729   :  { %12811 = vmatprep.subr.bf16.mxu1 %v14487_v40  ;;  %v2292_v20 = vld [vmem:[#allocation8 + $0x2378] sm:$0xff]  ;;  %v14516_v40 = vcombine.low %v2279_v59, %v2283_v42 }
 0x72a   :  { %v14527_v12 = vcombine.high %v2288_v30, %v2292_v20  ;;  %v14526_v58 = vcombine.low %v2288_v30, %v2292_v20  ;;  %v2327_v20 = vld [vmem:[#allocation8 + $0x2490] sm:$0xff] }
 0x72b   :  { %12176 = vmatpush1.bf16.msra.mxu0 %v14484_v10  ;;  %v2299_v10 = vld [vmem:[#allocation8 + $0x23b0] sm:$0xff] }
 0x72c   :  { %12812 = vmatpush1.bf16.msra.mxu1 %v14486_v28  ;;  %12177 = vmatprep.subr.bf16.mxu0 %v14493_v48  ;;  %v2296_v28 = vld [vmem:[#allocation8 + $0x2398] sm:$0xff]  ;;  %v14533_v50 = vcombine.high %v2295_v45, %v2299_v10 }
 0x72d   :  { %12813 = vmatprep.subr.bf16.mxu1 %v14495_v13  ;;  %v2300_v48 = vld [vmem:[#allocation8 + $0x23b8] sm:$0xff]  ;;  %v14524_v13 = vcombine.low %v2287_v52, %v2291_v41 }
 0x72e   :  { %v14535_v5 = vcombine.high %v2296_v28, %v2300_v48  ;;  %v14534_v34 = vcombine.low %v2296_v28, %v2300_v48  ;;  %v2335_v48 = vld [vmem:[#allocation8 + $0x24d0] sm:$0xff] }
 0x72f   :  { %12178 = vmatpush1.bf16.msra.mxu0 %v14492_v1  ;;  %v2307_v1 = vld [vmem:[#allocation8 + $0x23f0] sm:$0xff] }
 0x730   :  { %12814 = vmatpush1.bf16.msra.mxu1 %v14494_v11  ;;  %12179 = vmatprep.subr.bf16.mxu0 %v14501_v7  ;;  %v2304_v11 = vld [vmem:[#allocation8 + $0x23d8] sm:$0xff]  ;;  %v14541_v35 = vcombine.high %v2303_v55, %v2307_v1 }
 0x731   :  { %12815 = vmatprep.subr.bf16.mxu1 %v14503_v0  ;;  %v2308_v7 = vld [vmem:[#allocation8 + $0x23f8] sm:$0xff]  ;;  %v14532_v0 = vcombine.low %v2295_v45, %v2299_v10 }
 0x732   :  { %v14543_v18 = vcombine.high %v2304_v11, %v2308_v7  ;;  %v14542_v59 = vcombine.low %v2304_v11, %v2308_v7  ;;  %v2347_v11 = vld [vmem:[#allocation8 + $0x2530] sm:$0xff]  ;;  %v2344_v7 = vld [vmem:[#allocation8 + $0x2518] sm:$0xff] }
 0x733   :  { %12180 = vmatpush1.bf16.msra.mxu0 %v14500_v14  ;;  %v2315_v14 = vld [vmem:[#allocation8 + $0x2430] sm:$0xff] }
 0x734   :  { %12816 = vmatpush1.bf16.msra.mxu1 %v14502_v29  ;;  %12181 = vmatprep.subr.bf16.mxu0 %v14509_v9  ;;  %v2312_v29 = vld [vmem:[#allocation8 + $0x2418] sm:$0xff]  ;;  %v14549_v42 = vcombine.high %v2311_v3, %v2315_v14 }
 0x735   :  { %12817 = vmatprep.subr.bf16.mxu1 %v14511_v61  ;;  %v2316_v9 = vld [vmem:[#allocation8 + $0x2438] sm:$0xff]  ;;  %v14540_v61 = vcombine.low %v2303_v55, %v2307_v1  ;;  %v2343_v1 = vld [vmem:[#allocation8 + $0x2510] sm:$0xff] }
 0x736   :  { %v14551_v17 = vcombine.high %v2312_v29, %v2316_v9  ;;  %v14550_v52 = vcombine.low %v2312_v29, %v2316_v9  ;;  %v2355_v29 = vld [vmem:[#allocation8 + $0x2570] sm:$0xff]  ;;  %v2352_v9 = vld [vmem:[#allocation8 + $0x2558] sm:$0xff] }
 0x737   :  { %12182 = vmatpush1.bf16.msra.mxu0 %v14508_v57  ;;  %v2323_v57 = vld [vmem:[#allocation8 + $0x2470] sm:$0xff] }
 0x738   :  { %12818 = vmatpush1.bf16.msra.mxu1 %v14510_v36  ;;  %12183 = vmatprep.subr.bf16.mxu0 %v14517_v53  ;;  %v2320_v36 = vld [vmem:[#allocation8 + $0x2458] sm:$0xff]  ;;  %v14557_v41 = vcombine.high %v2319_v47, %v2323_v57 }
 0x739   :  { %12819 = vmatprep.subr.bf16.mxu1 %v14519_v15  ;;  %v2324_v53 = vld [vmem:[#allocation8 + $0x2478] sm:$0xff]  ;;  %v14548_v15 = vcombine.low %v2311_v3, %v2315_v14  ;;  %v2351_v14 = vld [vmem:[#allocation8 + $0x2550] sm:$0xff] }
 0x73a   :  { %v14559_v30 = vcombine.high %v2320_v36, %v2324_v53  ;;  %v14558_v45 = vcombine.low %v2320_v36, %v2324_v53  ;;  %v2364_v36 = vld [vmem:[#allocation8 + $0x25b8] sm:$0xff]  ;;  %v14588_v53 = vcombine.low %v2351_v14, %v2355_v29 }
 0x73b   :  { %12184 = vmatpush1.bf16.msra.mxu0 %v14516_v40  ;;  %v2331_v40 = vld [vmem:[#allocation8 + $0x24b0] sm:$0xff] }
 0x73c   :  { %12820 = vmatpush1.bf16.msra.mxu1 %v14518_v51  ;;  %12185 = vmatprep.subr.bf16.mxu0 %v14525_v25  ;;  %v2328_v51 = vld [vmem:[#allocation8 + $0x2498] sm:$0xff]  ;;  %v14565_v10 = vcombine.high %v2327_v20, %v2331_v40 }
 0x73d   :  { %12821 = vmatprep.subr.bf16.mxu1 %v14527_v12  ;;  %v2332_v25 = vld [vmem:[#allocation8 + $0x24b8] sm:$0xff]  ;;  %v14556_v12 = vcombine.low %v2319_v47, %v2323_v57  ;;  %v2363_v47 = vld [vmem:[#allocation8 + $0x25b0] sm:$0xff] }
 0x73e   :  { %v14567_v28 = vcombine.high %v2328_v51, %v2332_v25  ;;  %v2360_v57 = vld [vmem:[#allocation8 + $0x2598] sm:$0xff] }
 0x73f   :  { %12186 = vmatpush1.bf16.msra.mxu0 %v14524_v13  ;;  %v2339_v13 = vld [vmem:[#allocation8 + $0x24f0] sm:$0xff] }
 0x740   :  { %12822 = vmatpush1.bf16.msra.mxu1 %v14526_v58  ;;  %12187 = vmatprep.subr.bf16.mxu0 %v14533_v50  ;;  %v2336_v58 = vld [vmem:[#allocation8 + $0x24d8] sm:$0xff]  ;;  %v14573_v55 = vcombine.high %v2335_v48, %v2339_v13 }
 0x741   :  { %12823 = vmatprep.subr.bf16.mxu1 %v14535_v5  ;;  %v2340_v50 = vld [vmem:[#allocation8 + $0x24f8] sm:$0xff]  ;;  %v14566_v5 = vcombine.low %v2328_v51, %v2332_v25 }
 0x742   :  { %v2372_v51 = vld [vmem:[#allocation8 + $0x25f8] sm:$0xff] }
 0x743   :  { %12188 = vmatpush1.bf16.msra.mxu0 %v14532_v0  ;;  %v2348_v0 = vld [vmem:[#allocation8 + $0x2538] sm:$0xff] }
 0x744   :  { %12824 = vmatpush1.bf16.msra.mxu1 %v14534_v34  ;;  %12189 = vmatprep.subr.bf16.mxu0 %v14541_v35  ;;  %v14572_v34 = vcombine.low %v2335_v48, %v2339_v13  ;;  %v14574_v35 = vcombine.low %v2336_v58, %v2340_v50  ;;  %v14583_v3 = vcombine.high %v2344_v7, %v2348_v0  ;;  %v2379_v48 = vld [vmem:[#allocation8 + $0x2630] sm:$0xff]  ;;  %v2376_v13 = vld [vmem:[#allocation8 + $0x2618] sm:$0xff] }
 0x745   :  { %12825 = vmatprep.subr.bf16.mxu1 %v14543_v18  ;;  %v14581_v18 = vcombine.high %v2343_v1, %v2347_v11 }
 0x747   :  { %12190 = vmatpush1.bf16.msra.mxu0 %v14540_v61  ;;  %v2356_v61 = vld [vmem:[#allocation8 + $0x2578] sm:$0xff] }
 0x748   :  { %12826 = vmatpush1.bf16.msra.mxu1 %v14542_v59  ;;  %12212 = vmatprep.subr.bf16.mxu0 %v14549_v42  ;;  %v14582_v59 = vcombine.low %v2344_v7, %v2348_v0  ;;  %v14589_v42 = vcombine.high %v2351_v14, %v2355_v29  ;;  %v2388_v7 = vld [vmem:[#allocation8 + $0x2678] sm:$0xff]  ;;  %v2395_v14 = vld [vmem:[#allocation8 + $0x26b0] sm:$0xff] }
 0x749   :  { %12848 = vmatprep.subr.bf16.mxu1 %v14551_v17  ;;  %v14591_v17 = vcombine.high %v2352_v9, %v2356_v61  ;;  %v2392_v29 = vld [vmem:[#allocation8 + $0x2698] sm:$0xff] }
 0x74a   :  { %12192 = vmatmul.mubr.bf16.vlgmr.msra.gmra.mrb[8].mxu0 %v17653_v32 }
 0x74b   :  { %12828 = vmatmul.mubr.bf16.vlgmr.msra.gmra.mrb[8].mxu1 %v17653_v32  ;;  %12201 = vmatprep.mubr.bf16.mxu0 %v17655_v27  ;;  %v14564_v32 = vcombine.low %v2327_v20, %v2331_v40  ;;  %v2371_v20 = vld [vmem:[#allocation8 + $0x25f0] sm:$0xff]  ;;  %v2368_v40 = vld [vmem:[#allocation8 + $0x25d8] sm:$0xff] }
 0x74c   :  { %12213 = vmatpush1.bf16.msra.mxu0 %v14548_v15  ;;  %12837 = vmatprep.mubr.bf16.mxu1 %v17655_v27  ;;  %v14575_v27 = vcombine.high %v2336_v58, %v2340_v50  ;;  %v14590_v15 = vcombine.low %v2352_v9, %v2356_v61  ;;  %v2380_v58 = vld [vmem:[#allocation8 + $0x2638] sm:$0xff] }
 0x74d   :  { %12849 = vmatpush1.bf16.msra.mxu1 %v14550_v52  ;;  %12214 = vmatprep.subr.bf16.mxu0 %v14557_v41  ;;  %v14599_v41 = vcombine.high %v2360_v57, %v2364_v36  ;;  %v2396_v9 = vld [vmem:[#allocation8 + $0x26b8] sm:$0xff] }
 0x74e   :  { %12850 = vmatprep.subr.bf16.mxu1 %v14559_v30  ;;  %v2367_v30 = vld [vmem:[#allocation8 + $0x25d0] sm:$0xff] }
 0x74f   :  { %v14604_v50 = vcombine.low %v2367_v30, %v2371_v20 }
 0x750   :  { %12215 = vmatpush1.bf16.msra.mxu0 %v14556_v12  ;;  %v14598_v12 = vcombine.low %v2360_v57, %v2364_v36  ;;  %v2404_v57 = vld [vmem:[#allocation8 + $0x26f8] sm:$0xff] }
 0x751   :  { %12851 = vmatpush1.bf16.msra.mxu1 %v14558_v45  ;;  %12216 = vmatprep.subr.bf16.mxu0 %v14565_v10  ;;  %v14605_v45 = vcombine.high %v2367_v30, %v2371_v20  ;;  %v14607_v10 = vcombine.high %v2368_v40, %v2372_v51  ;;  %v2411_v30 = vld [vmem:[#allocation8 + $0x2730] sm:$0xff]  ;;  %v2408_v20 = vld [vmem:[#allocation8 + $0x2718] sm:$0xff] }
 0x752   :  { %12202 = vmatmul.mubr.bf16.gmra.mrb[12].mxu0 %v17661_v6  ;;  %12852 = vmatprep.subr.bf16.mxu1 %v14567_v28  ;;  %v2375_v28 = vld [vmem:[#allocation8 + $0x2610] sm:$0xff] }
 0x753   :  { %12838 = vmatmul.mubr.bf16.gmra.mrb[12].mxu1 %v17661_v6  ;;  %12244 = vmatprep.mubr.bf16.mxu0 %v17351_v19  ;;  %v14580_v6 = vcombine.low %v2343_v1, %v2347_v11  ;;  %v2387_v1 = vld [vmem:[#allocation8 + $0x2670] sm:$0xff]  ;;  %v2384_v11 = vld [vmem:[#allocation8 + $0x2658] sm:$0xff]  ;;  %v14612_v0 = vcombine.low %v2375_v28, %v2379_v48 }
 0x754   :  { %12217 = vmatpush1.bf16.msra.mxu0 %v14564_v32  ;;  %12880 = vmatprep.mubr.bf16.mxu1 %v17351_v19  ;;  %v2359_v19 = vld [vmem:[#allocation8 + $0x2590] sm:$0xff]  ;;  %v14606_v32 = vcombine.low %v2368_v40, %v2372_v51  ;;  %v2412_v40 = vld [vmem:[#allocation8 + $0x2738] sm:$0xff] }
 0x755   :  { %12853 = vmatpush1.bf16.msra.mxu1 %v14566_v5  ;;  %12218 = vmatprep.subr.bf16.mxu0 %v14573_v55  ;;  %v14597_v52 = vcombine.high %v2359_v19, %v2363_v47  ;;  %v14596_v25 = vcombine.low %v2359_v19, %v2363_v47  ;;  %v14613_v5 = vcombine.high %v2375_v28, %v2379_v48  ;;  %v2403_v19 = vld [vmem:[#allocation8 + $0x26f0] sm:$0xff]  ;;  %v2400_v47 = vld [vmem:[#allocation8 + $0x26d8] sm:$0xff] }
 0x756   :  { %12854 = vmatprep.subr.bf16.mxu1 %v14575_v27  ;;  %v14615_v55 = vcombine.high %v2376_v13, %v2380_v58  ;;  %v2383_v27 = vld [vmem:[#allocation8 + $0x2650] sm:$0xff]  ;;  %v2416_v48 = vld [vmem:[#allocation8 + $0x2758] sm:$0xff] }
 0x757   :  { %v14620_v61 = vcombine.low %v2383_v27, %v2387_v1  ;;  %v2419_v28 = vld [vmem:[#allocation8 + $0x2770] sm:$0xff] }
 0x758   :  { %12219 = vmatpush1.bf16.msra.mxu0 %v14572_v34  ;;  %v14614_v34 = vcombine.low %v2376_v13, %v2380_v58  ;;  %v2420_v13 = vld [vmem:[#allocation8 + $0x2778] sm:$0xff] }
 0x759   :  { %12855 = vmatpush1.bf16.msra.mxu1 %v14574_v35  ;;  %12220 = vmatprep.subr.bf16.mxu0 %v14581_v18  ;;  %v14621_v35 = vcombine.high %v2383_v27, %v2387_v1  ;;  %v14623_v18 = vcombine.high %v2384_v11, %v2388_v7  ;;  %v2427_v27 = vld [vmem:[#allocation8 + $0x27b0] sm:$0xff]  ;;  %v2424_v1 = vld [vmem:[#allocation8 + $0x2798] sm:$0xff] }
 0x75a   :  { %12856 = vmatprep.subr.bf16.mxu1 %v14583_v3  ;;  %v2391_v3 = vld [vmem:[#allocation8 + $0x2690] sm:$0xff] }
 0x75b   :  { %v14628_v36 = vcombine.low %v2391_v3, %v2395_v14 }
 0x75c   :  { %12221 = vmatpush1.bf16.msra.mxu0 %v14580_v6  ;;  %v14622_v6 = vcombine.low %v2384_v11, %v2388_v7  ;;  %v2428_v11 = vld [vmem:[#allocation8 + $0x27b8] sm:$0xff] }
 0x75d   :  { %12857 = vmatpush1.bf16.msra.mxu1 %v14582_v59  ;;  %12222 = vmatprep.subr.bf16.mxu0 %v14589_v42  ;;  %v14629_v59 = vcombine.high %v2391_v3, %v2395_v14  ;;  %v14631_v42 = vcombine.high %v2392_v29, %v2396_v9  ;;  %v2435_v3 = vld [vmem:[#allocation8 + $0x27f0] sm:$0xff]  ;;  %v2432_v14 = vld [vmem:[#allocation8 + $0x27d8] sm:$0xff] }
 0x75e   :  { %12858 = vmatprep.subr.bf16.mxu1 %v14591_v17  ;;  %v2399_v17 = vld [vmem:[#allocation8 + $0x26d0] sm:$0xff] }
 0x75f   :  { %v14636_v51 = vcombine.low %v2399_v17, %v2403_v19 }
 0x760   :  { %12223 = vmatpush1.bf16.msra.mxu0 %v14588_v53  ;;  %v14630_v53 = vcombine.low %v2392_v29, %v2396_v9  ;;  %v2436_v29 = vld [vmem:[#allocation8 + $0x27f8] sm:$0xff] }
 0x761   :  { %12859 = vmatpush1.bf16.msra.mxu1 %v14590_v15  ;;  %12224 = vmatprep.subr.bf16.mxu0 %v14597_v52  ;;  %v14637_v15 = vcombine.high %v2399_v17, %v2403_v19  ;;  %v14639_v52 = vcombine.high %v2400_v47, %v2404_v57  ;;  %v2443_v17 = vld [vmem:[#allocation8 + $0x2830] sm:$0xff]  ;;  %v2440_v19 = vld [vmem:[#allocation8 + $0x2818] sm:$0xff] }
 0x762   :  { %12860 = vmatprep.subr.bf16.mxu1 %v14599_v41  ;;  %v2407_v41 = vld [vmem:[#allocation8 + $0x2710] sm:$0xff] }
 0x763   :  { %v14644_v58 = vcombine.low %v2407_v41, %v2411_v30 }
 0x764   :  { %12225 = vmatpush1.bf16.msra.mxu0 %v14596_v25  ;;  %v14638_v25 = vcombine.low %v2400_v47, %v2404_v57  ;;  %v2444_v47 = vld [vmem:[#allocation8 + $0x2838] sm:$0xff] }
 0x765   :  { %12861 = vmatpush1.bf16.msra.mxu1 %v14598_v12  ;;  %12226 = vmatprep.subr.bf16.mxu0 %v14605_v45  ;;  %v14645_v12 = vcombine.high %v2407_v41, %v2411_v30  ;;  %v14647_v45 = vcombine.high %v2408_v20, %v2412_v40  ;;  %v2451_v41 = vld [vmem:[#allocation8 + $0x2870] sm:$0xff]  ;;  %v2448_v30 = vld [vmem:[#allocation8 + $0x2858] sm:$0xff] }
 0x766   :  { %12862 = vmatprep.subr.bf16.mxu1 %v14607_v10  ;;  %v2415_v10 = vld [vmem:[#allocation8 + $0x2750] sm:$0xff] }
 0x767   :  { %v14652_v7 = vcombine.low %v2415_v10, %v2419_v28 }
 0x768   :  { %12227 = vmatpush1.bf16.msra.mxu0 %v14604_v50  ;;  %v14646_v50 = vcombine.low %v2408_v20, %v2412_v40  ;;  %v2452_v20 = vld [vmem:[#allocation8 + $0x2878] sm:$0xff] }
 0x769   :  { %12863 = vmatpush1.bf16.msra.mxu1 %v14606_v32  ;;  %12228 = vmatprep.subr.bf16.mxu0 %v14613_v5  ;;  %v14653_v32 = vcombine.high %v2415_v10, %v2419_v28  ;;  %v14655_v5 = vcombine.high %v2416_v48, %v2420_v13  ;;  %v2459_v10 = vld [vmem:[#allocation8 + $0x28b0] sm:$0xff]  ;;  %v2456_v28 = vld [vmem:[#allocation8 + $0x2898] sm:$0xff] }
 0x76a   :  { %12864 = vmatprep.subr.bf16.mxu1 %v14615_v55  ;;  %v2423_v55 = vld [vmem:[#allocation8 + $0x2790] sm:$0xff] }
 0x76b   :  { %v14660_v9 = vcombine.low %v2423_v55, %v2427_v27 }
 0x76c   :  { %12229 = vmatpush1.bf16.msra.mxu0 %v14612_v0  ;;  %v14654_v0 = vcombine.low %v2416_v48, %v2420_v13  ;;  %v2460_v48 = vld [vmem:[#allocation8 + $0x28b8] sm:$0xff] }
 0x76d   :  { %12865 = vmatpush1.bf16.msra.mxu1 %v14614_v34  ;;  %12230 = vmatprep.subr.bf16.mxu0 %v14621_v35  ;;  %v14661_v34 = vcombine.high %v2423_v55, %v2427_v27  ;;  %v14663_v35 = vcombine.high %v2424_v1, %v2428_v11  ;;  %v2467_v55 = vld [vmem:[#allocation8 + $0x28f0] sm:$0xff]  ;;  %v2464_v27 = vld [vmem:[#allocation8 + $0x28d8] sm:$0xff] }
 0x76e   :  { %12866 = vmatprep.subr.bf16.mxu1 %v14623_v18  ;;  %v2431_v18 = vld [vmem:[#allocation8 + $0x27d0] sm:$0xff] }
 0x76f   :  { %v14668_v57 = vcombine.low %v2431_v18, %v2435_v3 }
 0x770   :  { %12231 = vmatpush1.bf16.msra.mxu0 %v14620_v61  ;;  %v14662_v61 = vcombine.low %v2424_v1, %v2428_v11  ;;  %v2468_v1 = vld [vmem:[#allocation8 + $0x28f8] sm:$0xff]  ;;  %v14694_v11 = vcombine.low %v2456_v28, %v2460_v48 }
 0x771   :  { %12867 = vmatpush1.bf16.msra.mxu1 %v14622_v6  ;;  %12232 = vmatprep.subr.bf16.mxu0 %v14629_v59  ;;  %v14669_v6 = vcombine.high %v2431_v18, %v2435_v3  ;;  %v14671_v59 = vcombine.high %v2432_v14, %v2436_v29  ;;  %v2476_v18 = vld [vmem:[#allocation8 + $0x2938] sm:$0xff] }
 0x772   :  { %12868 = vmatprep.subr.bf16.mxu1 %v14631_v42  ;;  %v2439_v42 = vld [vmem:[#allocation8 + $0x2810] sm:$0xff] }
 0x773   :  { %v14676_v40 = vcombine.low %v2439_v42, %v2443_v17 }
 0x774   :  { %12233 = vmatpush1.bf16.msra.mxu0 %v14628_v36  ;;  %v14670_v36 = vcombine.low %v2432_v14, %v2436_v29  ;;  %v14702_v14 = vcombine.low %v2464_v27, %v2468_v1 }
 0x775   :  { %12869 = vmatpush1.bf16.msra.mxu1 %v14630_v53  ;;  %12234 = vmatprep.subr.bf16.mxu0 %v14637_v15  ;;  %v14677_v53 = vcombine.high %v2439_v42, %v2443_v17  ;;  %v14679_v15 = vcombine.high %v2440_v19, %v2444_v47  ;;  %v2484_v42 = vld [vmem:[#allocation8 + $0x2978] sm:$0xff] }
 0x776   :  { %12870 = vmatprep.subr.bf16.mxu1 %v14639_v52  ;;  %v2447_v52 = vld [vmem:[#allocation8 + $0x2850] sm:$0xff] }
 0x777   :  { %v14684_v13 = vcombine.low %v2447_v52, %v2451_v41 }
 0x778   :  { %12235 = vmatpush1.bf16.msra.mxu0 %v14636_v51  ;;  %v14678_v51 = vcombine.low %v2440_v19, %v2444_v47 }
 0x779   :  { %12871 = vmatpush1.bf16.msra.mxu1 %v14638_v25  ;;  %12236 = vmatprep.subr.bf16.mxu0 %v14645_v12  ;;  %v14685_v25 = vcombine.high %v2447_v52, %v2451_v41  ;;  %v14687_v12 = vcombine.high %v2448_v30, %v2452_v20 }
 0x77a   :  { %12872 = vmatprep.subr.bf16.mxu1 %v14647_v45  ;;  %v2455_v45 = vld [vmem:[#allocation8 + $0x2890] sm:$0xff] }
 0x77c   :  { %12237 = vmatpush1.bf16.msra.mxu0 %v14644_v58  ;;  %v14686_v58 = vcombine.low %v2448_v30, %v2452_v20  ;;  %v2495_v20 = vld [vmem:[#allocation8 + $0x29d0] sm:$0xff] }
 0x77d   :  { %12873 = vmatpush1.bf16.msra.mxu1 %v14646_v50  ;;  %12238 = vmatprep.subr.bf16.mxu0 %v14653_v32  ;;  %v14693_v50 = vcombine.high %v2455_v45, %v2459_v10  ;;  %v14695_v32 = vcombine.high %v2456_v28, %v2460_v48  ;;  %v2503_v48 = vld [vmem:[#allocation8 + $0x2a10] sm:$0xff] }
 0x77e   :  { %12874 = vmatprep.subr.bf16.mxu1 %v14655_v5  ;;  %v2463_v5 = vld [vmem:[#allocation8 + $0x28d0] sm:$0xff] }
 0x77f   :  { %v14700_v3 = vcombine.low %v2463_v5, %v2467_v55 }
 0x780   :  { %12239 = vmatpush1.bf16.msra.mxu0 %v14652_v7  ;;  %v14701_v7 = vcombine.high %v2463_v5, %v2467_v55 }
 0x781   :  { %12875 = vmatpush1.bf16.msra.mxu1 %v14654_v0  ;;  %12240 = vmatprep.subr.bf16.mxu0 %v14661_v34  ;;  %v2471_v0 = vld [vmem:[#allocation8 + $0x2910] sm:$0xff] }
 0x782   :  { %12876 = vmatprep.subr.bf16.mxu1 %v14663_v35  ;;  %v2475_v34 = vld [vmem:[#allocation8 + $0x2930] sm:$0xff]  ;;  %v2472_v35 = vld [vmem:[#allocation8 + $0x2918] sm:$0xff] }
 0x783   :  { %v14709_v29 = vcombine.high %v2471_v0, %v2475_v34  ;;  %v14710_v17 = vcombine.low %v2472_v35, %v2476_v18 }
 0x784   :  { %12241 = vmatpush1.bf16.msra.mxu0 %v14660_v9  ;;  %v14711_v9 = vcombine.high %v2472_v35, %v2476_v18  ;;  %v2519_v18 = vld [vmem:[#allocation8 + $0x2a90] sm:$0xff] }
 0x785   :  { %12877 = vmatpush1.bf16.msra.mxu1 %v14662_v61  ;;  %12242 = vmatprep.subr.bf16.mxu0 %v14669_v6  ;;  %v2479_v61 = vld [vmem:[#allocation8 + $0x2950] sm:$0xff] }
 0x786   :  { %12878 = vmatprep.subr.bf16.mxu1 %v14671_v59  ;;  %v2483_v6 = vld [vmem:[#allocation8 + $0x2970] sm:$0xff]  ;;  %v2480_v59 = vld [vmem:[#allocation8 + $0x2958] sm:$0xff] }
 0x787   :  { %v14717_v19 = vcombine.high %v2479_v61, %v2483_v6  ;;  %v14719_v47 = vcombine.high %v2480_v59, %v2484_v42  ;;  %v14718_v52 = vcombine.low %v2480_v59, %v2484_v42  ;;  %v2527_v42 = vld [vmem:[#allocation8 + $0x2ad0] sm:$0xff] }
 0x788   :  { %12243 = vmatpush1.bf16.msra.mxu0 %v14668_v57  ;;  %v2491_v57 = vld [vmem:[#allocation8 + $0x29b0] sm:$0xff] }
 0x789   :  { %12879 = vmatpush1.bf16.msra.mxu1 %v14670_v36  ;;  %12265 = vmatprep.subr.bf16.mxu0 %v14677_v53  ;;  %v2488_v36 = vld [vmem:[#allocation8 + $0x2998] sm:$0xff] }
 0x78a   :  { %12901 = vmatprep.subr.bf16.mxu1 %v14679_v15  ;;  %v2492_v53 = vld [vmem:[#allocation8 + $0x29b8] sm:$0xff]  ;;  %v14716_v15 = vcombine.low %v2479_v61, %v2483_v6 }
 0x78b   :  { %12245 = vmatmul.mubr.bf16.vlgmr.msra.gmra.mrb[8].mxu0 %v17377_v21  ;;  %v14727_v30 = vcombine.high %v2488_v36, %v2492_v53 }
 0x78c   :  { %12881 = vmatmul.mubr.bf16.vlgmr.msra.gmra.mrb[8].mxu1 %v17377_v21  ;;  %12254 = vmatprep.mubr.bf16.mxu0 %v17404_v56  ;;  %v14692_v21 = vcombine.low %v2455_v45, %v2459_v10  ;;  %v14726_v45 = vcombine.low %v2488_v36, %v2492_v53  ;;  %v2535_v53 = vld [vmem:[#allocation8 + $0x2b10] sm:$0xff] }
 0x78d   :  { %12266 = vmatpush1.bf16.msra.mxu0 %v14676_v40  ;;  %12890 = vmatprep.mubr.bf16.mxu1 %v17404_v56  ;;  %v14703_v56 = vcombine.high %v2464_v27, %v2468_v1  ;;  %v2499_v40 = vld [vmem:[#allocation8 + $0x29f0] sm:$0xff] }
 0x78e   :  { %12902 = vmatpush1.bf16.msra.mxu1 %v14678_v51  ;;  %12267 = vmatprep.subr.bf16.mxu0 %v14685_v25  ;;  %v2496_v51 = vld [vmem:[#allocation8 + $0x29d8] sm:$0xff]  ;;  %v14733_v10 = vcombine.high %v2495_v20, %v2499_v40  ;;  %v2511_v1 = vld [vmem:[#allocation8 + $0x2a50] sm:$0xff] }
 0x78f   :  { %12903 = vmatprep.subr.bf16.mxu1 %v14687_v12  ;;  %v2500_v25 = vld [vmem:[#allocation8 + $0x29f8] sm:$0xff] }
 0x790   :  { %v14735_v28 = vcombine.high %v2496_v51, %v2500_v25  ;;  %v14734_v5 = vcombine.low %v2496_v51, %v2500_v25  ;;  %v2543_v25 = vld [vmem:[#allocation8 + $0x2b50] sm:$0xff] }
 0x791   :  { %12268 = vmatpush1.bf16.msra.mxu0 %v14684_v13  ;;  %v2507_v13 = vld [vmem:[#allocation8 + $0x2a30] sm:$0xff] }
 0x792   :  { %12904 = vmatpush1.bf16.msra.mxu1 %v14686_v58  ;;  %12269 = vmatprep.subr.bf16.mxu0 %v14693_v50  ;;  %v2504_v58 = vld [vmem:[#allocation8 + $0x2a18] sm:$0xff]  ;;  %v14741_v55 = vcombine.high %v2503_v48, %v2507_v13 }
 0x793   :  { %12255 = vmatmul.mubr.bf16.gmra.mrb[12].mxu0 %v17428_v26  ;;  %12905 = vmatprep.subr.bf16.mxu1 %v14695_v32  ;;  %v2508_v50 = vld [vmem:[#allocation8 + $0x2a38] sm:$0xff]  ;;  %v14732_v32 = vcombine.low %v2495_v20, %v2499_v40 }
 0x794   :  { %12891 = vmatmul.mubr.bf16.gmra.mrb[12].mxu1 %v17428_v26  ;;  %12297 = vmatprep.mubr.bf16.mxu0 %v17455_v4  ;;  %v14708_v26 = vcombine.low %v2471_v0, %v2475_v34  ;;  %v14743_v27 = vcombine.high %v2504_v58, %v2508_v50  ;;  %v14742_v0 = vcombine.low %v2504_v58, %v2508_v50  ;;  %v2551_v50 = vld [vmem:[#allocation8 + $0x2b90] sm:$0xff] }
 0x795   :  { %12270 = vmatpush1.bf16.msra.mxu0 %v14692_v21  ;;  %12933 = vmatprep.mubr.bf16.mxu1 %v17455_v4  ;;  %v2487_v4 = vld [vmem:[#allocation8 + $0x2990] sm:$0xff] }
 0x796   :  { %12906 = vmatpush1.bf16.msra.mxu1 %v14694_v11  ;;  %12271 = vmatprep.subr.bf16.mxu0 %v14701_v7  ;;  %v14725_v41 = vcombine.high %v2487_v4, %v2491_v57  ;;  %v14724_v12 = vcombine.low %v2487_v4, %v2491_v57  ;;  %v2515_v21 = vld [vmem:[#allocation8 + $0x2a70] sm:$0xff]  ;;  %v2512_v11 = vld [vmem:[#allocation8 + $0x2a58] sm:$0xff] }
 0x797   :  { %12907 = vmatprep.subr.bf16.mxu1 %v14703_v56  ;;  %v2516_v7 = vld [vmem:[#allocation8 + $0x2a78] sm:$0xff]  ;;  %v14740_v56 = vcombine.low %v2503_v48, %v2507_v13  ;;  %v14749_v34 = vcombine.high %v2511_v1, %v2515_v21 }
 0x798   :  { %v14751_v35 = vcombine.high %v2512_v11, %v2516_v7  ;;  %v14750_v61 = vcombine.low %v2512_v11, %v2516_v7  ;;  %v2559_v7 = vld [vmem:[#allocation8 + $0x2bd0] sm:$0xff] }
 0x799   :  { %12272 = vmatpush1.bf16.msra.mxu0 %v14700_v3  ;;  %v2523_v3 = vld [vmem:[#allocation8 + $0x2ab0] sm:$0xff] }
 0x79a   :  { %12908 = vmatpush1.bf16.msra.mxu1 %v14702_v14  ;;  %12273 = vmatprep.subr.bf16.mxu0 %v14709_v29  ;;  %v2520_v14 = vld [vmem:[#allocation8 + $0x2a98] sm:$0xff]  ;;  %v14757_v6 = vcombine.high %v2519_v18, %v2523_v3 }
 0x79b   :  { %12909 = vmatprep.subr.bf16.mxu1 %v14711_v9  ;;  %v2524_v29 = vld [vmem:[#allocation8 + $0x2ab8] sm:$0xff]  ;;  %v14748_v9 = vcombine.low %v2511_v1, %v2515_v21 }
 0x79c   :  { %v14759_v59 = vcombine.high %v2520_v14, %v2524_v29  ;;  %v14758_v4 = vcombine.low %v2520_v14, %v2524_v29  ;;  %v2567_v29 = vld [vmem:[#allocation8 + $0x2c10] sm:$0xff] }
 0x79d   :  { %12274 = vmatpush1.bf16.msra.mxu0 %v14708_v26  ;;  %v2531_v26 = vld [vmem:[#allocation8 + $0x2af0] sm:$0xff] }
 0x79e   :  { %12910 = vmatpush1.bf16.msra.mxu1 %v14710_v17  ;;  %12275 = vmatprep.subr.bf16.mxu0 %v14717_v19  ;;  %v2528_v17 = vld [vmem:[#allocation8 + $0x2ad8] sm:$0xff]  ;;  %v14765_v57 = vcombine.high %v2527_v42, %v2531_v26 }
 0x79f   :  { %12911 = vmatprep.subr.bf16.mxu1 %v14719_v47  ;;  %v2532_v19 = vld [vmem:[#allocation8 + $0x2af8] sm:$0xff]  ;;  %v14756_v47 = vcombine.low %v2519_v18, %v2523_v3 }
 0x7a0   :  { %v14767_v36 = vcombine.high %v2528_v17, %v2532_v19  ;;  %v14766_v20 = vcombine.low %v2528_v17, %v2532_v19  ;;  %v2575_v19 = vld [vmem:[#allocation8 + $0x2c50] sm:$0xff] }
 0x7a1   :  { %12276 = vmatpush1.bf16.msra.mxu0 %v14716_v15  ;;  %v2539_v15 = vld [vmem:[#allocation8 + $0x2b30] sm:$0xff] }
 0x7a2   :  { %12912 = vmatpush1.bf16.msra.mxu1 %v14718_v52  ;;  %12277 = vmatprep.subr.bf16.mxu0 %v14725_v41  ;;  %v2536_v52 = vld [vmem:[#allocation8 + $0x2b18] sm:$0xff]  ;;  %v14773_v40 = vcombine.high %v2535_v53, %v2539_v15 }
 0x7a3   :  { %12913 = vmatprep.subr.bf16.mxu1 %v14727_v30  ;;  %v2540_v41 = vld [vmem:[#allocation8 + $0x2b38] sm:$0xff]  ;;  %v14764_v30 = vcombine.low %v2527_v42, %v2531_v26 }
 0x7a4   :  { %v14775_v51 = vcombine.high %v2536_v52, %v2540_v41  ;;  %v14774_v48 = vcombine.low %v2536_v52, %v2540_v41  ;;  %v2583_v41 = vld [vmem:[#allocation8 + $0x2c90] sm:$0xff] }
 0x7a5   :  { %12278 = vmatpush1.bf16.msra.mxu0 %v14724_v12  ;;  %v2547_v12 = vld [vmem:[#allocation8 + $0x2b70] sm:$0xff] }
 0x7a6   :  { %12914 = vmatpush1.bf16.msra.mxu1 %v14726_v45  ;;  %12279 = vmatprep.subr.bf16.mxu0 %v14733_v10  ;;  %v2544_v45 = vld [vmem:[#allocation8 + $0x2b58] sm:$0xff]  ;;  %v14781_v13 = vcombine.high %v2543_v25, %v2547_v12 }
 0x7a7   :  { %12915 = vmatprep.subr.bf16.mxu1 %v14735_v28  ;;  %v2548_v10 = vld [vmem:[#allocation8 + $0x2b78] sm:$0xff]  ;;  %v14772_v28 = vcombine.low %v2535_v53, %v2539_v15 }
 0x7a8   :  { %v14783_v58 = vcombine.high %v2544_v45, %v2548_v10  ;;  %v14782_v1 = vcombine.low %v2544_v45, %v2548_v10  ;;  %v2591_v10 = vld [vmem:[#allocation8 + $0x2cd0] sm:$0xff] }
 0x7a9   :  { %12280 = vmatpush1.bf16.msra.mxu0 %v14732_v32  ;;  %v2555_v32 = vld [vmem:[#allocation8 + $0x2bb0] sm:$0xff] }
 0x7aa   :  { %12916 = vmatpush1.bf16.msra.mxu1 %v14734_v5  ;;  %12281 = vmatprep.subr.bf16.mxu0 %v14741_v55  ;;  %v2552_v5 = vld [vmem:[#allocation8 + $0x2b98] sm:$0xff]  ;;  %v14789_v21 = vcombine.high %v2551_v50, %v2555_v32 }
 0x7ab   :  { %12917 = vmatprep.subr.bf16.mxu1 %v14743_v27  ;;  %v2556_v55 = vld [vmem:[#allocation8 + $0x2bb8] sm:$0xff]  ;;  %v14780_v27 = vcombine.low %v2543_v25, %v2547_v12 }
 0x7ac   :  { %v14791_v11 = vcombine.high %v2552_v5, %v2556_v55  ;;  %v14790_v18 = vcombine.low %v2552_v5, %v2556_v55  ;;  %v2603_v5 = vld [vmem:[#allocation8 + $0x2d30] sm:$0xff]  ;;  %v2600_v55 = vld [vmem:[#allocation8 + $0x2d18] sm:$0xff] }
 0x7ad   :  { %12282 = vmatpush1.bf16.msra.mxu0 %v14740_v56  ;;  %v2563_v56 = vld [vmem:[#allocation8 + $0x2bf0] sm:$0xff] }
 0x7ae   :  { %12918 = vmatpush1.bf16.msra.mxu1 %v14742_v0  ;;  %12283 = vmatprep.subr.bf16.mxu0 %v14749_v34  ;;  %v2560_v0 = vld [vmem:[#allocation8 + $0x2bd8] sm:$0xff]  ;;  %v14797_v3 = vcombine.high %v2559_v7, %v2563_v56 }
 0x7af   :  { %12919 = vmatprep.subr.bf16.mxu1 %v14751_v35  ;;  %v2564_v34 = vld [vmem:[#allocation8 + $0x2bf8] sm:$0xff]  ;;  %v14788_v35 = vcombine.low %v2551_v50, %v2555_v32  ;;  %v2599_v32 = vld [vmem:[#allocation8 + $0x2d10] sm:$0xff] }
 0x7b0   :  { %v14799_v14 = vcombine.high %v2560_v0, %v2564_v34  ;;  %v14798_v42 = vcombine.low %v2560_v0, %v2564_v34  ;;  %v2611_v0 = vld [vmem:[#allocation8 + $0x2d70] sm:$0xff]  ;;  %v2608_v34 = vld [vmem:[#allocation8 + $0x2d58] sm:$0xff] }
 0x7b1   :  { %12284 = vmatpush1.bf16.msra.mxu0 %v14748_v9  ;;  %v2571_v9 = vld [vmem:[#allocation8 + $0x2c30] sm:$0xff] }
 0x7b2   :  { %12920 = vmatpush1.bf16.msra.mxu1 %v14750_v61  ;;  %12285 = vmatprep.subr.bf16.mxu0 %v14757_v6  ;;  %v2568_v61 = vld [vmem:[#allocation8 + $0x2c18] sm:$0xff]  ;;  %v14805_v26 = vcombine.high %v2567_v29, %v2571_v9 }
 0x7b3   :  { %12921 = vmatprep.subr.bf16.mxu1 %v14759_v59  ;;  %v2572_v6 = vld [vmem:[#allocation8 + $0x2c38] sm:$0xff]  ;;  %v14796_v59 = vcombine.low %v2559_v7, %v2563_v56  ;;  %v2607_v56 = vld [vmem:[#allocation8 + $0x2d50] sm:$0xff] }
 0x7b4   :  { %v14807_v17 = vcombine.high %v2568_v61, %v2572_v6  ;;  %v14806_v53 = vcombine.low %v2568_v61, %v2572_v6  ;;  %v2620_v61 = vld [vmem:[#allocation8 + $0x2db8] sm:$0xff]  ;;  %v14844_v6 = vcombine.low %v2607_v56, %v2611_v0 }
 0x7b5   :  { %12286 = vmatpush1.bf16.msra.mxu0 %v14756_v47  ;;  %v2579_v47 = vld [vmem:[#allocation8 + $0x2c70] sm:$0xff] }
 0x7b6   :  { %12922 = vmatpush1.bf16.msra.mxu1 %v14758_v4  ;;  %12287 = vmatprep.subr.bf16.mxu0 %v14765_v57  ;;  %v2576_v4 = vld [vmem:[#allocation8 + $0x2c58] sm:$0xff]  ;;  %v14813_v15 = vcombine.high %v2575_v19, %v2579_v47 }
 0x7b7   :  { %12923 = vmatprep.subr.bf16.mxu1 %v14767_v36  ;;  %v2580_v57 = vld [vmem:[#allocation8 + $0x2c78] sm:$0xff]  ;;  %v14804_v36 = vcombine.low %v2567_v29, %v2571_v9  ;;  %v2619_v29 = vld [vmem:[#allocation8 + $0x2db0] sm:$0xff] }
 0x7b8   :  { %v14815_v52 = vcombine.high %v2576_v4, %v2580_v57  ;;  %v14814_v25 = vcombine.low %v2576_v4, %v2580_v57  ;;  %v2616_v9 = vld [vmem:[#allocation8 + $0x2d98] sm:$0xff] }
 0x7b9   :  { %12288 = vmatpush1.bf16.msra.mxu0 %v14764_v30  ;;  %v2587_v30 = vld [vmem:[#allocation8 + $0x2cb0] sm:$0xff]  ;;  %v2628_v4 = vld [vmem:[#allocation8 + $0x2df8] sm:$0xff] }
 0x7ba   :  { %12924 = vmatpush1.bf16.msra.mxu1 %v14766_v20  ;;  %12289 = vmatprep.subr.bf16.mxu0 %v14773_v40  ;;  %v2584_v20 = vld [vmem:[#allocation8 + $0x2c98] sm:$0xff]  ;;  %v14821_v12 = vcombine.high %v2583_v41, %v2587_v30 }
 0x7bb   :  { %12925 = vmatprep.subr.bf16.mxu1 %v14775_v51  ;;  %v2588_v40 = vld [vmem:[#allocation8 + $0x2cb8] sm:$0xff]  ;;  %v14812_v51 = vcombine.low %v2575_v19, %v2579_v47  ;;  %v2627_v19 = vld [vmem:[#allocation8 + $0x2df0] sm:$0xff] }
 0x7bc   :  { %v14823_v45 = vcombine.high %v2584_v20, %v2588_v40  ;;  %v2624_v47 = vld [vmem:[#allocation8 + $0x2dd8] sm:$0xff] }
 0x7bd   :  { %12290 = vmatpush1.bf16.msra.mxu0 %v14772_v28  ;;  %v2595_v28 = vld [vmem:[#allocation8 + $0x2cf0] sm:$0xff] }
 0x7be   :  { %12926 = vmatpush1.bf16.msra.mxu1 %v14774_v48  ;;  %12291 = vmatprep.subr.bf16.mxu0 %v14781_v13  ;;  %v2592_v48 = vld [vmem:[#allocation8 + $0x2cd8] sm:$0xff]  ;;  %v14829_v50 = vcombine.high %v2591_v10, %v2595_v28 }
 0x7bf   :  { %12927 = vmatprep.subr.bf16.mxu1 %v14783_v58  ;;  %v2596_v13 = vld [vmem:[#allocation8 + $0x2cf8] sm:$0xff]  ;;  %v14822_v58 = vcombine.low %v2584_v20, %v2588_v40 }
 0x7c0   :  { %v2636_v20 = vld [vmem:[#allocation8 + $0x2e38] sm:$0xff] }
 0x7c1   :  { %12292 = vmatpush1.bf16.msra.mxu0 %v14780_v27  ;;  %v2604_v27 = vld [vmem:[#allocation8 + $0x2d38] sm:$0xff] }
 0x7c2   :  { %12928 = vmatpush1.bf16.msra.mxu1 %v14782_v1  ;;  %12293 = vmatprep.subr.bf16.mxu0 %v14789_v21  ;;  %v14828_v1 = vcombine.low %v2591_v10, %v2595_v28  ;;  %v14830_v21 = vcombine.low %v2592_v48, %v2596_v13  ;;  %v14839_v7 = vcombine.high %v2600_v55, %v2604_v27  ;;  %v2643_v10 = vld [vmem:[#allocation8 + $0x2e70] sm:$0xff]  ;;  %v2640_v28 = vld [vmem:[#allocation8 + $0x2e58] sm:$0xff] }
 0x7c3   :  { %12929 = vmatprep.subr.bf16.mxu1 %v14791_v11  ;;  %v14837_v11 = vcombine.high %v2599_v32, %v2603_v5 }
 0x7c5   :  { %12294 = vmatpush1.bf16.msra.mxu0 %v14788_v35  ;;  %v2612_v35 = vld [vmem:[#allocation8 + $0x2d78] sm:$0xff] }
 0x7c6   :  { %12930 = vmatpush1.bf16.msra.mxu1 %v14790_v18  ;;  %12295 = vmatprep.subr.bf16.mxu0 %v14797_v3  ;;  %v14838_v18 = vcombine.low %v2600_v55, %v2604_v27  ;;  %v14845_v3 = vcombine.high %v2607_v56, %v2611_v0  ;;  %v2652_v55 = vld [vmem:[#allocation8 + $0x2eb8] sm:$0xff]  ;;  %v2659_v56 = vld [vmem:[#allocation8 + $0x2ef0] sm:$0xff] }
 0x7c7   :  { %12931 = vmatprep.subr.bf16.mxu1 %v14799_v14  ;;  %v14847_v14 = vcombine.high %v2608_v34, %v2612_v35  ;;  %v2656_v0 = vld [vmem:[#allocation8 + $0x2ed8] sm:$0xff] }
 0x7c9   :  { %12296 = vmatpush1.bf16.msra.mxu0 %v14796_v59  ;;  %v14846_v59 = vcombine.low %v2608_v34, %v2612_v35  ;;  %v2660_v34 = vld [vmem:[#allocation8 + $0x2ef8] sm:$0xff] }
 0x7ca   :  { %12932 = vmatpush1.bf16.msra.mxu1 %v14798_v42  ;;  %12318 = vmatprep.subr.bf16.mxu0 %v14805_v26  ;;  %v14855_v26 = vcombine.high %v2616_v9, %v2620_v61 }
 0x7cb   :  { %12954 = vmatprep.subr.bf16.mxu1 %v14807_v17  ;;  %v2623_v17 = vld [vmem:[#allocation8 + $0x2dd0] sm:$0xff] }
 0x7cc   :  { %12298 = vmatmul.mubr.bf16.vlgmr.msra.gmra.mrb[8].mxu0 %v17467_v37  ;;  %v14860_v40 = vcombine.low %v2623_v17, %v2627_v19 }
 0x7cd   :  { %12934 = vmatmul.mubr.bf16.vlgmr.msra.gmra.mrb[8].mxu1 %v17467_v37  ;;  %12307 = vmatprep.mubr.bf16.mxu0 %v17479_v33  ;;  %v14820_v37 = vcombine.low %v2583_v41, %v2587_v30  ;;  %v2635_v41 = vld [vmem:[#allocation8 + $0x2e30] sm:$0xff]  ;;  %v2632_v30 = vld [vmem:[#allocation8 + $0x2e18] sm:$0xff] }
 0x7ce   :  { %12319 = vmatpush1.bf16.msra.mxu0 %v14804_v36  ;;  %12943 = vmatprep.mubr.bf16.mxu1 %v17479_v33  ;;  %v14831_v33 = vcombine.high %v2592_v48, %v2596_v13  ;;  %v14854_v36 = vcombine.low %v2616_v9, %v2620_v61  ;;  %v2644_v48 = vld [vmem:[#allocation8 + $0x2e78] sm:$0xff] }
 0x7cf   :  { %12955 = vmatpush1.bf16.msra.mxu1 %v14806_v53  ;;  %12320 = vmatprep.subr.bf16.mxu0 %v14813_v15  ;;  %v14861_v53 = vcombine.high %v2623_v17, %v2627_v19  ;;  %v14863_v15 = vcombine.high %v2624_v47, %v2628_v4  ;;  %v2668_v9 = vld [vmem:[#allocation8 + $0x2f38] sm:$0xff]  ;;  %v2675_v17 = vld [vmem:[#allocation8 + $0x2f70] sm:$0xff] }
 0x7d0   :  { %12956 = vmatprep.subr.bf16.mxu1 %v14815_v52  ;;  %v2631_v52 = vld [vmem:[#allocation8 + $0x2e10] sm:$0xff]  ;;  %v2672_v19 = vld [vmem:[#allocation8 + $0x2f58] sm:$0xff] }
 0x7d1   :  { %v14868_v13 = vcombine.low %v2631_v52, %v2635_v41 }
 0x7d2   :  { %12321 = vmatpush1.bf16.msra.mxu0 %v14812_v51  ;;  %v14862_v51 = vcombine.low %v2624_v47, %v2628_v4  ;;  %v2676_v47 = vld [vmem:[#allocation8 + $0x2f78] sm:$0xff] }
 0x7d3   :  { %12957 = vmatpush1.bf16.msra.mxu1 %v14814_v25  ;;  %12322 = vmatprep.subr.bf16.mxu0 %v14821_v12  ;;  %v14869_v25 = vcombine.high %v2631_v52, %v2635_v41  ;;  %v14871_v12 = vcombine.high %v2632_v30, %v2636_v20  ;;  %v2683_v52 = vld [vmem:[#allocation8 + $0x2fb0] sm:$0xff]  ;;  %v2680_v41 = vld [vmem:[#allocation8 + $0x2f98] sm:$0xff] }
 0x7d4   :  { %12308 = vmatmul.mubr.bf16.gmra.mrb[12].mxu0 %v17493_v60  ;;  %12958 = vmatprep.subr.bf16.mxu1 %v14823_v45  ;;  %v2639_v45 = vld [vmem:[#allocation8 + $0x2e50] sm:$0xff] }
 0x7d5   :  { %12944 = vmatmul.mubr.bf16.gmra.mrb[12].mxu1 %v17493_v60  ;;  %12350 = vmatprep.mubr.bf16.mxu0 %v17501_v31  ;;  %v14836_v60 = vcombine.low %v2599_v32, %v2603_v5  ;;  %v2651_v32 = vld [vmem:[#allocation8 + $0x2eb0] sm:$0xff]  ;;  %v2648_v5 = vld [vmem:[#allocation8 + $0x2e98] sm:$0xff]  ;;  %v14876_v27 = vcombine.low %v2639_v45, %v2643_v10 }
 0x7d6   :  { %12323 = vmatpush1.bf16.msra.mxu0 %v14820_v37  ;;  %12986 = vmatprep.mubr.bf16.mxu1 %v17501_v31  ;;  %v2615_v31 = vld [vmem:[#allocation8 + $0x2d90] sm:$0xff]  ;;  %v14870_v37 = vcombine.low %v2632_v30, %v2636_v20  ;;  %v2684_v30 = vld [vmem:[#allocation8 + $0x2fb8] sm:$0xff] }
 0x7d7   :  { %12959 = vmatpush1.bf16.msra.mxu1 %v14822_v58  ;;  %12324 = vmatprep.subr.bf16.mxu0 %v14829_v50  ;;  %v14853_v42 = vcombine.high %v2615_v31, %v2619_v29  ;;  %v14852_v57 = vcombine.low %v2615_v31, %v2619_v29  ;;  %v14877_v58 = vcombine.high %v2639_v45, %v2643_v10  ;;  %v2667_v31 = vld [vmem:[#allocation8 + $0x2f30] sm:$0xff]  ;;  %v2664_v29 = vld [vmem:[#allocation8 + $0x2f18] sm:$0xff] }
 0x7d8   :  { %12960 = vmatprep.subr.bf16.mxu1 %v14831_v33  ;;  %v14879_v50 = vcombine.high %v2640_v28, %v2644_v48  ;;  %v2647_v33 = vld [vmem:[#allocation8 + $0x2e90] sm:$0xff]  ;;  %v2688_v10 = vld [vmem:[#allocation8 + $0x2fd8] sm:$0xff] }
 0x7d9   :  { %v14884_v35 = vcombine.low %v2647_v33, %v2651_v32  ;;  %v2691_v45 = vld [vmem:[#allocation8 + $0x2ff0] sm:$0xff] }
 0x7da   :  { %12325 = vmatpush1.bf16.msra.mxu0 %v14828_v1  ;;  %v14878_v1 = vcombine.low %v2640_v28, %v2644_v48  ;;  %v2692_v28 = vld [vmem:[#allocation8 + $0x2ff8] sm:$0xff] }
 0x7db   :  { %12961 = vmatpush1.bf16.msra.mxu1 %v14830_v21  ;;  %12326 = vmatprep.subr.bf16.mxu0 %v14837_v11  ;;  %v14885_v21 = vcombine.high %v2647_v33, %v2651_v32  ;;  %v14887_v11 = vcombine.high %v2648_v5, %v2652_v55  ;;  %v14926_v33 = vcombine.low %v2688_v10, %v2692_v28  ;;  %v2741_v32 = vld [vmem:[#allocation10] sm:$0xff] }
 0x7dc   :  { %12962 = vmatprep.subr.bf16.mxu1 %v14839_v7  ;;  %v2655_v7 = vld [vmem:[#allocation8 + $0x2ed0] sm:$0xff] }
 0x7dd   :  { %v14892_v61 = vcombine.low %v2655_v7, %v2659_v56 }
 0x7de   :  { %12327 = vmatpush1.bf16.msra.mxu0 %v14836_v60  ;;  %v14886_v60 = vcombine.low %v2648_v5, %v2652_v55  ;;  %v18792_v5 = vld [vmem:[#allocation104_spill] sm:$0xff] }
 0x7df   :  { %12963 = vmatpush1.bf16.msra.mxu1 %v14838_v18  ;;  %12328 = vmatprep.subr.bf16.mxu0 %v14845_v3  ;;  %v14893_v18 = vcombine.high %v2655_v7, %v2659_v56  ;;  %v14895_v3 = vcombine.high %v2656_v0, %v2660_v34  ;;  %v2746_v55 = vrot.slane %v2741_v32, %v18792_v5 }
 0x7e0   :  { %12964 = vmatprep.subr.bf16.mxu1 %v14847_v14  ;;  %v2663_v14 = vld [vmem:[#allocation8 + $0x2f10] sm:$0xff] }
 0x7e1   :  { %v14900_v4 = vcombine.low %v2663_v14, %v2667_v31  ;;  %v17827_v56 = vadd.f32 %v17723_v38, %v2746_v55 }
 0x7e2   :  { %12329 = vmatpush1.bf16.msra.mxu0 %v14844_v6  ;;  %v14894_v6 = vcombine.low %v2656_v0, %v2660_v34  ;;  %v18795_v34 = vld [vmem:[#allocation93_spill] sm:$0xff] }
 0x7e3   :  { %12965 = vmatpush1.bf16.msra.mxu1 %v14846_v59  ;;  %12330 = vmatprep.subr.bf16.mxu0 %v14853_v42  ;;  %v14901_v59 = vcombine.high %v2663_v14, %v2667_v31  ;;  %v14903_v42 = vcombine.high %v2664_v29, %v2668_v9  ;;  %v18797_v31 = vld [vmem:[#allocation72_spill] sm:$0xff] }
 0x7e4   :  { %12966 = vmatprep.subr.bf16.mxu1 %v14855_v26  ;;  %v2671_v26 = vld [vmem:[#allocation8 + $0x2f50] sm:$0xff] }
 0x7e5   :  { %v14908_v20 = vcombine.low %v2671_v26, %v2675_v17 }
 0x7e6   :  { %12331 = vmatpush1.bf16.msra.mxu0 %v14852_v57  ;;  %v14902_v57 = vcombine.low %v2664_v29, %v2668_v9  ;;  %v2766_v29 = vrot.slane %v2741_v32, %v18797_v31 }
 0x7e7   :  { %12967 = vmatpush1.bf16.msra.mxu1 %v14854_v36  ;;  %12332 = vmatprep.subr.bf16.mxu0 %v14861_v53  ;;  %v14909_v36 = vcombine.high %v2671_v26, %v2675_v17  ;;  %v14911_v53 = vcombine.high %v2672_v19, %v2676_v47  ;;  %v18799_v17 = vld [vmem:[#allocation31_spill] sm:$0xff] }
 0x7e8   :  { %12968 = vmatprep.subr.bf16.mxu1 %v14863_v15  ;;  %v2679_v15 = vld [vmem:[#allocation8 + $0x2f90] sm:$0xff] }
 0x7e9   :  { %v14916_v48 = vcombine.low %v2679_v15, %v2683_v52 }
 0x7ea   :  { %12333 = vmatpush1.bf16.msra.mxu0 %v14860_v40  ;;  %v14910_v40 = vcombine.low %v2672_v19, %v2676_v47 }
 0x7eb   :  { %12969 = vmatpush1.bf16.msra.mxu1 %v14862_v51  ;;  %12334 = vmatprep.subr.bf16.mxu0 %v14869_v25  ;;  %v14917_v51 = vcombine.high %v2679_v15, %v2683_v52  ;;  %v14919_v25 = vcombine.high %v2680_v41, %v2684_v30 }
 0x7ec   :  { %12970 = vmatprep.subr.bf16.mxu1 %v14871_v12  ;;  %v2687_v12 = vld [vmem:[#allocation8 + $0x2fd0] sm:$0xff] }
 0x7ee   :  { %12335 = vmatpush1.bf16.msra.mxu0 %v14868_v13  ;;  %v14918_v13 = vcombine.low %v2680_v41, %v2684_v30 }
 0x7ef   :  { %12971 = vmatpush1.bf16.msra.mxu1 %v14870_v37  ;;  %12336 = vmatprep.subr.bf16.mxu0 %v14877_v58  ;;  %v14925_v37 = vcombine.high %v2687_v12, %v2691_v45  ;;  %v14927_v58 = vcombine.high %v2688_v10, %v2692_v28 }
 0x7f0   :  { %12972 = vmatprep.subr.bf16.mxu1 %v14879_v50  ;;  %v14924_v50 = vcombine.low %v2687_v12, %v2691_v45 }
 0x7f2   :  { %12337 = vmatpush1.bf16.msra.mxu0 %v14876_v27  ;;  %v18793_v27 = vld [vmem:[#allocation103_spill] sm:$0xff] }
 0x7f3   :  { %12973 = vmatpush1.bf16.msra.mxu1 %v14878_v1  ;;  %12338 = vmatprep.subr.bf16.mxu0 %v14885_v21  ;;  %v2750_v1 = vrot.slane %v2741_v32, %v18793_v27  ;;  %v17820_v21 = vadd.f32 %v17715_v46, %v2746_v55  ;;  %v2758_v46 = vrot.slane %v2741_v32, %v18795_v34 }
 0x7f4   :  { %12974 = vmatprep.subr.bf16.mxu1 %v14887_v11 }
 0x7f5   :  { %v17823_v11 = vadd.f32 %v17719_v8, %v2750_v1  ;;  %v17844_v38 = vadd.f32 %v17735_v43, %v2750_v1  ;;  %v17855_v14 = vadd.f32 %v17743_v63, %v2750_v1  ;;  %v18798_v63 = vld [vmem:[#allocation75_spill] sm:$0xff] }
 0x7f6   :  { %12339 = vmatpush1.bf16.msra.mxu0 %v14884_v35  ;;  %v17841_v35 = vadd.f32 %v17731_v39, %v2746_v55  ;;  %v17859_v39 = vadd.f32 %v17721_v49, %v2758_v46 }
 0x7f7   :  { %12975 = vmatpush1.bf16.msra.mxu1 %v14886_v60  ;;  %12340 = vmatprep.subr.bf16.mxu0 %v14893_v18  ;;  %v18796_v18 = vld [vmem:[#allocation73_spill] sm:$0xff] }
 0x7f8   :  { %12976 = vmatprep.subr.bf16.mxu1 %v14895_v3  ;;  %v2762_v3 = vrot.slane %v2741_v32, %v18796_v18  ;;  %v13025_v9 = vadd.f32 %v17844_v38, %v17841_v35 }
 0x7fa   :  { %12341 = vmatpush1.bf16.msra.mxu0 %v14892_v61 }
 0x7fb   :  { %12977 = vmatpush1.bf16.msra.mxu1 %v14894_v6  ;;  %12342 = vmatprep.subr.bf16.mxu0 %v14901_v59  ;;  %v17866_v6 = vadd.f32 %v17729_v24, %v2758_v46  ;;  %v2770_v59 = vrot.slane %v2741_v32, %v18798_v63 }
 0x7fc   :  { %12978 = vmatprep.subr.bf16.mxu1 %v14903_v42 }
 0x7fe   :  { %12343 = vmatpush1.bf16.msra.mxu0 %v14900_v4 }
 0x7ff   :  { %12979 = vmatpush1.bf16.msra.mxu1 %v14902_v57  ;;  %12344 = vmatprep.subr.bf16.mxu0 %v14909_v36 }
 0x800   :  { %12980 = vmatprep.subr.bf16.mxu1 %v14911_v53  ;;  %v18800_v53 = vld [vmem:[#allocation74_spill] sm:$0xff] }
 0x801   :  { %v2774_v15 = vrot.slane %v2741_v32, %v18800_v53 }
 0x802   :  { %12345 = vmatpush1.bf16.msra.mxu0 %v14908_v20 }
 0x803   :  { %12981 = vmatpush1.bf16.msra.mxu1 %v14910_v40  ;;  %12346 = vmatprep.subr.bf16.mxu0 %v14917_v51  ;;  %v18801_v40 = vld [vmem:[#allocation96_spill] sm:$0xff] }
 0x804   :  { %12982 = vmatprep.subr.bf16.mxu1 %v14919_v25 }
 0x806   :  { %12347 = vmatpush1.bf16.msra.mxu0 %v14916_v48  ;;  %v18802_v48 = vld [vmem:[#allocation92_spill] sm:$0xff] }
 0x807   :  { %12983 = vmatpush1.bf16.msra.mxu1 %v14918_v13  ;;  %12348 = vmatprep.subr.bf16.mxu0 %v14925_v37  ;;  %v17892_v13 = vadd.f32 %v18802_v48, %v2758_v46 }
 0x808   :  { %12984 = vmatprep.subr.bf16.mxu1 %v14927_v58 }
 0x80a   :  { %12349 = vmatpush1.bf16.msra.mxu0 %v14924_v50 }
 0x80b   :  { %12985 = vmatpush1.bf16.msra.mxu1 %v14926_v33 }
 0x80d   :  { %12351 = vmatmul.mubr.bf16.vlgmr.msra.gmra.mrb[8].mxu0 %v17508_v44 }
 0x80e   :  { %12987 = vmatmul.mubr.bf16.vlgmr.msra.gmra.mrb[8].mxu1 %v17508_v44  ;;  %12360 = vmatprep.mubr.bf16.mxu0 %v17511_v16  ;;  %v18794_v44 = vld [vmem:[#allocation71_spill] sm:$0xff] }
 0x80f   :  { %12996 = vmatprep.mubr.bf16.mxu1 %v17511_v16  ;;  %v2754_v7 = vrot.slane %v2741_v32, %v18794_v44  ;;  %v17830_v16 = vadd.f32 %v17727_v22, %v2750_v1  ;;  %v18803_v1 = vld [vmem:[#allocation100_spill] sm:$0xff] }
 0x811   :  { %v17835_v0 = vadd.f32 %v17717_v62, %v2754_v7  ;;  %v13016_v8 = vadd.f32 %v17830_v16, %v17827_v56  ;;  %v17848_v60 = vadd.f32 %v17725_v23, %v2754_v7  ;;  %v17852_v62 = vadd.f32 %v17739_v54, %v2746_v55 }
 0x812   :  { %v17872_v49 = vadd.f32 %v18799_v17, %v2754_v7  ;;  %v17885_v51 = vadd.f32 %v18801_v40, %v2754_v7  ;;  %v17900_v7 = vadd.f32 %v18803_v1, %v2758_v46 }
 0x813   :  { %v13017_v43 = vadd.f32 %v17848_v60, %v13016_v8  ;;  %v13034_v19 = vadd.f32 %v17855_v14, %v17852_v62 }
 0x814   :  { %v13026_v20 = vadd.f32 %v17872_v49, %v13025_v9 }
 0x815   :  { %12361 = vmatmul.mubr.bf16.gmra.mrb[12].mxu0 %v17513_v2  ;;  %v13018_v36 = vadd.f32 %v17866_v6, %v13017_v43  ;;  %v13035_v37 = vadd.f32 %v17885_v51, %v13034_v19 }
 0x816   :  { %12997 = vmatmul.mubr.bf16.gmra.mrb[12].mxu1 %v17513_v2  ;;  %v13007_v2 = vadd.f32 %v17823_v11, %v17820_v21  ;;  %v13027_v55 = vadd.f32 %v17892_v13, %v13026_v20 }
 0x817   :  { %v13036_v19 = vadd.f32 %v17900_v7, %v13035_v37 }
 0x818   :  { %v13008_v22 = vadd.f32 %v17835_v0, %v13007_v2 }
 0x81a   :  { %v13009_v61 = vadd.f32 %v17859_v39, %v13008_v22 }
 0x8e0   :  { %v12352_v23 = vpop.f32.mrb[8].mxu0 }
 0x8e1   :  { %v17868_v54 = vadd.f32 %v12352_v23, %v2762_v3  ;;  %v12988_v42 = vpop.f32.mrb[8].mxu1  ;;  %v12354_v26 = vpop.f32.mrb[9].mxu0 }
 0x8e2   :  { %v17876_v47 = vadd.f32 %v12354_v26, %v2766_v29  ;;  %v12990_v4 = vpop.f32.mrb[9].mxu1  ;;  %v12356_v57 = vpop.f32.mrb[10].mxu0  ;;  %v14952_v45 = vadd.f32 %v12988_v42, %v2770_v59 }
 0x8e3   :  { %v13010_v24 = vadd.f32 %v17868_v54, %v13009_v61  ;;  %v17881_v52 = vadd.f32 %v12356_v57, %v2762_v3  ;;  %v12992_v41 = vpop.f32.mrb[10].mxu1  ;;  %v12358_v30 = vpop.f32.mrb[11].mxu0  ;;  %v14953_v58 = vadd.f32 %v12990_v4, %v2774_v15 }
 0x8e4   :  { %v17887_v25 = vadd.f32 %v12358_v30, %v2766_v29  ;;  %v12994_v12 = vpop.f32.mrb[11].mxu1  ;;  %v17895_v50 = vadd.f32 %v12992_v41, %v2770_v59 }
 0x8e5   :  { %v13011_v10 = vadd.f32 %v17876_v47, %v13010_v24  ;;  %v13019_v28 = vadd.f32 %v17881_v52, %v13018_v36  ;;  %v17902_v8 = vadd.f32 %v12994_v12, %v2774_v15 }
 0x8e7   :  { %v13020_v33 = vadd.f32 %v17887_v25, %v13019_v28  ;;  %v13012_v32 = vadd.f32 %v14952_v45, %v13011_v10 }
 0x8e8   :  { %v12362_v2 = vpop.f32.mrb[12].mxu0 }
 0x8e9   :  { %v17904_v22 = vadd.f32 %v12362_v2, %v2762_v3  ;;  %v12998_v43 = vpop.f32.mrb[12].mxu1  ;;  %v12364_v9 = vpop.f32.mrb[13].mxu0  ;;  %v13013_v23 = vadd.f32 %v14953_v58, %v13012_v32  ;;  %v13021_v61 = vadd.f32 %v17895_v50, %v13020_v33 }
 0x8ea   :  { %v17907_v42 = vadd.f32 %v12364_v9, %v2766_v29  ;;  %v13000_v26 = vpop.f32.mrb[13].mxu1  ;;  %v12366_v17 = vpop.f32.mrb[14].mxu0  ;;  %v17916_v20 = vadd.f32 %v12998_v43, %v2770_v59 }
 0x8eb   :  { %v13028_v4 = vadd.f32 %v17904_v22, %v13027_v55  ;;  %v17911_v46 = vadd.f32 %v12366_v17, %v2762_v3  ;;  %v13002_v57 = vpop.f32.mrb[14].mxu1  ;;  %v12368_v36 = vpop.f32.mrb[15].mxu0  ;;  %13014 = vadd.xlane.f32.xlu0 %v13013_v23  ;;  %v13022_v24 = vadd.f32 %v17902_v8, %v13021_v61  ;;  %v17920_v10 = vadd.f32 %v13000_v26, %v2774_v15 }
 0x8ec   :  { %v17914_v41 = vadd.f32 %v12368_v36, %v2766_v29  ;;  %v13004_v30 = vpop.f32.mrb[15].mxu1  ;;  %v17922_v28 = vadd.f32 %v13002_v57, %v2770_v59 }
 0x8ed   :  { %v13029_v40 = vadd.f32 %v17907_v42, %v13028_v4  ;;  %v13037_v12 = vadd.f32 %v17911_v46, %v13036_v19  ;;  %13023 = vadd.xlane.f32.xlu1 %v13022_v24  ;;  %v17926_v37 = vadd.f32 %v13004_v30, %v2774_v15 }
 0x8ef   :  { %v13038_v3 = vadd.f32 %v17914_v41, %v13037_v12  ;;  %v13030_v48 = vadd.f32 %v17916_v20, %v13029_v40 }
 0x8f1   :  { %v13031_v29 = vadd.f32 %v17920_v10, %v13030_v48  ;;  %v13039_v33 = vadd.f32 %v17922_v28, %v13038_v3 }
 0x8f3   :  { %13032 = vadd.xlane.f32.xlu0 %v13031_v29  ;;  %v13040_v32 = vadd.f32 %v17926_v37, %v13039_v33 }
 0x8f5   :  { %13041 = vadd.xlane.f32.xlu1 %v13040_v32 }
 0x978   :  { %v13015_v55 = vpop.xlane.xlu0 %13014 }
 0x979   :  { %v13044_v1 = vmul.f32 0.0009765625, %v13015_v55 }
 0x97a   :  { %v13024_v2 = vpop.xlane.xlu1 %13023 }
 0x97b   :  { %v13045_v43 = vmul.f32 0.0009765625, %v13024_v2  ;;  %v17932_v59 = vsub.f32 %v17820_v21, %v13044_v1  ;;  %v17935_v9 = vsub.f32 %v17823_v11, %v13044_v1  ;;  %v17938_v15 = vsub.f32 %v17835_v0, %v13044_v1 }
 0x97c   :  { %v17941_v23 = vsub.f32 %v17859_v39, %v13044_v1  ;;  %v17948_v17 = vsub.f32 %v17868_v54, %v13044_v1  ;;  %v17951_v21 = vsub.f32 %v17876_v47, %v13044_v1  ;;  %v17953_v11 = vsub.f32 %v14952_v45, %v13044_v1 }
 0x97d   :  { %v13080_v61 = vmul.f32 %v17932_v59, %v17932_v59  ;;  %v13081_v26 = vmul.f32 %v17935_v9, %v17935_v9  ;;  %v13082_v0 = vmul.f32 %v17938_v15, %v17938_v15  ;;  %v17958_v39 = vsub.f32 %v17827_v56, %v13045_v43 }
 0x97e   :  { %v17961_v4 = vsub.f32 %v17830_v16, %v13045_v43  ;;  %v17964_v36 = vsub.f32 %v17848_v60, %v13045_v43  ;;  %v13083_v47 = vmul.f32 %v17941_v23, %v17941_v23  ;;  %v17968_v24 = vsub.f32 %v14953_v58, %v13044_v1 }
 0x97f   :  { %v13112_v19 = vadd.f32 %v13081_v26, %v13080_v61  ;;  %v17971_v30 = vsub.f32 %v17866_v6, %v13045_v43  ;;  %v13088_v56 = vmul.f32 %v17958_v39, %v17958_v39  ;;  %v13084_v60 = vmul.f32 %v17948_v17, %v17948_v17 }
 0x980   :  { %v13033_v57 = vpop.xlane.xlu0 %13032  ;;  %v13089_v16 = vmul.f32 %v17961_v4, %v17961_v4  ;;  %v13085_v12 = vmul.f32 %v17951_v21, %v17951_v21  ;;  %v13086_v58 = vmul.f32 %v17953_v11, %v17953_v11  ;;  %v17984_v6 = vsub.f32 %v17881_v52, %v13045_v43 }
 0x981   :  { %v13046_v54 = vmul.f32 0.0009765625, %v13033_v57  ;;  %v13113_v45 = vadd.f32 %v13112_v19, %v13082_v0  ;;  %v13090_v48 = vmul.f32 %v17964_v36, %v17964_v36  ;;  %v17992_v55 = vsub.f32 %v17887_v25, %v13045_v43 }
 0x982   :  { %v13042_v40 = vpop.xlane.xlu1 %13041  ;;  %v13121_v29 = vadd.f32 %v13089_v16, %v13088_v56  ;;  %v13087_v52 = vmul.f32 %v17968_v24, %v17968_v24  ;;  %v13091_v26 = vmul.f32 %v17971_v30, %v17971_v30  ;;  %v18005_v19 = vsub.f32 %v17895_v50, %v13045_v43 }
 0x983   :  { %v13114_v3 = vadd.f32 %v13113_v45, %v13083_v47  ;;  %v17989_v33 = vsub.f32 %v17841_v35, %v13046_v54  ;;  %v17995_v1 = vsub.f32 %v17844_v38, %v13046_v54  ;;  %v17998_v2 = vsub.f32 %v17872_v49, %v13046_v54 }
 0x984   :  { %v13047_v61 = vmul.f32 0.0009765625, %v13042_v40  ;;  %v13122_v0 = vadd.f32 %v13121_v29, %v13090_v48  ;;  %v18012_v49 = vsub.f32 %v17902_v8, %v13045_v43  ;;  %v13092_v57 = vmul.f32 %v17984_v6, %v17984_v6 }
 0x985   :  { %v13115_v32 = vadd.f32 %v13114_v3, %v13084_v60  ;;  %v13096_v25 = vmul.f32 %v17989_v33, %v17989_v33  ;;  %v13097_v38 = vmul.f32 %v17995_v1, %v17995_v1  ;;  %v18017_v45 = vsub.f32 %v17892_v13, %v13046_v54 }
 0x986   :  { %v13123_v47 = vadd.f32 %v13122_v0, %v13091_v26  ;;  %v13093_v50 = vmul.f32 %v17992_v55, %v17992_v55  ;;  %v18022_v16 = vsub.f32 %v17904_v22, %v13046_v54  ;;  %v13098_v40 = vmul.f32 %v17998_v2, %v17998_v2 }
 0x987   :  { %v13116_v35 = vadd.f32 %v13115_v32, %v13085_v12  ;;  %v13130_v8 = vadd.f32 %v13097_v38, %v13096_v25  ;;  %v18027_v43 = vsub.f32 %v17852_v62, %v13047_v61  ;;  %v18030_v12 = vsub.f32 %v17855_v14, %v13047_v61 }
 0x988   :  { %v13124_v60 = vadd.f32 %v13123_v47, %v13092_v57  ;;  %v18035_v3 = vsub.f32 %v17885_v51, %v13047_v61  ;;  %v18038_v48 = vsub.f32 %v17907_v42, %v13046_v54  ;;  %v13099_v29 = vmul.f32 %v18017_v45, %v18017_v45 }
 0x989   :  { %v13117_v56 = vadd.f32 %v13116_v35, %v13086_v58  ;;  %v13094_v58 = vmul.f32 %v18005_v19, %v18005_v19  ;;  %v13131_v32 = vadd.f32 %v13130_v8, %v13098_v40  ;;  %v13095_v62 = vmul.f32 %v18012_v49, %v18012_v49 }
 0x98a   :  { %v13125_v22 = vadd.f32 %v13124_v60, %v13093_v50  ;;  %v18045_v14 = vsub.f32 %v17900_v7, %v13047_v61  ;;  %v13105_v51 = vmul.f32 %v18030_v12, %v18030_v12  ;;  %v18052_v42 = vsub.f32 %v17916_v20, %v13046_v54 }
 0x98b   :  { %v13118_v13 = vadd.f32 %v13117_v56, %v13087_v52  ;;  %v13104_v52 = vmul.f32 %v18027_v43, %v18027_v43  ;;  %v13100_v0 = vmul.f32 %v18022_v16, %v18022_v16  ;;  %v13132_v35 = vadd.f32 %v13131_v32, %v13099_v29 }
 0x98c   :  { %v13126_v26 = vadd.f32 %v13125_v22, %v13094_v58  ;;  %v18057_v25 = vsub.f32 %v17911_v46, %v13047_v61  ;;  %v13106_v7 = vmul.f32 %v18035_v3, %v18035_v3  ;;  %v18062_v47 = vsub.f32 %v17920_v10, %v13046_v54 }
 0x98d   :  { %13119 = vadd.xlane.f32.xlu0 %v13118_v13  ;;  %v13139_v38 = vadd.f32 %v13105_v51, %v13104_v52  ;;  %v13101_v56 = vmul.f32 %v18038_v48, %v18038_v48  ;;  %v13133_v20 = vadd.f32 %v13132_v35, %v13100_v0  ;;  %v18067_v50 = vsub.f32 %v17914_v41, %v13047_v61 }
 0x98e   :  { %v13127_v57 = vadd.f32 %v13126_v26, %v13095_v62  ;;  %v13107_v40 = vmul.f32 %v18045_v14, %v18045_v14  ;;  %v13102_v60 = vmul.f32 %v18052_v42, %v18052_v42  ;;  %v18074_v13 = vsub.f32 %v17922_v28, %v13047_v61 }
 0x98f   :  { %v13140_v46 = vadd.f32 %v13139_v38, %v13106_v7  ;;  %v13134_v8 = vadd.f32 %v13133_v20, %v13101_v56  ;;  %v13108_v10 = vmul.f32 %v18057_v25, %v18057_v25  ;;  %v13103_v41 = vmul.f32 %v18062_v47, %v18062_v47  ;;  %v13266_v56 = vld [vmem:[#allocation13] sm:$0xff] }
 0x990   :  { %13128 = vadd.xlane.f32.xlu1 %v13127_v57  ;;  %v18081_v22 = vsub.f32 %v17926_v37, %v13047_v61  ;;  %v13109_v29 = vmul.f32 %v18067_v50, %v18067_v50  ;;  %v13110_v28 = vmul.f32 %v18074_v13, %v18074_v13  ;;  %v13192_v57 = vld [vmem:[#allocation11] sm:$0xff] }
 0x991   :  { %v13141_v54 = vadd.f32 %v13140_v46, %v13107_v40  ;;  %v13135_v58 = vadd.f32 %v13134_v8, %v13102_v60  ;;  %v18090_v40 = vrot.slane %v13192_v57, %v18793_v27  ;;  %v18093_v46 = vrot.slane %v13266_v56, %v18793_v27 }
 0x992   :  { %v13111_v51 = vmul.f32 %v18081_v22, %v18081_v22  ;;  %v18096_v8 = vrot.slane %v13192_v57, %v18792_v5  ;;  %v18111_v27 = vrot.slane %v13266_v56, %v18794_v44 }
 0x993   :  { %v13142_v32 = vadd.f32 %v13141_v54, %v13108_v10  ;;  %v13136_v62 = vadd.f32 %v13135_v58, %v13103_v41  ;;  %v18099_v10 = vrot.slane %v13266_v56, %v18792_v5  ;;  %v18102_v54 = vrot.slane %v13192_v57, %v18795_v34 }
 0x994   :  { %v18105_v58 = vrot.slane %v13266_v56, %v18795_v34  ;;  %v18120_v5 = vrot.slane %v13192_v57, %v18796_v18  ;;  %v18126_v34 = vrot.slane %v13192_v57, %v18800_v53 }
 0x995   :  { %v13143_v52 = vadd.f32 %v13142_v32, %v13109_v29  ;;  %13137 = vadd.xlane.f32.xlu0 %v13136_v62  ;;  %v18108_v29 = vrot.slane %v13192_v57, %v18794_v44  ;;  %v18114_v32 = vrot.slane %v13192_v57, %v18797_v31  ;;  %v18117_v62 = vrot.slane %v13266_v56, %v18797_v31 }
 0x996   :  { %v18132_v44 = vrot.slane %v13192_v57, %v18798_v63 }
 0x997   :  { %v13144_v26 = vadd.f32 %v13143_v52, %v13110_v28  ;;  %v18123_v28 = vrot.slane %v13266_v56, %v18796_v18 }
 0x999   :  { %v13145_v0 = vadd.f32 %v13144_v26, %v13111_v51  ;;  %v18129_v51 = vrot.slane %v13266_v56, %v18800_v53  ;;  %v18135_v26 = vrot.slane %v13266_v56, %v18798_v63 }
 0x99b   :  { %13146 = vadd.xlane.f32.xlu1 %v13145_v0 }
 0xa1a   :  { %v13120_v35 = vpop.xlane.xlu0 %13119 }
 0xa1b   :  { %v13148_v7 = vmul.f32 0.0009765625, %v13120_v35 }
 0xa1d   :  { %v13152_v37 = vadd.f32 1e-05, %v13148_v7  ;;  %v13129_v61 = vpop.xlane.xlu1 %13128 }
 0xa1e   :  { %v13149_v38 = vmul.f32 0.0009765625, %v13129_v61 }
 0xa1f   :  { %15334 = vrsqrt.f32 %v13152_v37 }
 0xa20   :  { %v13153_v20 = vadd.f32 1e-05, %v13149_v38 }
 0xa22   :  { %15336 = vrsqrt.f32 %v13153_v20  ;;  %v13138_v60 = vpop.xlane.xlu0 %13137 }
 0xa23   :  { %v13150_v41 = vmul.f32 0.0009765625, %v13138_v60 }
 0xa25   :  { %v13154_v31 = vadd.f32 1e-05, %v13150_v41 }
 0xa27   :  { %15338 = vrsqrt.f32 %v13154_v31 }
 0xa29   :  { %v15335_v52 = vpop.eup %15334 }
 0xa2a   :  { %v13160_v0 = vmul.f32 %v15335_v52, %v17932_v59  ;;  %v13161_v35 = vmul.f32 %v15335_v52, %v17935_v9  ;;  %v13162_v18 = vmul.f32 %v15335_v52, %v17938_v15  ;;  %v13163_v7 = vmul.f32 %v15335_v52, %v17941_v23 }
 0xa2b   :  { %v13164_v37 = vmul.f32 %v15335_v52, %v17948_v17  ;;  %v13165_v53 = vmul.f32 %v15335_v52, %v17951_v21  ;;  %v13166_v61 = vmul.f32 %v15335_v52, %v17953_v11  ;;  %v13167_v38 = vmul.f32 %v15335_v52, %v17968_v24 }
 0xa2c   :  { %v13234_v63 = vmul.f32 %v18096_v8, %v13160_v0  ;;  %v13235_v57 = vmul.f32 %v18090_v40, %v13161_v35  ;;  %v13236_v59 = vmul.f32 %v18108_v29, %v13162_v18  ;;  %v13237_v9 = vmul.f32 %v18102_v54, %v13163_v7  ;;  %v15337_v56 = vpop.eup %15336 }
 0xa2d   :  { %v13238_v15 = vmul.f32 %v18120_v5, %v13164_v37  ;;  %v13239_v23 = vmul.f32 %v18114_v32, %v13165_v53  ;;  %v13240_v17 = vmul.f32 %v18132_v44, %v13166_v61  ;;  %v13241_v21 = vmul.f32 %v18126_v34, %v13167_v38 }
 0xa2e   :  { %v13308_v11 = vadd.f32 %v18099_v10, %v13234_v63  ;;  %v13309_v24 = vadd.f32 %v18093_v46, %v13235_v57  ;;  %v13310_v20 = vadd.f32 %v18111_v27, %v13236_v59  ;;  %v13311_v60 = vadd.f32 %v18105_v58, %v13237_v9 }
 0xa2f   :  { %v13312_v41 = vadd.f32 %v18123_v28, %v13238_v15  ;;  %v13313_v52 = vadd.f32 %v18117_v62, %v13239_v23  ;;  %v13314_v0 = vadd.f32 %v18135_v26, %v13240_v17  ;;  %v13315_v35 = vadd.f32 %v18129_v51, %v13241_v21  ;;  %v13147_v15 = vpop.xlane.xlu1 %13146 }
 0xa30   :  { %13340 = vst [vmem:[#allocation14] sm:$0xff] %v13308_v11  ;;  %13341 = vst [vmem:[#allocation14 + $0x8] sm:$0xff] %v13309_v24  ;;  %v13168_v18 = vmul.f32 %v15337_v56, %v17958_v39  ;;  %v13169_v7 = vmul.f32 %v15337_v56, %v17961_v4  ;;  %v13170_v37 = vmul.f32 %v15337_v56, %v17964_v36 }
 0xa31   :  { %13342 = vst [vmem:[#allocation14 + $0x10] sm:$0xff] %v13310_v20  ;;  %13343 = vst [vmem:[#allocation14 + $0x18] sm:$0xff] %v13311_v60  ;;  %v13171_v53 = vmul.f32 %v15337_v56, %v17971_v30  ;;  %v13172_v61 = vmul.f32 %v15337_v56, %v17984_v6  ;;  %v13173_v38 = vmul.f32 %v15337_v56, %v17992_v55  ;;  %v13151_v20 = vmul.f32 0.0009765625, %v13147_v15 }
 0xa32   :  { %13344 = vst [vmem:[#allocation14 + $0x20] sm:$0xff] %v13312_v41  ;;  %13345 = vst [vmem:[#allocation14 + $0x28] sm:$0xff] %v13313_v52  ;;  %v13174_v63 = vmul.f32 %v15337_v56, %v18005_v19  ;;  %v13175_v57 = vmul.f32 %v15337_v56, %v18012_v49  ;;  %v13242_v39 = vmul.f32 %v18096_v8, %v13168_v18  ;;  %v15339_v41 = vpop.eup %15338 }
 0xa33   :  { %13346 = vst [vmem:[#allocation14 + $0x30] sm:$0xff] %v13314_v0  ;;  %13347 = vst [vmem:[#allocation14 + $0x38] sm:$0xff] %v13315_v35  ;;  %v13243_v4 = vmul.f32 %v18090_v40, %v13169_v7  ;;  %v13244_v36 = vmul.f32 %v18108_v29, %v13170_v37  ;;  %v13245_v30 = vmul.f32 %v18102_v54, %v13171_v53  ;;  %v13155_v60 = vadd.f32 1e-05, %v13151_v20 }
 0xa34   :  { %v13246_v59 = vmul.f32 %v18120_v5, %v13172_v61  ;;  %v13247_v9 = vmul.f32 %v18114_v32, %v13173_v38  ;;  %v13248_v6 = vmul.f32 %v18132_v44, %v13174_v63  ;;  %v13249_v55 = vmul.f32 %v18126_v34, %v13175_v57 }
 0xa35   :  { %v13316_v19 = vadd.f32 %v18099_v10, %v13242_v39  ;;  %v13317_v49 = vadd.f32 %v18093_v46, %v13243_v4  ;;  %v13318_v23 = vadd.f32 %v18111_v27, %v13244_v36  ;;  %v13319_v17 = vadd.f32 %v18105_v58, %v13245_v30 }
 0xa36   :  { %v13320_v21 = vadd.f32 %v18123_v28, %v13246_v59  ;;  %v13321_v56 = vadd.f32 %v18117_v62, %v13247_v9  ;;  %v13322_v11 = vadd.f32 %v18135_v26, %v13248_v6  ;;  %v13323_v24 = vadd.f32 %v18129_v51, %v13249_v55 }
 0xa37   :  { %13348 = vst [vmem:[#allocation14 + $0x40] sm:$0xff] %v13316_v19  ;;  %13349 = vst [vmem:[#allocation14 + $0x48] sm:$0xff] %v13317_v49  ;;  %15340 = vrsqrt.f32 %v13155_v60  ;;  %v13176_v52 = vmul.f32 %v15339_v41, %v17989_v33  ;;  %v13177_v0 = vmul.f32 %v15339_v41, %v17995_v1  ;;  %v13178_v35 = vmul.f32 %v15339_v41, %v17998_v2 }
 0xa38   :  { %13350 = vst [vmem:[#allocation14 + $0x50] sm:$0xff] %v13318_v23  ;;  %13351 = vst [vmem:[#allocation14 + $0x58] sm:$0xff] %v13319_v17  ;;  %v13179_v18 = vmul.f32 %v15339_v41, %v18017_v45  ;;  %v13180_v7 = vmul.f32 %v15339_v41, %v18022_v16  ;;  %v13181_v31 = vmul.f32 %v15339_v41, %v18038_v48 }
 0xa39   :  { %13352 = vst [vmem:[#allocation14 + $0x60] sm:$0xff] %v13320_v21  ;;  %13353 = vst [vmem:[#allocation14 + $0x68] sm:$0xff] %v13321_v56  ;;  %v13182_v37 = vmul.f32 %v15339_v41, %v18052_v42  ;;  %v13183_v53 = vmul.f32 %v15339_v41, %v18062_v47  ;;  %v13250_v61 = vmul.f32 %v18096_v8, %v13176_v52 }
 0xa3a   :  { %13354 = vst [vmem:[#allocation14 + $0x70] sm:$0xff] %v13322_v11  ;;  %13355 = vst [vmem:[#allocation14 + $0x78] sm:$0xff] %v13323_v24  ;;  %v13251_v38 = vmul.f32 %v18090_v40, %v13177_v0  ;;  %v13252_v33 = vmul.f32 %v18108_v29, %v13178_v35  ;;  %v13253_v1 = vmul.f32 %v18102_v54, %v13179_v18 }
 0xa3b   :  { %v13254_v2 = vmul.f32 %v18120_v5, %v13180_v7  ;;  %v13255_v45 = vmul.f32 %v18114_v32, %v13181_v31  ;;  %v13256_v16 = vmul.f32 %v18132_v44, %v13182_v37  ;;  %v13257_v48 = vmul.f32 %v18126_v34, %v13183_v53 }
 0xa3c   :  { %v13324_v42 = vadd.f32 %v18099_v10, %v13250_v61  ;;  %v13325_v47 = vadd.f32 %v18093_v46, %v13251_v38  ;;  %v13326_v57 = vadd.f32 %v18111_v27, %v13252_v33  ;;  %v13327_v39 = vadd.f32 %v18105_v58, %v13253_v1 }
 0xa3d   :  { %v13328_v4 = vadd.f32 %v18123_v28, %v13254_v2  ;;  %v13329_v36 = vadd.f32 %v18117_v62, %v13255_v45  ;;  %v13330_v30 = vadd.f32 %v18135_v26, %v13256_v16  ;;  %v13331_v59 = vadd.f32 %v18129_v51, %v13257_v48 }
 0xa3e   :  { %13356 = vst [vmem:[#allocation14 + $0x80] sm:$0xff] %v13324_v42  ;;  %13357 = vst [vmem:[#allocation14 + $0x88] sm:$0xff] %v13325_v47 }
 0xa3f   :  { %13358 = vst [vmem:[#allocation14 + $0x90] sm:$0xff] %v13326_v57  ;;  %13359 = vst [vmem:[#allocation14 + $0x98] sm:$0xff] %v13327_v39 }
 0xa40   :  { %13360 = vst [vmem:[#allocation14 + $0xa0] sm:$0xff] %v13328_v4  ;;  %13361 = vst [vmem:[#allocation14 + $0xa8] sm:$0xff] %v13329_v36 }
 0xa41   :  { %v15341_v63 = vpop.eup %15340  ;;  %13362 = vst [vmem:[#allocation14 + $0xb0] sm:$0xff] %v13330_v30  ;;  %13363 = vst [vmem:[#allocation14 + $0xb8] sm:$0xff] %v13331_v59 }
 0xa42   :  { %v13184_v9 = vmul.f32 %v15341_v63, %v18027_v43  ;;  %v13185_v6 = vmul.f32 %v15341_v63, %v18030_v12  ;;  %v13186_v55 = vmul.f32 %v15341_v63, %v18035_v3  ;;  %v13187_v15 = vmul.f32 %v15341_v63, %v18045_v14 }
 0xa43   :  { %v13188_v19 = vmul.f32 %v15341_v63, %v18057_v25  ;;  %v13189_v49 = vmul.f32 %v15341_v63, %v18067_v50  ;;  %v13190_v23 = vmul.f32 %v15341_v63, %v18074_v13  ;;  %v13191_v17 = vmul.f32 %v15341_v63, %v18081_v22 }
 0xa44   :  { %v13258_v43 = vmul.f32 %v18096_v8, %v13184_v9  ;;  %v13259_v12 = vmul.f32 %v18090_v40, %v13185_v6  ;;  %v13260_v3 = vmul.f32 %v18108_v29, %v13186_v55  ;;  %v13261_v14 = vmul.f32 %v18102_v54, %v13187_v15 }
 0xa45   :  { %v13262_v21 = vmul.f32 %v18120_v5, %v13188_v19  ;;  %v13263_v25 = vmul.f32 %v18114_v32, %v13189_v49  ;;  %v13264_v50 = vmul.f32 %v18132_v44, %v13190_v23  ;;  %v13265_v13 = vmul.f32 %v18126_v34, %v13191_v17 }
 0xa46   :  { %v13332_v22 = vadd.f32 %v18099_v10, %v13258_v43  ;;  %v13333_v8 = vadd.f32 %v18093_v46, %v13259_v12  ;;  %v13334_v40 = vadd.f32 %v18111_v27, %v13260_v3  ;;  %v13335_v29 = vadd.f32 %v18105_v58, %v13261_v14 }
 0xa47   :  { %v13336_v54 = vadd.f32 %v18123_v28, %v13262_v21  ;;  %v13337_v56 = vadd.f32 %v18117_v62, %v13263_v25  ;;  %v13338_v5 = vadd.f32 %v18135_v26, %v13264_v50  ;;  %v13339_v32 = vadd.f32 %v18129_v51, %v13265_v13 }
 0xa48   :  { %13364 = vst [vmem:[#allocation14 + $0xc0] sm:$0xff] %v13332_v22  ;;  %13365 = vst [vmem:[#allocation14 + $0xc8] sm:$0xff] %v13333_v8 }
 0xa49   :  { %13366 = vst [vmem:[#allocation14 + $0xd0] sm:$0xff] %v13334_v40  ;;  %13367 = vst [vmem:[#allocation14 + $0xd8] sm:$0xff] %v13335_v29 }
 0xa4a   :  { %13368 = vst [vmem:[#allocation14 + $0xe0] sm:$0xff] %v13336_v54  ;;  %13369 = vst [vmem:[#allocation14 + $0xe8] sm:$0xff] %v13337_v56 }
 0xa4b   :  { %13370 = vst [vmem:[#allocation14 + $0xf0] sm:$0xff] %v13338_v5  ;;  %13371 = vst [vmem:[#allocation14 + $0xf8] sm:$0xff] %v13339_v32 }
 0xa4c   :  { %15511 = shalt.err (!%p15508_p4)
}
 0xa4d   :  { %s15512_s0 = scalar_lea.hbm %s18252_s7, 4096 }
 0xa4e   :  { %p15513_p5 = scmp.ne.s32.totalorder %s18252_s7, %s15512_s0  ;;  %p15516_p6 = scmp.lt.u32.totalorder %s15512_s0, %s18252_s7 }
 0xa50   :  { %p15518_p7 = pnand %p15516_p6, %p15513_p5 }
 0xa52   :  { %15521 = shalt.err (!%p15518_p7)
}
 0xa53   :  { %s15544_s17 = smov 1024   ;;  %s15545_s18 = smov 64  }
 0xa54   :  { %13383 = dma.vmem_to_hbm [thread:$0]  %s13378_s12, 4096, %s18252_s7, [#allocation4], %s15544_s17, %s15544_s17, %s15545_s18  }
 0xa55   :  { %15530 = dma.done.wait [#allocation4], 4096  }
 0xa56   :  { %15531 = vsyncadd [#allocation4], 4294963200 }
 0xa57   :  { %13387 = vsyncpa [#allocation3], 1 }
 0xa58   :  { %13388 = vsyncpa [#allocation6], 1 }
 0xa59   :  { %13389 = vsyncpa [#allocation9], 1 }
 0xa5a   :  { %13390 = vsyncpa [#allocation12], 1 }
 0xa5b   :  { %13391 = vsyncpa [#allocation4], 1 }

</bundles_post_ra>
